<compile_context>
chip_gen: v7x
topology: tpu7x:2x2x1
jax: 0.10.0
libtpu: 0.0.40
codegen_flags: <defaults>
</compile_context>

<pallas_src>
import functools

import jax
import jax.numpy as jnp
import numpy as np
from jax.experimental import pallas as pl
from jax.experimental.pallas import tpu as pltpu

EPS = 1e-5
LANE = 128


def _round_up(x, m):
    return (x + m - 1) // m * m


# ----------------------------------------------------------------------------
# Pallas kernel: fused conv3d (+ folded-BN bias) (+ residual) (+ ReLU)
# ----------------------------------------------------------------------------
def _conv_bn_kernel(*refs, kd_taps, kh, kw, sh, sw, ho, wo, td_tile, d_off,
                    static_j, relu, res_mode, pad_out_hw):
    """One grid step = (batch i, depth-tile j).

    refs:
      x_ref : (D_slab, P, Hs, Ws, Cx)     VMEM-resident activation slab (bf16)
      w_ref : (kd_taps*kh*kw*Cx, Cout_p)  BN-scale-folded weight, taps stacked
                                          along the contraction axis (bf16)
      b_ref : (1, Cout_p)                 folded BN bias (f32)
      [xs_ref: (TD*m, Cin_ds), wd_ref: (Cin_ds, Cout_p)]   res_mode=="matmul"
      [r_ref : (TD*m, Cout_p)]                             res_mode=="add"
      o_ref : (TD, Ho(+2), Wo(+2), Cout_p)
    """
    if res_mode == "matmul":
        x_ref, w_ref, b_ref, xs_ref, wd_ref, o_ref = refs
    elif res_mode == "add":
        x_ref, w_ref, b_ref, r_ref, o_ref = refs
    else:
        x_ref, w_ref, b_ref, o_ref = refs

    d_slab = x_ref.shape[0]
    cx = x_ref.shape[-1]
    m = ho * wo
    j = 0 if static_j else pl.program_id(1)

    if pad_out_hw:
        # The conv writes its own spatial zero border -> no wrapper-side pad
        # pass over the intermediate (extra stores are VMEM-only; the block is
        # written back to HBM once).
        o_ref[...] = jnp.zeros(o_ref.shape, o_ref.dtype)

    # Build one (TD*m, kd_taps*kh*kw*Cx) patch matrix out of statically
    # unrolled window slices of the VMEM-resident slab (never touches HBM) and
    # issue a single MXU matmul per grid step.
    rows = []
    for td in range(td_tile):
        pieces = []
        for a in range(kd_taps):
            if static_j:
                dd = j * td_tile + td + a - d_off
                valid = (0 <= dd < d_slab)
                dd = min(max(dd, 0), d_slab - 1)
            else:
                dd_raw = j * td_tile + td + a - d_off
                valid = jnp.logical_and(dd_raw >= 0, dd_raw < d_slab)
                dd = jnp.clip(dd_raw, 0, d_slab - 1)
            for b in range(kh):
                for c in range(kw):
                    if valid is False:        # statically out-of-range depth tap
                        pieces.append(jnp.zeros((m, cx), x_ref.dtype))
                        continue
                    phase = (b % sh) * sw + (c % sw)
                    hoff, woff = b // sh, c // sw
                    win = x_ref[dd, phase, hoff:hoff + ho, woff:woff + wo, :]
                    if valid is not True:     # dynamically masked depth tap
                        win = jnp.where(valid, win, jnp.zeros_like(win))
                    pieces.append(win.reshape(m, cx))
        rows.append(pieces[0] if len(pieces) == 1
                    else jnp.concatenate(pieces, axis=-1))
    lhs = rows[0] if td_tile == 1 else jnp.concatenate(rows, axis=0)

    out = jnp.dot(lhs, w_ref[...], preferred_element_type=jnp.float32)
    out = out + b_ref[...]
    if res_mode == "matmul":
        # fused strided 1x1x1 downsample conv (+ its BN, folded into wd / bias)
        out = out + jnp.dot(xs_ref[...], wd_ref[...],
                            preferred_element_type=jnp.float32)
    elif res_mode == "add":
        out = out + r_ref[...].astype(jnp.float32)
    if relu:
        out = jnp.maximum(out, 0.0)
    out = out.astype(o_ref.dtype).reshape(td_tile, ho, wo, -1)

    if pad_out_hw:
        o_ref[:, 1:1 + ho, 1:1 + wo, :] = out
    else:
        o_ref[...] = out


# ----------------------------------------------------------------------------
# pallas_call wrapper
# ----------------------------------------------------------------------------
def _pick_td(d_out, m, k_cat, cout_p, budget=6 * 1024 * 1024):
    """Largest divisor of d_out whose per-step patch matrix + f32 result fit."""
    best = 1
    for cand in range(1, d_out + 1):
        if d_out % cand:
            continue
        per_step = cand * m * (k_cat * 2 + cout_p * 4)
        if per_step <= budget:
            best = cand
    return best


def _vmem_limit(need_bytes):
    cap = 128 * 1024 * 1024
    try:
        info = pltpu.get_tpu_info()
        cap = int(getattr(info, "vmem_capacity_bytes", cap) or cap)
    except Exception:
        pass
    return int(min(max(2 * need_bytes, 32 * 1024 * 1024), (cap * 7) // 10))


def _fused_conv_bn(x6, w_cat, bias, *, kd_taps, kh, kw, sh, sw, ho, wo, d_out,
                   d_off, relu, pad_out_hw, out_dtype,
                   res_mode=None, res_args=()):
    """x6   : (N, D_slab, P, Hs, Ws, Cx)  activation (bf16)
       w_cat: (kd_taps*kh*kw*Cx, Cout_p)  folded weight
       bias : (1, Cout_p) f32
       out  : (N, d_out, Ho(+2), Wo(+2), Cout_p)"""
    n_b, d_slab, phases, hs, ws, cx = x6.shape
    cout_p = w_cat.shape[-1]
    m = ho * wo
    td = _pick_td(d_out, m, w_cat.shape[0], cout_p)
    dt = d_out // td
    static_j = dt == 1

    kernel = functools.partial(
        _conv_bn_kernel, kd_taps=kd_taps, kh=kh, kw=kw, sh=sh, sw=sw, ho=ho,
        wo=wo, td_tile=td, d_off=d_off, static_j=static_j, relu=relu,
        res_mode=res_mode, pad_out_hw=pad_out_hw)

    in_specs = [
        # Full per-batch slab; block index independent of the depth-tile axis
        # -> DMA'd once per batch (no kd-times HBM re-read), taps gathered
        # in-kernel from VMEM.
        pl.BlockSpec((None, d_slab, phases, hs, ws, cx),
                     lambda i, j: (i, 0, 0, 0, 0, 0)),
        # Whole weight stays VMEM-resident (constant block index).
        # TODO(synk): pipeline_mode=pl.Buffered(1) + a Cout tile grid axis for
        # very large channel counts on v7x (64 MiB VMEM/TC).
        pl.BlockSpec(w_cat.shape, lambda i, j: (0, 0)),
        pl.BlockSpec(bias.shape, lambda i, j: (0, 0)),
    ]
    args = [x6, w_cat, bias]
    if res_mode == "matmul":
        xs, wd = res_args
        in_specs += [pl.BlockSpec((None, td * m, xs.shape[-1]),
                                  lambda i, j: (i, j, 0)),
                     pl.BlockSpec(wd.shape, lambda i, j: (0, 0))]
        args += [xs, wd]
    elif res_mode == "add":
        (res,) = res_args
        in_specs.append(pl.BlockSpec((None, td * m, cout_p),
                                     lambda i, j: (i, j, 0)))
        args.append(res)

    ho_o = ho + 2 if pad_out_hw else ho
    wo_o = wo + 2 if pad_out_hw else wo
    out_shape = jax.ShapeDtypeStruct((n_b, d_out, ho_o, wo_o, cout_p), out_dtype)
    out_spec = pl.BlockSpec((None, td, ho_o, wo_o, cout_p),
                            lambda i, j: (i, j, 0, 0, 0))

    k_cat = w_cat.shape[0]
    out_itemsize = np.dtype(out_dtype).itemsize
    flops = 2 * n_b * d_out * m * k_cat * cout_p
    if res_mode == "matmul":
        flops += 2 * n_b * d_out * m * res_args[0].shape[-1] * cout_p
    bytes_accessed = sum(int(np.prod(a.shape)) * a.dtype.itemsize for a in args)
    bytes_accessed += int(np.prod(out_shape.shape)) * out_itemsize

    # VMEM budget from actual block footprints (double buffered) plus the
    # in-kernel patch matrix / f32 matmul result.
    need = (2 * int(np.prod(x6.shape[1:])) * x6.dtype.itemsize
            + 2 * int(np.prod(w_cat.shape)) * w_cat.dtype.itemsize
            + 2 * int(np.prod(bias.shape)) * bias.dtype.itemsize
            + 2 * td * ho_o * wo_o * cout_p * out_itemsize
            + td * m * k_cat * x6.dtype.itemsize
            + 2 * td * m * cout_p * 4)
    if res_mode == "matmul":
        xs, wd = res_args
        need += 2 * td * m * xs.shape[-1] * xs.dtype.itemsize
        need += 2 * int(np.prod(wd.shape)) * wd.dtype.itemsize
    elif res_mode == "add":
        need += 2 * td * m * cout_p * res_args[0].dtype.itemsize

    return pl.pallas_call(
        kernel,
        out_shape=out_shape,
        grid_spec=pltpu.PrefetchScalarGridSpec(
            num_scalar_prefetch=0,
            grid=(n_b, dt),
            in_specs=in_specs,
            out_specs=out_spec,
        ),
        compiler_params=pltpu.CompilerParams(
            dimension_semantics=("parallel", "parallel"),
            vmem_limit_bytes=_vmem_limit(need),
        ),
        cost_estimate=pl.CostEstimate(flops=int(flops), transcendentals=0,
                                      bytes_accessed=int(bytes_accessed)),
    )(*args)


# ----------------------------------------------------------------------------
# Wrapper-side glue (pure layout plumbing: pad / pack / weight folding)
# ----------------------------------------------------------------------------
def _phase_split(xp, sh, sw):
    """(N, D, Hp, Wp, C) -> (N, D, sh*sw, ceil(Hp/sh), ceil(Wp/sw), C) so every
    (kh, kw) tap window becomes a contiguous static slice inside the kernel,
    even for spatially strided convs.  (Used for the large-Cin conv1 path.)"""
    n, d, hp, wp, c = xp.shape
    hs, ws = -(-hp // sh), -(-wp // sw)
    xp = jnp.pad(xp, ((0, 0), (0, 0), (0, hs * sh - hp), (0, ws * sw - wp), (0, 0)))
    xp = xp.reshape(n, d, hs, sh, ws, sw, c)
    xp = jnp.transpose(xp, (0, 1, 3, 5, 2, 4, 6))
    return xp.reshape(n, d, sh * sw, hs, ws, c)


def _extract_patches(x, kd, kh, kw, sh, sw, d_out, h_out, w_out):
    """3x3x3, stride (1, sh, sw), pad 1 patch packing along the channel axis.
    Only used when Cin is tiny, so the kd*kh*kw-fold expansion is cheap."""
    xp = jnp.pad(x, ((0, 0), (1, 1), (1, 1), (1, 1), (0, 0)))
    pieces = []
    for a in range(kd):
        for b in range(kh):
            for c in range(kw):
                pieces.append(xp[:, a:a + d_out,
                                 b:b + (h_out - 1) * sh + 1:sh,
                                 c:c + (w_out - 1) * sw + 1:sw, :])
    return jnp.concatenate(pieces, axis=-1)


def _prep_weight(w_oidhw, scale, *, cout_pad_to, dtype, cin_pad_to=None,
                 flat_pad_to=None):
    """(Cout, Cin, kD, kH, kW) -> (K, Cout_p) with the BN scale folded in (f32);
    rows ordered (kd, kh, kw, cin) to match the kernel's tap-concat order.
    flat_pad_to: pad the flattened K once at the end (packed-patch conv1).
    cin_pad_to : pad cin per tap (kernel gathers taps from Cin_p-wide slabs)."""
    cout, cin, kdd, khh, kww = w_oidhw.shape
    w = w_oidhw.astype(jnp.float32) * scale[:, None, None, None, None]
    w = jnp.transpose(w, (2, 3, 4, 1, 0))                # (kd, kh, kw, cin, cout)
    if flat_pad_to is not None:
        w = w.reshape(kdd * khh * kww * cin, cout)
        w = jnp.pad(w, ((0, flat_pad_to - w.shape[0]), (0, cout_pad_to - cout)))
    else:
        w = jnp.pad(w, ((0, 0), (0, 0), (0, 0),
                        (0, cin_pad_to - cin), (0, cout_pad_to - cout)))
        w = w.reshape(kdd * khh * kww * cin_pad_to, cout_pad_to)
    return w.astype(dtype)


def _pad_vec(v, n):
    return jnp.pad(v.astype(jnp.float32), (0, n - v.shape[0])).reshape(1, n)


def fold_bn(bn):
    scale = bn["gamma"] / jnp.sqrt(bn["var"] + EPS)
    bias = bn["beta"] - bn["mean"] * scale
    return scale, bias


# ----------------------------------------------------------------------------
# BasicResBlock_3D forward (Pallas)
# ----------------------------------------------------------------------------
def basic_res_block_3d(x_ncdhw, params, stride, *, compute_dtype=jnp.bfloat16):
    x = jnp.transpose(x_ncdhw, (0, 2, 3, 4, 1)).astype(jnp.float32)   # NDHWC
    N, D, H, W, Cin = x.shape
    Cout = params["w1"].shape[0]
    Cout_p = _round_up(Cout, LANE)            # lane-dense output channels

    s1, b1 = fold_bn(params["bn1"])
    s2, b2 = fold_bn(params["bn2"])

    kd = kh = kw = 3
    sh = sw = int(stride)
    Do = D                                    # temporal stride 1, k 3, pad 1
    Ho = (H + 2 - kh) // sh + 1
    Wo = (W + 2 - kw) // sw + 1
    m = Ho * Wo

    # ---- conv1: 3x3x3, stride (1, s, s), pad 1 -> bn1 -> relu ----
    if kd * kh * kw * Cin <= 256:
        # Tiny Cin: pack all 27 taps into the channel axis on the wrapper side
        # (cheap), so conv1 is a single lane-aligned K matmul instead of K=Cin.
        kpk = kd * kh * kw * Cin
        kpk_p = _round_up(kpk, LANE)
        x1 = _extract_patches(x, kd, kh, kw, sh, sw, Do, Ho, Wo)
        x1 = jnp.pad(x1, ((0, 0),) * 4 + ((0, kpk_p - kpk),))
        x1 = x1.reshape(N, Do, 1, Ho, Wo, kpk_p).astype(compute_dtype)
        w1 = _prep_weight(params["w1"], s1, cout_pad_to=Cout_p,
                          dtype=compute_dtype, flat_pad_to=kpk_p)
        c1 = dict(kd_taps=1, kh=1, kw=1, sh=1, sw=1, d_off=0)
    else:
        # Larger Cin: stream the raw activation (spatially padded, phase split);
        # the kernel gathers the 27 taps from the VMEM-resident slab and masks
        # the depth-boundary taps (no depth-pad HBM pass).
        cin_p = _round_up(Cin, 8)
        x1 = jnp.pad(x, ((0, 0), (0, 0), (1, 1), (1, 1), (0, cin_p - Cin)))
        x1 = _phase_split(x1, sh, sw).astype(compute_dtype)
        w1 = _prep_weight(params["w1"], s1, cin_pad_to=cin_p,
                          cout_pad_to=Cout_p, dtype=compute_dtype)
        c1 = dict(kd_taps=kd, kh=kh, kw=kw, sh=sh, sw=sw, d_off=1)

    o1 = _fused_conv_bn(
        x1, w1, _pad_vec(b1, Cout_p), ho=Ho, wo=Wo, d_out=Do, relu=True,
        pad_out_hw=True, out_dtype=compute_dtype, **c1)
    # o1: (N, Do, Ho+2, Wo+2, Cout_p) bf16 -- spatial zero border written by
    # the kernel, padded channels stay exactly zero.

    # ---- identity path (fused into the conv2 kernel epilogue) ----
    if stride != 1:
        sd, bd = fold_bn(params["bnd"])
        cin_ds = _round_up(Cin, 8)
        xs = jnp.pad(x, ((0, 0),) * 4 + ((0, cin_ds - Cin),))
        xs = xs[:, :, ::sh, ::sw, :][:, :, :Ho, :Wo, :]      # (N, Do, Ho, Wo, cin_ds)
        xs = xs.reshape(N, Do * m, cin_ds).astype(compute_dtype)
        wd = params["wd"].reshape(Cout, Cin) * sd[:, None]    # fold BN-d scale
        wd = jnp.pad(jnp.transpose(wd),
                     ((0, cin_ds - Cin), (0, Cout_p - Cout))).astype(compute_dtype)
        bias2 = _pad_vec(b2 + bd, Cout_p)                     # fold BN-d bias
        res_mode, res_args = "matmul", (xs, wd)
    else:
        if Cin != Cout:
            raise ValueError("stride==1 requires in_channels == out_channels "
                             "(same contract as the PyTorch module).")
        res = jnp.pad(x, ((0, 0),) * 4 + ((0, Cout_p - Cin),))
        res = res.reshape(N, Do * m, Cout_p).astype(compute_dtype)
        bias2 = _pad_vec(b2, Cout_p)
        res_mode, res_args = "add", (res,)

    # ---- conv2: 3x3x3, stride 1, pad 1 -> bn2 -> (+identity) -> relu ----
    x2 = o1.reshape(N, Do, 1, Ho + 2, Wo + 2, Cout_p)          # free unit-dim reshape
    w2 = _prep_weight(params["w2"], s2, cin_pad_to=Cout_p, cout_pad_to=Cout_p,
                      dtype=compute_dtype)
    out = _fused_conv_bn(
        x2, w2, bias2, kd_taps=3, kh=3, kw=3, sh=1, sw=1, ho=Ho, wo=Wo,
        d_out=Do, d_off=1, relu=True, pad_out_hw=False, out_dtype=jnp.float32,
        res_mode=res_mode, res_args=res_args)

    out = out[..., :Cout]                                      # (N, Do, Ho, Wo, Cout)
    return jnp.transpose(out, (0, 4, 1, 2, 3))                 # back to NCDHW


# ----------------------------------------------------------------------------
# Pure-JAX f32 reference (PyTorch semantics) for correctness check
# ----------------------------------------------------------------------------
def _conv3d_ref(x_ndhwc, w_oidhw, stride, padding):
    w_dhwio = jnp.transpose(w_oidhw, (2, 3, 4, 1, 0))
    return jax.lax.conv_general_dilated(
        x_ndhwc, w_dhwio, window_strides=stride,
        padding=[(p, p) for p in padding],
        dimension_numbers=("NDHWC", "DHWIO", "NDHWC"))


def ref_forward(x_ncdhw, params, stride):
    x = jnp.transpose(x_ncdhw, (0, 2, 3, 4, 1))

    def bn(y, p):
        s = p["gamma"] / jnp.sqrt(p["var"] + EPS)
        return y * s + (p["beta"] - p["mean"] * s)

    o = _conv3d_ref(x, params["w1"], (1, stride, stride), (1, 1, 1))
    o = jnp.maximum(bn(o, params["bn1"]), 0.0)
    o = _conv3d_ref(o, params["w2"], (1, 1, 1), (1, 1, 1))
    o = bn(o, params["bn2"])
    if stride != 1:
        idn = bn(_conv3d_ref(x, params["wd"], (1, stride, stride), (0, 0, 0)),
                 params["bnd"])
    else:
        idn = x
    o = jnp.maximum(o + idn, 0.0)
    return jnp.transpose(o, (0, 4, 1, 2, 3))


# ----------------------------------------------------------------------------
# Main
# ----------------------------------------------------------------------------
def _make_bn(key, c):
    k1, k2, k3, k4 = jax.random.split(key, 4)
    return {
        "gamma": 1.0 + 0.1 * jax.random.normal(k1, (c,), jnp.float32),
        "beta": 0.1 * jax.random.normal(k2, (c,), jnp.float32),
        "mean": 0.1 * jax.random.normal(k3, (c,), jnp.float32),
        "var": jax.random.uniform(k4, (c,), jnp.float32, 0.5, 1.5),
    }


if __name__ == "__main__":
    key = jax.random.PRNGKey(0)
    ks = jax.random.split(key, 8)

    in_channels, out_channels, stride = 4, 8, 2
    N, D, H, W = 2, 4, 16, 16

    params = {
        "w1": 0.1 * jax.random.normal(ks[0], (out_channels, in_channels, 3, 3, 3), jnp.float32),
        "w2": 0.1 * jax.random.normal(ks[1], (out_channels, out_channels, 3, 3, 3), jnp.float32),
        "wd": 0.1 * jax.random.normal(ks[2], (out_channels, in_channels, 1, 1, 1), jnp.float32),
        "bn1": _make_bn(ks[3], out_channels),
        "bn2": _make_bn(ks[4], out_channels),
        "bnd": _make_bn(ks[5], out_channels),
    }
    x = jax.random.normal(ks[6], (N, in_channels, D, H, W), jnp.float32)

    fwd = jax.jit(lambda xx, pp: basic_res_block_3d(xx, pp, stride))
    out = jax.block_until_ready(fwd(x, params))

    ref = jax.block_until_ready(ref_forward(x, params, stride))
    assert out.shape == (N, out_channels, D, H // stride, W // stride), out.shape
    # Tolerance sized for bf16 MXU operands (f32 accumulation) against the pure
    # f32 reference: two chained convs with K up to 27*Cout quantized terms.
    np.testing.assert_allclose(np.asarray(out), np.asarray(ref), rtol=3e-2, atol=3e-2)

    print("KERNEL_OK")
</pallas_src>

<mosaic_0001>
module attributes {stable_mosaic.version = 11 : i64} {
  func.func @_conv_bn_kernel(%arg0: i32, %arg1: i32, %arg2: memref<1x4x1x8x8x128xbf16, #tpu.memory_space<vmem>>, %arg3: memref<128x128xbf16, #tpu.memory_space<vmem>>, %arg4: memref<1x128xf32, #tpu.memory_space<vmem>>, %arg5: memref<1x4x10x10x128xbf16, #tpu.memory_space<vmem>>) attributes {dimension_semantics = [#tpu.dimension_semantics<parallel>, #tpu.dimension_semantics<parallel>], iteration_bounds = array<i64: 2, 1>, scalar_prefetch = 0 : i64, scratch_operands = 0 : i64, tpu.core_type = #tpu.core_type<tc>, window_params = [{transform_indices = @transform_0, window_bounds = array<i64: 1, 4, 1, 8, 8, 128>}, {pipeline_mode = #tpu.pipeline_mode<synchronous>, transform_indices = @transform_1, window_bounds = array<i64: 128, 128>}, {pipeline_mode = #tpu.pipeline_mode<synchronous>, transform_indices = @transform_2, window_bounds = array<i64: 1, 128>}, {transform_indices = @transform_3, window_bounds = array<i64: 1, 4, 10, 10, 128>}]} {
    %cst = arith.constant 0.000000e+00 : bf16
    %0 = vector.broadcast %cst : bf16 to vector<4x10x10x128xbf16>
    %c0 = arith.constant 0 : index
    %c0_0 = arith.constant 0 : index
    %c0_1 = arith.constant 0 : index
    %c0_2 = arith.constant 0 : index
    %c0_3 = arith.constant 0 : index
    %1 = vector.load %arg5[%c0, %c0_0, %c0_1, %c0_2, %c0_3] : memref<1x4x10x10x128xbf16, #tpu.memory_space<vmem>>, vector<1x4x10x10x128xbf16>
    %2 = vector.shape_cast %1 : vector<1x4x10x10x128xbf16> to vector<4x10x10x128xbf16>
    %3 = vector.shape_cast %0 : vector<4x10x10x128xbf16> to vector<1x4x10x10x128xbf16>
    tpu.vector_store %arg5[%c0, %c0_0, %c0_1, %c0_2, %c0_3], %3 {strides = array<i32>} : memref<1x4x10x10x128xbf16, #tpu.memory_space<vmem>>, vector<1x4x10x10x128xbf16>,
    %c0_4 = arith.constant 0 : index
    %c0_5 = arith.constant 0 : index
    %c0_6 = arith.constant 0 : index
    %c0_7 = arith.constant 0 : index
    %c0_8 = arith.constant 0 : index
    %c0_9 = arith.constant 0 : index
    %4 = vector.load %arg2[%c0_4, %c0_5, %c0_6, %c0_7, %c0_8, %c0_9] : memref<1x4x1x8x8x128xbf16, #tpu.memory_space<vmem>>, vector<1x1x1x8x8x128xbf16>
    %5 = vector.shape_cast %4 : vector<1x1x1x8x8x128xbf16> to vector<8x8x128xbf16>
    %6 = vector.shape_cast %5 : vector<8x8x128xbf16> to vector<64x128xbf16>
    %c0_10 = arith.constant 0 : index
    %c1 = arith.constant 1 : index
    %c0_11 = arith.constant 0 : index
    %c0_12 = arith.constant 0 : index
    %c0_13 = arith.constant 0 : index
    %c0_14 = arith.constant 0 : index
    %7 = vector.load %arg2[%c0_10, %c1, %c0_11, %c0_12, %c0_13, %c0_14] : memref<1x4x1x8x8x128xbf16, #tpu.memory_space<vmem>>, vector<1x1x1x8x8x128xbf16>
    %8 = vector.shape_cast %7 : vector<1x1x1x8x8x128xbf16> to vector<8x8x128xbf16>
    %9 = vector.shape_cast %8 : vector<8x8x128xbf16> to vector<64x128xbf16>
    %c0_15 = arith.constant 0 : index
    %c2 = arith.constant 2 : index
    %c0_16 = arith.constant 0 : index
    %c0_17 = arith.constant 0 : index
    %c0_18 = arith.constant 0 : index
    %c0_19 = arith.constant 0 : index
    %10 = vector.load %arg2[%c0_15, %c2, %c0_16, %c0_17, %c0_18, %c0_19] : memref<1x4x1x8x8x128xbf16, #tpu.memory_space<vmem>>, vector<1x1x1x8x8x128xbf16>
    %11 = vector.shape_cast %10 : vector<1x1x1x8x8x128xbf16> to vector<8x8x128xbf16>
    %12 = vector.shape_cast %11 : vector<8x8x128xbf16> to vector<64x128xbf16>
    %c0_20 = arith.constant 0 : index
    %c3 = arith.constant 3 : index
    %c0_21 = arith.constant 0 : index
    %c0_22 = arith.constant 0 : index
    %c0_23 = arith.constant 0 : index
    %c0_24 = arith.constant 0 : index
    %13 = vector.load %arg2[%c0_20, %c3, %c0_21, %c0_22, %c0_23, %c0_24] : memref<1x4x1x8x8x128xbf16, #tpu.memory_space<vmem>>, vector<1x1x1x8x8x128xbf16>
    %14 = vector.shape_cast %13 : vector<1x1x1x8x8x128xbf16> to vector<8x8x128xbf16>
    %15 = vector.shape_cast %14 : vector<8x8x128xbf16> to vector<64x128xbf16>
    %16 = tpu.concatenate %6, %9, %12, %15 in 0 : vector<64x128xbf16>, vector<64x128xbf16>, vector<64x128xbf16>, vector<64x128xbf16> -> vector<256x128xbf16>
    %c0_25 = arith.constant 0 : index
    %c0_26 = arith.constant 0 : index
    %17 = vector.load %arg3[%c0_25, %c0_26] : memref<128x128xbf16, #tpu.memory_space<vmem>>, vector<128x128xbf16>
    %cst_27 = arith.constant dense<0.000000e+00> : vector<256x128xf32>
    %18 = tpu.matmul %16, %17, %cst_27 {dimension_numbers = #tpu.dot_dimension_numbers<[1], [0], [0], [1], [0, 0, 1, 1], [], []>} : vector<256x128xbf16>, vector<128x128xbf16>, vector<256x128xf32> -> vector<256x128xf32>
    %c0_28 = arith.constant 0 : index
    %c0_29 = arith.constant 0 : index
    %19 = vector.load %arg4[%c0_28, %c0_29] : memref<1x128xf32, #tpu.memory_space<vmem>>, vector<1x128xf32>
    %20 = vector.broadcast %19 : vector<1x128xf32> to vector<256x128xf32>
    %21 = arith.addf %18, %20 : vector<256x128xf32>
    %cst_30 = arith.constant 0.000000e+00 : f32
    %22 = vector.broadcast %cst_30 : f32 to vector<256x128xf32>
    %23 = arith.maximumf %21, %22 : vector<256x128xf32>
    %24 = arith.truncf %23 : vector<256x128xf32> to vector<256x128xbf16>
    %25 = vector.shape_cast %24 : vector<256x128xbf16> to vector<4x8x8x128xbf16>
    %c0_31 = arith.constant 0 : index
    %c0_32 = arith.constant 0 : index
    %c1_33 = arith.constant 1 : index
    %c1_34 = arith.constant 1 : index
    %c0_35 = arith.constant 0 : index
    %26 = vector.load %arg5[%c0_31, %c0_32, %c1_33, %c1_34, %c0_35] : memref<1x4x10x10x128xbf16, #tpu.memory_space<vmem>>, vector<1x4x8x8x128xbf16>
    %27 = vector.shape_cast %26 : vector<1x4x8x8x128xbf16> to vector<4x8x8x128xbf16>
    %28 = vector.shape_cast %25 : vector<4x8x8x128xbf16> to vector<1x4x8x8x128xbf16>
    tpu.vector_store %arg5[%c0_31, %c0_32, %c1_33, %c1_34, %c0_35], %28 {strides = array<i32>} : memref<1x4x10x10x128xbf16, #tpu.memory_space<vmem>>, vector<1x4x8x8x128xbf16>,
    return
  }
  func.func @transform_0(%arg0: i32, %arg1: i32) -> (i32, i32, i32, i32, i32, i32) {
    %c0_i32 = arith.constant 0 : i32
    %c0_i32_0 = arith.constant 0 : i32
    %c0_i32_1 = arith.constant 0 : i32
    %c0_i32_2 = arith.constant 0 : i32
    %c0_i32_3 = arith.constant 0 : i32
    %c0_i32_4 = arith.constant 0 : i32
    return %arg0, %c0_i32, %c0_i32_0, %c0_i32_1, %c0_i32_2, %c0_i32_3 : i32, i32, i32, i32, i32, i32
  }
  func.func @transform_1(%arg0: i32, %arg1: i32) -> (i32, i32) {
    %c0_i32 = arith.constant 0 : i32
    %c0_i32_0 = arith.constant 0 : i32
    %c0_i32_1 = arith.constant 0 : i32
    return %c0_i32, %c0_i32_0 : i32, i32
  }
  func.func @transform_2(%arg0: i32, %arg1: i32) -> (i32, i32) {
    %c0_i32 = arith.constant 0 : i32
    %c0_i32_0 = arith.constant 0 : i32
    %c0_i32_1 = arith.constant 0 : i32
    return %c0_i32, %c0_i32_0 : i32, i32
  }
  func.func @transform_3(%arg0: i32, %arg1: i32) -> (i32, i32, i32, i32, i32) {
    %c0_i32 = arith.constant 0 : i32
    %c0_i32_0 = arith.constant 0 : i32
    %c0_i32_1 = arith.constant 0 : i32
    %c0_i32_2 = arith.constant 0 : i32
    return %arg0, %arg1, %c0_i32, %c0_i32_0, %c0_i32_1 : i32, i32, i32, i32, i32
  }
}

module attributes {stable_mosaic.version = 11 : i64} {
  func.func @_conv_bn_kernel(%arg0: i32, %arg1: i32, %arg2: memref<1x4x1x10x10x128xbf16, #tpu.memory_space<vmem>>, %arg3: memref<3456x128xbf16, #tpu.memory_space<vmem>>, %arg4: memref<1x128xf32, #tpu.memory_space<vmem>>, %arg5: memref<1x256x8xbf16, #tpu.memory_space<vmem>>, %arg6: memref<8x128xbf16, #tpu.memory_space<vmem>>, %arg7: memref<1x4x8x8x128xf32, #tpu.memory_space<vmem>>) attributes {dimension_semantics = [#tpu.dimension_semantics<parallel>, #tpu.dimension_semantics<parallel>], iteration_bounds = array<i64: 2, 1>, scalar_prefetch = 0 : i64, scratch_operands = 0 : i64, tpu.core_type = #tpu.core_type<tc>, window_params = [{transform_indices = @transform_0, window_bounds = array<i64: 1, 4, 1, 10, 10, 128>}, {pipeline_mode = #tpu.pipeline_mode<synchronous>, transform_indices = @transform_1, window_bounds = array<i64: 3456, 128>}, {pipeline_mode = #tpu.pipeline_mode<synchronous>, transform_indices = @transform_2, window_bounds = array<i64: 1, 128>}, {transform_indices = @transform_3, window_bounds = array<i64: 1, 256, 8>}, {pipeline_mode = #tpu.pipeline_mode<synchronous>, transform_indices = @transform_4, window_bounds = array<i64: 8, 128>}, {transform_indices = @transform_5, window_bounds = array<i64: 1, 4, 8, 8, 128>}]} {
    %cst = arith.constant 0.000000e+00 : bf16
    %0 = vector.broadcast %cst : bf16 to vector<64x128xbf16>
    %cst_0 = arith.constant 0.000000e+00 : bf16
    %1 = vector.broadcast %cst_0 : bf16 to vector<64x128xbf16>
    %cst_1 = arith.constant 0.000000e+00 : bf16
    %2 = vector.broadcast %cst_1 : bf16 to vector<64x128xbf16>
    %cst_2 = arith.constant 0.000000e+00 : bf16
    %3 = vector.broadcast %cst_2 : bf16 to vector<64x128xbf16>
    %cst_3 = arith.constant 0.000000e+00 : bf16
    %4 = vector.broadcast %cst_3 : bf16 to vector<64x128xbf16>
    %cst_4 = arith.constant 0.000000e+00 : bf16
    %5 = vector.broadcast %cst_4 : bf16 to vector<64x128xbf16>
    %cst_5 = arith.constant 0.000000e+00 : bf16
    %6 = vector.broadcast %cst_5 : bf16 to vector<64x128xbf16>
    %cst_6 = arith.constant 0.000000e+00 : bf16
    %7 = vector.broadcast %cst_6 : bf16 to vector<64x128xbf16>
    %cst_7 = arith.constant 0.000000e+00 : bf16
    %8 = vector.broadcast %cst_7 : bf16 to vector<64x128xbf16>
    %c0 = arith.constant 0 : index
    %c0_8 = arith.constant 0 : index
    %c0_9 = arith.constant 0 : index
    %c0_10 = arith.constant 0 : index
    %c0_11 = arith.constant 0 : index
    %c0_12 = arith.constant 0 : index
    %9 = vector.load %arg2[%c0, %c0_8, %c0_9, %c0_10, %c0_11, %c0_12] : memref<1x4x1x10x10x128xbf16, #tpu.memory_space<vmem>>, vector<1x1x1x8x8x128xbf16>
    %10 = vector.shape_cast %9 : vector<1x1x1x8x8x128xbf16> to vector<8x8x128xbf16>
    %11 = vector.shape_cast %10 : vector<8x8x128xbf16> to vector<64x128xbf16>
    %c0_13 = arith.constant 0 : index
    %c0_14 = arith.constant 0 : index
    %c0_15 = arith.constant 0 : index
    %c0_16 = arith.constant 0 : index
    %c1 = arith.constant 1 : index
    %c0_17 = arith.constant 0 : index
    %12 = vector.load %arg2[%c0_13, %c0_14, %c0_15, %c0_16, %c1, %c0_17] : memref<1x4x1x10x10x128xbf16, #tpu.memory_space<vmem>>, vector<1x1x1x8x8x128xbf16>
    %13 = vector.shape_cast %12 : vector<1x1x1x8x8x128xbf16> to vector<8x8x128xbf16>
    %14 = vector.shape_cast %13 : vector<8x8x128xbf16> to vector<64x128xbf16>
    %c0_18 = arith.constant 0 : index
    %c0_19 = arith.constant 0 : index
    %c0_20 = arith.constant 0 : index
    %c0_21 = arith.constant 0 : index
    %c2 = arith.constant 2 : index
    %c0_22 = arith.constant 0 : index
    %15 = vector.load %arg2[%c0_18, %c0_19, %c0_20, %c0_21, %c2, %c0_22] : memref<1x4x1x10x10x128xbf16, #tpu.memory_space<vmem>>, vector<1x1x1x8x8x128xbf16>
    %16 = vector.shape_cast %15 : vector<1x1x1x8x8x128xbf16> to vector<8x8x128xbf16>
    %17 = vector.shape_cast %16 : vector<8x8x128xbf16> to vector<64x128xbf16>
    %c0_23 = arith.constant 0 : index
    %c0_24 = arith.constant 0 : index
    %c0_25 = arith.constant 0 : index
    %c1_26 = arith.constant 1 : index
    %c0_27 = arith.constant 0 : index
    %c0_28 = arith.constant 0 : index
    %18 = vector.load %arg2[%c0_23, %c0_24, %c0_25, %c1_26, %c0_27, %c0_28] : memref<1x4x1x10x10x128xbf16, #tpu.memory_space<vmem>>, vector<1x1x1x8x8x128xbf16>
    %19 = vector.shape_cast %18 : vector<1x1x1x8x8x128xbf16> to vector<8x8x128xbf16>
    %20 = vector.shape_cast %19 : vector<8x8x128xbf16> to vector<64x128xbf16>
    %c0_29 = arith.constant 0 : index
    %c0_30 = arith.constant 0 : index
    %c0_31 = arith.constant 0 : index
    %c1_32 = arith.constant 1 : index
    %c1_33 = arith.constant 1 : index
    %c0_34 = arith.constant 0 : index
    %21 = vector.load %arg2[%c0_29, %c0_30, %c0_31, %c1_32, %c1_33, %c0_34] : memref<1x4x1x10x10x128xbf16, #tpu.memory_space<vmem>>, vector<1x1x1x8x8x128xbf16>
    %22 = vector.shape_cast %21 : vector<1x1x1x8x8x128xbf16> to vector<8x8x128xbf16>
    %23 = vector.shape_cast %22 : vector<8x8x128xbf16> to vector<64x128xbf16>
    %c0_35 = arith.constant 0 : index
    %c0_36 = arith.constant 0 : index
    %c0_37 = arith.constant 0 : index
    %c1_38 = arith.constant 1 : index
    %c2_39 = arith.constant 2 : index
    %c0_40 = arith.constant 0 : index
    %24 = vector.load %arg2[%c0_35, %c0_36, %c0_37, %c1_38, %c2_39, %c0_40] : memref<1x4x1x10x10x128xbf16, #tpu.memory_space<vmem>>, vector<1x1x1x8x8x128xbf16>
    %25 = vector.shape_cast %24 : vector<1x1x1x8x8x128xbf16> to vector<8x8x128xbf16>
    %26 = vector.shape_cast %25 : vector<8x8x128xbf16> to vector<64x128xbf16>
    %c0_41 = arith.constant 0 : index
    %c0_42 = arith.constant 0 : index
    %c0_43 = arith.constant 0 : index
    %c2_44 = arith.constant 2 : index
    %c0_45 = arith.constant 0 : index
    %c0_46 = arith.constant 0 : index
    %27 = vector.load %arg2[%c0_41, %c0_42, %c0_43, %c2_44, %c0_45, %c0_46] : memref<1x4x1x10x10x128xbf16, #tpu.memory_space<vmem>>, vector<1x1x1x8x8x128xbf16>
    %28 = vector.shape_cast %27 : vector<1x1x1x8x8x128xbf16> to vector<8x8x128xbf16>
    %29 = vector.shape_cast %28 : vector<8x8x128xbf16> to vector<64x128xbf16>
    %c0_47 = arith.constant 0 : index
    %c0_48 = arith.constant 0 : index
    %c0_49 = arith.constant 0 : index
    %c2_50 = arith.constant 2 : index
    %c1_51 = arith.constant 1 : index
    %c0_52 = arith.constant 0 : index
    %30 = vector.load %arg2[%c0_47, %c0_48, %c0_49, %c2_50, %c1_51, %c0_52] : memref<1x4x1x10x10x128xbf16, #tpu.memory_space<vmem>>, vector<1x1x1x8x8x128xbf16>
    %31 = vector.shape_cast %30 : vector<1x1x1x8x8x128xbf16> to vector<8x8x128xbf16>
    %32 = vector.shape_cast %31 : vector<8x8x128xbf16> to vector<64x128xbf16>
    %c0_53 = arith.constant 0 : index
    %c0_54 = arith.constant 0 : index
    %c0_55 = arith.constant 0 : index
    %c2_56 = arith.constant 2 : index
    %c2_57 = arith.constant 2 : index
    %c0_58 = arith.constant 0 : index
    %33 = vector.load %arg2[%c0_53, %c0_54, %c0_55, %c2_56, %c2_57, %c0_58] : memref<1x4x1x10x10x128xbf16, #tpu.memory_space<vmem>>, vector<1x1x1x8x8x128xbf16>
    %34 = vector.shape_cast %33 : vector<1x1x1x8x8x128xbf16> to vector<8x8x128xbf16>
    %35 = vector.shape_cast %34 : vector<8x8x128xbf16> to vector<64x128xbf16>
    %c0_59 = arith.constant 0 : index
    %c1_60 = arith.constant 1 : index
    %c0_61 = arith.constant 0 : index
    %c0_62 = arith.constant 0 : index
    %c0_63 = arith.constant 0 : index
    %c0_64 = arith.constant 0 : index
    %36 = vector.load %arg2[%c0_59, %c1_60, %c0_61, %c0_62, %c0_63, %c0_64] : memref<1x4x1x10x10x128xbf16, #tpu.memory_space<vmem>>, vector<1x1x1x8x8x128xbf16>
    %37 = vector.shape_cast %36 : vector<1x1x1x8x8x128xbf16> to vector<8x8x128xbf16>
    %38 = vector.shape_cast %37 : vector<8x8x128xbf16> to vector<64x128xbf16>
    %c0_65 = arith.constant 0 : index
    %c1_66 = arith.constant 1 : index
    %c0_67 = arith.constant 0 : index
    %c0_68 = arith.constant 0 : index
    %c1_69 = arith.constant 1 : index
    %c0_70 = arith.constant 0 : index
    %39 = vector.load %arg2[%c0_65, %c1_66, %c0_67, %c0_68, %c1_69, %c0_70] : memref<1x4x1x10x10x128xbf16, #tpu.memory_space<vmem>>, vector<1x1x1x8x8x128xbf16>
    %40 = vector.shape_cast %39 : vector<1x1x1x8x8x128xbf16> to vector<8x8x128xbf16>
    %41 = vector.shape_cast %40 : vector<8x8x128xbf16> to vector<64x128xbf16>
    %c0_71 = arith.constant 0 : index
    %c1_72 = arith.constant 1 : index
    %c0_73 = arith.constant 0 : index
    %c0_74 = arith.constant 0 : index
    %c2_75 = arith.constant 2 : index
    %c0_76 = arith.constant 0 : index
    %42 = vector.load %arg2[%c0_71, %c1_72, %c0_73, %c0_74, %c2_75, %c0_76] : memref<1x4x1x10x10x128xbf16, #tpu.memory_space<vmem>>, vector<1x1x1x8x8x128xbf16>
    %43 = vector.shape_cast %42 : vector<1x1x1x8x8x128xbf16> to vector<8x8x128xbf16>
    %44 = vector.shape_cast %43 : vector<8x8x128xbf16> to vector<64x128xbf16>
    %c0_77 = arith.constant 0 : index
    %c1_78 = arith.constant 1 : index
    %c0_79 = arith.constant 0 : index
    %c1_80 = arith.constant 1 : index
    %c0_81 = arith.constant 0 : index
    %c0_82 = arith.constant 0 : index
    %45 = vector.load %arg2[%c0_77, %c1_78, %c0_79, %c1_80, %c0_81, %c0_82] : memref<1x4x1x10x10x128xbf16, #tpu.memory_space<vmem>>, vector<1x1x1x8x8x128xbf16>
    %46 = vector.shape_cast %45 : vector<1x1x1x8x8x128xbf16> to vector<8x8x128xbf16>
    %47 = vector.shape_cast %46 : vector<8x8x128xbf16> to vector<64x128xbf16>
    %c0_83 = arith.constant 0 : index
    %c1_84 = arith.constant 1 : index
    %c0_85 = arith.constant 0 : index
    %c1_86 = arith.constant 1 : index
    %c1_87 = arith.constant 1 : index
    %c0_88 = arith.constant 0 : index
    %48 = vector.load %arg2[%c0_83, %c1_84, %c0_85, %c1_86, %c1_87, %c0_88] : memref<1x4x1x10x10x128xbf16, #tpu.memory_space<vmem>>, vector<1x1x1x8x8x128xbf16>
    %49 = vector.shape_cast %48 : vector<1x1x1x8x8x128xbf16> to vector<8x8x128xbf16>
    %50 = vector.shape_cast %49 : vector<8x8x128xbf16> to vector<64x128xbf16>
    %c0_89 = arith.constant 0 : index
    %c1_90 = arith.constant 1 : index
    %c0_91 = arith.constant 0 : index
    %c1_92 = arith.constant 1 : index
    %c2_93 = arith.constant 2 : index
    %c0_94 = arith.constant 0 : index
    %51 = vector.load %arg2[%c0_89, %c1_90, %c0_91, %c1_92, %c2_93, %c0_94] : memref<1x4x1x10x10x128xbf16, #tpu.memory_space<vmem>>, vector<1x1x1x8x8x128xbf16>
    %52 = vector.shape_cast %51 : vector<1x1x1x8x8x128xbf16> to vector<8x8x128xbf16>
    %53 = vector.shape_cast %52 : vector<8x8x128xbf16> to vector<64x128xbf16>
    %c0_95 = arith.constant 0 : index
    %c1_96 = arith.constant 1 : index
    %c0_97 = arith.constant 0 : index
    %c2_98 = arith.constant 2 : index
    %c0_99 = arith.constant 0 : index
    %c0_100 = arith.constant 0 : index
    %54 = vector.load %arg2[%c0_95, %c1_96, %c0_97, %c2_98, %c0_99, %c0_100] : memref<1x4x1x10x10x128xbf16, #tpu.memory_space<vmem>>, vector<1x1x1x8x8x128xbf16>
    %55 = vector.shape_cast %54 : vector<1x1x1x8x8x128xbf16> to vector<8x8x128xbf16>
    %56 = vector.shape_cast %55 : vector<8x8x128xbf16> to vector<64x128xbf16>
    %c0_101 = arith.constant 0 : index
    %c1_102 = arith.constant 1 : index
    %c0_103 = arith.constant 0 : index
    %c2_104 = arith.constant 2 : index
    %c1_105 = arith.constant 1 : index
    %c0_106 = arith.constant 0 : index
    %57 = vector.load %arg2[%c0_101, %c1_102, %c0_103, %c2_104, %c1_105, %c0_106] : memref<1x4x1x10x10x128xbf16, #tpu.memory_space<vmem>>, vector<1x1x1x8x8x128xbf16>
    %58 = vector.shape_cast %57 : vector<1x1x1x8x8x128xbf16> to vector<8x8x128xbf16>
    %59 = vector.shape_cast %58 : vector<8x8x128xbf16> to vector<64x128xbf16>
    %c0_107 = arith.constant 0 : index
    %c1_108 = arith.constant 1 : index
    %c0_109 = arith.constant 0 : index
    %c2_110 = arith.constant 2 : index
    %c2_111 = arith.constant 2 : index
    %c0_112 = arith.constant 0 : index
    %60 = vector.load %arg2[%c0_107, %c1_108, %c0_109, %c2_110, %c2_111, %c0_112] : memref<1x4x1x10x10x128xbf16, #tpu.memory_space<vmem>>, vector<1x1x1x8x8x128xbf16>
    %61 = vector.shape_cast %60 : vector<1x1x1x8x8x128xbf16> to vector<8x8x128xbf16>
    %62 = vector.shape_cast %61 : vector<8x8x128xbf16> to vector<64x128xbf16>
    %63 = tpu.concatenate %0, %1, %2, %3, %4, %5, %6, %7, %8, %11, %14, %17, %20, %23, %26, %29 in 1 : vector<64x128xbf16>, vector<64x128xbf16>, vector<64x128xbf16>, vector<64x128xbf16>, vector<64x128xbf16>, vector<64x128xbf16>, vector<64x128xbf16>, vector<64x128xbf16>, vector<64x128xbf16>, vector<64x128xbf16>, vector<64x128xbf16>, vector<64x128xbf16>, vector<64x128xbf16>, vector<64x128xbf16>, vector<64x128xbf16>, vector<64x128xbf16> -> vector<64x2048xbf16>
    %64 = tpu.concatenate %32, %35, %38, %41, %44, %47, %50, %53, %56, %59, %62 in 1 : vector<64x128xbf16>, vector<64x128xbf16>, vector<64x128xbf16>, vector<64x128xbf16>, vector<64x128xbf16>, vector<64x128xbf16>, vector<64x128xbf16>, vector<64x128xbf16>, vector<64x128xbf16>, vector<64x128xbf16>, vector<64x128xbf16> -> vector<64x1408xbf16>
    %65 = tpu.concatenate %63, %64 in 1 : vector<64x2048xbf16>, vector<64x1408xbf16> -> vector<64x3456xbf16>
    %c0_113 = arith.constant 0 : index
    %c0_114 = arith.constant 0 : index
    %c0_115 = arith.constant 0 : index
    %c0_116 = arith.constant 0 : index
    %c0_117 = arith.constant 0 : index
    %c0_118 = arith.constant 0 : index
    %66 = vector.load %arg2[%c0_113, %c0_114, %c0_115, %c0_116, %c0_117, %c0_118] : memref<1x4x1x10x10x128xbf16, #tpu.memory_space<vmem>>, vector<1x1x1x8x8x128xbf16>
    %67 = vector.shape_cast %66 : vector<1x1x1x8x8x128xbf16> to vector<8x8x128xbf16>
    %68 = vector.shape_cast %67 : vector<8x8x128xbf16> to vector<64x128xbf16>
    %c0_119 = arith.constant 0 : index
    %c0_120 = arith.constant 0 : index
    %c0_121 = arith.constant 0 : index
    %c0_122 = arith.constant 0 : index
    %c1_123 = arith.constant 1 : index
    %c0_124 = arith.constant 0 : index
    %69 = vector.load %arg2[%c0_119, %c0_120, %c0_121, %c0_122, %c1_123, %c0_124] : memref<1x4x1x10x10x128xbf16, #tpu.memory_space<vmem>>, vector<1x1x1x8x8x128xbf16>
    %70 = vector.shape_cast %69 : vector<1x1x1x8x8x128xbf16> to vector<8x8x128xbf16>
    %71 = vector.shape_cast %70 : vector<8x8x128xbf16> to vector<64x128xbf16>
    %c0_125 = arith.constant 0 : index
    %c0_126 = arith.constant 0 : index
    %c0_127 = arith.constant 0 : index
    %c0_128 = arith.constant 0 : index
    %c2_129 = arith.constant 2 : index
    %c0_130 = arith.constant 0 : index
    %72 = vector.load %arg2[%c0_125, %c0_126, %c0_127, %c0_128, %c2_129, %c0_130] : memref<1x4x1x10x10x128xbf16, #tpu.memory_space<vmem>>, vector<1x1x1x8x8x128xbf16>
    %73 = vector.shape_cast %72 : vector<1x1x1x8x8x128xbf16> to vector<8x8x128xbf16>
    %74 = vector.shape_cast %73 : vector<8x8x128xbf16> to vector<64x128xbf16>
    %c0_131 = arith.constant 0 : index
    %c0_132 = arith.constant 0 : index
    %c0_133 = arith.constant 0 : index
    %c1_134 = arith.constant 1 : index
    %c0_135 = arith.constant 0 : index
    %c0_136 = arith.constant 0 : index
    %75 = vector.load %arg2[%c0_131, %c0_132, %c0_133, %c1_134, %c0_135, %c0_136] : memref<1x4x1x10x10x128xbf16, #tpu.memory_space<vmem>>, vector<1x1x1x8x8x128xbf16>
    %76 = vector.shape_cast %75 : vector<1x1x1x8x8x128xbf16> to vector<8x8x128xbf16>
    %77 = vector.shape_cast %76 : vector<8x8x128xbf16> to vector<64x128xbf16>
    %c0_137 = arith.constant 0 : index
    %c0_138 = arith.constant 0 : index
    %c0_139 = arith.constant 0 : index
    %c1_140 = arith.constant 1 : index
    %c1_141 = arith.constant 1 : index
    %c0_142 = arith.constant 0 : index
    %78 = vector.load %arg2[%c0_137, %c0_138, %c0_139, %c1_140, %c1_141, %c0_142] : memref<1x4x1x10x10x128xbf16, #tpu.memory_space<vmem>>, vector<1x1x1x8x8x128xbf16>
    %79 = vector.shape_cast %78 : vector<1x1x1x8x8x128xbf16> to vector<8x8x128xbf16>
    %80 = vector.shape_cast %79 : vector<8x8x128xbf16> to vector<64x128xbf16>
    %c0_143 = arith.constant 0 : index
    %c0_144 = arith.constant 0 : index
    %c0_145 = arith.constant 0 : index
    %c1_146 = arith.constant 1 : index
    %c2_147 = arith.constant 2 : index
    %c0_148 = arith.constant 0 : index
    %81 = vector.load %arg2[%c0_143, %c0_144, %c0_145, %c1_146, %c2_147, %c0_148] : memref<1x4x1x10x10x128xbf16, #tpu.memory_space<vmem>>, vector<1x1x1x8x8x128xbf16>
    %82 = vector.shape_cast %81 : vector<1x1x1x8x8x128xbf16> to vector<8x8x128xbf16>
    %83 = vector.shape_cast %82 : vector<8x8x128xbf16> to vector<64x128xbf16>
    %c0_149 = arith.constant 0 : index
    %c0_150 = arith.constant 0 : index
    %c0_151 = arith.constant 0 : index
    %c2_152 = arith.constant 2 : index
    %c0_153 = arith.constant 0 : index
    %c0_154 = arith.constant 0 : index
    %84 = vector.load %arg2[%c0_149, %c0_150, %c0_151, %c2_152, %c0_153, %c0_154] : memref<1x4x1x10x10x128xbf16, #tpu.memory_space<vmem>>, vector<1x1x1x8x8x128xbf16>
    %85 = vector.shape_cast %84 : vector<1x1x1x8x8x128xbf16> to vector<8x8x128xbf16>
    %86 = vector.shape_cast %85 : vector<8x8x128xbf16> to vector<64x128xbf16>
    %c0_155 = arith.constant 0 : index
    %c0_156 = arith.constant 0 : index
    %c0_157 = arith.constant 0 : index
    %c2_158 = arith.constant 2 : index
    %c1_159 = arith.constant 1 : index
    %c0_160 = arith.constant 0 : index
    %87 = vector.load %arg2[%c0_155, %c0_156, %c0_157, %c2_158, %c1_159, %c0_160] : memref<1x4x1x10x10x128xbf16, #tpu.memory_space<vmem>>, vector<1x1x1x8x8x128xbf16>
    %88 = vector.shape_cast %87 : vector<1x1x1x8x8x128xbf16> to vector<8x8x128xbf16>
    %89 = vector.shape_cast %88 : vector<8x8x128xbf16> to vector<64x128xbf16>
    %c0_161 = arith.constant 0 : index
    %c0_162 = arith.constant 0 : index
    %c0_163 = arith.constant 0 : index
    %c2_164 = arith.constant 2 : index
    %c2_165 = arith.constant 2 : index
    %c0_166 = arith.constant 0 : index
    %90 = vector.load %arg2[%c0_161, %c0_162, %c0_163, %c2_164, %c2_165, %c0_166] : memref<1x4x1x10x10x128xbf16, #tpu.memory_space<vmem>>, vector<1x1x1x8x8x128xbf16>
    %91 = vector.shape_cast %90 : vector<1x1x1x8x8x128xbf16> to vector<8x8x128xbf16>
    %92 = vector.shape_cast %91 : vector<8x8x128xbf16> to vector<64x128xbf16>
    %c0_167 = arith.constant 0 : index
    %c1_168 = arith.constant 1 : index
    %c0_169 = arith.constant 0 : index
    %c0_170 = arith.constant 0 : index
    %c0_171 = arith.constant 0 : index
    %c0_172 = arith.constant 0 : index
    %93 = vector.load %arg2[%c0_167, %c1_168, %c0_169, %c0_170, %c0_171, %c0_172] : memref<1x4x1x10x10x128xbf16, #tpu.memory_space<vmem>>, vector<1x1x1x8x8x128xbf16>
    %94 = vector.shape_cast %93 : vector<1x1x1x8x8x128xbf16> to vector<8x8x128xbf16>
    %95 = vector.shape_cast %94 : vector<8x8x128xbf16> to vector<64x128xbf16>
    %c0_173 = arith.constant 0 : index
    %c1_174 = arith.constant 1 : index
    %c0_175 = arith.constant 0 : index
    %c0_176 = arith.constant 0 : index
    %c1_177 = arith.constant 1 : index
    %c0_178 = arith.constant 0 : index
    %96 = vector.load %arg2[%c0_173, %c1_174, %c0_175, %c0_176, %c1_177, %c0_178] : memref<1x4x1x10x10x128xbf16, #tpu.memory_space<vmem>>, vector<1x1x1x8x8x128xbf16>
    %97 = vector.shape_cast %96 : vector<1x1x1x8x8x128xbf16> to vector<8x8x128xbf16>
    %98 = vector.shape_cast %97 : vector<8x8x128xbf16> to vector<64x128xbf16>
    %c0_179 = arith.constant 0 : index
    %c1_180 = arith.constant 1 : index
    %c0_181 = arith.constant 0 : index
    %c0_182 = arith.constant 0 : index
    %c2_183 = arith.constant 2 : index
    %c0_184 = arith.constant 0 : index
    %99 = vector.load %arg2[%c0_179, %c1_180, %c0_181, %c0_182, %c2_183, %c0_184] : memref<1x4x1x10x10x128xbf16, #tpu.memory_space<vmem>>, vector<1x1x1x8x8x128xbf16>
    %100 = vector.shape_cast %99 : vector<1x1x1x8x8x128xbf16> to vector<8x8x128xbf16>
    %101 = vector.shape_cast %100 : vector<8x8x128xbf16> to vector<64x128xbf16>
    %c0_185 = arith.constant 0 : index
    %c1_186 = arith.constant 1 : index
    %c0_187 = arith.constant 0 : index
    %c1_188 = arith.constant 1 : index
    %c0_189 = arith.constant 0 : index
    %c0_190 = arith.constant 0 : index
    %102 = vector.load %arg2[%c0_185, %c1_186, %c0_187, %c1_188, %c0_189, %c0_190] : memref<1x4x1x10x10x128xbf16, #tpu.memory_space<vmem>>, vector<1x1x1x8x8x128xbf16>
    %103 = vector.shape_cast %102 : vector<1x1x1x8x8x128xbf16> to vector<8x8x128xbf16>
    %104 = vector.shape_cast %103 : vector<8x8x128xbf16> to vector<64x128xbf16>
    %c0_191 = arith.constant 0 : index
    %c1_192 = arith.constant 1 : index
    %c0_193 = arith.constant 0 : index
    %c1_194 = arith.constant 1 : index
    %c1_195 = arith.constant 1 : index
    %c0_196 = arith.constant 0 : index
    %105 = vector.load %arg2[%c0_191, %c1_192, %c0_193, %c1_194, %c1_195, %c0_196] : memref<1x4x1x10x10x128xbf16, #tpu.memory_space<vmem>>, vector<1x1x1x8x8x128xbf16>
    %106 = vector.shape_cast %105 : vector<1x1x1x8x8x128xbf16> to vector<8x8x128xbf16>
    %107 = vector.shape_cast %106 : vector<8x8x128xbf16> to vector<64x128xbf16>
    %c0_197 = arith.constant 0 : index
    %c1_198 = arith.constant 1 : index
    %c0_199 = arith.constant 0 : index
    %c1_200 = arith.constant 1 : index
    %c2_201 = arith.constant 2 : index
    %c0_202 = arith.constant 0 : index
    %108 = vector.load %arg2[%c0_197, %c1_198, %c0_199, %c1_200, %c2_201, %c0_202] : memref<1x4x1x10x10x128xbf16, #tpu.memory_space<vmem>>, vector<1x1x1x8x8x128xbf16>
    %109 = vector.shape_cast %108 : vector<1x1x1x8x8x128xbf16> to vector<8x8x128xbf16>
    %110 = vector.shape_cast %109 : vector<8x8x128xbf16> to vector<64x128xbf16>
    %c0_203 = arith.constant 0 : index
    %c1_204 = arith.constant 1 : index
    %c0_205 = arith.constant 0 : index
    %c2_206 = arith.constant 2 : index
    %c0_207 = arith.constant 0 : index
    %c0_208 = arith.constant 0 : index
    %111 = vector.load %arg2[%c0_203, %c1_204, %c0_205, %c2_206, %c0_207, %c0_208] : memref<1x4x1x10x10x128xbf16, #tpu.memory_space<vmem>>, vector<1x1x1x8x8x128xbf16>
    %112 = vector.shape_cast %111 : vector<1x1x1x8x8x128xbf16> to vector<8x8x128xbf16>
    %113 = vector.shape_cast %112 : vector<8x8x128xbf16> to vector<64x128xbf16>
    %c0_209 = arith.constant 0 : index
    %c1_210 = arith.constant 1 : index
    %c0_211 = arith.constant 0 : index
    %c2_212 = arith.constant 2 : index
    %c1_213 = arith.constant 1 : index
    %c0_214 = arith.constant 0 : index
    %114 = vector.load %arg2[%c0_209, %c1_210, %c0_211, %c2_212, %c1_213, %c0_214] : memref<1x4x1x10x10x128xbf16, #tpu.memory_space<vmem>>, vector<1x1x1x8x8x128xbf16>
    %115 = vector.shape_cast %114 : vector<1x1x1x8x8x128xbf16> to vector<8x8x128xbf16>
    %116 = vector.shape_cast %115 : vector<8x8x128xbf16> to vector<64x128xbf16>
    %c0_215 = arith.constant 0 : index
    %c1_216 = arith.constant 1 : index
    %c0_217 = arith.constant 0 : index
    %c2_218 = arith.constant 2 : index
    %c2_219 = arith.constant 2 : index
    %c0_220 = arith.constant 0 : index
    %117 = vector.load %arg2[%c0_215, %c1_216, %c0_217, %c2_218, %c2_219, %c0_220] : memref<1x4x1x10x10x128xbf16, #tpu.memory_space<vmem>>, vector<1x1x1x8x8x128xbf16>
    %118 = vector.shape_cast %117 : vector<1x1x1x8x8x128xbf16> to vector<8x8x128xbf16>
    %119 = vector.shape_cast %118 : vector<8x8x128xbf16> to vector<64x128xbf16>
    %c0_221 = arith.constant 0 : index
    %c2_222 = arith.constant 2 : index
    %c0_223 = arith.constant 0 : index
    %c0_224 = arith.constant 0 : index
    %c0_225 = arith.constant 0 : index
    %c0_226 = arith.constant 0 : index
    %120 = vector.load %arg2[%c0_221, %c2_222, %c0_223, %c0_224, %c0_225, %c0_226] : memref<1x4x1x10x10x128xbf16, #tpu.memory_space<vmem>>, vector<1x1x1x8x8x128xbf16>
    %121 = vector.shape_cast %120 : vector<1x1x1x8x8x128xbf16> to vector<8x8x128xbf16>
    %122 = vector.shape_cast %121 : vector<8x8x128xbf16> to vector<64x128xbf16>
    %c0_227 = arith.constant 0 : index
    %c2_228 = arith.constant 2 : index
    %c0_229 = arith.constant 0 : index
    %c0_230 = arith.constant 0 : index
    %c1_231 = arith.constant 1 : index
    %c0_232 = arith.constant 0 : index
    %123 = vector.load %arg2[%c0_227, %c2_228, %c0_229, %c0_230, %c1_231, %c0_232] : memref<1x4x1x10x10x128xbf16, #tpu.memory_space<vmem>>, vector<1x1x1x8x8x128xbf16>
    %124 = vector.shape_cast %123 : vector<1x1x1x8x8x128xbf16> to vector<8x8x128xbf16>
    %125 = vector.shape_cast %124 : vector<8x8x128xbf16> to vector<64x128xbf16>
    %c0_233 = arith.constant 0 : index
    %c2_234 = arith.constant 2 : index
    %c0_235 = arith.constant 0 : index
    %c0_236 = arith.constant 0 : index
    %c2_237 = arith.constant 2 : index
    %c0_238 = arith.constant 0 : index
    %126 = vector.load %arg2[%c0_233, %c2_234, %c0_235, %c0_236, %c2_237, %c0_238] : memref<1x4x1x10x10x128xbf16, #tpu.memory_space<vmem>>, vector<1x1x1x8x8x128xbf16>
    %127 = vector.shape_cast %126 : vector<1x1x1x8x8x128xbf16> to vector<8x8x128xbf16>
    %128 = vector.shape_cast %127 : vector<8x8x128xbf16> to vector<64x128xbf16>
    %c0_239 = arith.constant 0 : index
    %c2_240 = arith.constant 2 : index
    %c0_241 = arith.constant 0 : index
    %c1_242 = arith.constant 1 : index
    %c0_243 = arith.constant 0 : index
    %c0_244 = arith.constant 0 : index
    %129 = vector.load %arg2[%c0_239, %c2_240, %c0_241, %c1_242, %c0_243, %c0_244] : memref<1x4x1x10x10x128xbf16, #tpu.memory_space<vmem>>, vector<1x1x1x8x8x128xbf16>
    %130 = vector.shape_cast %129 : vector<1x1x1x8x8x128xbf16> to vector<8x8x128xbf16>
    %131 = vector.shape_cast %130 : vector<8x8x128xbf16> to vector<64x128xbf16>
    %c0_245 = arith.constant 0 : index
    %c2_246 = arith.constant 2 : index
    %c0_247 = arith.constant 0 : index
    %c1_248 = arith.constant 1 : index
    %c1_249 = arith.constant 1 : index
    %c0_250 = arith.constant 0 : index
    %132 = vector.load %arg2[%c0_245, %c2_246, %c0_247, %c1_248, %c1_249, %c0_250] : memref<1x4x1x10x10x128xbf16, #tpu.memory_space<vmem>>, vector<1x1x1x8x8x128xbf16>
    %133 = vector.shape_cast %132 : vector<1x1x1x8x8x128xbf16> to vector<8x8x128xbf16>
    %134 = vector.shape_cast %133 : vector<8x8x128xbf16> to vector<64x128xbf16>
    %c0_251 = arith.constant 0 : index
    %c2_252 = arith.constant 2 : index
    %c0_253 = arith.constant 0 : index
    %c1_254 = arith.constant 1 : index
    %c2_255 = arith.constant 2 : index
    %c0_256 = arith.constant 0 : index
    %135 = vector.load %arg2[%c0_251, %c2_252, %c0_253, %c1_254, %c2_255, %c0_256] : memref<1x4x1x10x10x128xbf16, #tpu.memory_space<vmem>>, vector<1x1x1x8x8x128xbf16>
    %136 = vector.shape_cast %135 : vector<1x1x1x8x8x128xbf16> to vector<8x8x128xbf16>
    %137 = vector.shape_cast %136 : vector<8x8x128xbf16> to vector<64x128xbf16>
    %c0_257 = arith.constant 0 : index
    %c2_258 = arith.constant 2 : index
    %c0_259 = arith.constant 0 : index
    %c2_260 = arith.constant 2 : index
    %c0_261 = arith.constant 0 : index
    %c0_262 = arith.constant 0 : index
    %138 = vector.load %arg2[%c0_257, %c2_258, %c0_259, %c2_260, %c0_261, %c0_262] : memref<1x4x1x10x10x128xbf16, #tpu.memory_space<vmem>>, vector<1x1x1x8x8x128xbf16>
    %139 = vector.shape_cast %138 : vector<1x1x1x8x8x128xbf16> to vector<8x8x128xbf16>
    %140 = vector.shape_cast %139 : vector<8x8x128xbf16> to vector<64x128xbf16>
    %c0_263 = arith.constant 0 : index
    %c2_264 = arith.constant 2 : index
    %c0_265 = arith.constant 0 : index
    %c2_266 = arith.constant 2 : index
    %c1_267 = arith.constant 1 : index
    %c0_268 = arith.constant 0 : index
    %141 = vector.load %arg2[%c0_263, %c2_264, %c0_265, %c2_266, %c1_267, %c0_268] : memref<1x4x1x10x10x128xbf16, #tpu.memory_space<vmem>>, vector<1x1x1x8x8x128xbf16>
    %142 = vector.shape_cast %141 : vector<1x1x1x8x8x128xbf16> to vector<8x8x128xbf16>
    %143 = vector.shape_cast %142 : vector<8x8x128xbf16> to vector<64x128xbf16>
    %c0_269 = arith.constant 0 : index
    %c2_270 = arith.constant 2 : index
    %c0_271 = arith.constant 0 : index
    %c2_272 = arith.constant 2 : index
    %c2_273 = arith.constant 2 : index
    %c0_274 = arith.constant 0 : index
    %144 = vector.load %arg2[%c0_269, %c2_270, %c0_271, %c2_272, %c2_273, %c0_274] : memref<1x4x1x10x10x128xbf16, #tpu.memory_space<vmem>>, vector<1x1x1x8x8x128xbf16>
    %145 = vector.shape_cast %144 : vector<1x1x1x8x8x128xbf16> to vector<8x8x128xbf16>
    %146 = vector.shape_cast %145 : vector<8x8x128xbf16> to vector<64x128xbf16>
    %147 = tpu.concatenate %68, %71, %74, %77, %80, %83, %86, %89, %92, %95, %98, %101, %104, %107, %110, %113 in 1 : vector<64x128xbf16>, vector<64x128xbf16>, vector<64x128xbf16>, vector<64x128xbf16>, vector<64x128xbf16>, vector<64x128xbf16>, vector<64x128xbf16>, vector<64x128xbf16>, vector<64x128xbf16>, vector<64x128xbf16>, vector<64x128xbf16>, vector<64x128xbf16>, vector<64x128xbf16>, vector<64x128xbf16>, vector<64x128xbf16>, vector<64x128xbf16> -> vector<64x2048xbf16>
    %148 = tpu.concatenate %116, %119, %122, %125, %128, %131, %134, %137, %140, %143, %146 in 1 : vector<64x128xbf16>, vector<64x128xbf16>, vector<64x128xbf16>, vector<64x128xbf16>, vector<64x128xbf16>, vector<64x128xbf16>, vector<64x128xbf16>, vector<64x128xbf16>, vector<64x128xbf16>, vector<64x128xbf16>, vector<64x128xbf16> -> vector<64x1408xbf16>
    %149 = tpu.concatenate %147, %148 in 1 : vector<64x2048xbf16>, vector<64x1408xbf16> -> vector<64x3456xbf16>
    %c0_275 = arith.constant 0 : index
    %c1_276 = arith.constant 1 : index
    %c0_277 = arith.constant 0 : index
    %c0_278 = arith.constant 0 : index
    %c0_279 = arith.constant 0 : index
    %c0_280 = arith.constant 0 : index
    %150 = vector.load %arg2[%c0_275, %c1_276, %c0_277, %c0_278, %c0_279, %c0_280] : memref<1x4x1x10x10x128xbf16, #tpu.memory_space<vmem>>, vector<1x1x1x8x8x128xbf16>
    %151 = vector.shape_cast %150 : vector<1x1x1x8x8x128xbf16> to vector<8x8x128xbf16>
    %152 = vector.shape_cast %151 : vector<8x8x128xbf16> to vector<64x128xbf16>
    %c0_281 = arith.constant 0 : index
    %c1_282 = arith.constant 1 : index
    %c0_283 = arith.constant 0 : index
    %c0_284 = arith.constant 0 : index
    %c1_285 = arith.constant 1 : index
    %c0_286 = arith.constant 0 : index
    %153 = vector.load %arg2[%c0_281, %c1_282, %c0_283, %c0_284, %c1_285, %c0_286] : memref<1x4x1x10x10x128xbf16, #tpu.memory_space<vmem>>, vector<1x1x1x8x8x128xbf16>
    %154 = vector.shape_cast %153 : vector<1x1x1x8x8x128xbf16> to vector<8x8x128xbf16>
    %155 = vector.shape_cast %154 : vector<8x8x128xbf16> to vector<64x128xbf16>
    %c0_287 = arith.constant 0 : index
    %c1_288 = arith.constant 1 : index
    %c0_289 = arith.constant 0 : index
    %c0_290 = arith.constant 0 : index
    %c2_291 = arith.constant 2 : index
    %c0_292 = arith.constant 0 : index
    %156 = vector.load %arg2[%c0_287, %c1_288, %c0_289, %c0_290, %c2_291, %c0_292] : memref<1x4x1x10x10x128xbf16, #tpu.memory_space<vmem>>, vector<1x1x1x8x8x128xbf16>
    %157 = vector.shape_cast %156 : vector<1x1x1x8x8x128xbf16> to vector<8x8x128xbf16>
    %158 = vector.shape_cast %157 : vector<8x8x128xbf16> to vector<64x128xbf16>
    %c0_293 = arith.constant 0 : index
    %c1_294 = arith.constant 1 : index
    %c0_295 = arith.constant 0 : index
    %c1_296 = arith.constant 1 : index
    %c0_297 = arith.constant 0 : index
    %c0_298 = arith.constant 0 : index
    %159 = vector.load %arg2[%c0_293, %c1_294, %c0_295, %c1_296, %c0_297, %c0_298] : memref<1x4x1x10x10x128xbf16, #tpu.memory_space<vmem>>, vector<1x1x1x8x8x128xbf16>
    %160 = vector.shape_cast %159 : vector<1x1x1x8x8x128xbf16> to vector<8x8x128xbf16>
    %161 = vector.shape_cast %160 : vector<8x8x128xbf16> to vector<64x128xbf16>
    %c0_299 = arith.constant 0 : index
    %c1_300 = arith.constant 1 : index
    %c0_301 = arith.constant 0 : index
    %c1_302 = arith.constant 1 : index
    %c1_303 = arith.constant 1 : index
    %c0_304 = arith.constant 0 : index
    %162 = vector.load %arg2[%c0_299, %c1_300, %c0_301, %c1_302, %c1_303, %c0_304] : memref<1x4x1x10x10x128xbf16, #tpu.memory_space<vmem>>, vector<1x1x1x8x8x128xbf16>
    %163 = vector.shape_cast %162 : vector<1x1x1x8x8x128xbf16> to vector<8x8x128xbf16>
    %164 = vector.shape_cast %163 : vector<8x8x128xbf16> to vector<64x128xbf16>
    %c0_305 = arith.constant 0 : index
    %c1_306 = arith.constant 1 : index
    %c0_307 = arith.constant 0 : index
    %c1_308 = arith.constant 1 : index
    %c2_309 = arith.constant 2 : index
    %c0_310 = arith.constant 0 : index
    %165 = vector.load %arg2[%c0_305, %c1_306, %c0_307, %c1_308, %c2_309, %c0_310] : memref<1x4x1x10x10x128xbf16, #tpu.memory_space<vmem>>, vector<1x1x1x8x8x128xbf16>
    %166 = vector.shape_cast %165 : vector<1x1x1x8x8x128xbf16> to vector<8x8x128xbf16>
    %167 = vector.shape_cast %166 : vector<8x8x128xbf16> to vector<64x128xbf16>
    %c0_311 = arith.constant 0 : index
    %c1_312 = arith.constant 1 : index
    %c0_313 = arith.constant 0 : index
    %c2_314 = arith.constant 2 : index
    %c0_315 = arith.constant 0 : index
    %c0_316 = arith.constant 0 : index
    %168 = vector.load %arg2[%c0_311, %c1_312, %c0_313, %c2_314, %c0_315, %c0_316] : memref<1x4x1x10x10x128xbf16, #tpu.memory_space<vmem>>, vector<1x1x1x8x8x128xbf16>
    %169 = vector.shape_cast %168 : vector<1x1x1x8x8x128xbf16> to vector<8x8x128xbf16>
    %170 = vector.shape_cast %169 : vector<8x8x128xbf16> to vector<64x128xbf16>
    %c0_317 = arith.constant 0 : index
    %c1_318 = arith.constant 1 : index
    %c0_319 = arith.constant 0 : index
    %c2_320 = arith.constant 2 : index
    %c1_321 = arith.constant 1 : index
    %c0_322 = arith.constant 0 : index
    %171 = vector.load %arg2[%c0_317, %c1_318, %c0_319, %c2_320, %c1_321, %c0_322] : memref<1x4x1x10x10x128xbf16, #tpu.memory_space<vmem>>, vector<1x1x1x8x8x128xbf16>
    %172 = vector.shape_cast %171 : vector<1x1x1x8x8x128xbf16> to vector<8x8x128xbf16>
    %173 = vector.shape_cast %172 : vector<8x8x128xbf16> to vector<64x128xbf16>
    %c0_323 = arith.constant 0 : index
    %c1_324 = arith.constant 1 : index
    %c0_325 = arith.constant 0 : index
    %c2_326 = arith.constant 2 : index
    %c2_327 = arith.constant 2 : index
    %c0_328 = arith.constant 0 : index
    %174 = vector.load %arg2[%c0_323, %c1_324, %c0_325, %c2_326, %c2_327, %c0_328] : memref<1x4x1x10x10x128xbf16, #tpu.memory_space<vmem>>, vector<1x1x1x8x8x128xbf16>
    %175 = vector.shape_cast %174 : vector<1x1x1x8x8x128xbf16> to vector<8x8x128xbf16>
    %176 = vector.shape_cast %175 : vector<8x8x128xbf16> to vector<64x128xbf16>
    %c0_329 = arith.constant 0 : index
    %c2_330 = arith.constant 2 : index
    %c0_331 = arith.constant 0 : index
    %c0_332 = arith.constant 0 : index
    %c0_333 = arith.constant 0 : index
    %c0_334 = arith.constant 0 : index
    %177 = vector.load %arg2[%c0_329, %c2_330, %c0_331, %c0_332, %c0_333, %c0_334] : memref<1x4x1x10x10x128xbf16, #tpu.memory_space<vmem>>, vector<1x1x1x8x8x128xbf16>
    %178 = vector.shape_cast %177 : vector<1x1x1x8x8x128xbf16> to vector<8x8x128xbf16>
    %179 = vector.shape_cast %178 : vector<8x8x128xbf16> to vector<64x128xbf16>
    %c0_335 = arith.constant 0 : index
    %c2_336 = arith.constant 2 : index
    %c0_337 = arith.constant 0 : index
    %c0_338 = arith.constant 0 : index
    %c1_339 = arith.constant 1 : index
    %c0_340 = arith.constant 0 : index
    %180 = vector.load %arg2[%c0_335, %c2_336, %c0_337, %c0_338, %c1_339, %c0_340] : memref<1x4x1x10x10x128xbf16, #tpu.memory_space<vmem>>, vector<1x1x1x8x8x128xbf16>
    %181 = vector.shape_cast %180 : vector<1x1x1x8x8x128xbf16> to vector<8x8x128xbf16>
    %182 = vector.shape_cast %181 : vector<8x8x128xbf16> to vector<64x128xbf16>
    %c0_341 = arith.constant 0 : index
    %c2_342 = arith.constant 2 : index
    %c0_343 = arith.constant 0 : index
    %c0_344 = arith.constant 0 : index
    %c2_345 = arith.constant 2 : index
    %c0_346 = arith.constant 0 : index
    %183 = vector.load %arg2[%c0_341, %c2_342, %c0_343, %c0_344, %c2_345, %c0_346] : memref<1x4x1x10x10x128xbf16, #tpu.memory_space<vmem>>, vector<1x1x1x8x8x128xbf16>
    %184 = vector.shape_cast %183 : vector<1x1x1x8x8x128xbf16> to vector<8x8x128xbf16>
    %185 = vector.shape_cast %184 : vector<8x8x128xbf16> to vector<64x128xbf16>
    %c0_347 = arith.constant 0 : index
    %c2_348 = arith.constant 2 : index
    %c0_349 = arith.constant 0 : index
    %c1_350 = arith.constant 1 : index
    %c0_351 = arith.constant 0 : index
    %c0_352 = arith.constant 0 : index
    %186 = vector.load %arg2[%c0_347, %c2_348, %c0_349, %c1_350, %c0_351, %c0_352] : memref<1x4x1x10x10x128xbf16, #tpu.memory_space<vmem>>, vector<1x1x1x8x8x128xbf16>
    %187 = vector.shape_cast %186 : vector<1x1x1x8x8x128xbf16> to vector<8x8x128xbf16>
    %188 = vector.shape_cast %187 : vector<8x8x128xbf16> to vector<64x128xbf16>
    %c0_353 = arith.constant 0 : index
    %c2_354 = arith.constant 2 : index
    %c0_355 = arith.constant 0 : index
    %c1_356 = arith.constant 1 : index
    %c1_357 = arith.constant 1 : index
    %c0_358 = arith.constant 0 : index
    %189 = vector.load %arg2[%c0_353, %c2_354, %c0_355, %c1_356, %c1_357, %c0_358] : memref<1x4x1x10x10x128xbf16, #tpu.memory_space<vmem>>, vector<1x1x1x8x8x128xbf16>
    %190 = vector.shape_cast %189 : vector<1x1x1x8x8x128xbf16> to vector<8x8x128xbf16>
    %191 = vector.shape_cast %190 : vector<8x8x128xbf16> to vector<64x128xbf16>
    %c0_359 = arith.constant 0 : index
    %c2_360 = arith.constant 2 : index
    %c0_361 = arith.constant 0 : index
    %c1_362 = arith.constant 1 : index
    %c2_363 = arith.constant 2 : index
    %c0_364 = arith.constant 0 : index
    %192 = vector.load %arg2[%c0_359, %c2_360, %c0_361, %c1_362, %c2_363, %c0_364] : memref<1x4x1x10x10x128xbf16, #tpu.memory_space<vmem>>, vector<1x1x1x8x8x128xbf16>
    %193 = vector.shape_cast %192 : vector<1x1x1x8x8x128xbf16> to vector<8x8x128xbf16>
    %194 = vector.shape_cast %193 : vector<8x8x128xbf16> to vector<64x128xbf16>
    %c0_365 = arith.constant 0 : index
    %c2_366 = arith.constant 2 : index
    %c0_367 = arith.constant 0 : index
    %c2_368 = arith.constant 2 : index
    %c0_369 = arith.constant 0 : index
    %c0_370 = arith.constant 0 : index
    %195 = vector.load %arg2[%c0_365, %c2_366, %c0_367, %c2_368, %c0_369, %c0_370] : memref<1x4x1x10x10x128xbf16, #tpu.memory_space<vmem>>, vector<1x1x1x8x8x128xbf16>
    %196 = vector.shape_cast %195 : vector<1x1x1x8x8x128xbf16> to vector<8x8x128xbf16>
    %197 = vector.shape_cast %196 : vector<8x8x128xbf16> to vector<64x128xbf16>
    %c0_371 = arith.constant 0 : index
    %c2_372 = arith.constant 2 : index
    %c0_373 = arith.constant 0 : index
    %c2_374 = arith.constant 2 : index
    %c1_375 = arith.constant 1 : index
    %c0_376 = arith.constant 0 : index
    %198 = vector.load %arg2[%c0_371, %c2_372, %c0_373, %c2_374, %c1_375, %c0_376] : memref<1x4x1x10x10x128xbf16, #tpu.memory_space<vmem>>, vector<1x1x1x8x8x128xbf16>
    %199 = vector.shape_cast %198 : vector<1x1x1x8x8x128xbf16> to vector<8x8x128xbf16>
    %200 = vector.shape_cast %199 : vector<8x8x128xbf16> to vector<64x128xbf16>
    %c0_377 = arith.constant 0 : index
    %c2_378 = arith.constant 2 : index
    %c0_379 = arith.constant 0 : index
    %c2_380 = arith.constant 2 : index
    %c2_381 = arith.constant 2 : index
    %c0_382 = arith.constant 0 : index
    %201 = vector.load %arg2[%c0_377, %c2_378, %c0_379, %c2_380, %c2_381, %c0_382] : memref<1x4x1x10x10x128xbf16, #tpu.memory_space<vmem>>, vector<1x1x1x8x8x128xbf16>
    %202 = vector.shape_cast %201 : vector<1x1x1x8x8x128xbf16> to vector<8x8x128xbf16>
    %203 = vector.shape_cast %202 : vector<8x8x128xbf16> to vector<64x128xbf16>
    %c0_383 = arith.constant 0 : index
    %c3 = arith.constant 3 : index
    %c0_384 = arith.constant 0 : index
    %c0_385 = arith.constant 0 : index
    %c0_386 = arith.constant 0 : index
    %c0_387 = arith.constant 0 : index
    %204 = vector.load %arg2[%c0_383, %c3, %c0_384, %c0_385, %c0_386, %c0_387] : memref<1x4x1x10x10x128xbf16, #tpu.memory_space<vmem>>, vector<1x1x1x8x8x128xbf16>
    %205 = vector.shape_cast %204 : vector<1x1x1x8x8x128xbf16> to vector<8x8x128xbf16>
    %206 = vector.shape_cast %205 : vector<8x8x128xbf16> to vector<64x128xbf16>
    %c0_388 = arith.constant 0 : index
    %c3_389 = arith.constant 3 : index
    %c0_390 = arith.constant 0 : index
    %c0_391 = arith.constant 0 : index
    %c1_392 = arith.constant 1 : index
    %c0_393 = arith.constant 0 : index
    %207 = vector.load %arg2[%c0_388, %c3_389, %c0_390, %c0_391, %c1_392, %c0_393] : memref<1x4x1x10x10x128xbf16, #tpu.memory_space<vmem>>, vector<1x1x1x8x8x128xbf16>
    %208 = vector.shape_cast %207 : vector<1x1x1x8x8x128xbf16> to vector<8x8x128xbf16>
    %209 = vector.shape_cast %208 : vector<8x8x128xbf16> to vector<64x128xbf16>
    %c0_394 = arith.constant 0 : index
    %c3_395 = arith.constant 3 : index
    %c0_396 = arith.constant 0 : index
    %c0_397 = arith.constant 0 : index
    %c2_398 = arith.constant 2 : index
    %c0_399 = arith.constant 0 : index
    %210 = vector.load %arg2[%c0_394, %c3_395, %c0_396, %c0_397, %c2_398, %c0_399] : memref<1x4x1x10x10x128xbf16, #tpu.memory_space<vmem>>, vector<1x1x1x8x8x128xbf16>
    %211 = vector.shape_cast %210 : vector<1x1x1x8x8x128xbf16> to vector<8x8x128xbf16>
    %212 = vector.shape_cast %211 : vector<8x8x128xbf16> to vector<64x128xbf16>
    %c0_400 = arith.constant 0 : index
    %c3_401 = arith.constant 3 : index
    %c0_402 = arith.constant 0 : index
    %c1_403 = arith.constant 1 : index
    %c0_404 = arith.constant 0 : index
    %c0_405 = arith.constant 0 : index
    %213 = vector.load %arg2[%c0_400, %c3_401, %c0_402, %c1_403, %c0_404, %c0_405] : memref<1x4x1x10x10x128xbf16, #tpu.memory_space<vmem>>, vector<1x1x1x8x8x128xbf16>
    %214 = vector.shape_cast %213 : vector<1x1x1x8x8x128xbf16> to vector<8x8x128xbf16>
    %215 = vector.shape_cast %214 : vector<8x8x128xbf16> to vector<64x128xbf16>
    %c0_406 = arith.constant 0 : index
    %c3_407 = arith.constant 3 : index
    %c0_408 = arith.constant 0 : index
    %c1_409 = arith.constant 1 : index
    %c1_410 = arith.constant 1 : index
    %c0_411 = arith.constant 0 : index
    %216 = vector.load %arg2[%c0_406, %c3_407, %c0_408, %c1_409, %c1_410, %c0_411] : memref<1x4x1x10x10x128xbf16, #tpu.memory_space<vmem>>, vector<1x1x1x8x8x128xbf16>
    %217 = vector.shape_cast %216 : vector<1x1x1x8x8x128xbf16> to vector<8x8x128xbf16>
    %218 = vector.shape_cast %217 : vector<8x8x128xbf16> to vector<64x128xbf16>
    %c0_412 = arith.constant 0 : index
    %c3_413 = arith.constant 3 : index
    %c0_414 = arith.constant 0 : index
    %c1_415 = arith.constant 1 : index
    %c2_416 = arith.constant 2 : index
    %c0_417 = arith.constant 0 : index
    %219 = vector.load %arg2[%c0_412, %c3_413, %c0_414, %c1_415, %c2_416, %c0_417] : memref<1x4x1x10x10x128xbf16, #tpu.memory_space<vmem>>, vector<1x1x1x8x8x128xbf16>
    %220 = vector.shape_cast %219 : vector<1x1x1x8x8x128xbf16> to vector<8x8x128xbf16>
    %221 = vector.shape_cast %220 : vector<8x8x128xbf16> to vector<64x128xbf16>
    %c0_418 = arith.constant 0 : index
    %c3_419 = arith.constant 3 : index
    %c0_420 = arith.constant 0 : index
    %c2_421 = arith.constant 2 : index
    %c0_422 = arith.constant 0 : index
    %c0_423 = arith.constant 0 : index
    %222 = vector.load %arg2[%c0_418, %c3_419, %c0_420, %c2_421, %c0_422, %c0_423] : memref<1x4x1x10x10x128xbf16, #tpu.memory_space<vmem>>, vector<1x1x1x8x8x128xbf16>
    %223 = vector.shape_cast %222 : vector<1x1x1x8x8x128xbf16> to vector<8x8x128xbf16>
    %224 = vector.shape_cast %223 : vector<8x8x128xbf16> to vector<64x128xbf16>
    %c0_424 = arith.constant 0 : index
    %c3_425 = arith.constant 3 : index
    %c0_426 = arith.constant 0 : index
    %c2_427 = arith.constant 2 : index
    %c1_428 = arith.constant 1 : index
    %c0_429 = arith.constant 0 : index
    %225 = vector.load %arg2[%c0_424, %c3_425, %c0_426, %c2_427, %c1_428, %c0_429] : memref<1x4x1x10x10x128xbf16, #tpu.memory_space<vmem>>, vector<1x1x1x8x8x128xbf16>
    %226 = vector.shape_cast %225 : vector<1x1x1x8x8x128xbf16> to vector<8x8x128xbf16>
    %227 = vector.shape_cast %226 : vector<8x8x128xbf16> to vector<64x128xbf16>
    %c0_430 = arith.constant 0 : index
    %c3_431 = arith.constant 3 : index
    %c0_432 = arith.constant 0 : index
    %c2_433 = arith.constant 2 : index
    %c2_434 = arith.constant 2 : index
    %c0_435 = arith.constant 0 : index
    %228 = vector.load %arg2[%c0_430, %c3_431, %c0_432, %c2_433, %c2_434, %c0_435] : memref<1x4x1x10x10x128xbf16, #tpu.memory_space<vmem>>, vector<1x1x1x8x8x128xbf16>
    %229 = vector.shape_cast %228 : vector<1x1x1x8x8x128xbf16> to vector<8x8x128xbf16>
    %230 = vector.shape_cast %229 : vector<8x8x128xbf16> to vector<64x128xbf16>
    %231 = tpu.concatenate %152, %155, %158, %161, %164, %167, %170, %173, %176, %179, %182, %185, %188, %191, %194, %197 in 1 : vector<64x128xbf16>, vector<64x128xbf16>, vector<64x128xbf16>, vector<64x128xbf16>, vector<64x128xbf16>, vector<64x128xbf16>, vector<64x128xbf16>, vector<64x128xbf16>, vector<64x128xbf16>, vector<64x128xbf16>, vector<64x128xbf16>, vector<64x128xbf16>, vector<64x128xbf16>, vector<64x128xbf16>, vector<64x128xbf16>, vector<64x128xbf16> -> vector<64x2048xbf16>
    %232 = tpu.concatenate %200, %203, %206, %209, %212, %215, %218, %221, %224, %227, %230 in 1 : vector<64x128xbf16>, vector<64x128xbf16>, vector<64x128xbf16>, vector<64x128xbf16>, vector<64x128xbf16>, vector<64x128xbf16>, vector<64x128xbf16>, vector<64x128xbf16>, vector<64x128xbf16>, vector<64x128xbf16>, vector<64x128xbf16> -> vector<64x1408xbf16>
    %233 = tpu.concatenate %231, %232 in 1 : vector<64x2048xbf16>, vector<64x1408xbf16> -> vector<64x3456xbf16>
    %c0_436 = arith.constant 0 : index
    %c2_437 = arith.constant 2 : index
    %c0_438 = arith.constant 0 : index
    %c0_439 = arith.constant 0 : index
    %c0_440 = arith.constant 0 : index
    %c0_441 = arith.constant 0 : index
    %234 = vector.load %arg2[%c0_436, %c2_437, %c0_438, %c0_439, %c0_440, %c0_441] : memref<1x4x1x10x10x128xbf16, #tpu.memory_space<vmem>>, vector<1x1x1x8x8x128xbf16>
    %235 = vector.shape_cast %234 : vector<1x1x1x8x8x128xbf16> to vector<8x8x128xbf16>
    %236 = vector.shape_cast %235 : vector<8x8x128xbf16> to vector<64x128xbf16>
    %c0_442 = arith.constant 0 : index
    %c2_443 = arith.constant 2 : index
    %c0_444 = arith.constant 0 : index
    %c0_445 = arith.constant 0 : index
    %c1_446 = arith.constant 1 : index
    %c0_447 = arith.constant 0 : index
    %237 = vector.load %arg2[%c0_442, %c2_443, %c0_444, %c0_445, %c1_446, %c0_447] : memref<1x4x1x10x10x128xbf16, #tpu.memory_space<vmem>>, vector<1x1x1x8x8x128xbf16>
    %238 = vector.shape_cast %237 : vector<1x1x1x8x8x128xbf16> to vector<8x8x128xbf16>
    %239 = vector.shape_cast %238 : vector<8x8x128xbf16> to vector<64x128xbf16>
    %c0_448 = arith.constant 0 : index
    %c2_449 = arith.constant 2 : index
    %c0_450 = arith.constant 0 : index
    %c0_451 = arith.constant 0 : index
    %c2_452 = arith.constant 2 : index
    %c0_453 = arith.constant 0 : index
    %240 = vector.load %arg2[%c0_448, %c2_449, %c0_450, %c0_451, %c2_452, %c0_453] : memref<1x4x1x10x10x128xbf16, #tpu.memory_space<vmem>>, vector<1x1x1x8x8x128xbf16>
    %241 = vector.shape_cast %240 : vector<1x1x1x8x8x128xbf16> to vector<8x8x128xbf16>
    %242 = vector.shape_cast %241 : vector<8x8x128xbf16> to vector<64x128xbf16>
    %c0_454 = arith.constant 0 : index
    %c2_455 = arith.constant 2 : index
    %c0_456 = arith.constant 0 : index
    %c1_457 = arith.constant 1 : index
    %c0_458 = arith.constant 0 : index
    %c0_459 = arith.constant 0 : index
    %243 = vector.load %arg2[%c0_454, %c2_455, %c0_456, %c1_457, %c0_458, %c0_459] : memref<1x4x1x10x10x128xbf16, #tpu.memory_space<vmem>>, vector<1x1x1x8x8x128xbf16>
    %244 = vector.shape_cast %243 : vector<1x1x1x8x8x128xbf16> to vector<8x8x128xbf16>
    %245 = vector.shape_cast %244 : vector<8x8x128xbf16> to vector<64x128xbf16>
    %c0_460 = arith.constant 0 : index
    %c2_461 = arith.constant 2 : index
    %c0_462 = arith.constant 0 : index
    %c1_463 = arith.constant 1 : index
    %c1_464 = arith.constant 1 : index
    %c0_465 = arith.constant 0 : index
    %246 = vector.load %arg2[%c0_460, %c2_461, %c0_462, %c1_463, %c1_464, %c0_465] : memref<1x4x1x10x10x128xbf16, #tpu.memory_space<vmem>>, vector<1x1x1x8x8x128xbf16>
    %247 = vector.shape_cast %246 : vector<1x1x1x8x8x128xbf16> to vector<8x8x128xbf16>
    %248 = vector.shape_cast %247 : vector<8x8x128xbf16> to vector<64x128xbf16>
    %c0_466 = arith.constant 0 : index
    %c2_467 = arith.constant 2 : index
    %c0_468 = arith.constant 0 : index
    %c1_469 = arith.constant 1 : index
    %c2_470 = arith.constant 2 : index
    %c0_471 = arith.constant 0 : index
    %249 = vector.load %arg2[%c0_466, %c2_467, %c0_468, %c1_469, %c2_470, %c0_471] : memref<1x4x1x10x10x128xbf16, #tpu.memory_space<vmem>>, vector<1x1x1x8x8x128xbf16>
    %250 = vector.shape_cast %249 : vector<1x1x1x8x8x128xbf16> to vector<8x8x128xbf16>
    %251 = vector.shape_cast %250 : vector<8x8x128xbf16> to vector<64x128xbf16>
    %c0_472 = arith.constant 0 : index
    %c2_473 = arith.constant 2 : index
    %c0_474 = arith.constant 0 : index
    %c2_475 = arith.constant 2 : index
    %c0_476 = arith.constant 0 : index
    %c0_477 = arith.constant 0 : index
    %252 = vector.load %arg2[%c0_472, %c2_473, %c0_474, %c2_475, %c0_476, %c0_477] : memref<1x4x1x10x10x128xbf16, #tpu.memory_space<vmem>>, vector<1x1x1x8x8x128xbf16>
    %253 = vector.shape_cast %252 : vector<1x1x1x8x8x128xbf16> to vector<8x8x128xbf16>
    %254 = vector.shape_cast %253 : vector<8x8x128xbf16> to vector<64x128xbf16>
    %c0_478 = arith.constant 0 : index
    %c2_479 = arith.constant 2 : index
    %c0_480 = arith.constant 0 : index
    %c2_481 = arith.constant 2 : index
    %c1_482 = arith.constant 1 : index
    %c0_483 = arith.constant 0 : index
    %255 = vector.load %arg2[%c0_478, %c2_479, %c0_480, %c2_481, %c1_482, %c0_483] : memref<1x4x1x10x10x128xbf16, #tpu.memory_space<vmem>>, vector<1x1x1x8x8x128xbf16>
    %256 = vector.shape_cast %255 : vector<1x1x1x8x8x128xbf16> to vector<8x8x128xbf16>
    %257 = vector.shape_cast %256 : vector<8x8x128xbf16> to vector<64x128xbf16>
    %c0_484 = arith.constant 0 : index
    %c2_485 = arith.constant 2 : index
    %c0_486 = arith.constant 0 : index
    %c2_487 = arith.constant 2 : index
    %c2_488 = arith.constant 2 : index
    %c0_489 = arith.constant 0 : index
    %258 = vector.load %arg2[%c0_484, %c2_485, %c0_486, %c2_487, %c2_488, %c0_489] : memref<1x4x1x10x10x128xbf16, #tpu.memory_space<vmem>>, vector<1x1x1x8x8x128xbf16>
    %259 = vector.shape_cast %258 : vector<1x1x1x8x8x128xbf16> to vector<8x8x128xbf16>
    %260 = vector.shape_cast %259 : vector<8x8x128xbf16> to vector<64x128xbf16>
    %c0_490 = arith.constant 0 : index
    %c3_491 = arith.constant 3 : index
    %c0_492 = arith.constant 0 : index
    %c0_493 = arith.constant 0 : index
    %c0_494 = arith.constant 0 : index
    %c0_495 = arith.constant 0 : index
    %261 = vector.load %arg2[%c0_490, %c3_491, %c0_492, %c0_493, %c0_494, %c0_495] : memref<1x4x1x10x10x128xbf16, #tpu.memory_space<vmem>>, vector<1x1x1x8x8x128xbf16>
    %262 = vector.shape_cast %261 : vector<1x1x1x8x8x128xbf16> to vector<8x8x128xbf16>
    %263 = vector.shape_cast %262 : vector<8x8x128xbf16> to vector<64x128xbf16>
    %c0_496 = arith.constant 0 : index
    %c3_497 = arith.constant 3 : index
    %c0_498 = arith.constant 0 : index
    %c0_499 = arith.constant 0 : index
    %c1_500 = arith.constant 1 : index
    %c0_501 = arith.constant 0 : index
    %264 = vector.load %arg2[%c0_496, %c3_497, %c0_498, %c0_499, %c1_500, %c0_501] : memref<1x4x1x10x10x128xbf16, #tpu.memory_space<vmem>>, vector<1x1x1x8x8x128xbf16>
    %265 = vector.shape_cast %264 : vector<1x1x1x8x8x128xbf16> to vector<8x8x128xbf16>
    %266 = vector.shape_cast %265 : vector<8x8x128xbf16> to vector<64x128xbf16>
    %c0_502 = arith.constant 0 : index
    %c3_503 = arith.constant 3 : index
    %c0_504 = arith.constant 0 : index
    %c0_505 = arith.constant 0 : index
    %c2_506 = arith.constant 2 : index
    %c0_507 = arith.constant 0 : index
    %267 = vector.load %arg2[%c0_502, %c3_503, %c0_504, %c0_505, %c2_506, %c0_507] : memref<1x4x1x10x10x128xbf16, #tpu.memory_space<vmem>>, vector<1x1x1x8x8x128xbf16>
    %268 = vector.shape_cast %267 : vector<1x1x1x8x8x128xbf16> to vector<8x8x128xbf16>
    %269 = vector.shape_cast %268 : vector<8x8x128xbf16> to vector<64x128xbf16>
    %c0_508 = arith.constant 0 : index
    %c3_509 = arith.constant 3 : index
    %c0_510 = arith.constant 0 : index
    %c1_511 = arith.constant 1 : index
    %c0_512 = arith.constant 0 : index
    %c0_513 = arith.constant 0 : index
    %270 = vector.load %arg2[%c0_508, %c3_509, %c0_510, %c1_511, %c0_512, %c0_513] : memref<1x4x1x10x10x128xbf16, #tpu.memory_space<vmem>>, vector<1x1x1x8x8x128xbf16>
    %271 = vector.shape_cast %270 : vector<1x1x1x8x8x128xbf16> to vector<8x8x128xbf16>
    %272 = vector.shape_cast %271 : vector<8x8x128xbf16> to vector<64x128xbf16>
    %c0_514 = arith.constant 0 : index
    %c3_515 = arith.constant 3 : index
    %c0_516 = arith.constant 0 : index
    %c1_517 = arith.constant 1 : index
    %c1_518 = arith.constant 1 : index
    %c0_519 = arith.constant 0 : index
    %273 = vector.load %arg2[%c0_514, %c3_515, %c0_516, %c1_517, %c1_518, %c0_519] : memref<1x4x1x10x10x128xbf16, #tpu.memory_space<vmem>>, vector<1x1x1x8x8x128xbf16>
    %274 = vector.shape_cast %273 : vector<1x1x1x8x8x128xbf16> to vector<8x8x128xbf16>
    %275 = vector.shape_cast %274 : vector<8x8x128xbf16> to vector<64x128xbf16>
    %c0_520 = arith.constant 0 : index
    %c3_521 = arith.constant 3 : index
    %c0_522 = arith.constant 0 : index
    %c1_523 = arith.constant 1 : index
    %c2_524 = arith.constant 2 : index
    %c0_525 = arith.constant 0 : index
    %276 = vector.load %arg2[%c0_520, %c3_521, %c0_522, %c1_523, %c2_524, %c0_525] : memref<1x4x1x10x10x128xbf16, #tpu.memory_space<vmem>>, vector<1x1x1x8x8x128xbf16>
    %277 = vector.shape_cast %276 : vector<1x1x1x8x8x128xbf16> to vector<8x8x128xbf16>
    %278 = vector.shape_cast %277 : vector<8x8x128xbf16> to vector<64x128xbf16>
    %c0_526 = arith.constant 0 : index
    %c3_527 = arith.constant 3 : index
    %c0_528 = arith.constant 0 : index
    %c2_529 = arith.constant 2 : index
    %c0_530 = arith.constant 0 : index
    %c0_531 = arith.constant 0 : index
    %279 = vector.load %arg2[%c0_526, %c3_527, %c0_528, %c2_529, %c0_530, %c0_531] : memref<1x4x1x10x10x128xbf16, #tpu.memory_space<vmem>>, vector<1x1x1x8x8x128xbf16>
    %280 = vector.shape_cast %279 : vector<1x1x1x8x8x128xbf16> to vector<8x8x128xbf16>
    %281 = vector.shape_cast %280 : vector<8x8x128xbf16> to vector<64x128xbf16>
    %c0_532 = arith.constant 0 : index
    %c3_533 = arith.constant 3 : index
    %c0_534 = arith.constant 0 : index
    %c2_535 = arith.constant 2 : index
    %c1_536 = arith.constant 1 : index
    %c0_537 = arith.constant 0 : index
    %282 = vector.load %arg2[%c0_532, %c3_533, %c0_534, %c2_535, %c1_536, %c0_537] : memref<1x4x1x10x10x128xbf16, #tpu.memory_space<vmem>>, vector<1x1x1x8x8x128xbf16>
    %283 = vector.shape_cast %282 : vector<1x1x1x8x8x128xbf16> to vector<8x8x128xbf16>
    %284 = vector.shape_cast %283 : vector<8x8x128xbf16> to vector<64x128xbf16>
    %c0_538 = arith.constant 0 : index
    %c3_539 = arith.constant 3 : index
    %c0_540 = arith.constant 0 : index
    %c2_541 = arith.constant 2 : index
    %c2_542 = arith.constant 2 : index
    %c0_543 = arith.constant 0 : index
    %285 = vector.load %arg2[%c0_538, %c3_539, %c0_540, %c2_541, %c2_542, %c0_543] : memref<1x4x1x10x10x128xbf16, #tpu.memory_space<vmem>>, vector<1x1x1x8x8x128xbf16>
    %286 = vector.shape_cast %285 : vector<1x1x1x8x8x128xbf16> to vector<8x8x128xbf16>
    %287 = vector.shape_cast %286 : vector<8x8x128xbf16> to vector<64x128xbf16>
    %cst_544 = arith.constant 0.000000e+00 : bf16
    %288 = vector.broadcast %cst_544 : bf16 to vector<64x128xbf16>
    %cst_545 = arith.constant 0.000000e+00 : bf16
    %289 = vector.broadcast %cst_545 : bf16 to vector<64x128xbf16>
    %cst_546 = arith.constant 0.000000e+00 : bf16
    %290 = vector.broadcast %cst_546 : bf16 to vector<64x128xbf16>
    %cst_547 = arith.constant 0.000000e+00 : bf16
    %291 = vector.broadcast %cst_547 : bf16 to vector<64x128xbf16>
    %cst_548 = arith.constant 0.000000e+00 : bf16
    %292 = vector.broadcast %cst_548 : bf16 to vector<64x128xbf16>
    %cst_549 = arith.constant 0.000000e+00 : bf16
    %293 = vector.broadcast %cst_549 : bf16 to vector<64x128xbf16>
    %cst_550 = arith.constant 0.000000e+00 : bf16
    %294 = vector.broadcast %cst_550 : bf16 to vector<64x128xbf16>
    %cst_551 = arith.constant 0.000000e+00 : bf16
    %295 = vector.broadcast %cst_551 : bf16 to vector<64x128xbf16>
    %cst_552 = arith.constant 0.000000e+00 : bf16
    %296 = vector.broadcast %cst_552 : bf16 to vector<64x128xbf16>
    %297 = tpu.concatenate %236, %239, %242, %245, %248, %251, %254, %257, %260, %263, %266, %269, %272, %275, %278, %281 in 1 : vector<64x128xbf16>, vector<64x128xbf16>, vector<64x128xbf16>, vector<64x128xbf16>, vector<64x128xbf16>, vector<64x128xbf16>, vector<64x128xbf16>, vector<64x128xbf16>, vector<64x128xbf16>, vector<64x128xbf16>, vector<64x128xbf16>, vector<64x128xbf16>, vector<64x128xbf16>, vector<64x128xbf16>, vector<64x128xbf16>, vector<64x128xbf16> -> vector<64x2048xbf16>
    %298 = tpu.concatenate %284, %287, %288, %289, %290, %291, %292, %293, %294, %295, %296 in 1 : vector<64x128xbf16>, vector<64x128xbf16>, vector<64x128xbf16>, vector<64x128xbf16>, vector<64x128xbf16>, vector<64x128xbf16>, vector<64x128xbf16>, vector<64x128xbf16>, vector<64x128xbf16>, vector<64x128xbf16>, vector<64x128xbf16> -> vector<64x1408xbf16>
    %299 = tpu.concatenate %297, %298 in 1 : vector<64x2048xbf16>, vector<64x1408xbf16> -> vector<64x3456xbf16>
    %300 = tpu.concatenate %65, %149, %233, %299 in 0 : vector<64x3456xbf16>, vector<64x3456xbf16>, vector<64x3456xbf16>, vector<64x3456xbf16> -> vector<256x3456xbf16>
    %c0_553 = arith.constant 0 : index
    %c0_554 = arith.constant 0 : index
    %301 = vector.load %arg3[%c0_553, %c0_554] : memref<3456x128xbf16, #tpu.memory_space<vmem>>, vector<3456x128xbf16>
    %cst_555 = arith.constant dense<0.000000e+00> : vector<256x128xf32>
    %302 = tpu.matmul %300, %301, %cst_555 {dimension_numbers = #tpu.dot_dimension_numbers<[1], [0], [0], [1], [0, 0, 1, 1], [], []>} : vector<256x3456xbf16>, vector<3456x128xbf16>, vector<256x128xf32> -> vector<256x128xf32>
    %c0_556 = arith.constant 0 : index
    %c0_557 = arith.constant 0 : index
    %303 = vector.load %arg4[%c0_556, %c0_557] : memref<1x128xf32, #tpu.memory_space<vmem>>, vector<1x128xf32>
    %304 = vector.broadcast %303 : vector<1x128xf32> to vector<256x128xf32>
    %305 = arith.addf %302, %304 : vector<256x128xf32>
    %c0_558 = arith.constant 0 : index
    %c0_559 = arith.constant 0 : index
    %c0_560 = arith.constant 0 : index
    %306 = vector.load %arg5[%c0_558, %c0_559, %c0_560] : memref<1x256x8xbf16, #tpu.memory_space<vmem>>, vector<1x256x8xbf16>
    %307 = vector.shape_cast %306 : vector<1x256x8xbf16> to vector<256x8xbf16>
    %c0_561 = arith.constant 0 : index
    %c0_562 = arith.constant 0 : index
    %308 = vector.load %arg6[%c0_561, %c0_562] : memref<8x128xbf16, #tpu.memory_space<vmem>>, vector<8x128xbf16>
    %cst_563 = arith.constant dense<0.000000e+00> : vector<256x128xf32>
    %309 = tpu.matmul %307, %308, %cst_563 {dimension_numbers = #tpu.dot_dimension_numbers<[1], [0], [0], [1], [0, 0, 1, 1], [], []>} : vector<256x8xbf16>, vector<8x128xbf16>, vector<256x128xf32> -> vector<256x128xf32>
    %310 = arith.addf %305, %309 : vector<256x128xf32>
    %cst_564 = arith.constant 0.000000e+00 : f32
    %311 = vector.broadcast %cst_564 : f32 to vector<256x128xf32>
    %312 = arith.maximumf %310, %311 : vector<256x128xf32>
    %313 = vector.shape_cast %312 : vector<256x128xf32> to vector<4x8x8x128xf32>
    %c0_565 = arith.constant 0 : index
    %c0_566 = arith.constant 0 : index
    %c0_567 = arith.constant 0 : index
    %c0_568 = arith.constant 0 : index
    %c0_569 = arith.constant 0 : index
    %314 = vector.load %arg7[%c0_565, %c0_566, %c0_567, %c0_568, %c0_569] : memref<1x4x8x8x128xf32, #tpu.memory_space<vmem>>, vector<1x4x8x8x128xf32>
    %315 = vector.shape_cast %314 : vector<1x4x8x8x128xf32> to vector<4x8x8x128xf32>
    %316 = vector.shape_cast %313 : vector<4x8x8x128xf32> to vector<1x4x8x8x128xf32>
    tpu.vector_store %arg7[%c0_565, %c0_566, %c0_567, %c0_568, %c0_569], %316 {strides = array<i32>} : memref<1x4x8x8x128xf32, #tpu.memory_space<vmem>>, vector<1x4x8x8x128xf32>,
    return
  }
  func.func @transform_0(%arg0: i32, %arg1: i32) -> (i32, i32, i32, i32, i32, i32) {
    %c0_i32 = arith.constant 0 : i32
    %c0_i32_0 = arith.constant 0 : i32
    %c0_i32_1 = arith.constant 0 : i32
    %c0_i32_2 = arith.constant 0 : i32
    %c0_i32_3 = arith.constant 0 : i32
    %c0_i32_4 = arith.constant 0 : i32
    return %arg0, %c0_i32, %c0_i32_0, %c0_i32_1, %c0_i32_2, %c0_i32_3 : i32, i32, i32, i32, i32, i32
  }
  func.func @transform_1(%arg0: i32, %arg1: i32) -> (i32, i32) {
    %c0_i32 = arith.constant 0 : i32
    %c0_i32_0 = arith.constant 0 : i32
    %c0_i32_1 = arith.constant 0 : i32
    return %c0_i32, %c0_i32_0 : i32, i32
  }
  func.func @transform_2(%arg0: i32, %arg1: i32) -> (i32, i32) {
    %c0_i32 = arith.constant 0 : i32
    %c0_i32_0 = arith.constant 0 : i32
    %c0_i32_1 = arith.constant 0 : i32
    return %c0_i32, %c0_i32_0 : i32, i32
  }
  func.func @transform_3(%arg0: i32, %arg1: i32) -> (i32, i32, i32) {
    %c0_i32 = arith.constant 0 : i32
    %c0_i32_0 = arith.constant 0 : i32
    return %arg0, %arg1, %c0_i32 : i32, i32, i32
  }
  func.func @transform_4(%arg0: i32, %arg1: i32) -> (i32, i32) {
    %c0_i32 = arith.constant 0 : i32
    %c0_i32_0 = arith.constant 0 : i32
    %c0_i32_1 = arith.constant 0 : i32
    return %c0_i32, %c0_i32_0 : i32, i32
  }
  func.func @transform_5(%arg0: i32, %arg1: i32) -> (i32, i32, i32, i32, i32) {
    %c0_i32 = arith.constant 0 : i32
    %c0_i32_0 = arith.constant 0 : i32
    %c0_i32_1 = arith.constant 0 : i32
    %c0_i32_2 = arith.constant 0 : i32
    return %arg0, %arg1, %c0_i32, %c0_i32_0, %c0_i32_1 : i32, i32, i32, i32, i32
  }
}

</mosaic_0001>

<bundles_post_ra>
// kernel: _lambda_.2
= control target key start
LH: loop header
LB: loop body
LE: loop exit
PB: predicated region body
PF: predicated region fallthrough
CT: control target
= control target key end

     0   :  { %s1809_s12 = smov 0   ;;  %s1811_s13 = smov 0   ;;  %s2448_s0 = inlined_call_operand.vmem [shape: bf16[2,4,1,8,8,128], index: 0, kind: input, shape index: {}]   ;;  %s2449_s1 = inlined_call_operand.vmem [shape: bf16[128,128], index: 1, kind: input, shape index: {}]   ;;  %s2450_s2 = inlined_call_operand.vmem [shape: f32[1,128], index: 2, kind: input, shape index: {}]   ;;  %s2451_s3 = inlined_call_operand.vmem [shape: bf16[2,4,10,10,128], index: 3, kind: output, shape index: {}]  }
   0x1   :  { %s1813_s14 = smov 0  }
   0x2 LB: > { %s25_s15 = sadd.s32 1, %s1782_s13  ;;  %p1378_p0 = scmp.ge.s32.totalorder %s1786_s14, 1  ;;  %s1786_s14 = sphi %s1813_s14, %s13_s14   ;;  %s1782_s13 = sphi %s1811_s13, %s2457_s13   ;;  %s1778_s12 = sphi %s1809_s12, %s2456_s12  }
   0x3   : > { %p27_p1 = scmp.ge.s32.totalorder %s25_s15, 2  ;;  %p151_p2 = scmp.lt.s32.totalorder %s1786_s14, 3 }
   0x5   : > { %s2459_s15 = smov (%p27_p1, %s25_s15), 0  ;;  %p152_p3 = pnand %p1378_p0, %p151_p2 }
   0x6   : > { %v1740_v0 = vld [vmem:[%s2449_s1] sm:$0xff] (!%p152_p3)   ;;  %p180_p4 = scmp.lt.s32.totalorder (!%p152_p3), %s1778_s12, 1  ;;  %v1741_v1 = vld [vmem:[%s2449_s1 + $0x8] sm:$0xff] (!%p152_p3)   ;;  %v1836_v2 = vld [vmem:[%s2449_s1 + $0x10] sm:$0xff] (!%p152_p3)   ;;  %v1788_v5 = vmov (!%p152_p3), 0   ;;  %vm1089_vm0 = vcmask (!%p152_p3), 1043456  }
   0x7   : > { %155 = sbr.rel (%p152_p3) target bundleno = 337 (0x151), region = 32  ;;  %1650 = vmatprep.subr.bf16.mxu0 (!%p152_p3), %v1740_v0  ;;  %1698 = vmatprep.subr.bf16.mxu1 (!%p152_p3), %v1740_v0  ;;  %v1846_v3 = vld [vmem:[%s2449_s1 + $0x18] sm:$0xff] (!%p152_p3)   ;;  %v1744_v7 = vld [vmem:[%s2449_s1 + $0x20] sm:$0xff] (!%p152_p3)   ;;  %v1745_v8 = vld [vmem:[%s2449_s1 + $0x28] sm:$0xff] (!%p152_p3)   ;;  %vm1090_vm1 = vsmask.f32 (!%p152_p3), 7938 }
   0x8   : > { %1651 = vmatpush3.bf16.msra.mxu0 (!%p152_p3), %v1740_v0  ;;  %1706 = vmatpush3.bf16.msra.mxu1 (!%p152_p3), %v1740_v0  ;;  %v1746_v9 = vld [vmem:[%s2449_s1 + $0x30] sm:$0xff] (!%p152_p3)   ;;  %v1747_v10 = vld [vmem:[%s2449_s1 + $0x38] sm:$0xff] (!%p152_p3)   ;;  %v2055_v25 = vld [vmem:[%s2450_s2] ss:$0 sm:$0xff] (!%p152_p3)  ;;  %vm1095_vm2 = vcmask (!%p152_p3), 1040384  }
   0x9   : > { %1652 = vmatprep.subr.bf16.mxu0 (!%p152_p3), %v1741_v1  ;;  %1699 = vmatprep.subr.bf16.mxu1 (!%p152_p3), %v1741_v1  ;;  %vm1096_vm3 = vsmask.f32 (!%p152_p3), 256  ;;  %vm2075_vm4 = vmand (!%p152_p3), %vm1089_vm0, %vm1090_vm1 }
   0xa   : > { %vm2087_vm5 = vmand (!%p152_p3), %vm1095_vm2, %vm1096_vm3 }
   0xc   : > { %1653 = vmatpush3.bf16.msra.mxu0 (!%p152_p3), %v1741_v1  ;;  %1707 = vmatpush3.bf16.msra.mxu1 (!%p152_p3), %v1741_v1 }
   0xd   : > { %1654 = vmatprep.subr.bf16.mxu0 (!%p152_p3), %v1836_v2  ;;  %1700 = vmatprep.subr.bf16.mxu1 (!%p152_p3), %v1836_v2 }
   0xe   : > { %s2461_s12 = smov (!%p180_p4, %s1778_s12), 1 }
   0xf   : > { %s1593_s22 = sshll.u32 %s2461_s12, 7  ;;  %s1714_s26 = smul.u32 320, %s2461_s12 }
  0x10   : > { %s1841_s25 = scalar_lea.vmem %s2448_s0, %s1593_s22  ;;  %1655 = vmatpush3.bf16.msra.mxu0 %v1836_v2  ;;  %1708 = vmatpush3.bf16.msra.mxu1 %v1836_v2 }
  0x11   : > { %s1851_s4 = scalar_lea.vmem %s2451_s3, %s1714_s26  ;;  %v1856_v4 = vld [vmem:[%s1841_s25] sm:$0xff]   ;;  %1656 = vmatprep.subr.bf16.mxu0 %v1846_v3  ;;  %1701 = vmatprep.subr.bf16.mxu1 %v1846_v3  ;;  %v1750_v11 = vld [vmem:[%s1841_s25 + $0x8] sm:$0xff]   ;;  %v1752_v13 = vld [vmem:[%s1841_s25 + $0x10] sm:$0xff]  }
  0x12   : > { %197 = vst [vmem:[%s1851_s4] sm:$0xf] %v1788_v5  ;;  %198 = vst [vmem:[%s1851_s4 + $0x4] sm:$0x1] %v1788_v5  ;;  %v1749_v6 = vld [vmem:[%s1841_s25 + $0x40] sm:$0xff]   ;;  %1666 = vmatprep.mubr.bf16.mxu0 %v1856_v4  ;;  %v1751_v12 = vld [vmem:[%s1841_s25 + $0x48] sm:$0xff]  }
  0x13   : > { %203 = vst [vmem:[%s1851_s4 + $0x18] sm:$0xf] %v1788_v5  ;;  %204 = vst [vmem:[%s1851_s4 + $0x1c] sm:$0x1] %v1788_v5  ;;  %1682 = vmatprep.mubr.bf16.mxu1 %v1749_v6  ;;  %v1753_v14 = vld [vmem:[%s1841_s25 + $0x50] sm:$0xff]   ;;  %v1754_v15 = vld [vmem:[%s1841_s25 + $0x18] sm:$0xff]  }
  0x14   : > { %215 = vst [vmem:[%s1851_s4 + $0x48] sm:$0xf] %v1788_v5  ;;  %216 = vst [vmem:[%s1851_s4 + $0x4c] sm:$0x1] %v1788_v5  ;;  %1657 = vmatpush3.bf16.msra.mxu0 %v1846_v3  ;;  %1709 = vmatpush3.bf16.msra.mxu1 %v1846_v3  ;;  %v1755_v16 = vld [vmem:[%s1841_s25 + $0x58] sm:$0xff]   ;;  %v1756_v17 = vld [vmem:[%s1841_s25 + $0x20] sm:$0xff]  }
  0x15   : > { %217 = vst [vmem:[%s1851_s4 + $0x50] sm:$0xf] %v1788_v5  ;;  %218 = vst [vmem:[%s1851_s4 + $0x54] sm:$0x1] %v1788_v5  ;;  %1658 = vmatprep.subr.bf16.mxu0 %v1744_v7  ;;  %1702 = vmatprep.subr.bf16.mxu1 %v1744_v7  ;;  %v1757_v18 = vld [vmem:[%s1841_s25 + $0x60] sm:$0xff]   ;;  %v1758_v19 = vld [vmem:[%s1841_s25 + $0x28] sm:$0xff]  }
  0x16   : > { %235 = vst [vmem:[%s1851_s4 + $0x98] sm:$0xf] %v1788_v5  ;;  %236 = vst [vmem:[%s1851_s4 + $0x9c] sm:$0x1] %v1788_v5  ;;  %v1759_v20 = vld [vmem:[%s1841_s25 + $0x68] sm:$0xff]   ;;  %v1760_v21 = vld [vmem:[%s1841_s25 + $0x30] sm:$0xff]  }
  0x17   : > { %237 = vst [vmem:[%s1851_s4 + $0xa0] sm:$0xf] %v1788_v5  ;;  %238 = vst [vmem:[%s1851_s4 + $0xa4] sm:$0x1] %v1788_v5  ;;  %v1761_v22 = vld [vmem:[%s1841_s25 + $0x70] sm:$0xff]   ;;  %v1762_v23 = vld [vmem:[%s1841_s25 + $0x38] sm:$0xff]  }
  0x18   : > { %255 = vst [vmem:[%s1851_s4 + $0xe8] sm:$0xf] %v1788_v5  ;;  %256 = vst [vmem:[%s1851_s4 + $0xec] sm:$0x1] %v1788_v5  ;;  %1659 = vmatpush3.bf16.msra.mxu0 %v1744_v7  ;;  %1710 = vmatpush3.bf16.msra.mxu1 %v1744_v7  ;;  %v1763_v24 = vld [vmem:[%s1841_s25 + $0x78] sm:$0xff]  }
  0x19   : > { %257 = vst [vmem:[%s1851_s4 + $0xf0] sm:$0xf] %v1788_v5  ;;  %258 = vst [vmem:[%s1851_s4 + $0xf4] sm:$0x1] %v1788_v5  ;;  %1660 = vmatprep.subr.bf16.mxu0 %v1745_v8  ;;  %1703 = vmatprep.subr.bf16.mxu1 %v1745_v8 }
  0x1a   : > { %275 = vst [vmem:[%s1851_s4 + $0x138] sm:$0xf] %v1788_v5  ;;  %276 = vst [vmem:[%s1851_s4 + $0x13c] sm:$0x1] %v1788_v5  ;;  %v1471_v58 = vld [vmem:[%s1851_s4 + $0x18] sm:$0xf] }
  0x1b   : > { %199 = vst [vmem:[%s1851_s4 + $0x8] sm:$0xf] %v1788_v5  ;;  %200 = vst [vmem:[%s1851_s4 + $0xc] sm:$0x1] %v1788_v5  ;;  %v1473_v59 = vld [vmem:[%s1851_s4 + $0x1c] sm:$0x1] }
  0x1c   : > { %201 = vst [vmem:[%s1851_s4 + $0x10] sm:$0xf] %v1788_v5  ;;  %202 = vst [vmem:[%s1851_s4 + $0x14] sm:$0x1] %v1788_v5  ;;  %1661 = vmatpush3.bf16.msra.mxu0 %v1745_v8  ;;  %1711 = vmatpush3.bf16.msra.mxu1 %v1745_v8 }
  0x1d   : > { %205 = vst [vmem:[%s1851_s4 + $0x20] sm:$0xf] %v1788_v5  ;;  %206 = vst [vmem:[%s1851_s4 + $0x24] sm:$0x1] %v1788_v5  ;;  %1662 = vmatprep.subr.bf16.mxu0 %v1746_v9  ;;  %1704 = vmatprep.subr.bf16.mxu1 %v1746_v9 }
  0x1e   : > { %207 = vst [vmem:[%s1851_s4 + $0x28] sm:$0xf] %v1788_v5  ;;  %208 = vst [vmem:[%s1851_s4 + $0x2c] sm:$0x1] %v1788_v5 }
  0x1f   : > { %209 = vst [vmem:[%s1851_s4 + $0x30] sm:$0xf] %v1788_v5  ;;  %210 = vst [vmem:[%s1851_s4 + $0x34] sm:$0x1] %v1788_v5 }
  0x20   : > { %211 = vst [vmem:[%s1851_s4 + $0x38] sm:$0xf] %v1788_v5  ;;  %212 = vst [vmem:[%s1851_s4 + $0x3c] sm:$0x1] %v1788_v5  ;;  %1663 = vmatpush3.bf16.msra.mxu0 %v1746_v9  ;;  %1712 = vmatpush3.bf16.msra.mxu1 %v1746_v9 }
  0x21   : > { %213 = vst [vmem:[%s1851_s4 + $0x40] sm:$0xf] %v1788_v5  ;;  %214 = vst [vmem:[%s1851_s4 + $0x44] sm:$0x1] %v1788_v5  ;;  %1664 = vmatprep.subr.bf16.mxu0 %v1747_v10  ;;  %1705 = vmatprep.subr.bf16.mxu1 %v1747_v10 }
  0x22   : > { %219 = vst [vmem:[%s1851_s4 + $0x58] sm:$0xf] %v1788_v5  ;;  %220 = vst [vmem:[%s1851_s4 + $0x5c] sm:$0x1] %v1788_v5  ;;  %v1463_v7 = vld [vmem:[%s1851_s4 + $0x8] sm:$0xf] }
  0x23   : > { %221 = vst [vmem:[%s1851_s4 + $0x60] sm:$0xf] %v1788_v5  ;;  %222 = vst [vmem:[%s1851_s4 + $0x64] sm:$0x1] %v1788_v5  ;;  %v1465_v8 = vld [vmem:[%s1851_s4 + $0xc] sm:$0x1] }
  0x24   : > { %223 = vst [vmem:[%s1851_s4 + $0x68] sm:$0xf] %v1788_v5  ;;  %224 = vst [vmem:[%s1851_s4 + $0x6c] sm:$0x1] %v1788_v5  ;;  %1665 = vmatpush3.bf16.msra.mxu0 %v1747_v10  ;;  %1713 = vmatpush3.bf16.msra.mxu1 %v1747_v10 }
  0x25   : > { %225 = vst [vmem:[%s1851_s4 + $0x70] sm:$0xf] %v1788_v5  ;;  %226 = vst [vmem:[%s1851_s4 + $0x74] sm:$0x1] %v1788_v5 }
  0x26   : > { %227 = vst [vmem:[%s1851_s4 + $0x78] sm:$0xf] %v1788_v5  ;;  %228 = vst [vmem:[%s1851_s4 + $0x7c] sm:$0x1] %v1788_v5 }
  0x27   : > { %229 = vst [vmem:[%s1851_s4 + $0x80] sm:$0xf] %v1788_v5  ;;  %230 = vst [vmem:[%s1851_s4 + $0x84] sm:$0x1] %v1788_v5  ;;  %1667 = vmatmul.mubr.bf16.vlgmr.msra.gmra.mrb[0].mxu0 %v1750_v11  ;;  %1683 = vmatmul.mubr.bf16.vlgmr.msra.gmra.mrb[0].mxu1 %v1751_v12 }
  0x28   : > { %231 = vst [vmem:[%s1851_s4 + $0x88] sm:$0xf] %v1788_v5  ;;  %232 = vst [vmem:[%s1851_s4 + $0x8c] sm:$0x1] %v1788_v5  ;;  %1670 = vmatprep.mubr.bf16.mxu0 %v1752_v13  ;;  %1686 = vmatprep.mubr.bf16.mxu1 %v1753_v14 }
  0x29   : > { %233 = vst [vmem:[%s1851_s4 + $0x90] sm:$0xf] %v1788_v5  ;;  %234 = vst [vmem:[%s1851_s4 + $0x94] sm:$0x1] %v1788_v5 }
  0x2a   : > { %239 = vst [vmem:[%s1851_s4 + $0xa8] sm:$0xf] %v1788_v5  ;;  %240 = vst [vmem:[%s1851_s4 + $0xac] sm:$0x1] %v1788_v5 }
  0x2b   : > { %241 = vst [vmem:[%s1851_s4 + $0xb0] sm:$0xf] %v1788_v5  ;;  %242 = vst [vmem:[%s1851_s4 + $0xb4] sm:$0x1] %v1788_v5 }
  0x2c   : > { %243 = vst [vmem:[%s1851_s4 + $0xb8] sm:$0xf] %v1788_v5  ;;  %244 = vst [vmem:[%s1851_s4 + $0xbc] sm:$0x1] %v1788_v5 }
  0x2d   : > { %245 = vst [vmem:[%s1851_s4 + $0xc0] sm:$0xf] %v1788_v5  ;;  %246 = vst [vmem:[%s1851_s4 + $0xc4] sm:$0x1] %v1788_v5 }
  0x2e   : > { %247 = vst [vmem:[%s1851_s4 + $0xc8] sm:$0xf] %v1788_v5  ;;  %248 = vst [vmem:[%s1851_s4 + $0xcc] sm:$0x1] %v1788_v5 }
  0x2f   : > { %249 = vst [vmem:[%s1851_s4 + $0xd0] sm:$0xf] %v1788_v5  ;;  %250 = vst [vmem:[%s1851_s4 + $0xd4] sm:$0x1] %v1788_v5  ;;  %1671 = vmatmul.mubr.bf16.gmra.mrb[4].mxu0 %v1754_v15  ;;  %1687 = vmatmul.mubr.bf16.gmra.mrb[4].mxu1 %v1755_v16 }
  0x30   : > { %251 = vst [vmem:[%s1851_s4 + $0xd8] sm:$0xf] %v1788_v5  ;;  %252 = vst [vmem:[%s1851_s4 + $0xdc] sm:$0x1] %v1788_v5  ;;  %1674 = vmatprep.mubr.bf16.mxu0 %v1756_v17  ;;  %1690 = vmatprep.mubr.bf16.mxu1 %v1757_v18 }
  0x31   : > { %253 = vst [vmem:[%s1851_s4 + $0xe0] sm:$0xf] %v1788_v5  ;;  %254 = vst [vmem:[%s1851_s4 + $0xe4] sm:$0x1] %v1788_v5  ;;  %v1527_v16 = vld [vmem:[%s1851_s4 + $0xa8] sm:$0xf] }
  0x32   : > { %259 = vst [vmem:[%s1851_s4 + $0xf8] sm:$0xf] %v1788_v5  ;;  %260 = vst [vmem:[%s1851_s4 + $0xfc] sm:$0x1] %v1788_v5 }
  0x33   : > { %261 = vst [vmem:[%s1851_s4 + $0x100] sm:$0xf] %v1788_v5  ;;  %262 = vst [vmem:[%s1851_s4 + $0x104] sm:$0x1] %v1788_v5  ;;  %v1535_v60 = vld [vmem:[%s1851_s4 + $0xb8] sm:$0xf] }
  0x34   : > { %263 = vst [vmem:[%s1851_s4 + $0x108] sm:$0xf] %v1788_v5  ;;  %264 = vst [vmem:[%s1851_s4 + $0x10c] sm:$0x1] %v1788_v5  ;;  %v1537_v61 = vld [vmem:[%s1851_s4 + $0xbc] sm:$0x1] }
  0x35   : > { %265 = vst [vmem:[%s1851_s4 + $0x110] sm:$0xf] %v1788_v5  ;;  %266 = vst [vmem:[%s1851_s4 + $0x114] sm:$0x1] %v1788_v5 }
  0x36   : > { %267 = vst [vmem:[%s1851_s4 + $0x118] sm:$0xf] %v1788_v5  ;;  %268 = vst [vmem:[%s1851_s4 + $0x11c] sm:$0x1] %v1788_v5 }
  0x37   : > { %269 = vst [vmem:[%s1851_s4 + $0x120] sm:$0xf] %v1788_v5  ;;  %270 = vst [vmem:[%s1851_s4 + $0x124] sm:$0x1] %v1788_v5  ;;  %1675 = vmatmul.mubr.bf16.gmra.mrb[8].mxu0 %v1758_v19  ;;  %1691 = vmatmul.mubr.bf16.gmra.mrb[8].mxu1 %v1759_v20 }
  0x38   : > { %271 = vst [vmem:[%s1851_s4 + $0x128] sm:$0xf] %v1788_v5  ;;  %272 = vst [vmem:[%s1851_s4 + $0x12c] sm:$0x1] %v1788_v5  ;;  %1678 = vmatprep.mubr.bf16.mxu0 %v1760_v21  ;;  %1694 = vmatprep.mubr.bf16.mxu1 %v1761_v22 }
  0x39   : > { %273 = vst [vmem:[%s1851_s4 + $0x130] sm:$0xf] %v1788_v5  ;;  %274 = vst [vmem:[%s1851_s4 + $0x134] sm:$0x1] %v1788_v5 }
  0x3f   : > { %1679 = vmatmul.mubr.bf16.gmra.mrb[12].mxu0 %v1762_v23  ;;  %1695 = vmatmul.mubr.bf16.gmra.mrb[12].mxu1 %v1763_v24 }
  0xfa   : > { %v1668_v26 = vpop.f32.mrb[0].mxu0  ;;  %v1684_v27 = vpop.f32.mrb[0].mxu1 }
  0xfb   : > { %v522_v28 = vadd.f32 %v1668_v26, %v2055_v25  ;;  %v586_v29 = vadd.f32 %v1684_v27, %v2055_v25  ;;  %v513_v30 = vpop.f32.mrb[1].mxu0  ;;  %v577_v31 = vpop.f32.mrb[1].mxu1  ;;  %v1529_v26 = vld [vmem:[%s1851_s4 + $0xac] sm:$0x1] }
  0xfc   : > { %v514_v32 = vadd.f32 %v2055_v25, %v513_v30  ;;  %v578_v33 = vadd.f32 %v2055_v25, %v577_v31  ;;  %v1669_v34 = vpop.f32.mrb[2].mxu0  ;;  %v1685_v35 = vpop.f32.mrb[2].mxu1 }
  0xfd   : > { %v642_v36 = vmax.f32 %v522_v28, 0.0  ;;  %v658_v37 = vmax.f32 %v586_v29, 0.0  ;;  %v525_v38 = vadd.f32 %v1669_v34, %v2055_v25  ;;  %v589_v39 = vadd.f32 %v1685_v35, %v2055_v25  ;;  %v516_v40 = vpop.f32.mrb[3].mxu0  ;;  %v580_v41 = vpop.f32.mrb[3].mxu1 }
  0xfe   : > { %v640_v42 = vmax.f32 %v514_v32, 0.0  ;;  %v656_v43 = vmax.f32 %v578_v33, 0.0  ;;  %v517_v44 = vadd.f32 %v2055_v25, %v516_v40  ;;  %v581_v45 = vadd.f32 %v2055_v25, %v580_v41 }
  0xff   : > { %v1596_v46 = vpack.c.bf16 %v642_v36, %v642_v36  ;;  %v1612_v47 = vpack.c.bf16 %v658_v37, %v658_v37  ;;  %v643_v48 = vmax.f32 %v525_v38, 0.0  ;;  %v659_v49 = vmax.f32 %v589_v39, 0.0 }
 0x100   : > { %v1594_v50 = vpack.c.bf16 %v640_v42, %v640_v42  ;;  %v1610_v51 = vpack.c.bf16 %v656_v43, %v656_v43  ;;  %v641_v52 = vmax.f32 %v517_v44, 0.0  ;;  %v657_v53 = vmax.f32 %v581_v45, 0.0  ;;  %v1475_v45 = vld [vmem:[%s1851_s4 + $0x20] sm:$0xf] }
 0x101   : > { %v785_v54 = vshrl.u32 %v1596_v46, 16  ;;  %v788_v55 = vshll.u32 %v1596_v46, 16  ;;  %v913_v56 = vshrl.u32 %v1612_v47, 16  ;;  %v916_v57 = vshll.u32 %v1612_v47, 16  ;;  %v1477_v46 = vld [vmem:[%s1851_s4 + $0x24] sm:$0x1] }
 0x102   : > { %v769_v62 = vshrl.u32 %v1594_v50, 16  ;;  %v772_v63 = vshll.u32 %v1594_v50, 16  ;;  %v897_v0 = vshrl.u32 %v1610_v51, 16  ;;  %v900_v1 = vshll.u32 %v1610_v51, 16  ;;  %v2069_v2 = vpop.f32.mrb[4].mxu0  ;;  %v2071_v3 = vpop.f32.mrb[4].mxu1 }
 0x103   : > { %v787_v4 = vrot.slane %v785_v54, 7  ;;  %v915_v6 = vrot.slane %v913_v56, 7  ;;  %v2081_v9 = vpack.c.bf16 %v643_v48, %v643_v48  ;;  %v2083_v10 = vpack.c.bf16 %v659_v49, %v659_v49  ;;  %v529_v11 = vpop.f32.mrb[5].mxu0  ;;  %v593_v12 = vpop.f32.mrb[5].mxu1  ;;  %v1539_v47 = vld [vmem:[%s1851_s4 + $0xc0] sm:$0xf] }
 0x104   : > { %v771_v14 = vrot.slane %v769_v62, 7  ;;  %v899_v15 = vrot.slane %v897_v0, 7  ;;  %v2092_v17 = vpack.c.bf16 %v641_v52, %v641_v52  ;;  %v2094_v18 = vpack.c.bf16 %v657_v53, %v657_v53  ;;  %v2096_v19 = vpop.f32.mrb[6].mxu0  ;;  %v2098_v20 = vpop.f32.mrb[6].mxu1  ;;  %v1541_v48 = vld [vmem:[%s1851_s4 + $0xc4] sm:$0x1] }
 0x105   : > { %v790_v21 = vor.u32 %v788_v55, %v787_v4  ;;  %v791_v22 = vrot.slane %v787_v4, 4  ;;  %v918_v23 = vor.u32 %v916_v57, %v915_v6  ;;  %v919_v24 = vrot.slane %v915_v6, 4  ;;  %v2101_v27 = vpop.f32.mrb[7].mxu0  ;;  %v2103_v28 = vpop.f32.mrb[7].mxu1  ;;  %v1467_v57 = vld [vmem:[%s1851_s4 + $0x10] sm:$0xf] }
 0x106   : > { %v774_v29 = vor.u32 %v772_v63, %v771_v14  ;;  %v775_v30 = vrot.slane %v771_v14, 4  ;;  %v902_v31 = vor.u32 %v900_v1, %v899_v15  ;;  %v903_v32 = vrot.slane %v899_v15, 4  ;;  %v1531_v1 = vld [vmem:[%s1851_s4 + $0xb0] sm:$0xf]  ;;  %v1533_v14 = vld [vmem:[%s1851_s4 + $0xb4] sm:$0x1] }
 0x107   : > { %v1108_v33 = vsel %vm2075_vm4, %v790_v21, %v1471_v58  ;;  %v1111_v34 = vsel %vm2087_vm5, %v791_v22, %v1473_v59  ;;  %v1204_v35 = vsel %vm2075_vm4, %v918_v23, %v1535_v60  ;;  %v1207_v36 = vsel %vm2087_vm5, %v919_v24, %v1537_v61  ;;  %v1469_v58 = vld [vmem:[%s1851_s4 + $0x14] sm:$0x1] }
 0x108   : > { %1472 = vst [vmem:[%s1851_s4 + $0x18] sm:$0xf] %v1108_v33  ;;  %1474 = vst [vmem:[%s1851_s4 + $0x1c] sm:$0x1] %v1111_v34  ;;  %v1093_v37 = vsel %vm2075_vm4, %v774_v29, %v1463_v7  ;;  %v1099_v38 = vsel %vm2087_vm5, %v775_v30, %v1465_v8  ;;  %v1192_v39 = vsel %vm2075_vm4, %v902_v31, %v1527_v16  ;;  %v793_v41 = vshrl.u32 %v2081_v9, 16 }
 0x109   : > { %1536 = vst [vmem:[%s1851_s4 + $0xb8] sm:$0xf] %v1204_v35  ;;  %1538 = vst [vmem:[%s1851_s4 + $0xbc] sm:$0x1] %v1207_v36  ;;  %v1195_v40 = vsel %vm2087_vm5, %v903_v32, %v1529_v26  ;;  %v796_v42 = vshll.u32 %v2081_v9, 16  ;;  %v921_v43 = vshrl.u32 %v2083_v10, 16  ;;  %v538_v59 = vadd.f32 %v2069_v2, %v2055_v25 }
 0x10a   : > { %1464 = vst [vmem:[%s1851_s4 + $0x8] sm:$0xf] %v1093_v37  ;;  %1466 = vst [vmem:[%s1851_s4 + $0xc] sm:$0x1] %v1099_v38  ;;  %v924_v44 = vshll.u32 %v2083_v10, 16  ;;  %v777_v49 = vshrl.u32 %v2092_v17, 16  ;;  %v602_v60 = vadd.f32 %v2071_v3, %v2055_v25  ;;  %v530_v4 = vadd.f32 %v2055_v25, %v529_v11 }
 0x10b   : > { %1528 = vst [vmem:[%s1851_s4 + $0xa8] sm:$0xf] %v1192_v39  ;;  %1530 = vst [vmem:[%s1851_s4 + $0xac] sm:$0x1] %v1195_v40  ;;  %v780_v50 = vshll.u32 %v2092_v17, 16  ;;  %v905_v51 = vshrl.u32 %v2094_v18, 16  ;;  %v594_v6 = vadd.f32 %v2055_v25, %v593_v12  ;;  %v541_v36 = vadd.f32 %v2096_v19, %v2055_v25 }
 0x10c   : > { %v908_v52 = vshll.u32 %v2094_v18, 16  ;;  %v2141_v53 = vpop.f32.mrb[8].mxu0  ;;  %v2143_v54 = vpop.f32.mrb[8].mxu1  ;;  %v795_v55 = vrot.slane %v793_v41, 7  ;;  %v923_v56 = vrot.slane %v921_v43, 7  ;;  %v779_v63 = vrot.slane %v777_v49, 7 }
 0x10d   : > { %v2151_v61 = vpop.f32.mrb[9].mxu0  ;;  %v2153_v62 = vpop.f32.mrb[9].mxu1  ;;  %v907_v0 = vrot.slane %v905_v51, 7  ;;  %v646_v32 = vmax.f32 %v538_v59, 0.0  ;;  %v662_v33 = vmax.f32 %v602_v60, 0.0  ;;  %v644_v34 = vmax.f32 %v530_v4, 0.0 }
 0x10e   : > { %v2158_v7 = vpop.f32.mrb[10].mxu0  ;;  %v2160_v8 = vpop.f32.mrb[10].mxu1  ;;  %v798_v2 = vor.u32 %v796_v42, %v795_v55  ;;  %v799_v9 = vrot.slane %v795_v55, 4  ;;  %v926_v3 = vor.u32 %v924_v44, %v923_v56  ;;  %v927_v10 = vrot.slane %v923_v56, 4  ;;  %v1489_v59 = vld [vmem:[%s1851_s4 + $0x3c] sm:$0x1] }
 0x10f   : > { %v2163_v15 = vpop.f32.mrb[11].mxu0  ;;  %v2165_v16 = vpop.f32.mrb[11].mxu1  ;;  %v782_v11 = vor.u32 %v780_v50, %v779_v63  ;;  %v783_v12 = vrot.slane %v779_v63, 4  ;;  %v910_v17 = vor.u32 %v908_v52, %v907_v0  ;;  %v911_v18 = vrot.slane %v907_v0, 4 }
 0x110   : > { %v1114_v21 = vsel %vm2075_vm4, %v798_v2, %v1475_v45  ;;  %v1117_v22 = vsel %vm2087_vm5, %v799_v9, %v1477_v46  ;;  %v1210_v23 = vsel %vm2075_vm4, %v926_v3, %v1539_v47  ;;  %v1213_v24 = vsel %vm2087_vm5, %v927_v10, %v1541_v48  ;;  %v1551_v2 = vld [vmem:[%s1851_s4 + $0xd8] sm:$0xf]  ;;  %v1553_v9 = vld [vmem:[%s1851_s4 + $0xdc] sm:$0x1] }
 0x111   : > { %1476 = vst [vmem:[%s1851_s4 + $0x20] sm:$0xf] %v1114_v21  ;;  %1478 = vst [vmem:[%s1851_s4 + $0x24] sm:$0x1] %v1117_v22  ;;  %v1102_v26 = vsel %vm2075_vm4, %v782_v11, %v1467_v57  ;;  %v1105_v29 = vsel %vm2087_vm5, %v783_v12, %v1469_v58  ;;  %v1198_v30 = vsel %vm2075_vm4, %v910_v17, %v1531_v1  ;;  %v660_v35 = vmax.f32 %v594_v6, 0.0 }
 0x112   : > { %1540 = vst [vmem:[%s1851_s4 + $0xc0] sm:$0xf] %v1210_v23  ;;  %1542 = vst [vmem:[%s1851_s4 + $0xc4] sm:$0x1] %v1213_v24  ;;  %v1201_v31 = vsel %vm2087_vm5, %v911_v18, %v1533_v14  ;;  %v605_v37 = vadd.f32 %v2098_v20, %v2055_v25  ;;  %v533_v38 = vadd.f32 %v2055_v25, %v2101_v27  ;;  %v2199_v40 = vpop.f32.mrb[12].mxu0  ;;  %v2201_v41 = vpop.f32.mrb[12].mxu1 }
 0x113   : > { %1468 = vst [vmem:[%s1851_s4 + $0x10] sm:$0xf] %v1102_v26  ;;  %1470 = vst [vmem:[%s1851_s4 + $0x14] sm:$0x1] %v1105_v29  ;;  %v597_v39 = vadd.f32 %v2055_v25, %v2103_v28  ;;  %v1600_v42 = vpack.c.bf16 %v646_v32, %v646_v32  ;;  %v1616_v43 = vpack.c.bf16 %v662_v33, %v662_v33  ;;  %v2203_v19 = vpop.f32.mrb[13].mxu0  ;;  %v2205_v46 = vpop.f32.mrb[13].mxu1 }
 0x114   : > { %1532 = vst [vmem:[%s1851_s4 + $0xb0] sm:$0xf] %v1198_v30  ;;  %1534 = vst [vmem:[%s1851_s4 + $0xb4] sm:$0x1] %v1201_v31  ;;  %v1598_v44 = vpack.c.bf16 %v644_v34, %v644_v34  ;;  %v1614_v45 = vpack.c.bf16 %v660_v35, %v660_v35  ;;  %v647_v20 = vmax.f32 %v541_v36, 0.0  ;;  %v663_v47 = vmax.f32 %v605_v37, 0.0 }
 0x115   : > { %v645_v27 = vmax.f32 %v533_v38, 0.0  ;;  %v661_v48 = vmax.f32 %v597_v39, 0.0  ;;  %v2207_v49 = vpop.f32.mrb[14].mxu0  ;;  %v2209_v28 = vpop.f32.mrb[14].mxu1  ;;  %v817_v50 = vshrl.u32 %v1600_v42, 16  ;;  %v820_v51 = vshll.u32 %v1600_v42, 16 }
 0x116   : > { %v945_v52 = vshrl.u32 %v1616_v43, 16  ;;  %v948_v55 = vshll.u32 %v1616_v43, 16  ;;  %v2211_v56 = vpop.f32.mrb[15].mxu0  ;;  %v2213_v57 = vpop.f32.mrb[15].mxu1  ;;  %v1487_v58 = vld [vmem:[%s1851_s4 + $0x38] sm:$0xf]  ;;  %v1601_v3 = vpack.c.bf16 %v647_v20, %v647_v20  ;;  %v1617_v10 = vpack.c.bf16 %v663_v47, %v663_v47 }
 0x117   : > { %v801_v60 = vshrl.u32 %v1598_v44, 16  ;;  %v804_v63 = vshll.u32 %v1598_v44, 16  ;;  %v929_v0 = vshrl.u32 %v1614_v45, 16  ;;  %v932_v1 = vshll.u32 %v1614_v45, 16  ;;  %v1479_v11 = vld [vmem:[%s1851_s4 + $0x28] sm:$0xf] }
 0x118   : > { %v819_v4 = vrot.slane %v817_v50, 7  ;;  %v947_v6 = vrot.slane %v945_v52, 7  ;;  %v1481_v12 = vld [vmem:[%s1851_s4 + $0x2c] sm:$0x1]  ;;  %v1599_v18 = vpack.c.bf16 %v645_v27, %v645_v27  ;;  %v1615_v21 = vpack.c.bf16 %v661_v48, %v661_v48  ;;  %v1543_v29 = vld [vmem:[%s1851_s4 + $0xc8] sm:$0xf] }
 0x119   : > { %v803_v14 = vrot.slane %v801_v60, 7  ;;  %v931_v17 = vrot.slane %v929_v0, 7  ;;  %v1545_v30 = vld [vmem:[%s1851_s4 + $0xcc] sm:$0x1]  ;;  %v825_v45 = vshrl.u32 %v1601_v3, 16  ;;  %v828_v20 = vshll.u32 %v1601_v3, 16 }
 0x11a   : > { %v822_v22 = vor.u32 %v820_v51, %v819_v4  ;;  %v823_v23 = vrot.slane %v819_v4, 4  ;;  %v950_v24 = vor.u32 %v948_v55, %v947_v6  ;;  %v951_v26 = vrot.slane %v947_v6, 4  ;;  %v1491_v48 = vld [vmem:[%s1851_s4 + $0x40] sm:$0xf]  ;;  %v1493_v50 = vld [vmem:[%s1851_s4 + $0x44] sm:$0x1] }
 0x11b   : > { %v806_v31 = vor.u32 %v804_v63, %v803_v14  ;;  %v807_v32 = vrot.slane %v803_v14, 4  ;;  %v934_v33 = vor.u32 %v932_v1, %v931_v17  ;;  %v935_v34 = vrot.slane %v931_v17, 4  ;;  %v1555_v63 = vld [vmem:[%s1851_s4 + $0xe0] sm:$0xf]  ;;  %v1557_v0 = vld [vmem:[%s1851_s4 + $0xe4] sm:$0x1] }
 0x11c   : > { %v1132_v35 = vsel %vm2075_vm4, %v822_v22, %v1487_v58  ;;  %v1135_v36 = vsel %vm2087_vm5, %v823_v23, %v1489_v59  ;;  %v1228_v37 = vsel %vm2075_vm4, %v950_v24, %v1551_v2  ;;  %v1231_v38 = vsel %vm2087_vm5, %v951_v26, %v1553_v9  ;;  %v1483_v2 = vld [vmem:[%s1851_s4 + $0x30] sm:$0xf]  ;;  %v1485_v9 = vld [vmem:[%s1851_s4 + $0x34] sm:$0x1] }
 0x11d   : > { %1488 = vst [vmem:[%s1851_s4 + $0x38] sm:$0xf] %v1132_v35  ;;  %1490 = vst [vmem:[%s1851_s4 + $0x3c] sm:$0x1] %v1135_v36  ;;  %v1120_v39 = vsel %vm2075_vm4, %v806_v31, %v1479_v11  ;;  %v1123_v42 = vsel %vm2087_vm5, %v807_v32, %v1481_v12  ;;  %v1216_v43 = vsel %vm2075_vm4, %v934_v33, %v1543_v29  ;;  %v953_v47 = vshrl.u32 %v1617_v10, 16 }
 0x11e   : > { %1552 = vst [vmem:[%s1851_s4 + $0xd8] sm:$0xf] %v1228_v37  ;;  %1554 = vst [vmem:[%s1851_s4 + $0xdc] sm:$0x1] %v1231_v38  ;;  %v1219_v44 = vsel %vm2087_vm5, %v935_v34, %v1545_v30  ;;  %v956_v27 = vshll.u32 %v1617_v10, 16  ;;  %v809_v51 = vshrl.u32 %v1599_v18, 16  ;;  %v554_v1 = vadd.f32 %v2141_v53, %v2055_v25 }
 0x11f   : > { %1480 = vst [vmem:[%s1851_s4 + $0x28] sm:$0xf] %v1120_v39  ;;  %1482 = vst [vmem:[%s1851_s4 + $0x2c] sm:$0x1] %v1123_v42  ;;  %v812_v52 = vshll.u32 %v1599_v18, 16  ;;  %v937_v55 = vshrl.u32 %v1615_v21, 16  ;;  %v618_v4 = vadd.f32 %v2143_v54, %v2055_v25  ;;  %v546_v10 = vadd.f32 %v2055_v25, %v2151_v61 }
 0x120   : > { %1544 = vst [vmem:[%s1851_s4 + $0xc8] sm:$0xf] %v1216_v43  ;;  %1546 = vst [vmem:[%s1851_s4 + $0xcc] sm:$0x1] %v1219_v44  ;;  %v940_v58 = vshll.u32 %v1615_v21, 16  ;;  %v827_v59 = vrot.slane %v825_v45, 7  ;;  %v610_v14 = vadd.f32 %v2055_v25, %v2153_v62  ;;  %v557_v38 = vadd.f32 %v2158_v7, %v2055_v25 }
 0x121   : > { %v955_v60 = vrot.slane %v953_v47, 7  ;;  %v811_v6 = vrot.slane %v809_v51, 7  ;;  %v939_v3 = vrot.slane %v937_v55, 7  ;;  %v1547_v18 = vld [vmem:[%s1851_s4 + $0xd0] sm:$0xf]  ;;  %v650_v34 = vmax.f32 %v554_v1, 0.0 }
 0x122   : > { %v830_v11 = vor.u32 %v828_v20, %v827_v59  ;;  %v831_v12 = vrot.slane %v827_v59, 4  ;;  %v1549_v54 = vld [vmem:[%s1851_s4 + $0xd4] sm:$0x1]  ;;  %v666_v35 = vmax.f32 %v618_v4, 0.0  ;;  %v648_v36 = vmax.f32 %v546_v10, 0.0 }
 0x123   : > { %v958_v53 = vor.u32 %v956_v27, %v955_v60  ;;  %v959_v17 = vrot.slane %v955_v60, 4  ;;  %v814_v21 = vor.u32 %v812_v52, %v811_v6  ;;  %v815_v22 = vrot.slane %v811_v6, 4  ;;  %v1567_v4 = vld [vmem:[%s1851_s4 + $0x108] sm:$0xf]  ;;  %v1569_v6 = vld [vmem:[%s1851_s4 + $0x10c] sm:$0x1] }
 0x124   : > { %v942_v23 = vor.u32 %v940_v58, %v939_v3  ;;  %v943_v61 = vrot.slane %v939_v3, 4  ;;  %v1138_v62 = vsel %vm2075_vm4, %v830_v11, %v1491_v48  ;;  %v1141_v24 = vsel %vm2087_vm5, %v831_v12, %v1493_v50  ;;  %v1505_v58 = vld [vmem:[%s1851_s4 + $0x6c] sm:$0x1]  ;;  %v1495_v10 = vld [vmem:[%s1851_s4 + $0x58] sm:$0xf] }
 0x125   : > { %v1234_v26 = vsel %vm2075_vm4, %v958_v53, %v1555_v63  ;;  %v1237_v29 = vsel %vm2087_vm5, %v959_v17, %v1557_v0  ;;  %1492 = vst [vmem:[%s1851_s4 + $0x40] sm:$0xf] %v1138_v62  ;;  %1494 = vst [vmem:[%s1851_s4 + $0x44] sm:$0x1] %v1141_v24  ;;  %v1126_v30 = vsel %vm2075_vm4, %v814_v21, %v1483_v2  ;;  %v664_v37 = vmax.f32 %v610_v14, 0.0 }
 0x126   : > { %1556 = vst [vmem:[%s1851_s4 + $0xe0] sm:$0xf] %v1234_v26  ;;  %1558 = vst [vmem:[%s1851_s4 + $0xe4] sm:$0x1] %v1237_v29  ;;  %v1129_v31 = vsel %vm2087_vm5, %v815_v22, %v1485_v9  ;;  %v1222_v32 = vsel %vm2075_vm4, %v942_v23, %v1547_v18  ;;  %v1225_v33 = vsel %vm2087_vm5, %v943_v61, %v1549_v54  ;;  %v651_v27 = vmax.f32 %v557_v38, 0.0 }
 0x127   : > { %1484 = vst [vmem:[%s1851_s4 + $0x30] sm:$0xf] %v1126_v30  ;;  %1486 = vst [vmem:[%s1851_s4 + $0x34] sm:$0x1] %v1129_v31  ;;  %v621_v39 = vadd.f32 %v2160_v8, %v2055_v25  ;;  %v549_v42 = vadd.f32 %v2055_v25, %v2163_v15  ;;  %v613_v43 = vadd.f32 %v2055_v25, %v2165_v16  ;;  %v1503_v15 = vld [vmem:[%s1851_s4 + $0x68] sm:$0xf] }
 0x128   : > { %1548 = vst [vmem:[%s1851_s4 + $0xd0] sm:$0xf] %v1222_v32  ;;  %1550 = vst [vmem:[%s1851_s4 + $0xd4] sm:$0x1] %v1225_v33  ;;  %v1604_v44 = vpack.c.bf16 %v650_v34, %v650_v34  ;;  %v1620_v45 = vpack.c.bf16 %v666_v35, %v666_v35  ;;  %v1602_v20 = vpack.c.bf16 %v648_v36, %v648_v36  ;;  %v1497_v14 = vld [vmem:[%s1851_s4 + $0x5c] sm:$0x1] }
 0x129   : > { %v1618_v47 = vpack.c.bf16 %v664_v37, %v664_v37  ;;  %v667_v48 = vmax.f32 %v621_v39, 0.0  ;;  %v649_v7 = vmax.f32 %v549_v42, 0.0  ;;  %v665_v50 = vmax.f32 %v613_v43, 0.0  ;;  %v1559_v22 = vld [vmem:[%s1851_s4 + $0xf8] sm:$0xf] }
 0x12a   : > { %v849_v51 = vshrl.u32 %v1604_v44, 16  ;;  %v852_v52 = vshll.u32 %v1604_v44, 16  ;;  %v977_v8 = vshrl.u32 %v1620_v45, 16  ;;  %v980_v55 = vshll.u32 %v1620_v45, 16  ;;  %v1561_v23 = vld [vmem:[%s1851_s4 + $0xfc] sm:$0x1] }
 0x12b   : > { %v833_v59 = vshrl.u32 %v1602_v20, 16  ;;  %v836_v16 = vshll.u32 %v1602_v20, 16  ;;  %v961_v60 = vshrl.u32 %v1618_v47, 16  ;;  %v964_v63 = vshll.u32 %v1618_v47, 16  ;;  %v1507_v43 = vld [vmem:[%s1851_s4 + $0x70] sm:$0xf] }
 0x12c   : > { %v851_v0 = vrot.slane %v849_v51, 7  ;;  %v979_v1 = vrot.slane %v977_v8, 7  ;;  %v1605_v2 = vpack.c.bf16 %v651_v27, %v651_v27  ;;  %v1621_v9 = vpack.c.bf16 %v667_v48, %v667_v48  ;;  %v1509_v44 = vld [vmem:[%s1851_s4 + $0x74] sm:$0x1] }
 0x12d   : > { %v835_v3 = vrot.slane %v833_v59, 7  ;;  %v963_v11 = vrot.slane %v961_v60, 7  ;;  %v1603_v12 = vpack.c.bf16 %v649_v7, %v649_v7  ;;  %v1619_v53 = vpack.c.bf16 %v665_v50, %v665_v50  ;;  %v1571_v50 = vld [vmem:[%s1851_s4 + $0x110] sm:$0xf]  ;;  %v1573_v51 = vld [vmem:[%s1851_s4 + $0x114] sm:$0x1] }
 0x12e   : > { %v854_v17 = vor.u32 %v852_v52, %v851_v0  ;;  %v855_v18 = vrot.slane %v851_v0, 4  ;;  %v982_v54 = vor.u32 %v980_v55, %v979_v1  ;;  %v983_v21 = vrot.slane %v979_v1, 4 }
 0x12f   : > { %v838_v61 = vor.u32 %v836_v16, %v835_v3  ;;  %v839_v62 = vrot.slane %v835_v3, 4  ;;  %v966_v24 = vor.u32 %v964_v63, %v963_v11  ;;  %v967_v26 = vrot.slane %v963_v11, 4 }
 0x130   : > { %v1156_v29 = vsel %vm2075_vm4, %v854_v17, %v1503_v15  ;;  %v1159_v30 = vsel %vm2087_vm5, %v855_v18, %v1505_v58  ;;  %v1252_v31 = vsel %vm2075_vm4, %v982_v54, %v1567_v4  ;;  %v1255_v32 = vsel %vm2087_vm5, %v983_v21, %v1569_v6  ;;  %v1499_v15 = vld [vmem:[%s1851_s4 + $0x60] sm:$0xf]  ;;  %v1501_v58 = vld [vmem:[%s1851_s4 + $0x64] sm:$0x1] }
 0x131   : > { %1504 = vst [vmem:[%s1851_s4 + $0x68] sm:$0xf] %v1156_v29  ;;  %1506 = vst [vmem:[%s1851_s4 + $0x6c] sm:$0x1] %v1159_v30  ;;  %v1144_v33 = vsel %vm2075_vm4, %v838_v61, %v1495_v10  ;;  %v1147_v34 = vsel %vm2087_vm5, %v839_v62, %v1497_v14  ;;  %v1240_v35 = vsel %vm2075_vm4, %v966_v24, %v1559_v22  ;;  %v857_v37 = vshrl.u32 %v1605_v2, 16 }
 0x132   : > { %1568 = vst [vmem:[%s1851_s4 + $0x108] sm:$0xf] %v1252_v31  ;;  %1570 = vst [vmem:[%s1851_s4 + $0x10c] sm:$0x1] %v1255_v32  ;;  %v1243_v36 = vsel %vm2087_vm5, %v967_v26, %v1561_v23  ;;  %v860_v38 = vshll.u32 %v1605_v2, 16  ;;  %v985_v39 = vshrl.u32 %v1621_v9, 16  ;;  %v570_v52 = vadd.f32 %v2199_v40, %v2055_v25 }
 0x133   : > { %1496 = vst [vmem:[%s1851_s4 + $0x58] sm:$0xf] %v1144_v33  ;;  %1498 = vst [vmem:[%s1851_s4 + $0x5c] sm:$0x1] %v1147_v34  ;;  %v988_v42 = vshll.u32 %v1621_v9, 16  ;;  %v841_v45 = vshrl.u32 %v1603_v12, 16  ;;  %v634_v8 = vadd.f32 %v2201_v41, %v2055_v25  ;;  %v562_v16 = vadd.f32 %v2055_v25, %v2203_v19 }
 0x134   : > { %1560 = vst [vmem:[%s1851_s4 + $0xf8] sm:$0xf] %v1240_v35  ;;  %1562 = vst [vmem:[%s1851_s4 + $0xfc] sm:$0x1] %v1243_v36  ;;  %v844_v20 = vshll.u32 %v1603_v12, 16  ;;  %v969_v47 = vshrl.u32 %v1619_v53, 16  ;;  %v626_v60 = vadd.f32 %v2055_v25, %v2205_v46  ;;  %v573_v23 = vadd.f32 %v2207_v49, %v2055_v25 }
 0x135   : > { %v972_v27 = vshll.u32 %v1619_v53, 16  ;;  %v859_v48 = vrot.slane %v857_v37, 7  ;;  %v987_v7 = vrot.slane %v985_v39, 7  ;;  %v843_v55 = vrot.slane %v841_v45, 7  ;;  %v1563_v4 = vld [vmem:[%s1851_s4 + $0x100] sm:$0xf] }
 0x136   : > { %v971_v59 = vrot.slane %v969_v47, 7  ;;  %v1565_v41 = vld [vmem:[%s1851_s4 + $0x104] sm:$0x1]  ;;  %v654_v18 = vmax.f32 %v570_v52, 0.0  ;;  %v670_v54 = vmax.f32 %v634_v8, 0.0  ;;  %v652_v21 = vmax.f32 %v562_v16, 0.0 }
 0x137   : > { %v862_v63 = vor.u32 %v860_v38, %v859_v48  ;;  %v863_v0 = vrot.slane %v859_v48, 4  ;;  %v990_v40 = vor.u32 %v988_v42, %v987_v7  ;;  %v991_v1 = vrot.slane %v987_v7, 4  ;;  %v1521_v38 = vld [vmem:[%s1851_s4 + $0x8c] sm:$0x1]  ;;  %v1583_v45 = vld [vmem:[%s1851_s4 + $0x128] sm:$0xf] }
 0x138   : > { %v846_v6 = vor.u32 %v844_v20, %v843_v55  ;;  %v847_v2 = vrot.slane %v843_v55, 4  ;;  %v974_v9 = vor.u32 %v972_v27, %v971_v59  ;;  %v975_v19 = vrot.slane %v971_v59, 4  ;;  %v1585_v20 = vld [vmem:[%s1851_s4 + $0x12c] sm:$0x1]  ;;  %v1511_v7 = vld [vmem:[%s1851_s4 + $0x78] sm:$0xf] }
 0x139   : > { %v1162_v46 = vsel %vm2075_vm4, %v862_v63, %v1507_v43  ;;  %v1165_v3 = vsel %vm2087_vm5, %v863_v0, %v1509_v44  ;;  %v1258_v10 = vsel %vm2075_vm4, %v990_v40, %v1571_v50  ;;  %v1261_v14 = vsel %vm2087_vm5, %v991_v1, %v1573_v51  ;;  %v1513_v50 = vld [vmem:[%s1851_s4 + $0x7c] sm:$0x1]  ;;  %v1575_v16 = vld [vmem:[%s1851_s4 + $0x118] sm:$0xf] }
 0x13a   : > { %1508 = vst [vmem:[%s1851_s4 + $0x70] sm:$0xf] %v1162_v46  ;;  %1510 = vst [vmem:[%s1851_s4 + $0x74] sm:$0x1] %v1165_v3  ;;  %v1150_v11 = vsel %vm2075_vm4, %v846_v6, %v1499_v15  ;;  %v1153_v12 = vsel %vm2087_vm5, %v847_v2, %v1501_v58  ;;  %v1246_v53 = vsel %vm2075_vm4, %v974_v9, %v1563_v4  ;;  %v668_v22 = vmax.f32 %v626_v60, 0.0 }
 0x13b   : > { %1572 = vst [vmem:[%s1851_s4 + $0x110] sm:$0xf] %v1258_v10  ;;  %1574 = vst [vmem:[%s1851_s4 + $0x114] sm:$0x1] %v1261_v14  ;;  %v1249_v17 = vsel %vm2087_vm5, %v975_v19, %v1565_v41  ;;  %v637_v61 = vadd.f32 %v2209_v28, %v2055_v25  ;;  %v565_v62 = vadd.f32 %v2055_v25, %v2211_v56  ;;  %v655_v32 = vmax.f32 %v573_v23, 0.0 }
 0x13c   : > { %1500 = vst [vmem:[%s1851_s4 + $0x60] sm:$0xf] %v1150_v11  ;;  %1502 = vst [vmem:[%s1851_s4 + $0x64] sm:$0x1] %v1153_v12  ;;  %v629_v24 = vadd.f32 %v2055_v25, %v2213_v57  ;;  %v1608_v26 = vpack.c.bf16 %v654_v18, %v654_v18  ;;  %v1624_v29 = vpack.c.bf16 %v670_v54, %v670_v54  ;;  %v1519_v56 = vld [vmem:[%s1851_s4 + $0x88] sm:$0xf] }
 0x13d   : > { %1564 = vst [vmem:[%s1851_s4 + $0x100] sm:$0xf] %v1246_v53  ;;  %1566 = vst [vmem:[%s1851_s4 + $0x104] sm:$0x1] %v1249_v17  ;;  %v1606_v30 = vpack.c.bf16 %v652_v21, %v652_v21  ;;  %v1622_v31 = vpack.c.bf16 %v668_v22, %v668_v22  ;;  %v671_v33 = vmax.f32 %v637_v61, 0.0  ;;  %v653_v49 = vmax.f32 %v565_v62, 0.0 }
 0x13e   : > { %v669_v34 = vmax.f32 %v629_v24, 0.0  ;;  %v881_v35 = vshrl.u32 %v1608_v26, 16  ;;  %v884_v36 = vshll.u32 %v1608_v26, 16  ;;  %v1009_v28 = vshrl.u32 %v1624_v29, 16  ;;  %v1577_v60 = vld [vmem:[%s1851_s4 + $0x11c] sm:$0x1] }
 0x13f   : > { %v1012_v37 = vshll.u32 %v1624_v29, 16  ;;  %v865_v39 = vshrl.u32 %v1606_v30, 16  ;;  %v868_v25 = vshll.u32 %v1606_v30, 16  ;;  %v993_v57 = vshrl.u32 %v1622_v31, 16  ;;  %v1523_v11 = vld [vmem:[%s1851_s4 + $0x90] sm:$0xf] }
 0x140   : > { %v996_v42 = vshll.u32 %v1622_v31, 16  ;;  %v883_v43 = vrot.slane %v881_v35, 7  ;;  %v1011_v44 = vrot.slane %v1009_v28, 7  ;;  %v1609_v47 = vpack.c.bf16 %v655_v32, %v655_v32  ;;  %v1525_v12 = vld [vmem:[%s1851_s4 + $0x94] sm:$0x1] }
 0x141   : > { %v1625_v27 = vpack.c.bf16 %v671_v33, %v671_v33  ;;  %v867_v48 = vrot.slane %v865_v39, 7  ;;  %v995_v51 = vrot.slane %v993_v57, 7  ;;  %v1607_v52 = vpack.c.bf16 %v653_v49, %v653_v49  ;;  %v1587_v53 = vld [vmem:[%s1851_s4 + $0x130] sm:$0xf]  ;;  %v1589_v17 = vld [vmem:[%s1851_s4 + $0x134] sm:$0x1] }
 0x142   : > { %v1623_v8 = vpack.c.bf16 %v669_v34, %v669_v34  ;;  %v886_v55 = vor.u32 %v884_v36, %v883_v43  ;;  %v887_v15 = vrot.slane %v883_v43, 4  ;;  %v1014_v58 = vor.u32 %v1012_v37, %v1011_v44  ;;  %v1515_v62 = vld [vmem:[%s1851_s4 + $0x80] sm:$0xf]  ;;  %v1517_v29 = vld [vmem:[%s1851_s4 + $0x84] sm:$0x1] }
 0x143   : > { %v1015_v59 = vrot.slane %v1011_v44, 4  ;;  %v870_v63 = vor.u32 %v868_v25, %v867_v48  ;;  %v871_v0 = vrot.slane %v867_v48, 4  ;;  %v998_v40 = vor.u32 %v996_v42, %v995_v51  ;;  %v1579_v35 = vld [vmem:[%s1851_s4 + $0x120] sm:$0xf]  ;;  %v1581_v36 = vld [vmem:[%s1851_s4 + $0x124] sm:$0x1] }
 0x144   : > { %v999_v1 = vrot.slane %v995_v51, 4  ;;  %v1180_v4 = vsel %vm2075_vm4, %v886_v55, %v1519_v56  ;;  %v1183_v41 = vsel %vm2087_vm5, %v887_v15, %v1521_v38  ;;  %v1276_v6 = vsel %vm2075_vm4, %v1014_v58, %v1583_v45 }
 0x145   : > { %v1279_v2 = vsel %vm2087_vm5, %v1015_v59, %v1585_v20  ;;  %1520 = vst [vmem:[%s1851_s4 + $0x88] sm:$0xf] %v1180_v4  ;;  %1522 = vst [vmem:[%s1851_s4 + $0x8c] sm:$0x1] %v1183_v41  ;;  %v1168_v9 = vsel %vm2075_vm4, %v870_v63, %v1511_v7  ;;  %v1171_v19 = vsel %vm2087_vm5, %v871_v0, %v1513_v50  ;;  %v889_v10 = vshrl.u32 %v1609_v47, 16 }
 0x146   : > { %1584 = vst [vmem:[%s1851_s4 + $0x128] sm:$0xf] %v1276_v6  ;;  %1586 = vst [vmem:[%s1851_s4 + $0x12c] sm:$0x1] %v1279_v2  ;;  %v1264_v46 = vsel %vm2075_vm4, %v998_v40, %v1575_v16  ;;  %v1267_v3 = vsel %vm2087_vm5, %v999_v1, %v1577_v60  ;;  %v1017_v14 = vshrl.u32 %v1625_v27, 16  ;;  %v873_v18 = vshrl.u32 %v1607_v52, 16 }
 0x147   : > { %1512 = vst [vmem:[%s1851_s4 + $0x78] sm:$0xf] %v1168_v9  ;;  %1514 = vst [vmem:[%s1851_s4 + $0x7c] sm:$0x1] %v1171_v19  ;;  %v1001_v54 = vshrl.u32 %v1623_v8, 16  ;;  %v891_v21 = vrot.slane %v889_v10, 7 }
 0x148   : > { %1576 = vst [vmem:[%s1851_s4 + $0x118] sm:$0xf] %v1264_v46  ;;  %1578 = vst [vmem:[%s1851_s4 + $0x11c] sm:$0x1] %v1267_v3  ;;  %v892_v22 = vshll.u32 %v1609_v47, 16  ;;  %v1019_v23 = vrot.slane %v1017_v14, 7 }
 0x149   : > { %v1020_v61 = vshll.u32 %v1625_v27, 16  ;;  %v875_v24 = vrot.slane %v873_v18, 7  ;;  %v876_v26 = vshll.u32 %v1607_v52, 16  ;;  %v1003_v30 = vrot.slane %v1001_v54, 7 }
 0x14a   : > { %v1004_v31 = vshll.u32 %v1623_v8, 16  ;;  %v894_v32 = vor.u32 %v892_v22, %v891_v21  ;;  %v895_v33 = vrot.slane %v891_v21, 4  ;;  %v1023_v34 = vrot.slane %v1019_v23, 4 }
 0x14b   : > { %v1022_v49 = vor.u32 %v1020_v61, %v1019_v23  ;;  %v878_v28 = vor.u32 %v876_v26, %v875_v24  ;;  %v879_v37 = vrot.slane %v875_v24, 4  ;;  %v1007_v38 = vrot.slane %v1003_v30, 4 }
 0x14c   : > { %v1006_v56 = vor.u32 %v1004_v31, %v1003_v30  ;;  %v1186_v39 = vsel %vm2075_vm4, %v894_v32, %v1523_v11  ;;  %v1189_v25 = vsel %vm2087_vm5, %v895_v33, %v1525_v12  ;;  %v1285_v42 = vsel %vm2087_vm5, %v1023_v34, %v1589_v17 }
 0x14d   : > { %v1282_v57 = vsel %vm2075_vm4, %v1022_v49, %v1587_v53  ;;  %1524 = vst [vmem:[%s1851_s4 + $0x90] sm:$0xf] %v1186_v39  ;;  %1526 = vst [vmem:[%s1851_s4 + $0x94] sm:$0x1] %v1189_v25  ;;  %v1174_v43 = vsel %vm2075_vm4, %v878_v28, %v1515_v62  ;;  %v1177_v44 = vsel %vm2087_vm5, %v879_v37, %v1517_v29 }
 0x14e   : > { %1588 = vst [vmem:[%s1851_s4 + $0x130] sm:$0xf] %v1282_v57  ;;  %1590 = vst [vmem:[%s1851_s4 + $0x134] sm:$0x1] %v1285_v42  ;;  %v1270_v45 = vsel %vm2075_vm4, %v1006_v56, %v1579_v35  ;;  %v1273_v20 = vsel %vm2087_vm5, %v1007_v38, %v1581_v36 }
 0x14f   : > { %1516 = vst [vmem:[%s1851_s4 + $0x80] sm:$0xf] %v1174_v43  ;;  %1518 = vst [vmem:[%s1851_s4 + $0x84] sm:$0x1] %v1177_v44 }
 0x150   : > { %1580 = vst [vmem:[%s1851_s4 + $0x120] sm:$0xf] %v1270_v45  ;;  %1582 = vst [vmem:[%s1851_s4 + $0x124] sm:$0x1] %v1273_v20 }
 0x151 PF: > { %s13_s14 = sadd.s32 1, %s1786_s14   ;;  %s2456_s12 = smov %s1782_s13 }
 0x152   : > { %p10_p5 = scmp.ge.s32.totalorder %s13_s14, 4   ;;  %s2457_s13 = smov %s2459_s15 }
 0x154   :  { %12 = sbr.rel (!%p10_p5) target bundleno = 2 (0x2), region = 66 }

// kernel: _lambda_.3
= control target key start
LH: loop header
LB: loop body
LE: loop exit
PB: predicated region body
PF: predicated region fallthrough
CT: control target
= control target key end

     0   :  { %s10498_s18 = smov 0   ;;  %s10500_s19 = smov 0   ;;  %s14512_s0 = inlined_call_operand.vmem [shape: bf16[2,4,1,10,10,128], index: 0, kind: input, shape index: {}]   ;;  %s14513_s1 = inlined_call_operand.vmem [shape: bf16[3456,128], index: 1, kind: input, shape index: {}]   ;;  %s14514_s2 = inlined_call_operand.vmem [shape: f32[1,128], index: 2, kind: input, shape index: {}]   ;;  %s14515_s3 = inlined_call_operand.vmem [shape: bf16[2,256,8], index: 3, kind: input, shape index: {}]   ;;  %s14516_s4 = inlined_call_operand.vmem [shape: bf16[8,128], index: 4, kind: input, shape index: {}]   ;;  %s14517_s5 = inlined_call_operand.vmem [shape: f32[2,4,8,8,128], index: 5, kind: output, shape index: {}]  }
   0x1   :  { %s10502_s20 = smov 0  }
   0x2 LB: > { %s27_s21 = sadd.s32 1, %s10461_s19  ;;  %p7705_p0 = scmp.ge.s32.totalorder %s10465_s20, 1  ;;  %s10465_s20 = sphi %s10502_s20, %s15_s20   ;;  %s10461_s19 = sphi %s10500_s19, %s15318_s19   ;;  %s10457_s18 = sphi %s10498_s18, %s15317_s18  }
   0x3   : > { %p29_p1 = scmp.ge.s32.totalorder %s27_s21, 2  ;;  %p218_p2 = scmp.lt.s32.totalorder %s10465_s20, 3 }
   0x5   : > { %s15320_s21 = smov (%p29_p1, %s27_s21), 0  ;;  %p219_p3 = pnand %p7705_p0, %p218_p2 }
   0x7   : > { %222 = sbr.rel (%p219_p3) target bundleno = 1162 (0x48a), region = 40 }
   0xe   : > { %v10138_v0 = vld [vmem:[%s14513_s1 + $0x40] sm:$0xff]   ;;  %v14518_v2 = vmov 0   ;;  %v10142_v5 = vld [vmem:[%s14513_s1 + $0x48] sm:$0xff]   ;;  %v10146_v9 = vld [vmem:[%s14513_s1 + $0x50] sm:$0xff]   ;;  %p260_p4 = scmp.lt.s32.totalorder %s10457_s18, 1  ;;  %vm442_vm0 = vcmask 1042432  }
   0xf   : > { %v10139_v1 = vld [vmem:[%s14513_s1 + $0xc0] sm:$0xff]   ;;  %4951 = vmatprep.mubr.bf16.mxu0 %v14518_v2  ;;  %5112 = vmatprep.mubr.bf16.mxu1 %v14518_v2  ;;  %v10143_v6 = vld [vmem:[%s14513_s1 + $0xc8] sm:$0xff]   ;;  %v10147_v10 = vld [vmem:[%s14513_s1 + $0xd0] sm:$0xff]   ;;  %vm303_vm1 = vsmask.f32 3328  ;;  %vm443_vm3 = vcmask 1046532  }
  0x10   : > { %8468 = vmatprep.subr.bf16.mxu0 %v10138_v0  ;;  %v10140_v3 = vld [vmem:[%s14513_s1] sm:$0xff]   ;;  %8580 = vmatprep.subr.bf16.mxu1 %v10139_v1  ;;  %v10144_v7 = vld [vmem:[%s14513_s1 + $0x8] sm:$0xff]   ;;  %v10148_v11 = vld [vmem:[%s14513_s1 + $0x10] sm:$0xff]   ;;  %s15322_s18 = smov (!%p260_p4, %s10457_s18), 1  ;;  %vm304_vm2 = vsmask.f32 7440 }
  0x11   : > { %v10141_v4 = vld [vmem:[%s14513_s1 + $0x80] sm:$0xff]   ;;  %8469 = vmatpush3.bf16.msra.mxu0 %v10140_v3  ;;  %v10145_v8 = vld [vmem:[%s14513_s1 + $0x88] sm:$0xff]   ;;  %v10149_v12 = vld [vmem:[%s14513_s1 + $0x90] sm:$0xff]   ;;  %s10112_s27 = smul.u32 320, %s15322_s18  ;;  %vm7335_vm6 = vcmask 1043456   ;;  %s8466_s12 = sshll.u32 %s15322_s18, 7 }
  0x12   : > { %8581 = vmatpush3.bf16.msra.mxu1 %v10141_v4  ;;  %8470 = vmatprep.subr.bf16.mxu0 %v10142_v5  ;;  %v10150_v13 = vld [vmem:[%s14513_s1 + $0x58] sm:$0xff]   ;;  %v10154_v17 = vld [vmem:[%s14513_s1 + $0x60] sm:$0xff]   ;;  %v10158_v21 = vld [vmem:[%s14513_s1 + $0x68] sm:$0xff]   ;;  %s14062_s16 = scalar_lea.vmem %s14515_s3, %s8466_s12  ;;  %vm7286_vm7 = vcmask 64512   ;;  %s8467_s17 = sshll.u32 %s15322_s18, 8 }
  0x13   : > { %8582 = vmatprep.subr.bf16.mxu1 %v10143_v6  ;;  %v10151_v14 = vld [vmem:[%s14513_s1 + $0xd8] sm:$0xff]   ;;  %v10155_v18 = vld [vmem:[%s14513_s1 + $0xe0] sm:$0xff]   ;;  %v10159_v22 = vld [vmem:[%s14513_s1 + $0xe8] sm:$0xff]   ;;  %s10645_s13 = scalar_lea.vmem %s14512_s0, %s10112_s27  ;;  %s14431_s24 = scalar_lea.vmem %s14517_s5, %s8467_s17 }
  0x14   : > { %v10152_v15 = vld [vmem:[%s14513_s1 + $0x18] sm:$0xff]   ;;  %v10156_v19 = vld [vmem:[%s14513_s1 + $0x20] sm:$0xff]   ;;  %v10160_v23 = vld [vmem:[%s14513_s1 + $0x28] sm:$0xff]  }
  0x15   : > { %8471 = vmatpush3.bf16.msra.mxu0 %v10144_v7  ;;  %v10153_v16 = vld [vmem:[%s14513_s1 + $0x98] sm:$0xff]   ;;  %v10157_v20 = vld [vmem:[%s14513_s1 + $0xa0] sm:$0xff]   ;;  %v10161_v24 = vld [vmem:[%s14513_s1 + $0xa8] sm:$0xff]  }
  0x16   : > { %8583 = vmatpush3.bf16.msra.mxu1 %v10145_v8  ;;  %8472 = vmatprep.subr.bf16.mxu0 %v10146_v9  ;;  %v10162_v25 = vld [vmem:[%s14513_s1 + $0x70] sm:$0xff]   ;;  %v10166_v29 = vld [vmem:[%s14513_s1 + $0x78] sm:$0xff]   ;;  %v10170_v33 = vld [vmem:[%s14513_s1 + $0x140] sm:$0xff]  }
  0x17   : > { %8584 = vmatprep.subr.bf16.mxu1 %v10147_v10  ;;  %v10163_v26 = vld [vmem:[%s14513_s1 + $0xf0] sm:$0xff]   ;;  %v10167_v30 = vld [vmem:[%s14513_s1 + $0xf8] sm:$0xff]   ;;  %v10171_v34 = vld [vmem:[%s14513_s1 + $0x100] sm:$0xff]  }
  0x18   : > { %v10164_v27 = vld [vmem:[%s14513_s1 + $0x30] sm:$0xff]   ;;  %v10168_v31 = vld [vmem:[%s14513_s1 + $0x38] sm:$0xff]   ;;  %v10172_v35 = vld [vmem:[%s14513_s1 + $0x1c0] sm:$0xff]  }
  0x19   : > { %8473 = vmatpush3.bf16.msra.mxu0 %v10148_v11  ;;  %v10165_v28 = vld [vmem:[%s14513_s1 + $0xb0] sm:$0xff]   ;;  %v10169_v32 = vld [vmem:[%s14513_s1 + $0xb8] sm:$0xff]   ;;  %v10173_v36 = vld [vmem:[%s14513_s1 + $0x180] sm:$0xff]  }
  0x1a   : > { %8585 = vmatpush3.bf16.msra.mxu1 %v10149_v12  ;;  %8474 = vmatprep.subr.bf16.mxu0 %v10150_v13  ;;  %v10174_v37 = vld [vmem:[%s14513_s1 + $0x148] sm:$0xff]   ;;  %v287_v41 = vld [vmem:[%s10645_s13] sm:$0xf]  ;;  %v295_v43 = vld [vmem:[%s10645_s13 + $0x4] sm:$0x1] }
  0x1b   : > { %8586 = vmatprep.subr.bf16.mxu1 %v10151_v14  ;;  %v10175_v38 = vld [vmem:[%s14513_s1 + $0x108] sm:$0xff]   ;;  %v307_v45 = vshrl.u32 %v287_v41, 16  ;;  %v310_v46 = vshll.u32 %v287_v41, 16  ;;  %v316_v47 = vshll.u32 %v295_v43, 16  ;;  %v7720_v52 = vld [vmem:[%s10645_s13 + $0x10] sm:$0xf]  ;;  %vm10670_vm4 = vmor %vm442_vm0, %vm443_vm3 }
  0x1c   : > { %v10176_v39 = vld [vmem:[%s14513_s1 + $0x1c8] sm:$0xff]   ;;  %v418_v58 = vld [vmem:[%s10645_s13] sm:$0xe]  ;;  %v509_v1 = vshrl.u32 %v7720_v52, 16  ;;  %v512_v4 = vshll.u32 %v7720_v52, 16  ;;  %v447_v7 = vrot.slane %v295_v43, 5  ;;  %vm10679_vm5 = vmor %vm303_vm1, %vm304_vm2 }
  0x1d   : > { %8475 = vmatpush3.bf16.msra.mxu0 %v10152_v15  ;;  %v10177_v40 = vld [vmem:[%s14513_s1 + $0x188] sm:$0xff]   ;;  %v309_v54 = vrot.slane %v307_v45, 4  ;;  %v312_v55 = vrot.slane %v310_v46, 5  ;;  %v318_v59 = vrot.slane %v316_v47, 5  ;;  %v7711_v6 = vrot.slane %v418_v58, 9  ;;  %v10180_v8 = vld [vmem:[%s14513_s1 + $0x150] sm:$0xff]  }
  0x1e   : > { %8587 = vmatpush3.bf16.msra.mxu1 %v10153_v16  ;;  %8476 = vmatprep.subr.bf16.mxu0 %v10154_v17  ;;  %v288_v42 = vld [vmem:[%s10645_s13 + $0x8] sm:$0xf]  ;;  %v296_v44 = vld [vmem:[%s10645_s13 + $0xc] sm:$0x1]  ;;  %v10181_v15 = vld [vmem:[%s14513_s1 + $0x110] sm:$0xff]   ;;  %v10688_v16 = vrot.slane %v509_v1, 4 }
  0x1f   : > { %8588 = vmatprep.subr.bf16.mxu1 %v10155_v18  ;;  %v321_v48 = vshrl.u32 %v288_v42, 16  ;;  %v7719_v49 = vld [vmem:[%s10645_s13 + $0x8] sm:$0xf]  ;;  %v324_v50 = vshll.u32 %v288_v42, 16  ;;  %v330_v51 = vshll.u32 %v296_v44, 16  ;;  %v313_v63 = vor.u32 %v312_v55, %v309_v54  ;;  %v10182_v18 = vld [vmem:[%s14513_s1 + $0x1d0] sm:$0xff]  }
  0x20   : > { %v495_v53 = vshrl.u32 %v7719_v49, 16  ;;  %v498_v57 = vshll.u32 %v7719_v49, 16  ;;  %v419_v62 = vld [vmem:[%s10645_s13 + $0x8] sm:$0xe]  ;;  %v451_v13 = vrot.slane %v296_v44, 5  ;;  %v10690_v17 = vcombine.low %v287_v41, %v288_v42 }
  0x21   : > { %8477 = vmatpush3.bf16.msra.mxu0 %v10156_v19  ;;  %v323_v56 = vrot.slane %v321_v48, 4  ;;  %v326_v60 = vrot.slane %v324_v50, 5  ;;  %v332_v61 = vrot.slane %v330_v51, 5  ;;  %v314_v10 = vrot.slane %v313_v63, 4  ;;  %v420_v46 = vld [vmem:[%s10645_s13 + $0x10] sm:$0xe] }
  0x22   : > { %8589 = vmatpush3.bf16.msra.mxu1 %v10157_v20  ;;  %8478 = vmatprep.subr.bf16.mxu0 %v10158_v21  ;;  %v10666_v0 = vrot.slane %v495_v53, 4  ;;  %v10683_v11 = vrot.slane %v498_v57, 5  ;;  %v7712_v12 = vrot.slane %v419_v62, 9  ;;  %14752 = vst [vmem:[#allocation2_spill] sm:$0xff] %v10690_v17  ;;  %v10698_v20 = vrot.slane %v512_v4, 5 }
  0x23   : > { %8590 = vmatprep.subr.bf16.mxu1 %v10159_v22  ;;  %v327_v3 = vor.u32 %v326_v60, %v323_v56  ;;  %v319_v19 = vsel %vm10679_vm5, %v314_v10, %v318_v59  ;;  %v10700_v21 = vcombine.low %v7719_v49, %v7720_v52  ;;  %v448_v22 = vsel %vm10670_vm4, %v7711_v6, %v447_v7  ;;  %v421_v51 = vld [vmem:[%s10645_s13 + $0x18] sm:$0xe]  ;;  %v10748_v57 = vld [vmem:[%s10645_s13 + $0x20] sm:$0xf]  ;;  %v10751_v58 = vld [vmem:[%s10645_s13 + $0x28] sm:$0xf] }
  0x24   : > { %v10188_v52 = vld [vmem:[%s14513_s1 + $0x158] sm:$0xff]   ;;  %v10757_v63 = vld [vmem:[%s10645_s13 + $0x24] sm:$0x1]  ;;  %v7714_v4 = vrot.slane %v421_v51, 9  ;;  %v363_v6 = vshrl.u32 %v10748_v57, 16 }
  0x25   : > { %8479 = vmatpush3.bf16.msra.mxu0 %v10160_v23  ;;  %v328_v14 = vrot.slane %v327_v3, 4  ;;  %14753 = vst [vmem:[#allocation3_spill] sm:$0xff] %v10700_v21  ;;  %v10183_v23 = vld [vmem:[%s14513_s1 + $0x190] sm:$0xff]   ;;  %v10769_v10 = vld [vmem:[%s10645_s13 + $0x2c] sm:$0x1] }
  0x26   : > { %8591 = vmatpush3.bf16.msra.mxu1 %v10161_v24  ;;  %8480 = vmatprep.subr.bf16.mxu0 %v10162_v25  ;;  %v10708_v24 = vld [vmem:[%s10645_s13 + $0x10] sm:$0xf]  ;;  %v10711_v25 = vld [vmem:[%s10645_s13 + $0x18] sm:$0xf] }
  0x27   : > { %8592 = vmatprep.subr.bf16.mxu1 %v10163_v26  ;;  %v333_v26 = vsel %vm10679_vm5, %v328_v14, %v332_v61  ;;  %v7713_v61 = vrot.slane %v420_v46, 9  ;;  %v10190_v46 = vld [vmem:[%s14513_s1 + $0x1d8] sm:$0xff]  }
  0x28   : > { %v10734_v42 = vcombine.low %v319_v19, %v333_v26  ;;  %v377_v19 = vshrl.u32 %v10751_v58, 16 }
  0x29   : > { %8481 = vmatpush3.bf16.msra.mxu0 %v10164_v27  ;;  %v452_v27 = vsel %vm10670_vm4, %v7712_v12, %v451_v13  ;;  %v366_v12 = vshll.u32 %v10748_v57, 16  ;;  %v372_v13 = vshll.u32 %v10757_v63, 16 }
  0x2a   : > { %8593 = vmatpush3.bf16.msra.mxu1 %v10165_v28  ;;  %8482 = vmatprep.subr.bf16.mxu0 %v10166_v29  ;;  %v10720_v28 = vld [vmem:[%s10645_s13 + $0x14] sm:$0x1]  ;;  %v10723_v29 = vld [vmem:[%s10645_s13 + $0x1c] sm:$0x1]  ;;  %14754 = vst [vmem:[#allocation4_spill] sm:$0xff] %v10734_v42  ;;  %v10743_v53 = vcombine.low %v448_v22, %v452_v27 }
  0x2b   : > { %8594 = vmatprep.subr.bf16.mxu1 %v10167_v30  ;;  %v335_v30 = vshrl.u32 %v10708_v24, 16  ;;  %v455_v62 = vrot.slane %v10720_v28, 5  ;;  %v7723_v22 = vld [vmem:[%s10645_s13 + $0x28] sm:$0xf] }
  0x2c   : > { %14755 = vst [vmem:[#allocation5_spill] sm:$0xff] %v10743_v53 }
  0x2d   : > { %8483 = vmatpush3.bf16.msra.mxu0 %v10168_v31  ;;  %v338_v31 = vshll.u32 %v10708_v24, 16  ;;  %v456_v27 = vsel %vm10670_vm4, %v7713_v61, %v455_v62 }
  0x2e   : > { %8595 = vmatpush3.bf16.msra.mxu1 %v10169_v32  ;;  %8692 = vmatprep.subr.bf16.mxu0 %v10170_v33  ;;  %v344_v32 = vshll.u32 %v10720_v28, 16  ;;  %v349_v33 = vshrl.u32 %v10711_v25, 16  ;;  %v368_v28 = vrot.slane %v366_v12, 5 }
  0x2f   : > { %8804 = vmatprep.subr.bf16.mxu1 %v10172_v35  ;;  %v358_v35 = vshll.u32 %v10723_v29, 16 }
  0x30   : > { %4952 = vmatmul.mubr.bf16.vlgmr.msra.gmra.mrb[0].mxu0 %v14518_v2  ;;  %v346_v43 = vrot.slane %v344_v32, 5  ;;  %v351_v44 = vrot.slane %v349_v33, 4  ;;  %v380_v32 = vshll.u32 %v10751_v58, 16  ;;  %v386_v33 = vshll.u32 %v10769_v10, 16 }
  0x31   : > { %5113 = vmatmul.mubr.bf16.vlgmr.msra.gmra.mrb[0].mxu1 %v14518_v2  ;;  %8693 = vmatpush3.bf16.msra.mxu0 %v10171_v34  ;;  %v352_v34 = vshll.u32 %v10711_v25, 16  ;;  %v360_v48 = vrot.slane %v358_v35, 5  ;;  %v423_v35 = vld [vmem:[%s10645_s13 + $0x28] sm:$0xe] }
  0x32   : > { %4959 = vmatprep.mubr.bf16.mxu0 %v14518_v2  ;;  %8805 = vmatpush3.bf16.msra.mxu1 %v10173_v36  ;;  %v7721_v36 = vld [vmem:[%s10645_s13 + $0x18] sm:$0xf]  ;;  %v7716_v62 = vrot.slane %v423_v35, 9 }
  0x33   : > { %5120 = vmatprep.mubr.bf16.mxu1 %v14518_v2  ;;  %8694 = vmatprep.subr.bf16.mxu0 %v10174_v37  ;;  %v337_v37 = vrot.slane %v335_v30, 4  ;;  %v526_v41 = vshll.u32 %v7721_v36, 16  ;;  %v354_v45 = vrot.slane %v352_v34, 5  ;;  %v422_v30 = vld [vmem:[%s10645_s13 + $0x20] sm:$0xe]  ;;  %v551_v34 = vshrl.u32 %v7723_v22, 16 }
  0x34   : > { %8806 = vmatprep.subr.bf16.mxu1 %v10176_v39  ;;  %v7722_v39 = vld [vmem:[%s10645_s13 + $0x20] sm:$0xf] }
  0x35   : > { %8695 = vmatpush3.bf16.msra.mxu0 %v10175_v38  ;;  %v340_v38 = vrot.slane %v338_v31, 5  ;;  %v537_v50 = vshrl.u32 %v7722_v39, 16  ;;  %v355_v54 = vor.u32 %v354_v45, %v351_v44  ;;  %v10745_v55 = vrot.slane %v526_v41, 5 }
  0x36   : > { %8807 = vmatpush3.bf16.msra.mxu1 %v10177_v40  ;;  %8696 = vmatprep.subr.bf16.mxu0 %v10180_v8  ;;  %v523_v40 = vshrl.u32 %v7721_v36, 16  ;;  %v540_v56 = vshll.u32 %v7722_v39, 16  ;;  %v459_v8 = vrot.slane %v10723_v29, 5  ;;  %v374_v29 = vrot.slane %v372_v13, 5 }
  0x37   : > { %8808 = vmatprep.subr.bf16.mxu1 %v10182_v18  ;;  %v341_v47 = vor.u32 %v340_v38, %v337_v37  ;;  %v10753_v60 = vrot.slane %v537_v50, 4  ;;  %v356_v1 = vrot.slane %v355_v54, 4  ;;  %v365_v18 = vrot.slane %v363_v6, 4  ;;  %v10196_v6 = vld [vmem:[%s14513_s1 + $0x160] sm:$0xff]  }
  0x38   : > { %4960 = vmatmul.mubr.bf16.gmra.mrb[4].mxu0 %v14518_v2  ;;  %v10737_v49 = vrot.slane %v523_v40, 4  ;;  %v10760_v3 = vrot.slane %v540_v56, 5  ;;  %v379_v31 = vrot.slane %v377_v19, 4  ;;  %v554_v37 = vshll.u32 %v7723_v22, 16  ;;  %v10189_v40 = vld [vmem:[%s14513_s1 + $0x118] sm:$0xff]  }
  0x39   : > { %5121 = vmatmul.mubr.bf16.gmra.mrb[4].mxu1 %v14518_v2  ;;  %4967 = vmatprep.mubr.bf16.mxu0 %v14518_v2  ;;  %v342_v59 = vrot.slane %v341_v47, 4  ;;  %v361_v14 = vsel %vm10679_vm5, %v356_v1, %v360_v48  ;;  %v460_v41 = vsel %vm10670_vm4, %v7714_v4, %v459_v8  ;;  %v388_v44 = vrot.slane %v386_v33, 5  ;;  %v10820_v4 = vld [vmem:[%s10645_s13 + $0x30] sm:$0xf]  ;;  %v10831_v8 = vld [vmem:[%s10645_s13 + $0x38] sm:$0xf] }
  0x3a   : > { %5128 = vmatprep.mubr.bf16.mxu1 %v14518_v2  ;;  %8697 = vmatpush3.bf16.msra.mxu0 %v10181_v15  ;;  %v10776_v15 = vcombine.low %v7721_v36, %v7722_v39  ;;  %v369_v36 = vor.u32 %v368_v28, %v365_v18  ;;  %v10794_v45 = vrot.slane %v551_v34, 4  ;;  %v10799_v48 = vrot.slane %v554_v37, 5  ;;  %v10198_v37 = vld [vmem:[%s14513_s1 + $0x1e0] sm:$0xff]  }
  0x3b   : > { %8809 = vmatpush3.bf16.msra.mxu1 %v10183_v23  ;;  %8698 = vmatprep.subr.bf16.mxu0 %v10188_v52  ;;  %v347_v7 = vsel %vm10679_vm5, %v342_v59, %v346_v43  ;;  %v7724_v23 = vld [vmem:[%s10645_s13 + $0x30] sm:$0xf]  ;;  %v382_v43 = vrot.slane %v380_v32, 5  ;;  %v7715_v54 = vrot.slane %v422_v30, 9  ;;  %v463_v56 = vrot.slane %v10757_v63, 5  ;;  %v10191_v63 = vld [vmem:[%s14513_s1 + $0x198] sm:$0xff]  }
  0x3c   : > { %14756 = vst [vmem:[#allocation6_spill] sm:$0xff] %v10776_v15  ;;  %v10781_v26 = vcombine.low %v347_v7, %v361_v14  ;;  %v565_v38 = vshrl.u32 %v7724_v23, 16  ;;  %v568_v39 = vshll.u32 %v7724_v23, 16  ;;  %v370_v47 = vrot.slane %v369_v36, 4  ;;  %8810 = vmatprep.subr.bf16.mxu1 %v10190_v46  ;;  %v10840_v14 = vld [vmem:[%s10645_s13 + $0x3c] sm:$0x1] }
  0x3d   : > { %v383_v52 = vor.u32 %v382_v43, %v379_v31  ;;  %v10811_v59 = vcombine.low %v10708_v24, %v10711_v25  ;;  %v10813_v61 = vcombine.low %v456_v27, %v460_v41  ;;  %v467_v1 = vrot.slane %v10769_v10, 5  ;;  %v10834_v10 = vld [vmem:[%s10645_s13 + $0x34] sm:$0x1]  ;;  %v7725_v31 = vld [vmem:[%s10645_s13 + $0x38] sm:$0xf] }
  0x3e   : > { %14757 = vst [vmem:[#allocation7_spill] sm:$0xff] %v10781_v26  ;;  %v10801_v50 = vrot.slane %v565_v38, 4  ;;  %v10803_v51 = vrot.slane %v568_v39, 5  ;;  %8699 = vmatpush3.bf16.msra.mxu0 %v10189_v40  ;;  %v375_v24 = vsel %vm10679_vm5, %v370_v47, %v374_v29  ;;  %v10828_v7 = vcombine.low %v7723_v22, %v7724_v23  ;;  %v10197_v23 = vld [vmem:[%s14513_s1 + $0x120] sm:$0xff]   ;;  %v424_v43 = vld [vmem:[%s10645_s13 + $0x30] sm:$0xe] }
  0x3f   : > { %14758 = vst [vmem:[#allocation8_spill] sm:$0xff] %v10811_v59  ;;  %14759 = vst [vmem:[#allocation9_spill] sm:$0xff] %v10813_v61  ;;  %v384_v25 = vrot.slane %v383_v52, 4  ;;  %v391_v12 = vshrl.u32 %v10820_v4, 16  ;;  %v464_v13 = vsel %vm10670_vm4, %v7715_v54, %v463_v56  ;;  %8811 = vmatpush3.bf16.msra.mxu1 %v10191_v63  ;;  %v394_v18 = vshll.u32 %v10820_v4, 16  ;;  %8700 = vmatprep.subr.bf16.mxu0 %v10196_v6 }
  0x40   : > { %4968 = vmatmul.mubr.bf16.gmra.mrb[8].mxu0 %v14518_v2  ;;  %14760 = vst [vmem:[#allocation10_spill] sm:$0xff] %v10828_v7  ;;  %v400_v19 = vshll.u32 %v10834_v10, 16  ;;  %v405_v22 = vshrl.u32 %v10831_v8, 16  ;;  %v468_v28 = vsel %vm10670_vm4, %v7716_v62, %v467_v1  ;;  %v408_v30 = vshll.u32 %v10831_v8, 16  ;;  %v7726_v36 = vld [vmem:[%s10645_s13 + $0x40] sm:$0xf]  ;;  %8812 = vmatprep.subr.bf16.mxu1 %v10198_v37 }
  0x41   : > { %5129 = vmatmul.mubr.bf16.gmra.mrb[8].mxu1 %v14518_v2  ;;  %4975 = vmatprep.mubr.bf16.mxu0 %v14518_v2  ;;  %v389_v27 = vsel %vm10679_vm5, %v384_v25, %v388_v44  ;;  %v393_v29 = vrot.slane %v391_v12, 4  ;;  %v396_v33 = vrot.slane %v394_v18, 5  ;;  %v414_v39 = vshll.u32 %v10840_v14, 16  ;;  %v425_v52 = vld [vmem:[%s10645_s13 + $0x38] sm:$0xe]  ;;  %v10205_v37 = vld [vmem:[%s14513_s1 + $0x128] sm:$0xff]  }
  0x42   : > { %5136 = vmatprep.mubr.bf16.mxu1 %v14518_v2  ;;  %v10854_v32 = vcombine.low %v375_v24, %v389_v27  ;;  %v402_v34 = vrot.slane %v400_v19, 5  ;;  %v407_v35 = vrot.slane %v405_v22, 4  ;;  %8701 = vmatpush3.bf16.msra.mxu0 %v10197_v23  ;;  %v410_v38 = vrot.slane %v408_v30, 5  ;;  %v10864_v54 = vld [vmem:[%s10645_s13 + $0x50] sm:$0xf]  ;;  %v10199_v24 = vld [vmem:[%s14513_s1 + $0x1a0] sm:$0xff]  }
  0x43   : > { %v579_v40 = vshrl.u32 %v7725_v31, 16  ;;  %v582_v41 = vshll.u32 %v7725_v31, 16  ;;  %v397_v44 = vor.u32 %v396_v33, %v393_v29  ;;  %v593_v46 = vshrl.u32 %v7726_v36, 16  ;;  %v10874_v6 = vld [vmem:[%s10645_s13 + $0x58] sm:$0xf]  ;;  %v10204_v19 = vld [vmem:[%s14513_s1 + $0x168] sm:$0xff]   ;;  %8813 = vmatpush3.bf16.msra.mxu1 %v10199_v24 }
  0x44   : > { %14761 = vst [vmem:[#allocation11_spill] sm:$0xff] %v10854_v32  ;;  %v596_v47 = vshll.u32 %v7726_v36, 16  ;;  %v10869_v56 = vcombine.low %v10748_v57, %v10751_v58  ;;  %v411_v62 = vor.u32 %v410_v38, %v407_v35  ;;  %v416_v1 = vrot.slane %v414_v39, 5  ;;  %v10888_v18 = vld [vmem:[%s10645_s13 + $0x54] sm:$0x1]  ;;  %8702 = vmatprep.subr.bf16.mxu0 %v10204_v19  ;;  %v10206_v19 = vld [vmem:[%s14513_s1 + $0x1e8] sm:$0xff]  }
  0x45   : > { %v10871_v63 = vrot.slane %v579_v40, 4  ;;  %v10881_v25 = vcombine.low %v464_v13, %v468_v28  ;;  %v398_v12 = vrot.slane %v397_v44, 4  ;;  %v10883_v57 = vrot.slane %v582_v41, 5  ;;  %v10900_v30 = vld [vmem:[%s10645_s13 + $0x5c] sm:$0x1]  ;;  %8814 = vmatprep.subr.bf16.mxu1 %v10206_v19 }
  0x46   : > { %14762 = vst [vmem:[#allocation12_spill] sm:$0xff] %v10869_v56  ;;  %v10885_v58 = vrot.slane %v593_v46, 4  ;;  %v412_v22 = vrot.slane %v411_v62, 4  ;;  %v10894_v23 = vrot.slane %v596_v47, 5  ;;  %v7717_v27 = vrot.slane %v424_v43, 9  ;;  %8703 = vmatpush3.bf16.msra.mxu0 %v10205_v37 }
  0x47   : > { %14763 = vst [vmem:[#allocation13_spill] sm:$0xff] %v10881_v25  ;;  %v471_v13 = vrot.slane %v10834_v10, 5  ;;  %v403_v28 = vsel %vm10679_vm5, %v398_v12, %v402_v34  ;;  %v7718_v29 = vrot.slane %v425_v52, 9  ;;  %v865_v33 = vshrl.u32 %v10864_v54, 16  ;;  %v7815_v40 = vld [vmem:[%s10645_s13 + $0x58] sm:$0xf] }
  0x48   : > { %4976 = vmatmul.mubr.bf16.gmra.mrb[12].mxu0 %v14518_v2  ;;  %v868_v35 = vshll.u32 %v10864_v54, 16  ;;  %v417_v10 = vsel %vm10679_vm5, %v412_v22, %v416_v1  ;;  %v475_v34 = vrot.slane %v10840_v14, 5  ;;  %v874_v38 = vshll.u32 %v10888_v18, 16  ;;  %v7816_v47 = vld [vmem:[%s10645_s13 + $0x60] sm:$0xf] }
  0x49   : > { %5137 = vmatmul.mubr.bf16.gmra.mrb[12].mxu1 %v14518_v2  ;;  %4983 = vmatprep.mubr.bf16.mxu0 %v10734_v42  ;;  %v879_v39 = vshrl.u32 %v10874_v6, 16  ;;  %v10913_v41 = vcombine.low %v403_v28, %v417_v10  ;;  %v10915_v43 = vcombine.low %v7725_v31, %v7726_v36  ;;  %v867_v44 = vrot.slane %v865_v33, 4  ;;  %v7799_v24 = vld [vmem:[%s10645_s13 + $0x50] sm:$0xe]  ;;  %v7800_v12 = vld [vmem:[%s10645_s13 + $0x58] sm:$0xe] }
  0x4a   : > { %5144 = vmatprep.mubr.bf16.mxu1 %v10700_v21  ;;  %v870_v46 = vrot.slane %v868_v35, 5  ;;  %v472_v52 = vsel %vm10670_vm4, %v7717_v27, %v471_v13  ;;  %v876_v62 = vrot.slane %v874_v38, 5  ;;  %v882_v14 = vshll.u32 %v10874_v6, 16  ;;  %v10207_v33 = vld [vmem:[%s14513_s1 + $0x1a8] sm:$0xff]   ;;  %v10212_v10 = vld [vmem:[%s14513_s1 + $0x170] sm:$0xff]  }
  0x4b   : > { %14764 = vst [vmem:[#allocation14_spill] sm:$0xff] %v10913_v41  ;;  %14765 = vst [vmem:[#allocation15_spill] sm:$0xff] %v10915_v43  ;;  %v881_v1 = vrot.slane %v879_v39, 4  ;;  %v888_v31 = vshll.u32 %v10900_v30, 16  ;;  %v1050_v36 = vshrl.u32 %v7815_v40, 16  ;;  %v1053_v28 = vshll.u32 %v7815_v40, 16  ;;  %8815 = vmatpush3.bf16.msra.mxu1 %v10207_v33  ;;  %8704 = vmatprep.subr.bf16.mxu0 %v10212_v10 }
  0x4c   : > { %v871_v22 = vor.u32 %v870_v46, %v867_v44  ;;  %v476_v27 = vsel %vm10670_vm4, %v7718_v29, %v475_v34  ;;  %v884_v13 = vrot.slane %v882_v14, 5  ;;  %v1064_v35 = vshrl.u32 %v7816_v47, 16  ;;  %v10955_v2 = vld [vmem:[%s10645_s13 + $0x60] sm:$0xf]  ;;  %v10966_v33 = vld [vmem:[%s10645_s13 + $0x68] sm:$0xf] }
  0x4d   : > { %v1067_v37 = vshll.u32 %v7816_v47, 16  ;;  %v890_v39 = vrot.slane %v888_v31, 5  ;;  %v10938_v44 = vrot.slane %v1050_v36, 4  ;;  %v10940_v46 = vrot.slane %v1053_v28, 5  ;;  %v11012_v21 = vld [vmem:[%s10645_s13 + $0x78] sm:$0xf] }
  0x4e   : > { %v872_v38 = vrot.slane %v871_v22, 4  ;;  %v10945_v29 = vcombine.low %v10820_v4, %v10831_v8  ;;  %v885_v34 = vor.u32 %v884_v13, %v881_v1  ;;  %v10947_v14 = vrot.slane %v1064_v35, 4  ;;  %v10213_v4 = vld [vmem:[%s14513_s1 + $0x130] sm:$0xff]  }
  0x4f   : > { %v10949_v19 = vrot.slane %v1067_v37, 5  ;;  %v10951_v22 = vcombine.low %v472_v52, %v476_v27  ;;  %v7807_v31 = vrot.slane %v7799_v24, 9  ;;  %v1002_v36 = vrot.slane %v10888_v18, 5  ;;  %v10969_v24 = vld [vmem:[%s10645_s13 + $0x64] sm:$0x1]  ;;  %8705 = vmatpush3.bf16.msra.mxu0 %v10213_v4 }
  0x50   : > { %4984 = vmatmul.mubr.bf16.gmra.mrb[16].mxu0 %v10690_v17  ;;  %14766 = vst [vmem:[#allocation16_spill] sm:$0xff] %v10945_v29  ;;  %v7808_v28 = vrot.slane %v7800_v12, 9  ;;  %v877_v8 = vsel %vm10679_vm5, %v872_v38, %v876_v62  ;;  %v886_v1 = vrot.slane %v885_v34, 4  ;;  %v10962_v13 = vcombine.low %v7815_v40, %v7816_v47  ;;  %v10976_v12 = vld [vmem:[%s10645_s13 + $0x6c] sm:$0x1] }
  0x51   : > { %5145 = vmatmul.mubr.bf16.gmra.mrb[16].mxu1 %v10743_v53  ;;  %4991 = vmatprep.mubr.bf16.mxu0 %v10781_v26  ;;  %14767 = vst [vmem:[#allocation17_spill] sm:$0xff] %v10951_v22  ;;  %v1006_v52 = vrot.slane %v10900_v30, 5  ;;  %v10973_v18 = vcombine.low %v10864_v54, %v10874_v6  ;;  %v893_v27 = vshrl.u32 %v10955_v2, 16  ;;  %v896_v62 = vshll.u32 %v10955_v2, 16  ;;  %v10214_v30 = vld [vmem:[%s14513_s1 + $0x1f0] sm:$0xff]  }
  0x52   : > { %5152 = vmatprep.mubr.bf16.mxu1 %v10776_v15  ;;  %14768 = vst [vmem:[#allocation18_spill] sm:$0xff] %v10962_v13  ;;  %v902_v40 = vshll.u32 %v10969_v24, 16  ;;  %v891_v47 = vsel %vm10679_vm5, %v886_v1, %v890_v39  ;;  %v1003_v54 = vsel %vm10670_vm4, %v7807_v31, %v1002_v36  ;;  %v907_v6 = vshrl.u32 %v10966_v33, 16  ;;  %v7817_v4 = vld [vmem:[%s10645_s13 + $0x68] sm:$0xf]  ;;  %8816 = vmatprep.subr.bf16.mxu1 %v10214_v30 }
  0x53   : > { %14769 = vst [vmem:[#allocation19_spill] sm:$0xff] %v10973_v18  ;;  %v910_v35 = vshll.u32 %v10966_v33, 16  ;;  %v10990_v37 = vcombine.low %v877_v8, %v891_v47  ;;  %v1007_v10 = vsel %vm10670_vm4, %v7808_v28, %v1006_v52  ;;  %v895_v38 = vrot.slane %v893_v27, 4  ;;  %v7801_v8 = vld [vmem:[%s10645_s13 + $0x60] sm:$0xe] }
  0x54   : > { %v898_v34 = vrot.slane %v896_v62, 5  ;;  %v904_v39 = vrot.slane %v902_v40, 5  ;;  %v909_v1 = vrot.slane %v907_v6, 4  ;;  %v916_v36 = vshll.u32 %v10976_v12, 16  ;;  %v7802_v30 = vld [vmem:[%s10645_s13 + $0x68] sm:$0xe] }
  0x55   : > { %14770 = vst [vmem:[#allocation20_spill] sm:$0xff] %v10990_v37  ;;  %v912_v31 = vrot.slane %v910_v35, 5  ;;  %v1078_v52 = vshrl.u32 %v7817_v4, 16  ;;  %v1081_v27 = vshll.u32 %v7817_v4, 16  ;;  %v10215_v40 = vld [vmem:[%s14513_s1 + $0x1b0] sm:$0xff]   ;;  %v11006_v47 = vcombine.low %v1003_v54, %v1007_v10 }
  0x56   : > { %v899_v28 = vor.u32 %v898_v34, %v895_v38  ;;  %v918_v35 = vrot.slane %v916_v36, 5  ;;  %v11009_v15 = vld [vmem:[%s10645_s13 + $0x70] sm:$0xf]  ;;  %8817 = vmatpush3.bf16.msra.mxu1 %v10215_v40  ;;  %v10220_v36 = vld [vmem:[%s14513_s1 + $0x178] sm:$0xff]  }
  0x57   : > { %14771 = vst [vmem:[#allocation21_spill] sm:$0xff] %v11006_v47  ;;  %v913_v6 = vor.u32 %v912_v31, %v909_v1  ;;  %v11014_v34 = vrot.slane %v1078_v52, 4  ;;  %v7809_v31 = vrot.slane %v7801_v8, 9  ;;  %v1014_v52 = vrot.slane %v10976_v12, 5  ;;  %8706 = vmatprep.subr.bf16.mxu0 %v10220_v36  ;;  %v10222_v12 = vld [vmem:[%s14513_s1 + $0x1f8] sm:$0xff]  }
  0x58   : > { %4992 = vmatmul.mubr.bf16.gmra.mrb[20].mxu0 %v10811_v59  ;;  %v900_v38 = vrot.slane %v899_v28, 4  ;;  %v924_v40 = vshll.u32 %v11009_v15, 16  ;;  %8818 = vmatprep.subr.bf16.mxu1 %v10222_v12  ;;  %v11073_v12 = vcombine.low %v10955_v2, %v10966_v33 }
  0x59   : > { %5153 = vmatmul.mubr.bf16.gmra.mrb[20].mxu1 %v10813_v61  ;;  %4999 = vmatprep.mubr.bf16.mxu0 %v10854_v32  ;;  %v914_v54 = vrot.slane %v913_v6, 4  ;;  %v7805_v61 = vld [vmem:[%s10645_s13 + $0x80] sm:$0xe] }
  0x5a   : > { %5160 = vmatprep.mubr.bf16.mxu1 %v10828_v7  ;;  %v905_v28 = vsel %vm10679_vm5, %v900_v38, %v904_v39  ;;  %v7820_v38 = vld [vmem:[%s10645_s13 + $0x80] sm:$0xf]  ;;  %14774 = vst [vmem:[#allocation24_spill] sm:$0xff] %v11073_v12 }
  0x5b   : > { %v919_v8 = vsel %vm10679_vm5, %v914_v54, %v918_v35  ;;  %v935_v35 = vshrl.u32 %v11012_v21, 16  ;;  %v10223_v54 = vld [vmem:[%s14513_s1 + $0x1b8] sm:$0xff]  }
  0x5c   : > { %8819 = vmatpush3.bf16.msra.mxu1 %v10223_v54 }
  0x60   : > { %5000 = vmatmul.mubr.bf16.gmra.mrb[24].mxu0 %v10869_v56 }
  0x61   : > { %5161 = vmatmul.mubr.bf16.gmra.mrb[24].mxu1 %v10881_v25  ;;  %5007 = vmatprep.mubr.bf16.mxu0 %v10913_v41 }
  0x62   : > { %5168 = vmatprep.mubr.bf16.mxu1 %v10915_v43  ;;  %v7818_v43 = vld [vmem:[%s10645_s13 + $0x70] sm:$0xf] }
  0x63   : > { %v1092_v62 = vshrl.u32 %v7818_v43, 16  ;;  %v1095_v7 = vshll.u32 %v7818_v43, 16  ;;  %v11018_v41 = vcombine.low %v7817_v4, %v7818_v43  ;;  %v1010_v43 = vrot.slane %v10969_v24, 5  ;;  %v7819_v24 = vld [vmem:[%s10645_s13 + $0x78] sm:$0xf] }
  0x64   : > { %v7810_v4 = vrot.slane %v7802_v30, 9  ;;  %v11049_v30 = vcombine.low %v905_v28, %v919_v8  ;;  %v926_v28 = vrot.slane %v924_v40, 5  ;;  %v1106_v32 = vshrl.u32 %v7819_v24, 16 }
  0x65   : > { %14772 = vst [vmem:[#allocation22_spill] sm:$0xff] %v11018_v41  ;;  %v11023_v10 = vrot.slane %v1092_v62, 4  ;;  %v11025_v1 = vrot.slane %v1095_v7, 5  ;;  %v10221_v7 = vld [vmem:[%s14513_s1 + $0x138] sm:$0xff]   ;;  %v921_v62 = vshrl.u32 %v11009_v15, 16  ;;  %v1011_v6 = vsel %vm10670_vm4, %v7809_v31, %v1010_v43  ;;  %v10226_v31 = vld [vmem:[%s14513_s1 + $0x240] sm:$0xff]  }
  0x66   : > { %14773 = vst [vmem:[#allocation23_spill] sm:$0xff] %v11049_v30  ;;  %8707 = vmatpush3.bf16.msra.mxu0 %v10221_v7  ;;  %v1015_v36 = vsel %vm10670_vm4, %v7810_v4, %v1014_v52  ;;  %v937_v43 = vrot.slane %v935_v35, 4  ;;  %v938_v7 = vshll.u32 %v11012_v21, 16  ;;  %v7804_v4 = vld [vmem:[%s10645_s13 + $0x78] sm:$0xe]  ;;  %v1120_v40 = vshrl.u32 %v7820_v38, 16 }
  0x67   : > { %8916 = vmatprep.subr.bf16.mxu0 %v10226_v31  ;;  %v11086_v2 = vcombine.low %v1011_v6, %v1015_v36  ;;  %v11090_v31 = vld [vmem:[%s10645_s13 + $0x80] sm:$0xf]  ;;  %v7797_v6 = vld [vmem:[%s10645_s13 + $0x84] sm:$0x1] }
  0x68   : > { %5008 = vmatmul.mubr.bf16.gmra.mrb[28].mxu0 %v10945_v29  ;;  %v11021_v29 = vld [vmem:[%s10645_s13 + $0x74] sm:$0x1]  ;;  %v11082_v56 = vrot.slane %v1120_v40, 4 }
  0x69   : > { %5169 = vmatmul.mubr.bf16.gmra.mrb[28].mxu1 %v10951_v22  ;;  %5015 = vmatprep.mubr.bf16.mxu0 %v10990_v37  ;;  %v11016_v37 = vrot.slane %v1081_v27, 5  ;;  %v11035_v27 = vld [vmem:[%s10645_s13 + $0x7c] sm:$0x1]  ;;  %v930_v39 = vshll.u32 %v11021_v29, 16  ;;  %v7803_v22 = vld [vmem:[%s10645_s13 + $0x70] sm:$0xe] }
  0x6a   : > { %5176 = vmatprep.mubr.bf16.mxu1 %v10962_v13  ;;  %v923_v13 = vrot.slane %v921_v62, 4  ;;  %v1109_v62 = vshll.u32 %v7819_v24, 16  ;;  %14775 = vst [vmem:[#allocation25_spill] sm:$0xff] %v11082_v56  ;;  %14776 = vst [vmem:[#allocation26_spill] sm:$0xff] %v11086_v2  ;;  %v1022_v40 = vrot.slane %v11035_v27, 5 }
  0x6b   : > { %v932_v8 = vrot.slane %v930_v39, 5  ;;  %v1123_v39 = vshll.u32 %v7820_v38, 16 }
  0x6c   : > { %v927_v52 = vor.u32 %v926_v28, %v923_v13  ;;  %v11080_v28 = vrot.slane %v1109_v62, 5  ;;  %v7812_v62 = vrot.slane %v7804_v4, 9 }
  0x6d   : > { %v11084_v54 = vrot.slane %v1123_v39, 5  ;;  %v11100_v39 = vld [vmem:[%s10645_s13 + $0x88] sm:$0xf] }
  0x6e   : > { %v928_v13 = vrot.slane %v927_v52, 4  ;;  %v11096_v52 = vcombine.low %v11009_v15, %v11012_v21  ;;  %v7798_v15 = vld [vmem:[%s10645_s13 + $0x8c] sm:$0x1] }
  0x6f   : > { %v972_v26 = vshll.u32 %v7798_v15, 16 }
  0x70   : > { %5016 = vmatmul.mubr.bf16.gmra.mrb[32].mxu0 %v10973_v18  ;;  %v944_v18 = vshll.u32 %v11035_v27, 16  ;;  %14778 = vst [vmem:[#allocation28_spill] sm:$0xff] %v11096_v52  ;;  %v958_v27 = vshll.u32 %v7797_v6, 16 }
  0x71   : > { %5177 = vmatmul.mubr.bf16.gmra.mrb[32].mxu1 %v11006_v47  ;;  %5023 = vmatprep.mubr.bf16.mxu0 %v11049_v30  ;;  %v940_v30 = vrot.slane %v938_v7, 5  ;;  %v11075_v47 = vrot.slane %v1106_v32, 4  ;;  %v1018_v32 = vrot.slane %v11021_v29, 5  ;;  %v11092_v7 = vcombine.low %v7819_v24, %v7820_v38 }
  0x72   : > { %5184 = vmatprep.mubr.bf16.mxu1 %v11018_v41  ;;  %v946_v35 = vrot.slane %v944_v18, 5  ;;  %v10228_v41 = vld [vmem:[%s14513_s1 + $0x2c0] sm:$0xff]   ;;  %v7811_v18 = vrot.slane %v7803_v22, 9  ;;  %v933_v22 = vsel %vm10679_vm5, %v928_v13, %v932_v8  ;;  %v963_v24 = vshrl.u32 %v11100_v39, 16  ;;  %v7821_v13 = vld [vmem:[%s10645_s13 + $0x88] sm:$0xf] }
  0x73   : > { %v941_v33 = vor.u32 %v940_v30, %v937_v43  ;;  %9028 = vmatprep.subr.bf16.mxu1 %v10228_v41  ;;  %14777 = vst [vmem:[#allocation27_spill] sm:$0xff] %v11092_v7  ;;  %v949_v30 = vshrl.u32 %v11090_v31, 16  ;;  %v952_v41 = vshll.u32 %v11090_v31, 16  ;;  %v966_v38 = vshll.u32 %v11100_v39, 16 }
  0x74   : > { %v1019_v21 = vsel %vm10670_vm4, %v7811_v18, %v1018_v32  ;;  %v1023_v8 = vsel %vm10670_vm4, %v7812_v62, %v1022_v40  ;;  %v960_v18 = vrot.slane %v958_v27, 5  ;;  %v965_v32 = vrot.slane %v963_v24, 4 }
  0x75   : > { %v942_v29 = vrot.slane %v941_v33, 4  ;;  %v951_v43 = vrot.slane %v949_v30, 4  ;;  %v954_v4 = vrot.slane %v952_v41, 5  ;;  %v11125_v62 = vcombine.low %v1019_v21, %v1023_v8  ;;  %v7806_v41 = vld [vmem:[%s10645_s13 + $0x88] sm:$0xe] }
  0x76   : > { %v974_v24 = vrot.slane %v972_v26, 5  ;;  %v7813_v26 = vrot.slane %v7805_v61, 9 }
  0x77   : > { %v947_v36 = vsel %vm10679_vm5, %v942_v29, %v946_v35  ;;  %v955_v25 = vor.u32 %v954_v4, %v951_v43  ;;  %v1134_v35 = vshrl.u32 %v7821_v13, 16  ;;  %v1137_v29 = vshll.u32 %v7821_v13, 16  ;;  %14780 = vst [vmem:[#allocation30_spill] sm:$0xff] %v11125_v62  ;;  %v7952_v4 = vld [vmem:[%s10645_s13 + $0xa8] sm:$0xf] }
  0x78   : > { %5024 = vmatmul.mubr.bf16.gmra.mrb[36].mxu0 %v11073_v12  ;;  %v11119_v33 = vcombine.low %v933_v22, %v947_v36  ;;  %v968_v12 = vrot.slane %v966_v38, 5  ;;  %v11129_v36 = vld [vmem:[%s10645_s13 + $0xa0] sm:$0xf] }
  0x79   : > { %5185 = vmatmul.mubr.bf16.gmra.mrb[36].mxu1 %v11086_v2  ;;  %v7822_v2 = vld [vmem:[%s10645_s13 + $0x90] sm:$0xf]  ;;  %v956_v27 = vrot.slane %v955_v25, 4  ;;  %v11131_v38 = vrot.slane %v1134_v35, 4  ;;  %v11136_v59 = vrot.slane %v1137_v29, 5  ;;  %v1026_v25 = vrot.slane %v7797_v6, 5 }
  0x7a   : > { %14779 = vst [vmem:[#allocation29_spill] sm:$0xff] %v11119_v33  ;;  %5192 = vmatprep.mubr.bf16.mxu1 %v11092_v7  ;;  %5031 = vmatprep.mubr.bf16.mxu0 %v11119_v33  ;;  %v969_v40 = vor.u32 %v968_v12, %v965_v32  ;;  %v1148_v22 = vshrl.u32 %v7822_v2, 16  ;;  %v1151_v30 = vshll.u32 %v7822_v2, 16  ;;  %v11133_v43 = vcombine.low %v7821_v13, %v7822_v2  ;;  %v7959_v12 = vld [vmem:[%s10645_s13 + $0xa4] sm:$0x1] }
  0x7b   : > { %14781 = vst [vmem:[#allocation31_spill] sm:$0xff] %v11131_v38  ;;  %14783 = vst [vmem:[#allocation33_spill] sm:$0xff] %v11136_v59  ;;  %v961_v8 = vsel %vm10679_vm5, %v956_v27, %v960_v18  ;;  %v7814_v32 = vrot.slane %v7806_v41, 9  ;;  %v1030_v13 = vrot.slane %v7798_v15, 5  ;;  %v7960_v35 = vld [vmem:[%s10645_s13 + $0xac] sm:$0x1]  ;;  %v1027_v61 = vsel %vm10670_vm4, %v7813_v26, %v1026_v25 }
  0x7c   : > { %14782 = vst [vmem:[#allocation32_spill] sm:$0xff] %v11133_v43  ;;  %v970_v7 = vrot.slane %v969_v40, 4  ;;  %v11138_v33 = vrot.slane %v1148_v22, 4  ;;  %v11140_v21 = vrot.slane %v1151_v30, 5  ;;  %v1756_v29 = vshrl.u32 %v11129_v36, 16 }
  0x7d   : > { %v1759_v40 = vshll.u32 %v11129_v36, 16  ;;  %v1765_v6 = vshll.u32 %v7959_v12, 16  ;;  %v1770_v18 = vshrl.u32 %v7952_v4, 16  ;;  %v7983_v30 = vld [vmem:[%s10645_s13 + $0xa8] sm:$0xf]  ;;  %v14841_v59 = vor.u32 %v10760_v3, %v10753_v60  ;;  %v10242_v60 = vld [vmem:[%s14513_s1 + $0x218] sm:$0xff]  }
  0x7e   : > { %14784 = vst [vmem:[#allocation34_spill] sm:$0xff] %v11138_v33  ;;  %14785 = vst [vmem:[#allocation35_spill] sm:$0xff] %v11140_v21  ;;  %v975_v2 = vsel %vm10679_vm5, %v970_v7, %v974_v24  ;;  %v7984_v41 = vld [vmem:[%s10645_s13 + $0xb0] sm:$0xf]  ;;  %v1031_v7 = vsel %vm10670_vm4, %v7814_v32, %v1030_v13  ;;  %v1758_v15 = vrot.slane %v1756_v29, 4  ;;  %v1773_v24 = vshll.u32 %v7952_v4, 16 }
  0x7f   : > { %v11152_v22 = vcombine.low %v961_v8, %v975_v2  ;;  %v1761_v27 = vrot.slane %v1759_v40, 5  ;;  %v11165_v8 = vcombine.low %v11090_v31, %v11100_v39  ;;  %v1767_v26 = vrot.slane %v1765_v6, 5  ;;  %v7968_v29 = vld [vmem:[%s10645_s13 + $0xa8] sm:$0xe]  ;;  %v10243_v3 = vld [vmem:[%s14513_s1 + $0x2d8] sm:$0xff]  }
  0x80   : > { %5032 = vmatmul.mubr.bf16.gmra.mrb[40].mxu0 %v11096_v52  ;;  %v7967_v52 = vld [vmem:[%s10645_s13 + $0xa0] sm:$0xe]  ;;  %v1772_v25 = vrot.slane %v1770_v18, 4  ;;  %v1779_v2 = vshll.u32 %v7960_v35, 16  ;;  %v1775_v42 = vrot.slane %v1773_v24, 5  ;;  %v1944_v17 = vshll.u32 %v7983_v30, 16 }
  0x81   : > { %5193 = vmatmul.mubr.bf16.gmra.mrb[40].mxu1 %v11125_v62  ;;  %14786 = vst [vmem:[#allocation36_spill] sm:$0xff] %v11152_v22  ;;  %5039 = vmatprep.mubr.bf16.mxu0 %v11152_v22  ;;  %14787 = vst [vmem:[#allocation37_spill] sm:$0xff] %v11165_v8  ;;  %v1762_v62 = vor.u32 %v1761_v27, %v1758_v15  ;;  %v11167_v53 = vcombine.low %v1027_v61, %v1031_v7  ;;  %v1955_v32 = vshrl.u32 %v7984_v41, 16 }
  0x82   : > { %5200 = vmatprep.mubr.bf16.mxu1 %v11133_v43  ;;  %v1941_v43 = vshrl.u32 %v7983_v30, 16  ;;  %v1958_v13 = vshll.u32 %v7984_v41, 16  ;;  %v501_v40 = vor.u32 %v10683_v11, %v10666_v0  ;;  %v1776_v21 = vor.u32 %v1775_v42, %v1772_v25  ;;  %v7985_v25 = vld [vmem:[%s10645_s13 + $0xb8] sm:$0xf] }
  0x83   : > { %14788 = vst [vmem:[#allocation38_spill] sm:$0xff] %v11167_v53  ;;  %v1763_v22 = vrot.slane %v1762_v62, 4  ;;  %v1781_v31 = vrot.slane %v1779_v2, 5  ;;  %v11172_v39 = vcombine.low %v7983_v30, %v7984_v41  ;;  %v11176_v18 = vrot.slane %v1944_v17, 5  ;;  %v7953_v41 = vld [vmem:[%s10645_s13 + $0xb0] sm:$0xf] }
  0x84   : > { %v11174_v6 = vrot.slane %v1941_v43, 4  ;;  %v11178_v15 = vrot.slane %v1955_v32, 4  ;;  %v7975_v61 = vrot.slane %v7967_v52, 9  ;;  %v1777_v11 = vrot.slane %v1776_v21, 4  ;;  %v7954_v52 = vld [vmem:[%s10645_s13 + $0xb8] sm:$0xf] }
  0x85   : > { %14789 = vst [vmem:[#allocation39_spill] sm:$0xff] %v11172_v39  ;;  %14791 = vst [vmem:[#allocation41_spill] sm:$0xff] %v11176_v18  ;;  %v1768_v0 = vsel %vm10679_vm5, %v1763_v22, %v1767_v26  ;;  %v1893_v42 = vrot.slane %v7959_v12, 5  ;;  %v7976_v62 = vrot.slane %v7968_v29, 9  ;;  %v11184_v30 = vrot.slane %v1958_v13, 5 }
  0x86   : > { %14790 = vst [vmem:[#allocation40_spill] sm:$0xff] %v11174_v6  ;;  %14792 = vst [vmem:[#allocation42_spill] sm:$0xff] %v11178_v15  ;;  %v11187_v17 = vcombine.low %v11129_v36, %v7952_v4  ;;  %v1897_v43 = vrot.slane %v7960_v35, 5  ;;  %v1782_v7 = vsel %vm10679_vm5, %v1777_v11, %v1781_v31  ;;  %v7961_v12 = vld [vmem:[%s10645_s13 + $0xb4] sm:$0x1]  ;;  %v1784_v27 = vshrl.u32 %v7953_v41, 16 }
  0x87   : > { %14793 = vst [vmem:[#allocation43_spill] sm:$0xff] %v11184_v30  ;;  %v1894_v21 = vsel %vm10670_vm4, %v7975_v61, %v1893_v42  ;;  %v7962_v22 = vld [vmem:[%s10645_s13 + $0xbc] sm:$0x1]  ;;  %v1787_v24 = vshll.u32 %v7953_v41, 16  ;;  %v11198_v26 = vcombine.low %v1768_v0, %v1782_v7  ;;  %v1793_v4 = vshll.u32 %v7961_v12, 16 }
  0x88   : > { %5040 = vmatmul.mubr.bf16.gmra.mrb[44].mxu0 %v11165_v8  ;;  %14794 = vst [vmem:[#allocation44_spill] sm:$0xff] %v11187_v17  ;;  %v1898_v36 = vsel %vm10670_vm4, %v7976_v62, %v1897_v43  ;;  %v1798_v35 = vshrl.u32 %v7954_v52, 16  ;;  %v1786_v2 = vrot.slane %v1784_v27, 4  ;;  %v1801_v13 = vshll.u32 %v7954_v52, 16  ;;  %v11204_v29 = vld [vmem:[%s10645_s13 + $0xc0] sm:$0xf] }
  0x89   : > { %5201 = vmatmul.mubr.bf16.gmra.mrb[44].mxu1 %v11167_v53  ;;  %14795 = vst [vmem:[#allocation45_spill] sm:$0xff] %v11198_v26  ;;  %v1789_v32 = vrot.slane %v1787_v24, 5  ;;  %v11206_v31 = vrot.slane %v501_v40, 4  ;;  %5047 = vmatprep.mubr.bf16.mxu0 %v11198_v26  ;;  %v11209_v61 = vcombine.low %v1894_v21, %v1898_v36  ;;  %v1807_v11 = vshll.u32 %v7962_v22, 16  ;;  %v7969_v24 = vld [vmem:[%s10645_s13 + $0xb0] sm:$0xe] }
  0x8a   : > { %5208 = vmatprep.mubr.bf16.mxu1 %v11172_v39  ;;  %v1800_v0 = vrot.slane %v1798_v35, 4  ;;  %v1969_v42 = vshrl.u32 %v7985_v25, 16  ;;  %v1795_v43 = vrot.slane %v1793_v4, 5  ;;  %v1803_v7 = vrot.slane %v1801_v13, 5  ;;  %v7970_v53 = vld [vmem:[%s10645_s13 + $0xb8] sm:$0xe] }
  0x8b   : > { %14796 = vst [vmem:[#allocation46_spill] sm:$0xff] %v11206_v31  ;;  %14797 = vst [vmem:[#allocation47_spill] sm:$0xff] %v11209_v61  ;;  %v1790_v62 = vor.u32 %v1789_v32, %v1786_v2  ;;  %v1972_v27 = vshll.u32 %v7985_v25, 16  ;;  %v1809_v39 = vrot.slane %v1807_v11, 5  ;;  %v1983_v8 = vshrl.u32 %v11204_v29, 16 }
  0x8c   : > { %v11214_v40 = vcombine.low %v7985_v25, %v11204_v29  ;;  %v11218_v26 = vld [vmem:[%s10645_s13 + $0xc0] sm:$0xf]  ;;  %v1804_v36 = vor.u32 %v1803_v7, %v1800_v0  ;;  %v11221_v35 = vrot.slane %v1969_v42, 4  ;;  %v1986_v4 = vshll.u32 %v11204_v29, 16  ;;  %v11225_v2 = vld [vmem:[%s10645_s13 + $0xc4] sm:$0x1] }
  0x8d   : > { %v1791_v21 = vrot.slane %v1790_v62, 4  ;;  %v11228_v32 = vrot.slane %v1972_v27, 5  ;;  %v11230_v25 = vcombine.low %v7953_v41, %v7954_v52  ;;  %v7977_v13 = vrot.slane %v7969_v24, 9  ;;  %v7956_v31 = vld [vmem:[%s10645_s13 + $0xc8] sm:$0xf] }
  0x8e   : > { %14798 = vst [vmem:[#allocation48_spill] sm:$0xff] %v11214_v40  ;;  %14799 = vst [vmem:[#allocation49_spill] sm:$0xff] %v11221_v35  ;;  %v1901_v11 = vrot.slane %v7961_v12, 5  ;;  %v1805_v42 = vrot.slane %v1804_v36, 4  ;;  %v7978_v29 = vrot.slane %v7970_v53, 9  ;;  %v1905_v62 = vrot.slane %v7962_v22, 5 }
  0x8f   : > { %14800 = vst [vmem:[#allocation50_spill] sm:$0xff] %v11228_v32  ;;  %14801 = vst [vmem:[#allocation51_spill] sm:$0xff] %v11230_v25  ;;  %v1796_v0 = vsel %vm10679_vm5, %v1791_v21, %v1795_v43  ;;  %v7964_v27 = vld [vmem:[%s10645_s13 + $0xcc] sm:$0x1]  ;;  %v1812_v41 = vshrl.u32 %v11218_v26, 16  ;;  %v1815_v52 = vshll.u32 %v11218_v26, 16 }
  0x90   : > { %5048 = vmatmul.mubr.bf16.gmra.mrb[48].mxu0 %v11187_v17  ;;  %v1902_v7 = vsel %vm10670_vm4, %v7977_v13, %v1901_v11  ;;  %v1821_v12 = vshll.u32 %v11225_v2, 16  ;;  %v1810_v43 = vsel %vm10679_vm5, %v1805_v42, %v1809_v39  ;;  %v1906_v24 = vsel %vm10670_vm4, %v7978_v29, %v1905_v62  ;;  %v7987_v21 = vld [vmem:[%s10645_s13 + $0xc8] sm:$0xf]  ;;  %v7988_v36 = vld [vmem:[%s10645_s13 + $0xd0] sm:$0xf] }
  0x91   : > { %5209 = vmatmul.mubr.bf16.gmra.mrb[48].mxu1 %v11209_v61  ;;  %v1826_v53 = vshrl.u32 %v7956_v31, 16  ;;  %v1829_v22 = vshll.u32 %v7956_v31, 16  ;;  %v11250_v13 = vcombine.low %v1902_v7, %v1906_v24  ;;  %v1814_v11 = vrot.slane %v1812_v41, 4  ;;  %v7971_v61 = vld [vmem:[%s10645_s13 + $0xc0] sm:$0xe] }
  0x92   : > { %5216 = vmatprep.mubr.bf16.mxu1 %v11214_v40  ;;  %v11248_v40 = vcombine.low %v1796_v0, %v1810_v43  ;;  %v1817_v17 = vrot.slane %v1815_v52, 5  ;;  %v1823_v32 = vrot.slane %v1821_v12, 5  ;;  %v1835_v15 = vshll.u32 %v7964_v27, 16  ;;  %v7972_v18 = vld [vmem:[%s10645_s13 + $0xc8] sm:$0xe] }
  0x93   : > { %14803 = vst [vmem:[#allocation53_spill] sm:$0xff] %v11250_v13  ;;  %v1828_v35 = vrot.slane %v1826_v53, 4  ;;  %v1831_v30 = vrot.slane %v1829_v22, 5  ;;  %v1997_v42 = vshrl.u32 %v7987_v21, 16  ;;  %v2000_v29 = vshll.u32 %v7987_v21, 16 }
  0x94   : > { %14802 = vst [vmem:[#allocation52_spill] sm:$0xff] %v11248_v40  ;;  %5055 = vmatprep.mubr.bf16.mxu0 %v11248_v40  ;;  %v1818_v39 = vor.u32 %v1817_v17, %v1814_v11  ;;  %v2011_v62 = vshrl.u32 %v7988_v36, 16  ;;  %v11255_v6 = vrot.slane %v1983_v8, 4  ;;  %v1837_v7 = vrot.slane %v1835_v15, 5  ;;  %v7974_v40 = vld [vmem:[%s10645_s13 + $0xd8] sm:$0xe] }
  0x95   : > { %v1832_v0 = vor.u32 %v1831_v30, %v1828_v35  ;;  %v11258_v41 = vcombine.low %v7987_v21, %v7988_v36  ;;  %v11260_v52 = vrot.slane %v1986_v4, 5  ;;  %v11263_v17 = vrot.slane %v1997_v42, 4  ;;  %v7957_v21 = vld [vmem:[%s10645_s13 + $0xd0] sm:$0xf]  ;;  %v7965_v42 = vld [vmem:[%s10645_s13 + $0xd4] sm:$0x1] }
  0x96   : > { %14804 = vst [vmem:[#allocation54_spill] sm:$0xff] %v11255_v6  ;;  %v1819_v12 = vrot.slane %v1818_v39, 4  ;;  %v2014_v43 = vshll.u32 %v7988_v36, 16  ;;  %v11265_v24 = vrot.slane %v2000_v29, 5  ;;  %v11267_v53 = vrot.slane %v2011_v62, 4 }
  0x97   : > { %14805 = vst [vmem:[#allocation55_spill] sm:$0xff] %v11258_v41  ;;  %14806 = vst [vmem:[#allocation56_spill] sm:$0xff] %v11260_v52  ;;  %v1833_v8 = vrot.slane %v1832_v0, 4  ;;  %v7979_v15 = vrot.slane %v7971_v61, 9  ;;  %v1909_v35 = vrot.slane %v11225_v2, 5  ;;  %v7980_v4 = vrot.slane %v7972_v18, 9 }
  0x98   : > { %5056 = vmatmul.mubr.bf16.gmra.mrb[52].mxu0 %v11230_v25  ;;  %14807 = vst [vmem:[#allocation57_spill] sm:$0xff] %v11263_v17  ;;  %14808 = vst [vmem:[#allocation58_spill] sm:$0xff] %v11265_v24  ;;  %v1824_v30 = vsel %vm10679_vm5, %v1819_v12, %v1823_v32  ;;  %v1913_v22 = vrot.slane %v7964_v27, 5  ;;  %v11277_v11 = vcombine.low %v11218_v26, %v7956_v31  ;;  %v7958_v39 = vld [vmem:[%s10645_s13 + $0xd8] sm:$0xf]  ;;  %v1840_v27 = vshrl.u32 %v7957_v21, 16 }
  0x99   : > { %5217 = vmatmul.mubr.bf16.gmra.mrb[52].mxu1 %v11250_v13  ;;  %14809 = vst [vmem:[#allocation59_spill] sm:$0xff] %v11267_v53  ;;  %v1838_v36 = vsel %vm10679_vm5, %v1833_v8, %v1837_v7  ;;  %v7966_v61 = vld [vmem:[%s10645_s13 + $0xdc] sm:$0x1]  ;;  %v1910_v18 = vsel %vm10670_vm4, %v7979_v15, %v1909_v35  ;;  %v7989_v62 = vld [vmem:[%s10645_s13 + $0xd8] sm:$0xf]  ;;  %v1843_v31 = vshll.u32 %v7957_v21, 16 }
  0x9a   : > { %5224 = vmatprep.mubr.bf16.mxu1 %v11258_v41  ;;  %14810 = vst [vmem:[#allocation60_spill] sm:$0xff] %v11277_v11  ;;  %v11284_v32 = vcombine.low %v1824_v30, %v1838_v36  ;;  %v1914_v2 = vsel %vm10670_vm4, %v7980_v4, %v1913_v22  ;;  %v7990_v0 = vld [vmem:[%s10645_s13 + $0xe0] sm:$0xf]  ;;  %v1849_v7 = vshll.u32 %v7965_v42, 16  ;;  %v1854_v12 = vshrl.u32 %v7958_v39, 16 }
  0x9b   : > { %v11292_v26 = vcombine.low %v1910_v18, %v1914_v2  ;;  %v7973_v8 = vld [vmem:[%s10645_s13 + $0xd0] sm:$0xe]  ;;  %v1842_v30 = vrot.slane %v1840_v27, 4  ;;  %v1857_v36 = vshll.u32 %v7958_v39, 16  ;;  %v1863_v29 = vshll.u32 %v7966_v61, 16 }
  0x9c   : > { %14811 = vst [vmem:[#allocation61_spill] sm:$0xff] %v11284_v32  ;;  %5063 = vmatprep.mubr.bf16.mxu0 %v11284_v32  ;;  %v2025_v41 = vshrl.u32 %v7989_v62, 16  ;;  %v11297_v15 = vrot.slane %v2014_v43, 5  ;;  %v1845_v35 = vrot.slane %v1843_v31, 5  ;;  %v1856_v4 = vrot.slane %v1854_v12, 4 }
  0x9d   : > { %14812 = vst [vmem:[#allocation62_spill] sm:$0xff] %v11292_v26  ;;  %v2028_v22 = vshll.u32 %v7989_v62, 16  ;;  %v1851_v18 = vrot.slane %v1849_v7, 5  ;;  %v1859_v2 = vrot.slane %v1857_v36, 5  ;;  %v1865_v25 = vrot.slane %v1863_v29, 5 }
  0x9e   : > { %14813 = vst [vmem:[#allocation63_spill] sm:$0xff] %v11297_v15  ;;  %v2039_v13 = vshrl.u32 %v7990_v0, 16  ;;  %v1846_v53 = vor.u32 %v1845_v35, %v1842_v30  ;;  %v11301_v32 = vrot.slane %v2025_v41, 4  ;;  %v11305_v24 = vcombine.low %v7989_v62, %v7990_v0  ;;  %v7740_v52 = vld [vmem:[%s10645_s13 + $0x30] sm:$0xe] }
  0x9f   : > { %v11303_v27 = vrot.slane %v2028_v22, 5  ;;  %v1860_v43 = vor.u32 %v1859_v2, %v1856_v4  ;;  %v2042_v15 = vshll.u32 %v7990_v0, 16  ;;  %v7981_v17 = vrot.slane %v7973_v8, 9  ;;  %v7727_v22 = vld [vmem:[%s10645_s13 + $0xc] sm:$0x1] }
  0xa0   : > { %5064 = vmatmul.mubr.bf16.gmra.mrb[56].mxu0 %v11277_v11  ;;  %14814 = vst [vmem:[#allocation64_spill] sm:$0xff] %v11301_v32  ;;  %14816 = vst [vmem:[#allocation66_spill] sm:$0xff] %v11305_v24  ;;  %v1847_v12 = vrot.slane %v1846_v53, 4  ;;  %v11309_v11 = vrot.slane %v2039_v13, 4  ;;  %v1917_v29 = vrot.slane %v7965_v42, 5  ;;  %v7982_v7 = vrot.slane %v7974_v40, 9 }
  0xa1   : > { %5225 = vmatmul.mubr.bf16.gmra.mrb[56].mxu1 %v11292_v26  ;;  %14815 = vst [vmem:[#allocation65_spill] sm:$0xff] %v11303_v27  ;;  %v1861_v41 = vrot.slane %v1860_v43, 4  ;;  %v1921_v30 = vrot.slane %v7966_v61, 5  ;;  %v11326_v8 = vcombine.low %v7957_v21, %v7958_v39  ;;  %v11342_v21 = vrot.slane %v2042_v15, 5  ;;  %v7735_v39 = vld [vmem:[%s10645_s13 + $0x8] sm:$0xe] }
  0xa2   : > { %14817 = vst [vmem:[#allocation67_spill] sm:$0xff] %v11309_v11  ;;  %5232 = vmatprep.mubr.bf16.mxu1 %v11305_v24  ;;  %v1852_v53 = vsel %vm10679_vm5, %v1847_v12, %v1851_v18  ;;  %v1918_v13 = vsel %vm10670_vm4, %v7981_v17, %v1917_v29  ;;  %v7728_v18 = vld [vmem:[%s10645_s13 + $0x14] sm:$0x1]  ;;  %v7736_v43 = vld [vmem:[%s10645_s13 + $0x10] sm:$0xe]  ;;  %v632_v12 = vrot.slane %v7727_v22, 5 }
  0xa3   : > { %v1866_v61 = vsel %vm10679_vm5, %v1861_v41, %v1865_v25  ;;  %14818 = vst [vmem:[#allocation68_spill] sm:$0xff] %v11326_v8  ;;  %v1922_v36 = vsel %vm10670_vm4, %v7982_v7, %v1921_v30  ;;  %14821 = vst [vmem:[#allocation71_spill] sm:$0xff] %v11342_v21  ;;  %v7743_v41 = vrot.slane %v7735_v39, 9  ;;  %v636_v30 = vrot.slane %v7728_v18, 5  ;;  %v7752_v15 = vld [vmem:[%s10645_s13 + $0x18] sm:$0xf] }
  0xa4   : > { %v11332_v4 = vcombine.low %v1852_v53, %v1866_v61  ;;  %v11334_v17 = vcombine.low %v1918_v13, %v1922_v36  ;;  %v7751_v53 = vld [vmem:[%s10645_s13 + $0x10] sm:$0xf]  ;;  %v14822_v36 = vmov 0   ;;  %v7759_v29 = vld [vmem:[%s10645_s13 + $0x14] sm:$0x1]  ;;  %v694_v40 = vshrl.u32 %v7752_v15, 16 }
  0xa5   : > { %v7760_v7 = vld [vmem:[%s10645_s13 + $0x1c] sm:$0x1]  ;;  %v680_v25 = vshrl.u32 %v7751_v53, 16  ;;  %v683_v2 = vshll.u32 %v7751_v53, 16  ;;  %v689_v13 = vshll.u32 %v7759_v29, 16  ;;  %v697_v38 = vshll.u32 %v7752_v15, 16 }
  0xa6   : > { %14819 = vst [vmem:[#allocation69_spill] sm:$0xff] %v11332_v4  ;;  %14820 = vst [vmem:[#allocation70_spill] sm:$0xff] %v11334_v17  ;;  %5071 = vmatprep.mubr.bf16.mxu0 %v11332_v4  ;;  %v10227_v42 = vld [vmem:[%s14513_s1 + $0x200] sm:$0xff]   ;;  %v696_v33 = vrot.slane %v694_v40, 4  ;;  %v703_v35 = vshll.u32 %v7760_v7, 16  ;;  %v504_v62 = vshll.u32 %v7727_v22, 16  ;;  %v633_v22 = vsel %vm10670_vm4, %v7743_v41, %v632_v12 }
  0xa7   : > { %v682_v26 = vrot.slane %v680_v25, 4  ;;  %v685_v39 = vrot.slane %v683_v2, 5  ;;  %v691_v29 = vrot.slane %v689_v13, 5  ;;  %v10230_v4 = vld [vmem:[%s14513_s1 + $0x248] sm:$0xff]   ;;  %v699_v24 = vrot.slane %v697_v38, 5  ;;  %v14831_v61 = vld [vmem:[#allocation46_spill] sm:$0xff] }
  0xa8   : > { %5072 = vmatmul.mubr.bf16.gmra.mrb[60].mxu0 %v11326_v8  ;;  %v10229_v8 = vld [vmem:[%s14513_s1 + $0x280] sm:$0xff]   ;;  %v14828_v2 = vor.u32 %v10698_v20, %v10688_v16  ;;  %v10232_v40 = vld [vmem:[%s14513_s1 + $0x2c8] sm:$0xff]   ;;  %v705_v7 = vrot.slane %v703_v35, 5  ;;  %v506_v13 = vrot.slane %v504_v62, 5  ;;  %v11403_v12 = vld [vmem:[%s10645_s13 + $0x18] sm:$0xe] }
  0xa9   : > { %5233 = vmatmul.mubr.bf16.gmra.mrb[60].mxu1 %v11334_v17  ;;  %5273 = vmatprep.mubr.bf16.mxu0 %v14822_v36  ;;  %v7744_v17 = vrot.slane %v7736_v43, 9  ;;  %v686_v31 = vor.u32 %v685_v39, %v682_v26  ;;  %v518_v43 = vshll.u32 %v7728_v18, 16  ;;  %v700_v20 = vor.u32 %v699_v24, %v696_v33  ;;  %v11393_v18 = vld [vmem:[%s10645_s13 + $0x1c] sm:$0x1]  ;;  %v11400_v62 = vld [vmem:[%s10645_s13 + $0x24] sm:$0x1] }
  0xaa   : > { %5434 = vmatprep.mubr.bf16.mxu1 %v14822_v36  ;;  %v516_v25 = vrot.slane %v14828_v2, 4  ;;  %v507_v35 = vsel %vm10679_vm5, %v14831_v61, %v506_v13  ;;  %v11406_v41 = vld [vmem:[%s10645_s13 + $0x20] sm:$0xe]  ;;  %v10233_v61 = vld [vmem:[%s14513_s1 + $0x288] sm:$0xff]   ;;  %v11420_v26 = vcombine.low %v7751_v53, %v7752_v15  ;;  %v11470_v24 = vld [vmem:[%s10645_s13 + $0x34] sm:$0x1] }
  0xab   : > { %v637_v38 = vsel %vm10670_vm4, %v7744_v17, %v636_v30  ;;  %v687_v16 = vrot.slane %v686_v31, 4  ;;  %v520_v2 = vrot.slane %v518_v43, 5  ;;  %v701_v13 = vrot.slane %v700_v20, 4  ;;  %v11423_v33 = vld [vmem:[%s10645_s13 + $0x20] sm:$0xf] }
  0xac   : > { %14836 = vst [vmem:[#allocation46_spill] sm:$0xff] %v11420_v26  ;;  %v11426_v17 = vld [vmem:[%s10645_s13 + $0x28] sm:$0xf]  ;;  %v11434_v20 = vcombine.low %v633_v22, %v637_v38  ;;  %v7762_v38 = vld [vmem:[%s10645_s13 + $0x2c] sm:$0x1]  ;;  %v544_v56 = vrot.slane %v14841_v59, 4 }
  0xad   : > { %v521_v0 = vsel %vm10679_vm5, %v516_v25, %v520_v2  ;;  %v692_v53 = vsel %vm10679_vm5, %v687_v16, %v691_v29  ;;  %v10237_v25 = vld [vmem:[%s14513_s1 + $0x2d0] sm:$0xff]   ;;  %v706_v22 = vsel %vm10679_vm5, %v701_v13, %v705_v7  ;;  %v708_v16 = vshrl.u32 %v11423_v33, 16  ;;  %v11462_v32 = vld [vmem:[%s10645_s13 + $0x2c] sm:$0x1] }
  0xae   : > { %14837 = vst [vmem:[#allocation72_spill] sm:$0xff] %v11434_v20  ;;  %v11438_v15 = vcombine.low %v507_v35, %v521_v0  ;;  %v10235_v29 = vld [vmem:[%s14513_s1 + $0x250] sm:$0xff]   ;;  %v640_v0 = vrot.slane %v11393_v18, 5  ;;  %v711_v35 = vshll.u32 %v11423_v33, 16  ;;  %v7746_v7 = vrot.slane %v11406_v41, 9 }
  0xaf   : > { %v644_v13 = vrot.slane %v11400_v62, 5  ;;  %v722_v2 = vshrl.u32 %v11426_v17, 16  ;;  %v11464_v27 = vcombine.low %v692_v53, %v706_v22  ;;  %v710_v30 = vrot.slane %v708_v16, 4  ;;  %v7739_v41 = vld [vmem:[%s10645_s13 + $0x28] sm:$0xe] }
  0xb0   : > { %5274 = vmatmul.mubr.bf16.vlgmr.msra.gmra.mrb[64].mxu0 %v14822_v36  ;;  %14838 = vst [vmem:[#allocation73_spill] sm:$0xff] %v11438_v15  ;;  %v713_v43 = vrot.slane %v711_v35, 5  ;;  %v731_v53 = vshll.u32 %v7762_v38, 16  ;;  %v14840_v22 = vor.u32 %v10745_v55, %v10737_v49  ;;  %v532_v35 = vshll.u32 %v11393_v18, 16  ;;  %v10244_v38 = vld [vmem:[%s14513_s1 + $0x298] sm:$0xff]  }
  0xb1   : > { %5435 = vmatmul.mubr.bf16.vlgmr.msra.gmra.mrb[64].mxu1 %v14822_v36  ;;  %8917 = vmatpush3.bf16.msra.mxu0 %v10227_v42  ;;  %v7761_v42 = vld [vmem:[%s10645_s13 + $0x24] sm:$0x1]  ;;  %14839 = vst [vmem:[#allocation74_spill] sm:$0xff] %v11464_v27  ;;  %v724_v31 = vrot.slane %v722_v2, 4  ;;  %v10241_v2 = vld [vmem:[%s14513_s1 + $0x258] sm:$0xff]   ;;  %v7747_v18 = vrot.slane %v7739_v41, 9 }
  0xb2   : > { %9029 = vmatpush3.bf16.msra.mxu1 %v10229_v8  ;;  %5281 = vmatprep.mubr.bf16.mxu0 %v14822_v36  ;;  %v10231_v8 = vld [vmem:[%s14513_s1 + $0x208] sm:$0xff]   ;;  %v717_v39 = vshll.u32 %v7761_v42, 16  ;;  %v530_v6 = vrot.slane %v14840_v22, 4  ;;  %v714_v16 = vor.u32 %v713_v43, %v710_v30  ;;  %v11494_v30 = vrot.slane %v731_v53, 5  ;;  %v10247_v41 = vld [vmem:[%s14513_s1 + $0x260] sm:$0xff]  }
  0xb3   : > { %5442 = vmatprep.mubr.bf16.mxu1 %v14822_v36  ;;  %8918 = vmatprep.subr.bf16.mxu0 %v10230_v4  ;;  %v10236_v4 = vld [vmem:[%s14513_s1 + $0x210] sm:$0xff]   ;;  %v648_v43 = vrot.slane %v11462_v32, 5  ;;  %v7748_v53 = vrot.slane %v7740_v52, 9  ;;  %v652_v22 = vrot.slane %v11470_v24, 5  ;;  %v14842_v42 = vrot.slane %v11403_v12, 9 }
  0xb4   : > { %9030 = vmatprep.subr.bf16.mxu1 %v10232_v40  ;;  %v10238_v40 = vld [vmem:[%s14513_s1 + $0x290] sm:$0xff]   ;;  %v11492_v49 = vrot.slane %v717_v39, 5  ;;  %v11504_v59 = vrot.slane %v714_v16, 4  ;;  %v534_v39 = vrot.slane %v532_v35, 5 }
  0xb5   : > { %8919 = vmatpush3.bf16.msra.mxu0 %v10231_v8  ;;  %v546_v8 = vshll.u32 %v11400_v62, 16  ;;  %v7763_v16 = vld [vmem:[%s10645_s13 + $0x34] sm:$0x1]  ;;  %v641_v11 = vsel %vm10670_vm4, %v14842_v42, %v640_v0  ;;  %v649_v21 = vsel %vm10670_vm4, %v7747_v18, %v648_v43  ;;  %v653_v12 = vsel %vm10670_vm4, %v7748_v53, %v652_v22  ;;  %v10255_v43 = vld [vmem:[%s14513_s1 + $0x2e8] sm:$0xff]  }
  0xb6   : > { %9031 = vmatpush3.bf16.msra.mxu1 %v10233_v61  ;;  %v725_v61 = vshll.u32 %v11426_v17, 16  ;;  %8920 = vmatprep.subr.bf16.mxu0 %v10235_v29  ;;  %v11508_v29 = vld [vmem:[%s10645_s13 + $0x38] sm:$0xf]  ;;  %v535_v52 = vsel %vm10679_vm5, %v530_v6, %v534_v39  ;;  %v745_v39 = vshll.u32 %v7763_v16, 16  ;;  %v10254_v53 = vld [vmem:[%s14513_s1 + $0x228] sm:$0xff]   ;;  %v574_v16 = vshll.u32 %v11470_v24, 16 }
  0xb7   : > { %9032 = vmatprep.subr.bf16.mxu1 %v10237_v25  ;;  %v11486_v25 = vld [vmem:[%s10645_s13 + $0x30] sm:$0xf]  ;;  %v548_v62 = vrot.slane %v546_v8, 5  ;;  %v10249_v8 = vld [vmem:[%s14513_s1 + $0x2e0] sm:$0xff]   ;;  %v750_v6 = vshrl.u32 %v11508_v29, 16  ;;  %v753_v18 = vshll.u32 %v11508_v29, 16 }
  0xb8   : > { %v727_v55 = vrot.slane %v725_v61, 5  ;;  %5282 = vmatmul.mubr.bf16.gmra.mrb[68].mxu0 %v14822_v36  ;;  %v736_v35 = vshrl.u32 %v11486_v25, 16  ;;  %v7742_v24 = vld [vmem:[%s10645_s13 + $0x40] sm:$0xe] }
  0xb9   : > { %5443 = vmatmul.mubr.bf16.gmra.mrb[68].mxu1 %v14822_v36  ;;  %5289 = vmatprep.mubr.bf16.mxu0 %v14822_v36 }
  0xba   : > { %5450 = vmatprep.mubr.bf16.mxu1 %v14822_v36  ;;  %8921 = vmatpush3.bf16.msra.mxu0 %v10236_v4  ;;  %v728_v61 = vor.u32 %v727_v55, %v724_v31  ;;  %v645_v4 = vsel %vm10670_vm4, %v7746_v7, %v644_v13  ;;  %v549_v31 = vsel %vm10679_vm5, %v544_v56, %v548_v62  ;;  %v738_v42 = vrot.slane %v736_v35, 4  ;;  %v11588_v35 = vld [vmem:[%s10645_s13 + $0x44] sm:$0x1] }
  0xbb   : > { %9033 = vmatpush3.bf16.msra.mxu1 %v10238_v40  ;;  %v11533_v55 = vcombine.low %v535_v52, %v549_v31  ;;  %v7764_v40 = vld [vmem:[%s10645_s13 + $0x3c] sm:$0x1]  ;;  %8922 = vmatprep.subr.bf16.mxu0 %v10241_v2  ;;  %v739_v7 = vshll.u32 %v11486_v25, 16  ;;  %v11542_v13 = vcombine.low %v641_v11, %v645_v4  ;;  %v11546_v56 = vcombine.low %v11423_v33, %v11426_v17  ;;  %v10248_v2 = vld [vmem:[%s14513_s1 + $0x220] sm:$0xff]   ;;  %v10256_v4 = vld [vmem:[%s14513_s1 + $0x2a8] sm:$0xff]  }
  0xbc   : > { %9034 = vmatprep.subr.bf16.mxu1 %v10243_v3  ;;  %v729_v0 = vrot.slane %v728_v61, 4  ;;  %v10250_v3 = vld [vmem:[%s14513_s1 + $0x2a0] sm:$0xff]   ;;  %v720_v11 = vsel %vm10679_vm5, %v11504_v59, %v11492_v49  ;;  %v11559_v33 = vcombine.low %v649_v21, %v653_v12  ;;  %v752_v62 = vrot.slane %v750_v6, 4  ;;  %v10259_v52 = vld [vmem:[%s14513_s1 + $0x270] sm:$0xff]  }
  0xbd   : > { %14843 = vst [vmem:[#allocation75_spill] sm:$0xff] %v11533_v55  ;;  %14844 = vst [vmem:[#allocation76_spill] sm:$0xff] %v11542_v13  ;;  %v741_v17 = vrot.slane %v739_v7, 5  ;;  %v755_v61 = vrot.slane %v753_v18, 5  ;;  %v759_v49 = vshll.u32 %v7764_v40, 16  ;;  %v14847_v21 = vor.u32 %v10799_v48, %v10794_v45  ;;  %v10261_v12 = vld [vmem:[%s14513_s1 + $0x2f0] sm:$0xff]  }
  0xbe   : > { %14845 = vst [vmem:[#allocation77_spill] sm:$0xff] %v11546_v56  ;;  %8923 = vmatpush3.bf16.msra.mxu0 %v10242_v60  ;;  %14846 = vst [vmem:[#allocation78_spill] sm:$0xff] %v11559_v33  ;;  %v10253_v60 = vld [vmem:[%s14513_s1 + $0x268] sm:$0xff]   ;;  %v734_v22 = vsel %vm10679_vm5, %v729_v0, %v11494_v30  ;;  %v14848_v48 = vor.u32 %v10803_v51, %v10801_v50  ;;  %v11598_v30 = vrot.slane %v745_v39, 5  ;;  %v576_v0 = vrot.slane %v574_v16, 5 }
  0xbf   : > { %9035 = vmatpush3.bf16.msra.mxu1 %v10244_v38  ;;  %8924 = vmatprep.subr.bf16.mxu0 %v10247_v41  ;;  %v558_v59 = vrot.slane %v14847_v21, 4  ;;  %v560_v38 = vshll.u32 %v11462_v32, 16  ;;  %v11573_v41 = vld [vmem:[%s10645_s13 + $0x3c] sm:$0x1]  ;;  %v742_v45 = vor.u32 %v741_v17, %v738_v42  ;;  %v756_v50 = vor.u32 %v755_v61, %v752_v62  ;;  %v11609_v6 = vld [vmem:[%s10645_s13 + $0x40] sm:$0xf] }
  0xc0   : > { %9036 = vmatprep.subr.bf16.mxu1 %v10249_v8  ;;  %5290 = vmatmul.mubr.bf16.gmra.mrb[72].mxu0 %v14822_v36  ;;  %v572_v32 = vrot.slane %v14848_v48, 4  ;;  %v7741_v8 = vld [vmem:[%s10645_s13 + $0x38] sm:$0xe]  ;;  %v656_v31 = vrot.slane %v11573_v41, 5  ;;  %v660_v7 = vrot.slane %v11588_v35, 5  ;;  %v11611_v39 = vcombine.low %v720_v11, %v734_v22 }
  0xc1   : > { %5451 = vmatmul.mubr.bf16.gmra.mrb[72].mxu1 %v14822_v36  ;;  %5297 = vmatprep.mubr.bf16.mxu0 %v14822_v36  ;;  %v562_v51 = vrot.slane %v560_v38, 5  ;;  %v11605_v40 = vrot.slane %v742_v45, 4  ;;  %v7749_v42 = vrot.slane %v7741_v8, 9  ;;  %v11616_v17 = vld [vmem:[%s10645_s13 + $0x48] sm:$0xf]  ;;  %v764_v61 = vshrl.u32 %v11609_v6, 16 }
  0xc2   : > { %5458 = vmatprep.mubr.bf16.mxu1 %v14822_v36  ;;  %8925 = vmatpush3.bf16.msra.mxu0 %v10248_v2  ;;  %14849 = vst [vmem:[#allocation79_spill] sm:$0xff] %v11611_v39  ;;  %v7750_v2 = vrot.slane %v7742_v24, 9  ;;  %v7765_v62 = vld [vmem:[%s10645_s13 + $0x44] sm:$0x1]  ;;  %v11620_v21 = vrot.slane %v759_v49, 5  ;;  %v577_v38 = vsel %vm10679_vm5, %v572_v32, %v576_v0  ;;  %v767_v11 = vshll.u32 %v11609_v6, 16 }
  0xc3   : > { %9037 = vmatpush3.bf16.msra.mxu1 %v10250_v3  ;;  %8926 = vmatprep.subr.bf16.mxu0 %v10253_v60  ;;  %v563_v18 = vsel %vm10679_vm5, %v558_v59, %v562_v51  ;;  %v11626_v3 = vcombine.low %v11486_v25, %v11508_v29  ;;  %v10260_v60 = vld [vmem:[%s14513_s1 + $0x230] sm:$0xff]   ;;  %v757_v49 = vrot.slane %v756_v50, 4  ;;  %v7766_v22 = vld [vmem:[%s10645_s13 + $0x4c] sm:$0x1]  ;;  %v766_v45 = vrot.slane %v764_v61, 4  ;;  %v10265_v29 = vld [vmem:[%s14513_s1 + $0x278] sm:$0xff]  }
  0xc4   : > { %9038 = vmatprep.subr.bf16.mxu1 %v10255_v43  ;;  %v10262_v43 = vld [vmem:[%s14513_s1 + $0x2b0] sm:$0xff]   ;;  %v11635_v59 = vcombine.low %v563_v18, %v577_v38  ;;  %v14852_v48 = vor.u32 %v10883_v57, %v10871_v63  ;;  %v657_v32 = vsel %vm10670_vm4, %v7749_v42, %v656_v31  ;;  %v769_v16 = vrot.slane %v767_v11, 5  ;;  %v11648_v51 = vld [vmem:[%s10645_s13 + $0x5c] sm:$0x1]  ;;  %v7831_v31 = vld [vmem:[%s10645_s13 + $0x58] sm:$0xe] }
  0xc5   : > { %14850 = vst [vmem:[#allocation80_spill] sm:$0xff] %v11626_v3  ;;  %v773_v8 = vshll.u32 %v7765_v62, 16  ;;  %v778_v50 = vshrl.u32 %v11616_v17, 16  ;;  %v10267_v63 = vld [vmem:[%s14513_s1 + $0x2f8] sm:$0xff]   ;;  %v748_v57 = vsel %vm10679_vm5, %v11605_v40, %v11598_v30  ;;  %v781_v24 = vshll.u32 %v11616_v17, 16  ;;  %v10272_v11 = vld [vmem:[%s14513_s1 + $0x3c0] sm:$0xff]  }
  0xc6   : > { %14851 = vst [vmem:[#allocation81_spill] sm:$0xff] %v11635_v59  ;;  %v586_v25 = vrot.slane %v14852_v48, 4  ;;  %8927 = vmatpush3.bf16.msra.mxu0 %v10254_v53  ;;  %v661_v53 = vsel %vm10670_vm4, %v7750_v2, %v660_v7  ;;  %v10266_v0 = vld [vmem:[%s14513_s1 + $0x238] sm:$0xff]   ;;  %v787_v40 = vshll.u32 %v7766_v22, 16  ;;  %v14853_v42 = vor.u32 %v10894_v23, %v10885_v58  ;;  %v7832_v18 = vld [vmem:[%s10645_s13 + $0x60] sm:$0xe] }
  0xc7   : > { %9039 = vmatpush3.bf16.msra.mxu1 %v10256_v4  ;;  %8928 = vmatprep.subr.bf16.mxu0 %v10259_v52  ;;  %v588_v4 = vshll.u32 %v11573_v41, 16  ;;  %v11663_v52 = vld [vmem:[%s10645_s13 + $0x64] sm:$0x1]  ;;  %v780_v30 = vrot.slane %v778_v50, 4  ;;  %v602_v7 = vshll.u32 %v11588_v35, 16  ;;  %v762_v62 = vsel %vm10679_vm5, %v757_v49, %v11620_v21 }
  0xc8   : > { %9040 = vmatprep.subr.bf16.mxu1 %v10261_v12  ;;  %5298 = vmatmul.mubr.bf16.gmra.mrb[76].mxu0 %v14822_v36  ;;  %v600_v41 = vrot.slane %v14853_v42, 4  ;;  %v10268_v12 = vld [vmem:[%s14513_s1 + $0x2b8] sm:$0xff]   ;;  %v10270_v2 = vld [vmem:[%s14513_s1 + $0x340] sm:$0xff]   ;;  %v770_v58 = vor.u32 %v769_v16, %v766_v45  ;;  %v783_v23 = vrot.slane %v781_v24, 5  ;;  %v11690_v38 = vld [vmem:[%s10645_s13 + $0x68] sm:$0xf] }
  0xc9   : > { %5459 = vmatmul.mubr.bf16.gmra.mrb[76].mxu1 %v14822_v36  ;;  %5305 = vmatprep.mubr.bf16.mxu0 %v11434_v20  ;;  %v590_v61 = vrot.slane %v588_v4, 5  ;;  %v11687_v35 = vld [vmem:[%s10645_s13 + $0x60] sm:$0xf]  ;;  %v11695_v22 = vrot.slane %v773_v8, 5  ;;  %v604_v48 = vrot.slane %v602_v7, 5  ;;  %v7839_v50 = vrot.slane %v7831_v31, 9 }
  0xca   : > { %5466 = vmatprep.mubr.bf16.mxu1 %v11464_v27  ;;  %8929 = vmatpush3.bf16.msra.mxu0 %v10260_v60  ;;  %v1187_v42 = vrot.slane %v11648_v51, 5  ;;  %v7855_v21 = vld [vmem:[%s10645_s13 + $0x64] sm:$0x1]  ;;  %v784_v49 = vor.u32 %v783_v23, %v780_v30  ;;  %v7840_v16 = vrot.slane %v7832_v18, 9  ;;  %v1191_v60 = vrot.slane %v11663_v52, 5 }
  0xcb   : > { %9041 = vmatpush3.bf16.msra.mxu1 %v10262_v43  ;;  %8930 = vmatprep.subr.bf16.mxu0 %v10265_v29  ;;  %v591_v45 = vsel %vm10679_vm5, %v586_v25, %v590_v61  ;;  %v7856_v24 = vld [vmem:[%s10645_s13 + $0x6c] sm:$0x1]  ;;  %v11703_v4 = vcombine.low %v657_v32, %v661_v53  ;;  %v789_v8 = vrot.slane %v787_v40, 5  ;;  %v605_v31 = vsel %vm10679_vm5, %v600_v41, %v604_v48 }
  0xcc   : > { %9042 = vmatprep.subr.bf16.mxu1 %v10267_v63  ;;  %v1235_v7 = vshrl.u32 %v11687_v35, 16  ;;  %v11708_v27 = vcombine.low %v748_v57, %v762_v62  ;;  %v771_v43 = vrot.slane %v770_v58, 4  ;;  %v11710_v29 = vcombine.low %v591_v45, %v605_v31 }
  0xcd   : > { %14854 = vst [vmem:[#allocation82_spill] sm:$0xff] %v11703_v4  ;;  %v1238_v25 = vshll.u32 %v11687_v35, 16  ;;  %v785_v30 = vrot.slane %v784_v49, 4  ;;  %v1188_v63 = vsel %vm10670_vm4, %v7839_v50, %v1187_v42  ;;  %v1249_v53 = vshrl.u32 %v11690_v38, 16  ;;  %v7834_v49 = vld [vmem:[%s10645_s13 + $0x70] sm:$0xe] }
  0xce   : > { %14855 = vst [vmem:[#allocation83_spill] sm:$0xff] %v11708_v27  ;;  %14856 = vst [vmem:[#allocation84_spill] sm:$0xff] %v11710_v29  ;;  %8931 = vmatpush3.bf16.msra.mxu0 %v10266_v0  ;;  %v1237_v32 = vrot.slane %v1235_v7, 4  ;;  %v1192_v57 = vsel %vm10670_vm4, %v7840_v16, %v1191_v60  ;;  %v1244_v41 = vshll.u32 %v7855_v21, 16  ;;  %v1252_v0 = vshll.u32 %v11690_v38, 16 }
  0xcf   : > { %9043 = vmatpush3.bf16.msra.mxu1 %v10268_v12  ;;  %9140 = vmatprep.subr.bf16.mxu0 %v10270_v2  ;;  %v1240_v40 = vrot.slane %v1238_v25, 5  ;;  %v11724_v18 = vcombine.low %v11609_v6, %v11616_v17  ;;  %v1251_v12 = vrot.slane %v1249_v53, 4  ;;  %v1258_v2 = vshll.u32 %v7856_v24, 16  ;;  %v7825_v6 = vld [vmem:[%s10645_s13 + $0x6c] sm:$0x1] }
  0xd0   : > { %9252 = vmatprep.subr.bf16.mxu1 %v10272_v11  ;;  %5306 = vmatmul.mubr.bf16.gmra.mrb[80].mxu0 %v11438_v15  ;;  %v14858_v62 = vor.u32 %v10940_v46, %v10938_v44  ;;  %v776_v23 = vsel %vm10679_vm5, %v771_v43, %v11695_v22  ;;  %v1254_v11 = vrot.slane %v1252_v0, 5  ;;  %v1059_v48 = vshll.u32 %v11648_v51, 16  ;;  %v11736_v17 = vld [vmem:[%s10645_s13 + $0x74] sm:$0x1]  ;;  %v7833_v21 = vld [vmem:[%s10645_s13 + $0x68] sm:$0xe] }
  0xd1   : > { %5467 = vmatmul.mubr.bf16.gmra.mrb[80].mxu1 %v11420_v26  ;;  %14857 = vst [vmem:[#allocation85_spill] sm:$0xff] %v11724_v18  ;;  %5313 = vmatprep.mubr.bf16.mxu0 %v11542_v13  ;;  %v1241_v61 = vor.u32 %v1240_v40, %v1237_v32  ;;  %v790_v50 = vsel %vm10679_vm5, %v785_v30, %v789_v8  ;;  %v1073_v22 = vshll.u32 %v11663_v52, 16  ;;  %v11750_v51 = vrot.slane %v1244_v41, 5  ;;  %v11753_v24 = vld [vmem:[%s10645_s13 + $0x70] sm:$0xf] }
  0xd2   : > { %5474 = vmatprep.mubr.bf16.mxu1 %v11611_v39  ;;  %v1057_v58 = vrot.slane %v14858_v62, 4  ;;  %v11740_v42 = vcombine.low %v1188_v63, %v1192_v57  ;;  %v14860_v44 = vor.u32 %v10949_v19, %v10947_v14  ;;  %v1255_v16 = vor.u32 %v1254_v11, %v1251_v12  ;;  %v11761_v25 = vld [vmem:[%s10645_s13 + $0x78] sm:$0xf]  ;;  %v7857_v30 = vld [vmem:[%s10645_s13 + $0x74] sm:$0x1] }
  0xd3   : > { %v11748_v45 = vrot.slane %v1241_v61, 4  ;;  %v1061_v60 = vrot.slane %v1059_v48, 5  ;;  %v1075_v8 = vrot.slane %v1073_v22, 5  ;;  %v7841_v31 = vrot.slane %v7833_v21, 9  ;;  %v7835_v11 = vld [vmem:[%s10645_s13 + $0x78] sm:$0xe] }
  0xd4   : > { %14859 = vst [vmem:[#allocation86_spill] sm:$0xff] %v11740_v42  ;;  %v1071_v46 = vrot.slane %v14860_v44, 4  ;;  %v1195_v7 = vrot.slane %v7825_v6, 5  ;;  %v7842_v14 = vrot.slane %v7834_v49, 9  ;;  %v11755_v19 = vcombine.low %v776_v23, %v790_v50  ;;  %v11797_v21 = vld [vmem:[%s10645_s13 + $0x84] sm:$0x1] }
  0xd5   : > { %v1062_v52 = vsel %vm10679_vm5, %v1057_v58, %v1061_v60  ;;  %v1199_v43 = vrot.slane %v11736_v17, 5  ;;  %v1263_v63 = vshrl.u32 %v11753_v24, 16  ;;  %v1260_v32 = vrot.slane %v1258_v2, 5  ;;  %v7858_v2 = vld [vmem:[%s10645_s13 + $0x7c] sm:$0x1] }
  0xd6   : > { %14861 = vst [vmem:[#allocation87_spill] sm:$0xff] %v11755_v19  ;;  %v1076_v53 = vsel %vm10679_vm5, %v1071_v46, %v1075_v8  ;;  %v11769_v57 = vcombine.low %v11687_v35, %v11690_v38  ;;  %v1266_v40 = vshll.u32 %v11753_v24, 16  ;;  %v1247_v41 = vsel %vm10679_vm5, %v11748_v45, %v11750_v51  ;;  %v11781_v58 = vld [vmem:[%s10645_s13 + $0x7c] sm:$0x1]  ;;  %v7836_v49 = vld [vmem:[%s10645_s13 + $0x80] sm:$0xe] }
  0xd7   : > { %v1256_v0 = vrot.slane %v1255_v16, 4  ;;  %v11777_v12 = vcombine.low %v1062_v52, %v1076_v53  ;;  %v1265_v62 = vrot.slane %v1263_v63, 4  ;;  %v1196_v35 = vsel %vm10670_vm4, %v7841_v31, %v1195_v7  ;;  %v11803_v8 = vld [vmem:[%s10645_s13 + $0x80] sm:$0xf]  ;;  %v7859_v53 = vld [vmem:[%s10645_s13 + $0x84] sm:$0x1] }
  0xd8   : > { %14862 = vst [vmem:[#allocation88_spill] sm:$0xff] %v11769_v57  ;;  %5314 = vmatmul.mubr.bf16.gmra.mrb[84].mxu0 %v11533_v55  ;;  %v1268_v38 = vrot.slane %v1266_v40, 5  ;;  %v1272_v23 = vshll.u32 %v7857_v30, 16  ;;  %v1277_v61 = vshrl.u32 %v11761_v25, 16  ;;  %v1200_v48 = vsel %vm10670_vm4, %v7842_v14, %v1199_v43  ;;  %v12570_v13 = vld [vmem:[%s10645_s13 + $0xb0] sm:$0xe] }
  0xd9   : > { %5475 = vmatmul.mubr.bf16.gmra.mrb[84].mxu1 %v11546_v56  ;;  %14863 = vst [vmem:[#allocation89_spill] sm:$0xff] %v11777_v12  ;;  %5321 = vmatprep.mubr.bf16.mxu0 %v11559_v33  ;;  %v1280_v50 = vshll.u32 %v11761_v25, 16  ;;  %v14864_v44 = vor.u32 %v11016_v37, %v11014_v34  ;;  %v1087_v22 = vshll.u32 %v7825_v6, 16  ;;  %v1286_v60 = vshll.u32 %v7858_v2, 16  ;;  %v11810_v34 = vld [vmem:[%s10645_s13 + $0x88] sm:$0xf] }
  0xda   : > { %5482 = vmatprep.mubr.bf16.mxu1 %v11708_v27  ;;  %v1269_v45 = vor.u32 %v1268_v38, %v1265_v62  ;;  %v11800_v51 = vrot.slane %v1272_v23, 5  ;;  %v1279_v16 = vrot.slane %v1277_v61, 4  ;;  %v14865_v14 = vor.u32 %v11025_v1, %v11023_v10  ;;  %v14973_v56 = vld [vmem:[#allocation23_spill] sm:$0xff]  ;;  %v12614_v26 = vld [vmem:[%s10645_s13 + $0x100] sm:$0xf] }
  0xdb   : > { %v1085_v46 = vrot.slane %v14864_v44, 4  ;;  %v1282_v31 = vrot.slane %v1280_v50, 5  ;;  %v1089_v7 = vrot.slane %v1087_v22, 5  ;;  %v1101_v37 = vshll.u32 %v11736_v17, 16 }
  0xdc   : > { %v1099_v52 = vrot.slane %v14865_v14, 4  ;;  %v1261_v6 = vsel %vm10679_vm5, %v1256_v0, %v1260_v32  ;;  %v11814_v43 = vcombine.low %v1196_v35, %v1200_v48  ;;  %v7843_v30 = vrot.slane %v7835_v11, 9 }
  0xdd   : > { %v1203_v63 = vrot.slane %v11781_v58, 5  ;;  %v1283_v40 = vor.u32 %v1282_v31, %v1279_v16  ;;  %v1090_v2 = vsel %vm10679_vm5, %v1085_v46, %v1089_v7  ;;  %v1103_v62 = vrot.slane %v1101_v37, 5 }
  0xde   : > { %14866 = vst [vmem:[#allocation90_spill] sm:$0xff] %v11814_v43  ;;  %v7844_v10 = vrot.slane %v7836_v49, 9  ;;  %v1270_v1 = vrot.slane %v1269_v45, 4  ;;  %v1288_v38 = vrot.slane %v1286_v60, 5  ;;  %v1207_v17 = vrot.slane %v11797_v21, 5 }
  0xdf   : > { %v1291_v23 = vshrl.u32 %v11803_v8, 16  ;;  %v1284_v32 = vrot.slane %v1283_v40, 4  ;;  %v1104_v0 = vsel %vm10679_vm5, %v1099_v52, %v1103_v62  ;;  %v1204_v35 = vsel %vm10670_vm4, %v7843_v30, %v1203_v63  ;;  %v7860_v49 = vld [vmem:[%s10645_s13 + $0x8c] sm:$0x1]  ;;  %v11859_v30 = vld [vmem:[%s10645_s13 + $0x94] sm:$0x1] }
  0xe0   : > { %v1294_v61 = vshll.u32 %v11803_v8, 16  ;;  %5322 = vmatmul.mubr.bf16.gmra.mrb[88].mxu0 %v11635_v59  ;;  %v11830_v11 = vcombine.low %v1090_v2, %v1104_v0  ;;  %v1208_v48 = vsel %vm10670_vm4, %v7844_v10, %v1207_v17  ;;  %v1305_v44 = vshrl.u32 %v11810_v34, 16  ;;  %v14872_v40 = vld [vmem:[#allocation25_spill] sm:$0xff]  ;;  %v11872_v17 = vld [vmem:[%s10645_s13 + $0x90] sm:$0xf] }
  0xe1   : > { %5483 = vmatmul.mubr.bf16.gmra.mrb[88].mxu1 %v11626_v3  ;;  %v1293_v50 = vrot.slane %v1291_v23, 4  ;;  %5329 = vmatprep.mubr.bf16.mxu0 %v11703_v4  ;;  %v11836_v46 = vcombine.low %v1247_v41, %v1261_v6  ;;  %v11840_v22 = vcombine.low %v11753_v24, %v11761_v25  ;;  %v1300_v16 = vshll.u32 %v7859_v53, 16  ;;  %v11850_v41 = vld [vmem:[%s10645_s13 + $0x8c] sm:$0x1]  ;;  %v10308_v4 = vld [vmem:[%s14513_s1 + $0x4c0] sm:$0xff]  }
  0xe2   : > { %5490 = vmatprep.mubr.bf16.mxu1 %v11755_v19  ;;  %14867 = vst [vmem:[#allocation91_spill] sm:$0xff] %v11830_v11  ;;  %v1296_v45 = vrot.slane %v1294_v61, 5  ;;  %v1275_v60 = vsel %vm10679_vm5, %v1270_v1, %v11800_v51  ;;  %v1289_v31 = vsel %vm10679_vm5, %v1284_v32, %v1288_v38  ;;  %v1307_v7 = vrot.slane %v1305_v44, 4  ;;  %v7837_v51 = vld [vmem:[%s10645_s13 + $0x88] sm:$0xe] }
  0xe3   : > { %14868 = vst [vmem:[#allocation92_spill] sm:$0xff] %v11836_v46  ;;  %14869 = vst [vmem:[#allocation93_spill] sm:$0xff] %v11840_v22  ;;  %v1308_v14 = vshll.u32 %v11810_v34, 16  ;;  %v11852_v52 = vcombine.low %v1204_v35, %v1208_v48  ;;  %v14871_v25 = vor.u32 %v11080_v28, %v11075_v47  ;;  %v1115_v6 = vshll.u32 %v11781_v58, 16  ;;  %v7838_v1 = vld [vmem:[%s10645_s13 + $0x90] sm:$0xe] }
  0xe4   : > { %v1297_v24 = vor.u32 %v1296_v45, %v1293_v50  ;;  %v1314_v53 = vshll.u32 %v7860_v49, 16  ;;  %v14873_v2 = vor.u32 %v11084_v54, %v14872_v40  ;;  %v1129_v10 = vshll.u32 %v11797_v21, 16  ;;  %v7854_v48 = vld [vmem:[%s10645_s13 + $0x98] sm:$0xf]  ;;  %v7861_v50 = vld [vmem:[%s10645_s13 + $0x94] sm:$0x1] }
  0xe5   : > { %14870 = vst [vmem:[#allocation94_spill] sm:$0xff] %v11852_v52  ;;  %v1113_v37 = vrot.slane %v14871_v25, 4  ;;  %v1310_v63 = vrot.slane %v1308_v14, 5  ;;  %v11869_v47 = vrot.slane %v1300_v16, 5  ;;  %v1117_v28 = vrot.slane %v1115_v6, 5 }
  0xe6   : > { %v1127_v62 = vrot.slane %v14873_v2, 4  ;;  %v11867_v38 = vrot.slane %v1297_v24, 4  ;;  %v7845_v58 = vrot.slane %v7837_v51, 9  ;;  %v1131_v32 = vrot.slane %v1129_v10, 5  ;;  %v7991_v51 = vld [vmem:[%s10645_s13 + $0xac] sm:$0x1] }
  0xe7   : > { %v1311_v23 = vor.u32 %v1310_v63, %v1307_v7  ;;  %v1211_v0 = vrot.slane %v11850_v41, 5  ;;  %v7846_v54 = vrot.slane %v7838_v1, 9  ;;  %v11876_v35 = vcombine.low %v1275_v60, %v1289_v31  ;;  %v7862_v60 = vld [vmem:[%s10645_s13 + $0x9c] sm:$0x1]  ;;  %v12567_v3 = vld [vmem:[%s10645_s13 + $0xf8] sm:$0xe] }
  0xe8   : > { %v1118_v21 = vsel %vm10679_vm5, %v1113_v37, %v1117_v28  ;;  %v1215_v61 = vrot.slane %v11859_v30, 5  ;;  %v1319_v44 = vshrl.u32 %v11872_v17, 16  ;;  %5330 = vmatmul.mubr.bf16.gmra.mrb[92].mxu0 %v11710_v29  ;;  %v1316_v49 = vrot.slane %v1314_v53, 5  ;;  %v14877_v2 = vld [vmem:[#allocation33_spill] sm:$0xff]  ;;  %v11910_v28 = vld [vmem:[%s10645_s13 + $0xb4] sm:$0x1] }
  0xe9   : > { %5491 = vmatmul.mubr.bf16.gmra.mrb[92].mxu1 %v11724_v18  ;;  %14874 = vst [vmem:[#allocation25_spill] sm:$0xff] %v11876_v35  ;;  %v1132_v45 = vsel %vm10679_vm5, %v1127_v62, %v1131_v32  ;;  %v11890_v16 = vcombine.low %v11803_v8, %v11810_v34  ;;  %v1322_v31 = vshll.u32 %v11872_v17, 16  ;;  %5337 = vmatprep.mubr.bf16.mxu0 %v11740_v42  ;;  %v1312_v7 = vrot.slane %v1311_v23, 4  ;;  %v14878_v62 = vld [vmem:[#allocation31_spill] sm:$0xff]  ;;  %v12474_v18 = vld [vmem:[%s10645_s13 + $0x78] sm:$0xe] }
  0xea   : > { %5498 = vmatprep.mubr.bf16.mxu1 %v11836_v46  ;;  %v11895_v14 = vcombine.low %v1118_v21, %v1132_v45  ;;  %v1321_v24 = vrot.slane %v1319_v44, 4  ;;  %v1328_v25 = vshll.u32 %v7861_v50, 16  ;;  %v1303_v37 = vsel %vm10679_vm5, %v11867_v38, %v11869_v47  ;;  %v7999_v38 = vld [vmem:[%s10645_s13 + $0xa8] sm:$0xe]  ;;  %v8000_v50 = vld [vmem:[%s10645_s13 + $0xb0] sm:$0xe] }
  0xeb   : > { %14875 = vst [vmem:[#allocation95_spill] sm:$0xff] %v11890_v16  ;;  %v1324_v8 = vrot.slane %v1322_v31, 5  ;;  %v1333_v34 = vshrl.u32 %v7854_v48, 16  ;;  %v1336_v6 = vshll.u32 %v7854_v48, 16  ;;  %v1212_v63 = vsel %vm10670_vm4, %v7845_v58, %v1211_v0  ;;  %v11924_v31 = vld [vmem:[%s10645_s13 + $0xb0] sm:$0xf] }
  0xec   : > { %14876 = vst [vmem:[#allocation96_spill] sm:$0xff] %v11895_v14  ;;  %v1216_v53 = vsel %vm10670_vm4, %v7846_v54, %v1215_v61  ;;  %v1342_v40 = vshll.u32 %v7862_v60, 16  ;;  %v14879_v10 = vor.u32 %v14877_v2, %v14878_v62  ;;  %v1143_v21 = vshll.u32 %v11850_v41, 16  ;;  %v14880_v54 = vld [vmem:[#allocation35_spill] sm:$0xff]  ;;  %v14881_v61 = vld [vmem:[#allocation34_spill] sm:$0xff] }
  0xed   : > { %v1325_v47 = vor.u32 %v1324_v8, %v1321_v24  ;;  %v1335_v23 = vrot.slane %v1333_v34, 4  ;;  %v1338_v32 = vrot.slane %v1336_v6, 5  ;;  %v1317_v58 = vsel %vm10679_vm5, %v1312_v7, %v1316_v49  ;;  %v11929_v34 = vld [vmem:[%s10645_s13 + $0xb8] sm:$0xf]  ;;  %v8023_v6 = vld [vmem:[%s10645_s13 + $0xb4] sm:$0x1] }
  0xee   : > { %v1141_v1 = vrot.slane %v14879_v10, 4  ;;  %v11917_v0 = vrot.slane %v1328_v25, 5  ;;  %v14882_v44 = vor.u32 %v14880_v54, %v14881_v61  ;;  %v1157_v60 = vshll.u32 %v11859_v30, 16  ;;  %v12460_v29 = vld [vmem:[%s10645_s13 + $0x6c] sm:$0x1] }
  0xef   : > { %v11926_v2 = vrot.slane %v1325_v47, 4  ;;  %v1339_v24 = vor.u32 %v1338_v32, %v1335_v23  ;;  %v1344_v8 = vrot.slane %v1342_v40, 5  ;;  %v1145_v41 = vrot.slane %v1143_v21, 5  ;;  %v8024_v47 = vld [vmem:[%s10645_s13 + $0xbc] sm:$0x1] }
  0xf0   : > { %v1155_v45 = vrot.slane %v14882_v44, 4  ;;  %v1159_v49 = vrot.slane %v1157_v60, 5  ;;  %v8007_v7 = vrot.slane %v7999_v38, 9  ;;  %v2078_v25 = vrot.slane %v7991_v51, 5  ;;  %5338 = vmatmul.mubr.bf16.gmra.mrb[96].mxu0 %v11777_v12  ;;  %v14887_v60 = vld [vmem:[#allocation41_spill] sm:$0xff] }
  0xf1   : > { %5499 = vmatmul.mubr.bf16.gmra.mrb[96].mxu1 %v11769_v57  ;;  %v8008_v62 = vrot.slane %v8000_v50, 9  ;;  %v11935_v30 = vcombine.low %v1212_v63, %v1216_v53  ;;  %v1146_v10 = vsel %vm10679_vm5, %v1141_v1, %v1145_v41  ;;  %v2082_v40 = vrot.slane %v11910_v28, 5  ;;  %5345 = vmatprep.mubr.bf16.mxu0 %v11814_v43  ;;  %v11967_v41 = vld [vmem:[%s10645_s13 + $0xbc] sm:$0x1] }
  0xf2   : > { %5506 = vmatprep.mubr.bf16.mxu1 %v11876_v35  ;;  %v2126_v23 = vshrl.u32 %v11924_v31, 16  ;;  %v11943_v32 = vcombine.low %v1303_v37, %v1317_v58  ;;  %v1340_v38 = vrot.slane %v1339_v24, 4  ;;  %v1160_v21 = vsel %vm10679_vm5, %v1155_v45, %v1159_v49 }
  0xf3   : > { %14883 = vst [vmem:[#allocation33_spill] sm:$0xff] %v11935_v30  ;;  %v2129_v63 = vshll.u32 %v11924_v31, 16  ;;  %v1331_v53 = vsel %vm10679_vm5, %v11926_v2, %v11917_v0  ;;  %v11952_v1 = vcombine.low %v1146_v10, %v1160_v21  ;;  %v11955_v50 = vcombine.low %v11872_v17, %v7854_v48  ;;  %v14888_v2 = vld [vmem:[#allocation40_spill] sm:$0xff]  ;;  %v11972_v10 = vld [vmem:[%s10645_s13 + $0xc4] sm:$0x1]  ;;  %v14890_v21 = vld [vmem:[#allocation43_spill] sm:$0xff] }
  0xf4   : > { %14884 = vst [vmem:[#allocation31_spill] sm:$0xff] %v11943_v32  ;;  %v2128_v37 = vrot.slane %v2126_v23, 4  ;;  %v2079_v58 = vsel %vm10670_vm4, %v8007_v7, %v2078_v25  ;;  %v2135_v61 = vshll.u32 %v8023_v6, 16  ;;  %v2140_v44 = vshrl.u32 %v11929_v34, 16  ;;  %v8001_v23 = vld [vmem:[%s10645_s13 + $0xb8] sm:$0xe] }
  0xf5   : > { %14885 = vst [vmem:[#allocation35_spill] sm:$0xff] %v11952_v1  ;;  %14886 = vst [vmem:[#allocation34_spill] sm:$0xff] %v11955_v50  ;;  %v2131_v54 = vrot.slane %v2129_v63, 5  ;;  %v2083_v45 = vsel %vm10670_vm4, %v8008_v62, %v2082_v40  ;;  %v2143_v0 = vshll.u32 %v11929_v34, 16  ;;  %v14889_v24 = vor.u32 %v14887_v60, %v14888_v2  ;;  %v14891_v63 = vld [vmem:[#allocation42_spill] sm:$0xff] }
  0xf6   : > { %v1950_v48 = vshll.u32 %v7991_v51, 16  ;;  %v1345_v49 = vsel %vm10679_vm5, %v1340_v38, %v1344_v8  ;;  %v2142_v7 = vrot.slane %v2140_v44, 4  ;;  %v2149_v25 = vshll.u32 %v8024_v47, 16  ;;  %v8002_v2 = vld [vmem:[%s10645_s13 + $0xc0] sm:$0xe] }
  0xf7   : > { %v1948_v17 = vrot.slane %v14889_v24, 4  ;;  %v2132_v6 = vor.u32 %v2131_v54, %v2128_v37  ;;  %v2145_v62 = vrot.slane %v2143_v0, 5  ;;  %v14892_v35 = vor.u32 %v14890_v21, %v14891_v63  ;;  %v11988_v54 = vld [vmem:[%s10645_s13 + $0xc0] sm:$0xf]  ;;  %v8025_v0 = vld [vmem:[%s10645_s13 + $0xc4] sm:$0x1] }
  0xf8   : > { %v1952_v40 = vrot.slane %v1950_v48, 5  ;;  %v1964_v51 = vshll.u32 %v11910_v28, 16  ;;  %v11981_v8 = vcombine.low %v2079_v58, %v2083_v45  ;;  %v11985_v47 = vrot.slane %v2135_v61, 5  ;;  %5346 = vmatmul.mubr.bf16.gmra.mrb[100].mxu0 %v11830_v11  ;;  %v8018_v45 = vld [vmem:[%s10645_s13 + $0xc8] sm:$0xf] }
  0xf9   : > { %v1962_v60 = vrot.slane %v14892_v35, 4  ;;  %5507 = vmatmul.mubr.bf16.gmra.mrb[100].mxu1 %v11840_v22  ;;  %v11983_v38 = vrot.slane %v2132_v6, 4  ;;  %v8009_v37 = vrot.slane %v8001_v23, 9  ;;  %v2146_v35 = vor.u32 %v2145_v62, %v2142_v7  ;;  %5353 = vmatprep.mubr.bf16.mxu0 %v11852_v52  ;;  %v8026_v7 = vld [vmem:[%s10645_s13 + $0xcc] sm:$0x1] }
  0xfa   : > { %14893 = vst [vmem:[#allocation41_spill] sm:$0xff] %v11981_v8  ;;  %5514 = vmatprep.mubr.bf16.mxu1 %v11943_v32  ;;  %v1953_v28 = vsel %vm10679_vm5, %v1948_v17, %v1952_v40  ;;  %v1966_v44 = vrot.slane %v1964_v51, 5  ;;  %v2086_v58 = vrot.slane %v11967_v41, 5  ;;  %v11998_v61 = vcombine.low %v1331_v53, %v1345_v49 }
  0xfb   : > { %v8010_v24 = vrot.slane %v8002_v2, 9  ;;  %v2090_v48 = vrot.slane %v11972_v10, 5  ;;  %v2154_v6 = vshrl.u32 %v11988_v54, 16  ;;  %v2147_v23 = vrot.slane %v2146_v35, 4 }
  0xfc   : > { %14894 = vst [vmem:[#allocation40_spill] sm:$0xff] %v11998_v61  ;;  %v2151_v21 = vrot.slane %v2149_v25, 5  ;;  %v1967_v17 = vsel %vm10679_vm5, %v1962_v60, %v1966_v44  ;;  %v2157_v62 = vshll.u32 %v11988_v54, 16  ;;  %v2163_v53 = vshll.u32 %v8025_v0, 16 }
  0xfd   : > { %v12006_v40 = vcombine.low %v1953_v28, %v1967_v17  ;;  %v2156_v63 = vrot.slane %v2154_v6, 4  ;;  %v2168_v49 = vshrl.u32 %v8018_v45, 16  ;;  %v2138_v51 = vsel %vm10679_vm5, %v11983_v38, %v11985_v47  ;;  %v12021_v6 = vld [vmem:[%s10645_s13 + $0xcc] sm:$0x1]  ;;  %v14897_v17 = vld [vmem:[#allocation50_spill] sm:$0xff] }
  0xfe   : > { %v12014_v25 = vcombine.low %v11924_v31, %v11929_v34  ;;  %v2087_v60 = vsel %vm10670_vm4, %v8009_v37, %v2086_v58  ;;  %v2159_v2 = vrot.slane %v2157_v62, 5  ;;  %v2091_v35 = vsel %vm10670_vm4, %v8010_v24, %v2090_v48  ;;  %v14898_v31 = vld [vmem:[#allocation49_spill] sm:$0xff]  ;;  %v12030_v58 = vld [vmem:[%s10645_s13 + $0xc8] sm:$0xe]  ;;  %v12033_v24 = vld [vmem:[%s10645_s13 + $0xd0] sm:$0xe] }
  0xff   : > { %14895 = vst [vmem:[#allocation43_spill] sm:$0xff] %v12006_v40  ;;  %v2170_v28 = vrot.slane %v2168_v49, 4  ;;  %v2171_v44 = vshll.u32 %v8018_v45, 16  ;;  %v2177_v0 = vshll.u32 %v8026_v7, 16  ;;  %v2152_v38 = vsel %vm10679_vm5, %v2147_v23, %v2151_v21  ;;  %v12039_v48 = vld [vmem:[%s14514_s2] ss:$0 sm:$0xff] }
 0x100   : > { %14896 = vst [vmem:[#allocation42_spill] sm:$0xff] %v12014_v25  ;;  %v2160_v47 = vor.u32 %v2159_v2, %v2156_v63  ;;  %v14899_v34 = vor.u32 %v14897_v17, %v14898_v31  ;;  %v1978_v37 = vshll.u32 %v11967_v41, 16  ;;  %v12041_v23 = vrot.slane %v2163_v53, 5  ;;  %v14900_v7 = vld [vmem:[#allocation56_spill] sm:$0xff]  ;;  %v14901_v62 = vld [vmem:[#allocation54_spill] sm:$0xff]  ;;  %5354 = vmatmul.mubr.bf16.gmra.mrb[104].mxu0 %v11895_v14 }
 0x101   : > { %5515 = vmatmul.mubr.bf16.gmra.mrb[104].mxu1 %v11890_v16  ;;  %v2173_v21 = vrot.slane %v2171_v44, 5  ;;  %v14902_v63 = vor.u32 %v14900_v7, %v14901_v62  ;;  %v1992_v41 = vshll.u32 %v11972_v10, 16  ;;  %v12048_v2 = vld [vmem:[%s10645_s13 + $0xd4] sm:$0x1]  ;;  %v12052_v31 = vcombine.low %v2087_v60, %v2091_v35  ;;  %v12059_v7 = vld [vmem:[%s10645_s13 + $0xd0] sm:$0xf]  ;;  %5361 = vmatprep.mubr.bf16.mxu0 %v11935_v30 }
 0x102   : > { %v1976_v32 = vrot.slane %v14899_v34, 4  ;;  %5522 = vmatprep.mubr.bf16.mxu1 %v11998_v61  ;;  %v12054_v34 = vrot.slane %v2160_v47, 4  ;;  %v12056_v53 = vrot.slane %v2177_v0, 5  ;;  %v1980_v44 = vrot.slane %v1978_v37, 5  ;;  %v8027_v35 = vld [vmem:[%s10645_s13 + $0xd4] sm:$0x1] }
 0x103   : > { %v1990_v49 = vrot.slane %v14902_v63, 4  ;;  %v8484_v17 = vpop.f32.mrb[0].mxu0  ;;  %14903 = vst [vmem:[#allocation50_spill] sm:$0xff] %v12052_v31  ;;  %v2174_v63 = vor.u32 %v2173_v21, %v2170_v28  ;;  %v1994_v46 = vrot.slane %v1992_v41, 5  ;;  %v12065_v27 = vcombine.low %v2138_v51, %v2152_v38  ;;  %v12073_v30 = vld [vmem:[%s10645_s13 + $0xd8] sm:$0xf] }
 0x104   : > { %v8485_v62 = vpop.f32.mrb[1].mxu0  ;;  %v8596_v10 = vpop.f32.mrb[0].mxu1  ;;  %v1981_v37 = vsel %vm10679_vm5, %v1976_v32, %v1980_v44  ;;  %v12070_v39 = vcombine.low %v11988_v54, %v8018_v45  ;;  %v2098_v54 = vrot.slane %v12048_v2, 5  ;;  %v2166_v44 = vsel %vm10679_vm5, %v12054_v34, %v12041_v23  ;;  %v12123_v16 = vld [vmem:[%s10645_s13 + $0xe4] sm:$0x1] }
 0x105   : > { %v8486_v47 = vadd.f32 %v8485_v62, %v8484_v17  ;;  %v8487_v61 = vpop.f32.mrb[2].mxu0  ;;  %v8597_v0 = vpop.f32.mrb[1].mxu1  ;;  %14904 = vst [vmem:[#allocation49_spill] sm:$0xff] %v12065_v27  ;;  %v2175_v19 = vrot.slane %v2174_v63, 4  ;;  %v1995_v60 = vsel %vm10679_vm5, %v1990_v49, %v1994_v46  ;;  %v8028_v62 = vld [vmem:[%s10645_s13 + $0xdc] sm:$0x1] }
 0x106   : > { %14905 = vst [vmem:[#allocation56_spill] sm:$0xff] %v12070_v39  ;;  %v8488_v28 = vpop.f32.mrb[3].mxu0  ;;  %v8598_v21 = vadd.f32 %v8597_v0, %v8596_v10  ;;  %v8599_v41 = vpop.f32.mrb[2].mxu1  ;;  %v12080_v32 = vcombine.low %v1981_v37, %v1995_v60  ;;  %v2182_v10 = vshrl.u32 %v12059_v7, 16  ;;  %v2185_v46 = vshll.u32 %v12059_v7, 16 }
 0x107   : > { %v4954_v51 = vadd.f32 %v8486_v47, %v12039_v48  ;;  %v8489_v38 = vadd.f32 %v8488_v28, %v8487_v61  ;;  %v8600_v52 = vpop.f32.mrb[3].mxu1  ;;  %v2180_v61 = vsel %vm10679_vm5, %v2175_v19, %v12056_v53  ;;  %v2191_v60 = vshll.u32 %v8027_v35, 16  ;;  %v14907_v19 = vld [vmem:[#allocation58_spill] sm:$0xff]  ;;  %v14908_v53 = vld [vmem:[#allocation57_spill] sm:$0xff] }
 0x108   : > { %14906 = vst [vmem:[#allocation54_spill] sm:$0xff] %v12080_v32  ;;  %v8601_v45 = vadd.f32 %v8600_v52, %v8599_v41  ;;  %v2184_v52 = vrot.slane %v2182_v10, 4  ;;  %v2187_v47 = vrot.slane %v2185_v46, 5  ;;  %v2196_v0 = vshrl.u32 %v12073_v30, 16  ;;  %5362 = vmatmul.mubr.bf16.gmra.mrb[108].mxu0 %v11952_v1 }
 0x109   : > { %v4957_v49 = vadd.f32 %v8489_v38, %v12039_v48  ;;  %v12090_v63 = vadd.f32 %v8598_v21, %v4954_v51  ;;  %5523 = vmatmul.mubr.bf16.gmra.mrb[108].mxu1 %v11955_v50  ;;  %v2199_v23 = vshll.u32 %v12073_v30, 16  ;;  %v12102_v28 = vrot.slane %v2191_v60, 5  ;;  %5369 = vmatprep.mubr.bf16.mxu0 %v11981_v8  ;;  %v14911_v50 = vld [vmem:[#allocation59_spill] sm:$0xff] }
 0x10a   : > { %5530 = vmatprep.mubr.bf16.mxu1 %v12065_v27  ;;  %v2205_v21 = vshll.u32 %v8028_v62, 16  ;;  %v14909_v35 = vor.u32 %v14907_v19, %v14908_v53  ;;  %v2188_v10 = vor.u32 %v2187_v47, %v2184_v52  ;;  %v14910_v62 = vld [vmem:[#allocation63_spill] sm:$0xff]  ;;  %v2020_v53 = vshll.u32 %v12048_v2, 16 }
 0x10b   : > { %v12098_v34 = vadd.f32 %v8601_v45, %v4957_v49  ;;  %v8490_v37 = vpop.f32.mrb[4].mxu0  ;;  %v2198_v45 = vrot.slane %v2196_v0, 4  ;;  %v2201_v46 = vrot.slane %v2199_v23, 5  ;;  %v2006_v49 = vshll.u32 %v12021_v6, 16 }
 0x10c   : > { %v2004_v41 = vrot.slane %v14909_v35, 4  ;;  %v8491_v51 = vpop.f32.mrb[5].mxu0  ;;  %v8602_v38 = vpop.f32.mrb[4].mxu1  ;;  %v2207_v1 = vrot.slane %v2205_v21, 5  ;;  %v14912_v14 = vor.u32 %v14910_v62, %v14911_v50  ;;  %v2189_v35 = vrot.slane %v2188_v10, 4 }
 0x10d   : > { %v8492_v17 = vadd.f32 %v8491_v51, %v8490_v37  ;;  %v8493_v27 = vpop.f32.mrb[6].mxu0  ;;  %v8603_v60 = vpop.f32.mrb[5].mxu1  ;;  %v2202_v23 = vor.u32 %v2201_v46, %v2198_v45  ;;  %v2008_v8 = vrot.slane %v2006_v49, 5  ;;  %v12114_v37 = vld [vmem:[%s10645_s13 + $0xdc] sm:$0x1]  ;;  %v12120_v62 = vcombine.low %v2166_v44, %v2180_v61 }
 0x10e   : > { %v2018_v19 = vrot.slane %v14912_v14, 4  ;;  %v8494_v52 = vpop.f32.mrb[7].mxu0  ;;  %v8604_v47 = vadd.f32 %v8603_v60, %v8602_v38  ;;  %v8605_v0 = vpop.f32.mrb[6].mxu1  ;;  %v12117_v51 = vld [vmem:[%s10645_s13 + $0xd8] sm:$0xe]  ;;  %v2022_v2 = vrot.slane %v2020_v53, 5 }
 0x10f   : > { %v4962_v21 = vadd.f32 %v8492_v17, %v12039_v48  ;;  %v8495_v50 = vadd.f32 %v8494_v52, %v8493_v27  ;;  %v8606_v14 = vpop.f32.mrb[7].mxu1  ;;  %14913 = vst [vmem:[#allocation58_spill] sm:$0xff] %v12120_v62  ;;  %v12126_v38 = vld [vmem:[%s10645_s13 + $0xe0] sm:$0xe]  ;;  %v14914_v46 = vrot.slane %v12021_v6, 5  ;;  %v14915_v49 = vrot.slane %v12030_v58, 9 }
 0x110   : > { %v12129_v10 = vld [vmem:[%s10645_s13 + $0xe0] sm:$0xf]  ;;  %v8607_v45 = vadd.f32 %v8606_v14, %v8605_v0  ;;  %v2203_v27 = vrot.slane %v2202_v23, 4  ;;  %v2009_v44 = vsel %vm10679_vm5, %v2004_v41, %v2008_v8  ;;  %v12140_v61 = vld [vmem:[%s10645_s13 + $0xe8] sm:$0xf]  ;;  %v14916_v52 = vrot.slane %v12033_v24, 9  ;;  %5370 = vmatmul.mubr.bf16.gmra.mrb[112].mxu0 %v12006_v40 }
 0x111   : > { %v2095_v17 = vsel %vm10670_vm4, %v14915_v49, %v14914_v46  ;;  %v4965_v60 = vadd.f32 %v8495_v50, %v12039_v48  ;;  %v12143_v53 = vadd.f32 %v8604_v47, %v4962_v21  ;;  %v2023_v58 = vsel %vm10679_vm5, %v2018_v19, %v2022_v2  ;;  %v8029_v0 = vld [vmem:[%s10645_s13 + $0xe4] sm:$0x1]  ;;  %5531 = vmatmul.mubr.bf16.gmra.mrb[112].mxu1 %v12014_v25  ;;  %v8030_v50 = vld [vmem:[%s10645_s13 + $0xec] sm:$0x1] }
 0x112   : > { %v2099_v6 = vsel %vm10670_vm4, %v14916_v52, %v2098_v54  ;;  %v2194_v8 = vsel %vm10679_vm5, %v2189_v35, %v12102_v28  ;;  %v2208_v41 = vsel %vm10679_vm5, %v2203_v27, %v2207_v1  ;;  %v12158_v47 = vcombine.low %v2009_v44, %v2023_v58  ;;  %5538 = vmatprep.mubr.bf16.mxu1 %v12120_v62 }
 0x113   : > { %v8013_v24 = vrot.slane %v12117_v51, 9  ;;  %v12161_v23 = vadd.f32 %v8607_v45, %v4965_v60  ;;  %v8496_v54 = vpop.f32.mrb[8].mxu0  ;;  %v2102_v19 = vrot.slane %v12114_v37, 5  ;;  %v8014_v21 = vrot.slane %v12126_v38, 9  ;;  %5377 = vmatprep.mubr.bf16.mxu0 %v12052_v31 }
 0x114   : > { %14917 = vst [vmem:[#allocation57_spill] sm:$0xff] %v12158_v47  ;;  %v2210_v28 = vshrl.u32 %v12129_v10, 16  ;;  %v8497_v35 = vpop.f32.mrb[9].mxu0  ;;  %v8608_v1 = vpop.f32.mrb[8].mxu1  ;;  %v2106_v51 = vrot.slane %v12123_v16, 5  ;;  %v2213_v14 = vshll.u32 %v12129_v10, 16  ;;  %v12173_v44 = vcombine.low %v2095_v17, %v2099_v6 }
 0x115   : > { %v2219_v2 = vshll.u32 %v8029_v0, 16  ;;  %v2224_v45 = vshrl.u32 %v12140_v61, 16  ;;  %v8498_v46 = vadd.f32 %v8497_v35, %v8496_v54  ;;  %v8499_v49 = vpop.f32.mrb[10].mxu0  ;;  %v8609_v27 = vpop.f32.mrb[9].mxu1  ;;  %v2227_v60 = vshll.u32 %v12140_v61, 16  ;;  %v14920_v6 = vld [vmem:[#allocation65_spill] sm:$0xff] }
 0x116   : > { %14918 = vst [vmem:[#allocation63_spill] sm:$0xff] %v12173_v44  ;;  %v2212_v38 = vrot.slane %v2210_v28, 4  ;;  %v8500_v52 = vpop.f32.mrb[11].mxu0  ;;  %v8610_v58 = vadd.f32 %v8609_v27, %v8608_v1  ;;  %v8611_v62 = vpop.f32.mrb[10].mxu1  ;;  %v12176_v40 = vcombine.low %v2194_v8, %v2208_v41  ;;  %v2215_v31 = vrot.slane %v2213_v14, 5  ;;  %v14921_v28 = vld [vmem:[#allocation64_spill] sm:$0xff] }
 0x117   : > { %v2221_v25 = vrot.slane %v2219_v2, 5  ;;  %v4970_v43 = vadd.f32 %v8498_v46, %v12039_v48  ;;  %v8501_v0 = vadd.f32 %v8500_v52, %v8499_v49  ;;  %v8612_v11 = vpop.f32.mrb[11].mxu1  ;;  %v2226_v22 = vrot.slane %v2224_v45, 4  ;;  %v14923_v45 = vld [vmem:[#allocation71_spill] sm:$0xff] }
 0x118   : > { %14919 = vst [vmem:[#allocation59_spill] sm:$0xff] %v12176_v40  ;;  %v2229_v54 = vrot.slane %v2227_v60, 5  ;;  %v8613_v35 = vadd.f32 %v8612_v11, %v8611_v62  ;;  %v2216_v42 = vor.u32 %v2215_v31, %v2212_v38  ;;  %v2233_v17 = vshll.u32 %v8030_v50, 16  ;;  %v14924_v46 = vld [vmem:[#allocation67_spill] sm:$0xff]  ;;  %5378 = vmatmul.mubr.bf16.gmra.mrb[116].mxu0 %v12080_v32  ;;  %v12431_v32 = vld [vmem:[%s10645_s13 + $0x64] sm:$0x1] }
 0x119   : > { %v14922_v12 = vor.u32 %v14920_v6, %v14921_v28  ;;  %v4973_v1 = vadd.f32 %v8501_v0, %v12039_v48  ;;  %v12183_v27 = vadd.f32 %v8610_v58, %v4970_v43  ;;  %v2034_v41 = vshll.u32 %v12114_v37, 16  ;;  %5539 = vmatmul.mubr.bf16.gmra.mrb[116].mxu1 %v12070_v39  ;;  %5385 = vmatprep.mubr.bf16.mxu0 %v12173_v44  ;;  %v14955_v44 = vld [vmem:[#allocation21_spill] sm:$0xff]  ;;  %v14956_v39 = vld [vmem:[#allocation19_spill] sm:$0xff] }
 0x11a   : > { %v2230_v8 = vor.u32 %v2229_v54, %v2226_v22  ;;  %v2217_v14 = vrot.slane %v2216_v42, 4  ;;  %v2235_v2 = vrot.slane %v2233_v17, 5  ;;  %v14925_v11 = vor.u32 %v14923_v45, %v14924_v46  ;;  %5546 = vmatprep.mubr.bf16.mxu1 %v12176_v40 }
 0x11b   : > { %v2032_v57 = vrot.slane %v14922_v12, 4  ;;  %v2048_v62 = vshll.u32 %v12123_v16, 16  ;;  %v12191_v50 = vadd.f32 %v8613_v35, %v4973_v1  ;;  %v8502_v12 = vpop.f32.mrb[12].mxu0  ;;  %v2036_v22 = vrot.slane %v2034_v41, 5 }
 0x11c   : > { %v2046_v31 = vrot.slane %v14925_v11, 4  ;;  %v2231_v43 = vrot.slane %v2230_v8, 4  ;;  %v8503_v37 = vpop.f32.mrb[13].mxu0  ;;  %v8614_v49 = vpop.f32.mrb[12].mxu1  ;;  %v2103_v42 = vsel %vm10670_vm4, %v8013_v24, %v2102_v19  ;;  %v2222_v38 = vsel %vm10679_vm5, %v2217_v14, %v2221_v25 }
 0x11d   : > { %v2050_v16 = vrot.slane %v2048_v62, 5  ;;  %v8504_v60 = vadd.f32 %v8503_v37, %v8502_v12  ;;  %v8505_v52 = vpop.f32.mrb[14].mxu0  ;;  %v8615_v58 = vpop.f32.mrb[13].mxu1  ;;  %v2107_v0 = vsel %vm10670_vm4, %v8014_v21, %v2106_v51  ;;  %v2037_v35 = vsel %vm10679_vm5, %v2032_v57, %v2036_v22 }
 0x11e   : > { %v2236_v54 = vsel %vm10679_vm5, %v2231_v43, %v2235_v2  ;;  %v8506_v17 = vpop.f32.mrb[15].mxu0  ;;  %v8616_v6 = vadd.f32 %v8615_v58, %v8614_v49  ;;  %v8617_v28 = vpop.f32.mrb[14].mxu1  ;;  %v12208_v24 = vcombine.low %v12059_v7, %v12073_v30  ;;  %v12217_v57 = vcombine.low %v2103_v42, %v2107_v0 }
 0x11f   : > { %v2051_v25 = vsel %vm10679_vm5, %v2046_v31, %v2050_v16  ;;  %v4978_v19 = vadd.f32 %v8504_v60, %v12039_v48  ;;  %v8507_v1 = vadd.f32 %v8506_v17, %v8505_v52  ;;  %v8618_v21 = vpop.f32.mrb[15].mxu1  ;;  %v12213_v51 = vcombine.low %v2222_v38, %v2236_v54  ;;  %v14935_v54 = vld [vmem:[#allocation5_spill] sm:$0xff] }
 0x120   : > { %14926 = vst [vmem:[#allocation65_spill] sm:$0xff] %v12208_v24  ;;  %v12215_v8 = vcombine.low %v2037_v35, %v2051_v25  ;;  %v8619_v41 = vadd.f32 %v8618_v21, %v8617_v28  ;;  %14929 = vst [vmem:[#allocation67_spill] sm:$0xff] %v12217_v57  ;;  %5386 = vmatmul.mubr.bf16.gmra.mrb[120].mxu0 %v12158_v47  ;;  %v12230_v37 = vcombine.low %v12129_v10, %v12140_v61  ;;  %v14936_v35 = vld [vmem:[#allocation2_spill] sm:$0xff]  ;;  %v12424_v47 = vld [vmem:[%s10645_s13 + $0x4c] sm:$0x1] }
 0x121   : > { %14927 = vst [vmem:[#allocation64_spill] sm:$0xff] %v12213_v51  ;;  %v4981_v14 = vadd.f32 %v8507_v1, %v12039_v48  ;;  %v12220_v2 = vadd.f32 %v8616_v6, %v4978_v19  ;;  %5547 = vmatmul.mubr.bf16.gmra.mrb[120].mxu1 %v12208_v24  ;;  %5393 = vmatprep.mubr.bf16.mxu0 %v12217_v57  ;;  %v12428_v24 = vld [vmem:[%s10645_s13 + $0x68] sm:$0xe] }
 0x122   : > { %14928 = vst [vmem:[#allocation71_spill] sm:$0xff] %v12215_v8  ;;  %5554 = vmatprep.mubr.bf16.mxu1 %v12213_v51  ;;  %14932 = vst [vmem:[#allocation99_spill] sm:$0xff] %v12230_v37  ;;  %v10419_v51 = vld [vmem:[%s10645_s13 + $0x1c] sm:$0x1] }
 0x123   : > { %14930 = vst [vmem:[#allocation97_spill] sm:$0xff] %v12220_v2  ;;  %v12223_v30 = vadd.f32 %v8619_v41, %v4981_v14  ;;  %v8508_v7 = vpop.f32.mrb[16].mxu0  ;;  %v821_v40 = vrot.slane %v10419_v51, 5 }
 0x124   : > { %v8509_v45 = vpop.f32.mrb[17].mxu0  ;;  %v8620_v46 = vpop.f32.mrb[16].mxu1 }
 0x125   : > { %14931 = vst [vmem:[#allocation98_spill] sm:$0xff] %v12223_v30  ;;  %v8510_v11 = vadd.f32 %v8509_v45, %v8508_v7  ;;  %v8511_v31 = vpop.f32.mrb[18].mxu0  ;;  %v8621_v62 = vpop.f32.mrb[17].mxu1  ;;  %v10273_v7 = vld [vmem:[%s14513_s1 + $0x380] sm:$0xff]  }
 0x126   : > { %v8512_v12 = vpop.f32.mrb[19].mxu0  ;;  %v8622_v43 = vadd.f32 %v8621_v62, %v8620_v46  ;;  %v8623_v22 = vpop.f32.mrb[18].mxu1  ;;  %v10271_v46 = vld [vmem:[%s14513_s1 + $0x300] sm:$0xff]   ;;  %v10274_v62 = vld [vmem:[%s14513_s1 + $0x348] sm:$0xff]  }
 0x127   : > { %v4986_v49 = vadd.f32 %v8510_v11, %v12039_v48  ;;  %v8513_v42 = vadd.f32 %v8512_v12, %v8511_v31  ;;  %v8624_v38 = vpop.f32.mrb[19].mxu1  ;;  %v14938_v12 = vld [vmem:[#allocation4_spill] sm:$0xff] }
 0x128   : > { %v8625_v16 = vadd.f32 %v8624_v38, %v8623_v22  ;;  %5394 = vmatmul.mubr.bf16.gmra.mrb[124].mxu0 %v12215_v8  ;;  %v10276_v22 = vld [vmem:[%s14513_s1 + $0x3c8] sm:$0xff]  }
 0x129   : > { %v4989_v60 = vadd.f32 %v8513_v42, %v12039_v48  ;;  %v12234_v52 = vadd.f32 %v8622_v43, %v4986_v49  ;;  %5555 = vmatmul.mubr.bf16.gmra.mrb[124].mxu1 %v12230_v37  ;;  %5595 = vmatprep.mubr.bf16.mxu0 %v14936_v35  ;;  %v10275_v43 = vld [vmem:[%s14513_s1 + $0x308] sm:$0xff]   ;;  %v12368_v37 = vld [vmem:[%s10645_s13 + $0x24] sm:$0x1] }
 0x12a   : > { %5756 = vmatprep.mubr.bf16.mxu1 %v14935_v54  ;;  %v10277_v49 = vld [vmem:[%s14513_s1 + $0x388] sm:$0xff]  }
 0x12b   : > { %14933 = vst [vmem:[#allocation100_spill] sm:$0xff] %v12234_v52  ;;  %v12237_v58 = vadd.f32 %v8625_v16, %v4989_v60  ;;  %v8514_v0 = vpop.f32.mrb[20].mxu0  ;;  %v10278_v16 = vld [vmem:[%s14513_s1 + $0x350] sm:$0xff]   ;;  %v12622_v52 = vld [vmem:[%s10645_s13 + $0xc4] sm:$0x1] }
 0x12c   : > { %v8515_v10 = vpop.f32.mrb[21].mxu0  ;;  %v8626_v61 = vpop.f32.mrb[20].mxu1  ;;  %v10280_v60 = vld [vmem:[%s14513_s1 + $0x3d0] sm:$0xff]  }
 0x12d   : > { %14934 = vst [vmem:[#allocation101_spill] sm:$0xff] %v12237_v58  ;;  %v8516_v17 = vadd.f32 %v8515_v10, %v8514_v0  ;;  %v8517_v6 = vpop.f32.mrb[22].mxu0  ;;  %v8627_v28 = vpop.f32.mrb[21].mxu1  ;;  %v14940_v10 = vld [vmem:[#allocation8_spill] sm:$0xff] }
 0x12e   : > { %v8518_v25 = vpop.f32.mrb[23].mxu0  ;;  %v8628_v19 = vadd.f32 %v8627_v28, %v8626_v61  ;;  %v8629_v1 = vpop.f32.mrb[22].mxu1 }
 0x12f   : > { %v4994_v21 = vadd.f32 %v8516_v17, %v12039_v48  ;;  %v8519_v41 = vadd.f32 %v8518_v25, %v8517_v6  ;;  %v8630_v14 = vpop.f32.mrb[23].mxu1  ;;  %v14941_v6 = vld [vmem:[#allocation9_spill] sm:$0xff] }
 0x130   : > { %v8631_v45 = vadd.f32 %v8630_v14, %v8629_v1  ;;  %5596 = vmatmul.mubr.bf16.vlgmr.msra.gmra.mrb[128].mxu0 %v14822_v36 }
 0x131   : > { %v4997_v11 = vadd.f32 %v8519_v41, %v12039_v48  ;;  %v12250_v31 = vadd.f32 %v8628_v19, %v4994_v21  ;;  %5757 = vmatmul.mubr.bf16.vlgmr.msra.gmra.mrb[128].mxu1 %v14938_v12  ;;  %9141 = vmatpush3.bf16.msra.mxu0 %v10271_v46  ;;  %v14943_v12 = vld [vmem:[#allocation7_spill] sm:$0xff] }
 0x132   : > { %9253 = vmatpush3.bf16.msra.mxu1 %v10273_v7  ;;  %5603 = vmatprep.mubr.bf16.mxu0 %v14940_v10  ;;  %v10279_v7 = vld [vmem:[%s14513_s1 + $0x310] sm:$0xff]  }
 0x133   : > { %14937 = vst [vmem:[#allocation5_spill] sm:$0xff] %v12250_v31  ;;  %v12265_v42 = vadd.f32 %v8631_v45, %v4997_v11  ;;  %v8520_v38 = vpop.f32.mrb[24].mxu0  ;;  %5764 = vmatprep.mubr.bf16.mxu1 %v14941_v6  ;;  %9142 = vmatprep.subr.bf16.mxu0 %v10274_v62  ;;  %v10281_v11 = vld [vmem:[%s14513_s1 + $0x390] sm:$0xff]   ;;  %v10282_v62 = vld [vmem:[%s14513_s1 + $0x358] sm:$0xff]   ;;  %v10286_v6 = vld [vmem:[%s14513_s1 + $0x360] sm:$0xff]  }
 0x134   : > { %v8521_v0 = vpop.f32.mrb[25].mxu0  ;;  %v8632_v54 = vpop.f32.mrb[24].mxu1  ;;  %9254 = vmatprep.subr.bf16.mxu1 %v10276_v22 }
 0x135   : > { %14939 = vst [vmem:[#allocation2_spill] sm:$0xff] %v12265_v42  ;;  %v8522_v61 = vadd.f32 %v8521_v0, %v8520_v38  ;;  %v8523_v35 = vpop.f32.mrb[26].mxu0  ;;  %v8633_v17 = vpop.f32.mrb[25].mxu1  ;;  %9143 = vmatpush3.bf16.msra.mxu0 %v10275_v43  ;;  %v10284_v43 = vld [vmem:[%s14513_s1 + $0x3d8] sm:$0xff]   ;;  %v14946_v0 = vld [vmem:[#allocation12_spill] sm:$0xff] }
 0x136   : > { %v8524_v28 = vpop.f32.mrb[27].mxu0  ;;  %v8634_v25 = vadd.f32 %v8633_v17, %v8632_v54  ;;  %v8635_v19 = vpop.f32.mrb[26].mxu1  ;;  %9255 = vmatpush3.bf16.msra.mxu1 %v10277_v49  ;;  %9144 = vmatprep.subr.bf16.mxu0 %v10278_v16  ;;  %v14945_v38 = vld [vmem:[#allocation13_spill] sm:$0xff]  ;;  %v12598_v42 = vld [vmem:[%s10645_s13 + $0xb4] sm:$0x1] }
 0x137   : > { %v5002_v1 = vadd.f32 %v8522_v61, %v12039_v48  ;;  %v8525_v21 = vadd.f32 %v8524_v28, %v8523_v35  ;;  %v8636_v41 = vpop.f32.mrb[27].mxu1  ;;  %9256 = vmatprep.subr.bf16.mxu1 %v10280_v60  ;;  %v10283_v54 = vld [vmem:[%s14513_s1 + $0x318] sm:$0xff]  }
 0x138   : > { %v8637_v14 = vadd.f32 %v8636_v41, %v8635_v19  ;;  %5604 = vmatmul.mubr.bf16.gmra.mrb[132].mxu0 %v14822_v36  ;;  %v10285_v17 = vld [vmem:[%s14513_s1 + $0x398] sm:$0xff]  }
 0x139   : > { %v5005_v45 = vadd.f32 %v8525_v21, %v12039_v48  ;;  %v12281_v46 = vadd.f32 %v8634_v25, %v5002_v1  ;;  %5765 = vmatmul.mubr.bf16.gmra.mrb[132].mxu1 %v14943_v12  ;;  %5611 = vmatprep.mubr.bf16.mxu0 %v14946_v0  ;;  %v10287_v1 = vld [vmem:[%s14513_s1 + $0x320] sm:$0xff]  }
 0x13a   : > { %5772 = vmatprep.mubr.bf16.mxu1 %v14945_v38  ;;  %9145 = vmatpush3.bf16.msra.mxu0 %v10279_v7  ;;  %v10288_v21 = vld [vmem:[%s14513_s1 + $0x3e0] sm:$0xff]   ;;  %v14948_v38 = vld [vmem:[#allocation11_spill] sm:$0xff] }
 0x13b   : > { %14942 = vst [vmem:[#allocation4_spill] sm:$0xff] %v12281_v46  ;;  %v12293_v22 = vadd.f32 %v8637_v14, %v5005_v45  ;;  %v8526_v49 = vpop.f32.mrb[28].mxu0  ;;  %9257 = vmatpush3.bf16.msra.mxu1 %v10281_v11  ;;  %9146 = vmatprep.subr.bf16.mxu0 %v10282_v62  ;;  %v10289_v45 = vld [vmem:[%s14513_s1 + $0x3a0] sm:$0xff]   ;;  %v10290_v62 = vld [vmem:[%s14513_s1 + $0x368] sm:$0xff]   ;;  %v12544_v46 = vld [vmem:[%s10645_s13 + $0xf4] sm:$0x1] }
 0x13c   : > { %v8527_v16 = vpop.f32.mrb[29].mxu0  ;;  %v8638_v60 = vpop.f32.mrb[28].mxu1  ;;  %9258 = vmatprep.subr.bf16.mxu1 %v10284_v43 }
 0x13d   : > { %14944 = vst [vmem:[#allocation8_spill] sm:$0xff] %v12293_v22  ;;  %v8528_v10 = vadd.f32 %v8527_v16, %v8526_v49  ;;  %v8529_v61 = vpop.f32.mrb[30].mxu0  ;;  %v8639_v35 = vpop.f32.mrb[29].mxu1  ;;  %v12324_v49 = vld [vmem:[%s10645_s13 + $0x10] sm:$0xe]  ;;  %v10292_v16 = vld [vmem:[%s14513_s1 + $0x3e8] sm:$0xff]  }
 0x13e   : > { %v8530_v28 = vpop.f32.mrb[31].mxu0  ;;  %v8640_v25 = vadd.f32 %v8639_v35, %v8638_v60  ;;  %v8641_v19 = vpop.f32.mrb[30].mxu1  ;;  %9147 = vmatpush3.bf16.msra.mxu0 %v10283_v54  ;;  %v14950_v54 = vld [vmem:[#allocation17_spill] sm:$0xff]  ;;  %v10293_v35 = vld [vmem:[%s14513_s1 + $0x3a8] sm:$0xff]  }
 0x13f   : > { %v5010_v41 = vadd.f32 %v8528_v10, %v12039_v48  ;;  %v8531_v14 = vadd.f32 %v8530_v28, %v8529_v61  ;;  %v8642_v7 = vpop.f32.mrb[31].mxu1  ;;  %9259 = vmatpush3.bf16.msra.mxu1 %v10285_v17  ;;  %9148 = vmatprep.subr.bf16.mxu0 %v10286_v6  ;;  %v12335_v10 = vld [vmem:[%s10645_s13 + $0x18] sm:$0xe]  ;;  %v10291_v61 = vld [vmem:[%s14513_s1 + $0x328] sm:$0xff]   ;;  %v14951_v28 = vld [vmem:[#allocation16_spill] sm:$0xff] }
 0x140   : > { %v8643_v11 = vadd.f32 %v8642_v7, %v8641_v19  ;;  %9260 = vmatprep.subr.bf16.mxu1 %v10288_v21  ;;  %5612 = vmatmul.mubr.bf16.gmra.mrb[136].mxu0 %v14822_v36  ;;  %v12346_v19 = vld [vmem:[%s10645_s13 + $0x14] sm:$0x1]  ;;  %v7776_v21 = vrot.slane %v12335_v10, 9 }
 0x141   : > { %v5013_v12 = vadd.f32 %v8531_v14, %v12039_v48  ;;  %v12321_v43 = vadd.f32 %v8640_v25, %v5010_v41  ;;  %5773 = vmatmul.mubr.bf16.gmra.mrb[136].mxu1 %v14948_v38  ;;  %5619 = vmatprep.mubr.bf16.mxu0 %v14951_v28  ;;  %v10295_v41 = vld [vmem:[%s14513_s1 + $0x370] sm:$0xff]   ;;  %v12356_v38 = vld [vmem:[%s10645_s13 + $0x20] sm:$0xe] }
 0x142   : > { %5780 = vmatprep.mubr.bf16.mxu1 %v14950_v54  ;;  %9149 = vmatpush3.bf16.msra.mxu0 %v10287_v1  ;;  %v10297_v14 = vld [vmem:[%s14513_s1 + $0x3f0] sm:$0xff]   ;;  %v12359_v54 = vld [vmem:[%s10645_s13 + $0x28] sm:$0xe] }
 0x143   : > { %14947 = vst [vmem:[#allocation9_spill] sm:$0xff] %v12321_v43  ;;  %v12330_v60 = vadd.f32 %v8643_v11, %v5013_v12  ;;  %v8532_v0 = vpop.f32.mrb[32].mxu0  ;;  %9261 = vmatpush3.bf16.msra.mxu1 %v10289_v45  ;;  %9150 = vmatprep.subr.bf16.mxu0 %v10290_v62  ;;  %v12372_v62 = vld [vmem:[%s10645_s13 + $0x2c] sm:$0x1]  ;;  %v12478_v43 = vld [vmem:[%s10645_s13 + $0x80] sm:$0xe] }
 0x144   : > { %v8533_v17 = vpop.f32.mrb[33].mxu0  ;;  %v8644_v6 = vpop.f32.mrb[32].mxu1  ;;  %9262 = vmatprep.subr.bf16.mxu1 %v10292_v16  ;;  %v12407_v16 = vld [vmem:[%s10645_s13 + $0x48] sm:$0xe] }
 0x145   : > { %14949 = vst [vmem:[#allocation7_spill] sm:$0xff] %v12330_v60  ;;  %v8534_v7 = vadd.f32 %v8533_v17, %v8532_v0  ;;  %v8535_v11 = vpop.f32.mrb[34].mxu0  ;;  %v8645_v12 = vpop.f32.mrb[33].mxu1  ;;  %v12364_v0 = vld [vmem:[%s10645_s13 + $0x30] sm:$0xe] }
 0x146   : > { %v8536_v1 = vpop.f32.mrb[35].mxu0  ;;  %v8646_v28 = vadd.f32 %v8645_v12, %v8644_v6  ;;  %v8647_v25 = vpop.f32.mrb[34].mxu1  ;;  %v12376_v6 = vld [vmem:[%s10645_s13 + $0x38] sm:$0xe]  ;;  %9151 = vmatpush3.bf16.msra.mxu0 %v10291_v61  ;;  %v12396_v12 = vld [vmem:[%s10645_s13 + $0x40] sm:$0xe] }
 0x147   : > { %v5018_v17 = vadd.f32 %v8534_v7, %v12039_v48  ;;  %v8537_v57 = vadd.f32 %v8536_v1, %v8535_v11  ;;  %v8648_v8 = vpop.f32.mrb[35].mxu1  ;;  %v12381_v7 = vld [vmem:[%s10645_s13 + $0x34] sm:$0x1]  ;;  %9263 = vmatpush3.bf16.msra.mxu1 %v10293_v35  ;;  %9152 = vmatprep.subr.bf16.mxu0 %v10295_v41  ;;  %v10303_v35 = vld [vmem:[%s14513_s1 + $0x3f8] sm:$0xff]  }
 0x148   : > { %v8649_v51 = vadd.f32 %v8648_v8, %v8647_v25  ;;  %v10296_v1 = vld [vmem:[%s14513_s1 + $0x330] sm:$0xff]   ;;  %v12392_v25 = vld [vmem:[%s10645_s13 + $0x3c] sm:$0x1]  ;;  %v12410_v8 = vld [vmem:[%s10645_s13 + $0x60] sm:$0xe]  ;;  %9264 = vmatprep.subr.bf16.mxu1 %v10297_v14  ;;  %5620 = vmatmul.mubr.bf16.gmra.mrb[140].mxu0 %v14822_v36  ;;  %v822_v14 = vsel %vm10670_vm4, %v7776_v21, %v821_v40 }
 0x149   : > { %v5021_v10 = vadd.f32 %v8537_v57, %v12039_v48  ;;  %v12388_v45 = vadd.f32 %v8646_v28, %v5018_v17  ;;  %v10298_v61 = vld [vmem:[%s14513_s1 + $0x3b0] sm:$0xff]   ;;  %v10301_v57 = vld [vmem:[%s14513_s1 + $0x378] sm:$0xff]   ;;  %v14953_v28 = vld [vmem:[#allocation14_spill] sm:$0xff]  ;;  %5627 = vmatprep.mubr.bf16.mxu0 %v14956_v39  ;;  %v14976_v55 = vrot.slane %v12392_v25, 5 }
 0x14a   : > { %5781 = vmatmul.mubr.bf16.gmra.mrb[140].mxu1 %v14953_v28  ;;  %v12420_v28 = vld [vmem:[%s10645_s13 + $0x44] sm:$0x1]  ;;  %9153 = vmatpush3.bf16.msra.mxu0 %v10296_v1  ;;  %v10304_v40 = vld [vmem:[%s14513_s1 + $0x3b8] sm:$0xff]  }
 0x14b   : > { %14952 = vst [vmem:[#allocation13_spill] sm:$0xff] %v12388_v45  ;;  %v12415_v41 = vadd.f32 %v8649_v51, %v5021_v10  ;;  %v8538_v11 = vpop.f32.mrb[36].mxu0  ;;  %5788 = vmatprep.mubr.bf16.mxu1 %v14955_v44  ;;  %v14957_v44 = vrot.slane %v12346_v19, 5  ;;  %v12445_v45 = vld [vmem:[%s10645_s13 + $0x70] sm:$0xe]  ;;  %v10302_v10 = vld [vmem:[%s14513_s1 + $0x338] sm:$0xff]   ;;  %9265 = vmatpush3.bf16.msra.mxu1 %v10298_v61 }
 0x14c   : > { %v8539_v51 = vpop.f32.mrb[37].mxu0  ;;  %v8650_v36 = vpop.f32.mrb[36].mxu1  ;;  %9154 = vmatprep.subr.bf16.mxu0 %v10301_v57  ;;  %v10306_v21 = vld [vmem:[%s14513_s1 + $0x440] sm:$0xff]   ;;  %v12464_v57 = vld [vmem:[%s10645_s13 + $0x74] sm:$0x1]  ;;  %9266 = vmatprep.subr.bf16.mxu1 %v10303_v35 }
 0x14d   : > { %14954 = vst [vmem:[#allocation12_spill] sm:$0xff] %v12415_v41  ;;  %v14958_v41 = vrot.slane %v12324_v49, 9  ;;  %v8540_v19 = vadd.f32 %v8539_v51, %v8538_v11  ;;  %v8541_v39 = vpop.f32.mrb[38].mxu0  ;;  %v8651_v49 = vpop.f32.mrb[37].mxu1  ;;  %v12606_v25 = vld [vmem:[%s10645_s13 + $0xbc] sm:$0x1] }
 0x14e   : > { %v8542_v1 = vpop.f32.mrb[39].mxu0  ;;  %v8653_v11 = vpop.f32.mrb[38].mxu1  ;;  %9155 = vmatpush3.bf16.msra.mxu0 %v10302_v10  ;;  %v14965_v10 = vrot.slane %v12359_v54, 9 }
 0x14f   : > { %v818_v17 = vsel %vm10670_vm4, %v14958_v41, %v14957_v44  ;;  %v8652_v41 = vadd.f32 %v8651_v49, %v8650_v36  ;;  %v5026_v36 = vadd.f32 %v8540_v19, %v12039_v48  ;;  %v8543_v49 = vadd.f32 %v8542_v1, %v8541_v39  ;;  %v8654_v60 = vpop.f32.mrb[39].mxu1  ;;  %v12481_v44 = vld [vmem:[%s10645_s13 + $0xf0] sm:$0xf]  ;;  %v12487_v39 = vld [vmem:[%s10645_s13 + $0x88] sm:$0xe]  ;;  %9267 = vmatpush3.bf16.msra.mxu1 %v10304_v40 }
 0x150   : > { %v12471_v51 = vcombine.low %v818_v17, %v822_v14  ;;  %v8655_v33 = vadd.f32 %v8654_v60, %v8653_v11  ;;  %9364 = vmatprep.subr.bf16.mxu0 %v10306_v21  ;;  %v14961_v17 = vld [vmem:[#allocation20_spill] sm:$0xff]  ;;  %v14962_v14 = vrot.slane %v12368_v37, 5  ;;  %v14963_v60 = vrot.slane %v12356_v38, 9  ;;  %v12503_v11 = vld [vmem:[%s10645_s13 + $0xf8] sm:$0xf]  ;;  %9476 = vmatprep.subr.bf16.mxu1 %v10308_v4  ;;  %v14967_v38 = vld [vmem:[#allocation26_spill] sm:$0xff] }
 0x151   : > { %v5029_v35 = vadd.f32 %v8543_v49, %v12039_v48  ;;  %v12484_v59 = vadd.f32 %v8652_v41, %v5026_v36  ;;  %v14964_v1 = vrot.slane %v12372_v62, 5  ;;  %v12510_v21 = vld [vmem:[%s10645_s13 + $0x7c] sm:$0x1]  ;;  %v2479_v54 = vshrl.u32 %v12481_v44, 16  ;;  %v14968_v4 = vld [vmem:[#allocation24_spill] sm:$0xff] }
 0x152   : > { %14959 = vst [vmem:[#allocation11_spill] sm:$0xff] %v12471_v51  ;;  %5789 = vmatmul.mubr.bf16.gmra.mrb[144].mxu1 %v14961_v17  ;;  %v826_v19 = vsel %vm10670_vm4, %v14963_v60, %v14962_v14  ;;  %5628 = vmatmul.mubr.bf16.gmra.mrb[144].mxu0 %v12471_v51  ;;  %v2482_v36 = vshll.u32 %v12481_v44, 16  ;;  %v12519_v60 = vld [vmem:[%s10645_s13 + $0x84] sm:$0x1]  ;;  %v12526_v17 = vld [vmem:[%s10645_s13 + $0x90] sm:$0xe] }
 0x153   : > { %14960 = vst [vmem:[#allocation17_spill] sm:$0xff] %v12484_v59  ;;  %v830_v41 = vsel %vm10670_vm4, %v14965_v10, %v14964_v1  ;;  %v12505_v40 = vadd.f32 %v8655_v33, %v5029_v35  ;;  %v8544_v37 = vpop.f32.mrb[40].mxu0  ;;  %5796 = vmatprep.mubr.bf16.mxu1 %v14967_v38  ;;  %5635 = vmatprep.mubr.bf16.mxu0 %v14968_v4  ;;  %v12529_v35 = vld [vmem:[%s10645_s13 + $0x8c] sm:$0x1]  ;;  %v2493_v10 = vshrl.u32 %v12503_v11, 16 }
 0x154   : > { %v8545_v49 = vpop.f32.mrb[41].mxu0  ;;  %v8656_v14 = vpop.f32.mrb[40].mxu1  ;;  %v12523_v51 = vcombine.low %v826_v19, %v830_v41  ;;  %v12536_v59 = vld [vmem:[%s10645_s13 + $0x98] sm:$0xe]  ;;  %v12540_v1 = vld [vmem:[%s10645_s13 + $0x94] sm:$0x1] }
 0x155   : > { %14966 = vst [vmem:[#allocation16_spill] sm:$0xff] %v12505_v40  ;;  %v8546_v62 = vadd.f32 %v8545_v49, %v8544_v37  ;;  %v8547_v61 = vpop.f32.mrb[42].mxu0  ;;  %v8657_v38 = vpop.f32.mrb[41].mxu1  ;;  %v2496_v37 = vshll.u32 %v12503_v11, 16 }
 0x156   : > { %14969 = vst [vmem:[#allocation14_spill] sm:$0xff] %v12523_v51  ;;  %v8548_v4 = vpop.f32.mrb[43].mxu0  ;;  %v8658_v40 = vadd.f32 %v8657_v38, %v8656_v14  ;;  %v8659_v33 = vpop.f32.mrb[42].mxu1  ;;  %v2481_v38 = vrot.slane %v2479_v54, 4  ;;  %v2484_v14 = vrot.slane %v2482_v36, 5  ;;  %v14971_v36 = vrot.slane %v12381_v7, 5 }
 0x157   : > { %v5034_v49 = vadd.f32 %v8546_v62, %v12039_v48  ;;  %v8549_v19 = vadd.f32 %v8548_v4, %v8547_v61  ;;  %v8660_v41 = vpop.f32.mrb[43].mxu1  ;;  %v12547_v48 = vld [vmem:[%s10645_s13 + $0xf0] sm:$0xe]  ;;  %v12552_v61 = vld [vmem:[%s14514_s2] ss:$0 sm:$0xff]  ;;  %v14972_v4 = vrot.slane %v12364_v0, 9 }
 0x158   : > { %v8661_v22 = vadd.f32 %v8660_v41, %v8659_v33  ;;  %v12564_v41 = vld [vmem:[%s10645_s13 + $0xfc] sm:$0x1]  ;;  %v2498_v0 = vrot.slane %v2496_v37, 5  ;;  %v12590_v7 = vld [vmem:[%s10645_s13 + $0xb8] sm:$0xe] }
 0x159   : > { %v5037_v62 = vadd.f32 %v12552_v61, %v8549_v19  ;;  %v12555_v54 = vadd.f32 %v8658_v40, %v5034_v49  ;;  %v834_v33 = vsel %vm10670_vm4, %v14972_v4, %v14971_v36  ;;  %v12575_v40 = vld [vmem:[%s10645_s13 + $0x9c] sm:$0x1]  ;;  %v2495_v49 = vrot.slane %v2493_v10, 4  ;;  %v14975_v4 = vld [vmem:[#allocation30_spill] sm:$0xff] }
 0x15a   : > { %5797 = vmatmul.mubr.bf16.gmra.mrb[148].mxu1 %v14973_v56  ;;  %5636 = vmatmul.mubr.bf16.gmra.mrb[148].mxu0 %v12523_v51  ;;  %v14977_v56 = vrot.slane %v12376_v6, 9  ;;  %v2485_v10 = vor.u32 %v2484_v14, %v2481_v38  ;;  %v2488_v14 = vshll.u32 %v12544_v46, 16  ;;  %v2502_v58 = vshll.u32 %v12564_v41, 16 }
 0x15b   : > { %14970 = vst [vmem:[#allocation102_spill] sm:$0xff] %v12555_v54  ;;  %v12578_v54 = vadd.f32 %v8661_v22, %v5037_v62  ;;  %v8550_v36 = vpop.f32.mrb[44].mxu0  ;;  %5804 = vmatprep.mubr.bf16.mxu1 %v14975_v4  ;;  %v14978_v62 = vld [vmem:[#allocation28_spill] sm:$0xff] }
 0x15c   : > { %v838_v19 = vsel %vm10670_vm4, %v14977_v56, %v14976_v55  ;;  %v8551_v22 = vpop.f32.mrb[45].mxu0  ;;  %v8662_v37 = vpop.f32.mrb[44].mxu1  ;;  %5643 = vmatprep.mubr.bf16.mxu0 %v14978_v62  ;;  %v12610_v15 = vrot.slane %v2485_v10, 4  ;;  %v12619_v4 = vrot.slane %v2488_v14, 5  ;;  %v12627_v10 = vld [vmem:[%s10645_s13 + $0x108] sm:$0xf] }
 0x15d   : > { %14974 = vst [vmem:[#allocation103_spill] sm:$0xff] %v12578_v54  ;;  %v8552_v54 = vadd.f32 %v8551_v22, %v8550_v36  ;;  %v8553_v55 = vpop.f32.mrb[46].mxu0  ;;  %v8663_v56 = vpop.f32.mrb[45].mxu1  ;;  %v12602_v51 = vcombine.low %v834_v33, %v838_v19  ;;  %v14985_v14 = vrot.slane %v12420_v28, 5  ;;  %v12650_v28 = vrot.slane %v2502_v58, 5  ;;  %v14990_v58 = vld [vmem:[#allocation36_spill] sm:$0xff] }
 0x15e   : > { %v8554_v62 = vpop.f32.mrb[47].mxu0  ;;  %v8664_v20 = vadd.f32 %v8663_v56, %v8662_v37  ;;  %v8665_v31 = vpop.f32.mrb[46].mxu1  ;;  %v2499_v56 = vor.u32 %v2498_v0, %v2495_v49  ;;  %v14983_v49 = vld [vmem:[#allocation38_spill] sm:$0xff] }
 0x15f   : > { %14979 = vst [vmem:[#allocation104_spill] sm:$0xff] %v12602_v51  ;;  %v5042_v22 = vadd.f32 %v12552_v61, %v8552_v54  ;;  %v8555_v6 = vadd.f32 %v8554_v62, %v8553_v55  ;;  %v8666_v38 = vpop.f32.mrb[47].mxu1  ;;  %v14981_v62 = vld [vmem:[#allocation29_spill] sm:$0xff] }
 0x160   : > { %v8667_v37 = vadd.f32 %v8666_v38, %v8665_v31  ;;  %v14984_v38 = vld [vmem:[#allocation37_spill] sm:$0xff] }
 0x161   : > { %v5045_v33 = vadd.f32 %v12552_v61, %v8555_v6  ;;  %v12617_v19 = vadd.f32 %v8664_v20, %v5042_v22  ;;  %v2507_v20 = vshrl.u32 %v12614_v26, 16  ;;  %v14986_v22 = vrot.slane %v12396_v12, 9 }
 0x162   : > { %5805 = vmatmul.mubr.bf16.gmra.mrb[152].mxu1 %v14981_v62  ;;  %5644 = vmatmul.mubr.bf16.gmra.mrb[152].mxu0 %v12602_v51  ;;  %v2510_v51 = vshll.u32 %v12614_v26, 16  ;;  %v2521_v12 = vshrl.u32 %v12627_v10, 16 }
 0x163   : > { %14980 = vst [vmem:[#allocation105_spill] sm:$0xff] %v12617_v19  ;;  %v12629_v55 = vadd.f32 %v8667_v37, %v5045_v33  ;;  %v8556_v31 = vpop.f32.mrb[48].mxu0  ;;  %5812 = vmatprep.mubr.bf16.mxu1 %v14983_v49  ;;  %5651 = vmatprep.mubr.bf16.mxu0 %v14984_v38  ;;  %v842_v54 = vsel %vm10670_vm4, %v14986_v22, %v14985_v14  ;;  %v14987_v37 = vrot.slane %v12424_v47, 5  ;;  %v14988_v33 = vrot.slane %v12407_v16, 9 }
 0x164   : > { %v8557_v0 = vpop.f32.mrb[49].mxu0  ;;  %v8668_v6 = vpop.f32.mrb[48].mxu1  ;;  %v12647_v49 = vrot.slane %v2499_v56, 4  ;;  %v2524_v56 = vshll.u32 %v12627_v10, 16 }
 0x165   : > { %14982 = vst [vmem:[#allocation106_spill] sm:$0xff] %v12629_v55  ;;  %v846_v36 = vsel %vm10670_vm4, %v14988_v33, %v14987_v37  ;;  %v8558_v62 = vadd.f32 %v8557_v0, %v8556_v31  ;;  %v8559_v38 = vpop.f32.mrb[50].mxu0  ;;  %v8669_v55 = vpop.f32.mrb[49].mxu1 }
 0x166   : > { %v8560_v19 = vpop.f32.mrb[51].mxu0  ;;  %v8670_v14 = vadd.f32 %v8669_v55, %v8668_v6  ;;  %v8671_v22 = vpop.f32.mrb[50].mxu1  ;;  %v12654_v2 = vcombine.low %v842_v54, %v846_v36  ;;  %v14991_v6 = vld [vmem:[#allocation47_spill] sm:$0xff] }
 0x167   : > { %v5050_v47 = vadd.f32 %v12552_v61, %v8558_v62  ;;  %v8561_v16 = vadd.f32 %v8560_v19, %v8559_v38  ;;  %v8672_v30 = vpop.f32.mrb[51].mxu1  ;;  %v12665_v19 = vrot.slane %v2507_v20, 4  ;;  %v14992_v62 = vld [vmem:[#allocation44_spill] sm:$0xff]  ;;  %v14994_v38 = vrot.slane %v12410_v8, 9 }
 0x168   : > { %14989 = vst [vmem:[#allocation107_spill] sm:$0xff] %v12654_v2  ;;  %v8673_v37 = vadd.f32 %v8672_v30, %v8671_v22  ;;  %v14993_v30 = vrot.slane %v12431_v32, 5  ;;  %v14995_v22 = vrot.slane %v12460_v29, 5  ;;  %v12680_v20 = vrot.slane %v2510_v51, 5 }
 0x169   : > { %v5053_v31 = vadd.f32 %v12552_v61, %v8561_v16  ;;  %v12658_v0 = vadd.f32 %v8670_v14, %v5050_v47  ;;  %v14996_v47 = vrot.slane %v12428_v24, 9 }
 0x16a   : > { %5813 = vmatmul.mubr.bf16.gmra.mrb[156].mxu1 %v14990_v58  ;;  %5652 = vmatmul.mubr.bf16.gmra.mrb[156].mxu0 %v12654_v2  ;;  %v1373_v14 = vsel %vm10670_vm4, %v14994_v38, %v14993_v30  ;;  %v12685_v58 = vld [vmem:[%s10645_s13 + $0x100] sm:$0xe] }
 0x16b   : > { %v12661_v33 = vadd.f32 %v8673_v37, %v5053_v31  ;;  %v8562_v55 = vpop.f32.mrb[52].mxu0  ;;  %5820 = vmatprep.mubr.bf16.mxu1 %v14991_v6  ;;  %5659 = vmatprep.mubr.bf16.mxu0 %v14992_v62  ;;  %v1377_v16 = vsel %vm10670_vm4, %v14996_v47, %v14995_v22  ;;  %v12682_v37 = vrot.slane %v2521_v12, 4  ;;  %v12690_v22 = vrot.slane %v2524_v56, 5 }
 0x16c   : > { %v8563_v36 = vpop.f32.mrb[53].mxu0  ;;  %v8674_v54 = vpop.f32.mrb[52].mxu1  ;;  %v12688_v38 = vcombine.low %v1373_v14, %v1377_v16  ;;  %v15002_v16 = vld [vmem:[#allocation51_spill] sm:$0xff] }
 0x16d   : > { %v8564_v31 = vadd.f32 %v8563_v36, %v8562_v55  ;;  %v8565_v6 = vpop.f32.mrb[54].mxu0  ;;  %v8675_v32 = vpop.f32.mrb[53].mxu1  ;;  %v14999_v36 = vld [vmem:[#allocation45_spill] sm:$0xff] }
 0x16e   : > { %v8566_v62 = vpop.f32.mrb[55].mxu0  ;;  %v8676_v8 = vadd.f32 %v8675_v32, %v8674_v54  ;;  %v8677_v2 = vpop.f32.mrb[54].mxu1  ;;  %14997 = vst [vmem:[#allocation108_spill] sm:$0xff] %v12688_v38  ;;  %v12697_v54 = vld [vmem:[%s10645_s13 + $0x104] sm:$0x1]  ;;  %v15004_v32 = vrot.slane %v12445_v45, 9 }
 0x16f   : > { %v5058_v29 = vadd.f32 %v12552_v61, %v8564_v31  ;;  %v8567_v30 = vadd.f32 %v8566_v62, %v8565_v6  ;;  %v8678_v24 = vpop.f32.mrb[55].mxu1  ;;  %v15001_v62 = vld [vmem:[#allocation53_spill] sm:$0xff]  ;;  %v15003_v31 = vrot.slane %v12464_v57, 5  ;;  %v12724_v57 = vld [vmem:[%s10645_s13 + $0xc0] sm:$0xe] }
 0x170   : > { %v8679_v51 = vadd.f32 %v8678_v24, %v8677_v2 }
 0x171   : > { %v5061_v12 = vadd.f32 %v12552_v61, %v8567_v30  ;;  %v12693_v55 = vadd.f32 %v8676_v8, %v5058_v29  ;;  %v1381_v8 = vsel %vm10670_vm4, %v15004_v32, %v15003_v31  ;;  %v15005_v29 = vrot.slane %v12510_v21, 5  ;;  %v12727_v31 = vld [vmem:[%s10645_s13 + $0xc8] sm:$0xe] }
 0x172   : > { %5821 = vmatmul.mubr.bf16.gmra.mrb[160].mxu1 %v14999_v36  ;;  %5660 = vmatmul.mubr.bf16.gmra.mrb[160].mxu0 %v12688_v38  ;;  %v15006_v30 = vrot.slane %v12474_v18, 9 }
 0x173   : > { %14998 = vst [vmem:[#allocation109_spill] sm:$0xff] %v12693_v55  ;;  %v12699_v47 = vadd.f32 %v8679_v51, %v5061_v12  ;;  %v8568_v6 = vpop.f32.mrb[56].mxu0  ;;  %5828 = vmatprep.mubr.bf16.mxu1 %v15001_v62  ;;  %5667 = vmatprep.mubr.bf16.mxu0 %v15002_v16  ;;  %v12718_v62 = vld [vmem:[%s10645_s13 + $0x10c] sm:$0x1]  ;;  %v12721_v16 = vld [vmem:[%s10645_s13 + $0x108] sm:$0xe] }
 0x174   : > { %v8569_v56 = vpop.f32.mrb[57].mxu0  ;;  %v8680_v14 = vpop.f32.mrb[56].mxu1  ;;  %v1385_v24 = vsel %vm10670_vm4, %v15006_v30, %v15005_v29  ;;  %v15008_v55 = vld [vmem:[#allocation52_spill] sm:$0xff] }
 0x175   : > { %15000 = vst [vmem:[#allocation110_spill] sm:$0xff] %v12699_v47  ;;  %v8570_v51 = vadd.f32 %v8569_v56, %v8568_v6  ;;  %v8571_v12 = vpop.f32.mrb[58].mxu0  ;;  %v8681_v2 = vpop.f32.mrb[57].mxu1  ;;  %v12730_v47 = vcombine.low %v1381_v8, %v1385_v24  ;;  %v15009_v24 = vld [vmem:[#allocation62_spill] sm:$0xff] }
 0x176   : > { %v8572_v45 = vpop.f32.mrb[59].mxu0  ;;  %v8682_v38 = vadd.f32 %v8681_v2, %v8680_v14  ;;  %v8683_v36 = vpop.f32.mrb[58].mxu1 }
 0x177   : > { %v5066_v21 = vadd.f32 %v12552_v61, %v8570_v51  ;;  %v8573_v18 = vadd.f32 %v8572_v45, %v8571_v12  ;;  %v8684_v32 = vpop.f32.mrb[59].mxu1  ;;  %15007 = vst [vmem:[#allocation111_spill] sm:$0xff] %v12730_v47  ;;  %v15012_v45 = vrot.slane %v12478_v43, 9  ;;  %v12759_v12 = vld [vmem:[%s10645_s13 + $0xcc] sm:$0x1]  ;;  %v15018_v51 = vrot.slane %v12575_v40, 5 }
 0x178   : > { %v8685_v56 = vadd.f32 %v8684_v32, %v8683_v36  ;;  %v15010_v36 = vld [vmem:[#allocation60_spill] sm:$0xff]  ;;  %v15014_v32 = vrot.slane %v12487_v39, 9  ;;  %v15017_v39 = vrot.slane %v12526_v17, 9 }
 0x179   : > { %v5069_v29 = vadd.f32 %v12552_v61, %v8573_v18  ;;  %v12734_v30 = vadd.f32 %v8682_v38, %v5066_v21  ;;  %v15011_v38 = vrot.slane %v12519_v60, 5  ;;  %v15013_v18 = vrot.slane %v12529_v35, 5 }
 0x17a   : > { %5829 = vmatmul.mubr.bf16.gmra.mrb[164].mxu1 %v15008_v55  ;;  %5668 = vmatmul.mubr.bf16.gmra.mrb[164].mxu0 %v12730_v47  ;;  %v15016_v35 = vrot.slane %v12540_v1, 5  ;;  %v15021_v1 = vrot.slane %v12547_v48, 9  ;;  %v15026_v48 = vrot.slane %v12606_v25, 5  ;;  %v12815_v25 = vld [vmem:[%s10645_s13 + $0x118] sm:$0xf]  ;;  %v15127_v55 = vld [vmem:[#allocation39_spill] sm:$0xff] }
 0x17b   : > { %v12741_v8 = vadd.f32 %v8685_v56, %v5069_v29  ;;  %5836 = vmatprep.mubr.bf16.mxu1 %v15009_v24  ;;  %5675 = vmatprep.mubr.bf16.mxu0 %v15010_v36  ;;  %v1389_v21 = vsel %vm10670_vm4, %v15012_v45, %v15011_v38  ;;  %v1393_v56 = vsel %vm10670_vm4, %v15014_v32, %v15013_v18  ;;  %v8574_v2 = vpop.f32.mrb[60].mxu0  ;;  %v15019_v36 = vrot.slane %v12536_v59, 9 }
 0x17c   : > { %v8686_v29 = vpop.f32.mrb[60].mxu1  ;;  %v8575_v60 = vpop.f32.mrb[61].mxu0  ;;  %v12762_v24 = vcombine.low %v1389_v21, %v1393_v56  ;;  %v1397_v38 = vsel %vm10670_vm4, %v15017_v39, %v15016_v35  ;;  %v15020_v21 = vrot.slane %v12544_v46, 5  ;;  %v15022_v56 = vrot.slane %v12564_v41, 5  ;;  %v12802_v35 = vld [vmem:[%s10645_s13 + $0x110] sm:$0xf] }
 0x17d   : > { %v8687_v14 = vpop.f32.mrb[61].mxu1  ;;  %v8576_v45 = vadd.f32 %v8575_v60, %v8574_v2  ;;  %v8577_v18 = vpop.f32.mrb[62].mxu0  ;;  %v15023_v2 = vrot.slane %v12567_v3, 9  ;;  %v15024_v59 = vrot.slane %v12598_v42, 5  ;;  %v2516_v3 = vshll.u32 %v12697_v54, 16  ;;  %v15028_v42 = vld [vmem:[#allocation61_spill] sm:$0xff] }
 0x17e   : > { %v8688_v43 = vadd.f32 %v8687_v14, %v8686_v29  ;;  %v8689_v6 = vpop.f32.mrb[62].mxu1  ;;  %15015 = vst [vmem:[#allocation112_spill] sm:$0xff] %v12762_v24  ;;  %v1401_v14 = vsel %vm10670_vm4, %v15019_v36, %v15018_v51  ;;  %v2617_v17 = vsel %vm10670_vm4, %v15021_v1, %v15020_v21  ;;  %v8578_v40 = vpop.f32.mrb[63].mxu0  ;;  %v15025_v51 = vrot.slane %v12570_v13, 9 }
 0x17f   : > { %v8690_v32 = vpop.f32.mrb[63].mxu1  ;;  %v2621_v29 = vsel %vm10670_vm4, %v15023_v2, %v15022_v56  ;;  %v15027_v36 = vrot.slane %v12590_v7, 9  ;;  %v8579_v39 = vadd.f32 %v8578_v40, %v8577_v18  ;;  %v2491_v13 = vsel %vm10679_vm5, %v12610_v15, %v12619_v4  ;;  %v15031_v4 = vld [vmem:[#allocation68_spill] sm:$0xff] }
 0x180   : > { %v8691_v60 = vadd.f32 %v8690_v32, %v8689_v6  ;;  %v2264_v46 = vsel %vm10670_vm4, %v15025_v51, %v15024_v59  ;;  %v5074_v6 = vadd.f32 %v12552_v61, %v8576_v45  ;;  %v2505_v7 = vsel %vm10679_vm5, %v12647_v49, %v12650_v28  ;;  %v15029_v32 = vld [vmem:[#allocation70_spill] sm:$0xff]  ;;  %v12849_v2 = vld [vmem:[%s10645_s13 + $0x114] sm:$0x1] }
 0x181   : > { %v2268_v41 = vsel %vm10670_vm4, %v15027_v36, %v15026_v48  ;;  %v12819_v45 = vcombine.low %v1397_v38, %v1401_v14  ;;  %v2513_v18 = vor.u32 %v12680_v20, %v12665_v19  ;;  %v5077_v21 = vadd.f32 %v12552_v61, %v8579_v39 }
 0x182   : > { %5837 = vmatmul.mubr.bf16.gmra.mrb[168].mxu1 %v15028_v42  ;;  %5676 = vmatmul.mubr.bf16.gmra.mrb[168].mxu0 %v12762_v24  ;;  %v12824_v15 = vadd.f32 %v8688_v43, %v5074_v6  ;;  %v12829_v49 = vcombine.low %v12481_v44, %v12503_v11  ;;  %v12831_v28 = vcombine.low %v2617_v17, %v2621_v29  ;;  %v2530_v19 = vshll.u32 %v12718_v62, 16  ;;  %v8103_v29 = vld [vmem:[%s10645_s13 + $0x110] sm:$0xe] }
 0x183   : > { %5844 = vmatprep.mubr.bf16.mxu1 %v15029_v32  ;;  %15030 = vst [vmem:[#allocation113_spill] sm:$0xff] %v12819_v45  ;;  %5683 = vmatprep.mubr.bf16.mxu0 %v15031_v4  ;;  %v12833_v38 = vcombine.low %v2264_v46, %v2268_v41  ;;  %v12835_v14 = vcombine.low %v2491_v13, %v2505_v7  ;;  %v8708_v43 = vpop.f32.mrb[64].mxu0  ;;  %v2535_v11 = vshrl.u32 %v12802_v35, 16  ;;  %v2538_v17 = vshll.u32 %v12802_v35, 16  ;;  %v12857_v46 = vld [vmem:[%s10645_s13 + $0x11c] sm:$0x1] }
 0x184   : > { %15032 = vst [vmem:[#allocation114_spill] sm:$0xff] %v12829_v49  ;;  %15033 = vst [vmem:[#allocation115_spill] sm:$0xff] %v12831_v28  ;;  %v8820_v1 = vpop.f32.mrb[64].mxu1  ;;  %v2527_v61 = vor.u32 %v12690_v22, %v12682_v37  ;;  %v12840_v20 = vadd.f32 %v8691_v60, %v5077_v21  ;;  %v12844_v44 = vcombine.low %v12614_v26, %v12627_v10  ;;  %v8709_v37 = vpop.f32.mrb[65].mxu0  ;;  %v12852_v59 = vrot.slane %v2513_v18, 4 }
 0x185   : > { %15034 = vst [vmem:[#allocation116_spill] sm:$0xff] %v12833_v38  ;;  %15035 = vst [vmem:[#allocation117_spill] sm:$0xff] %v12835_v14  ;;  %v8821_v56 = vpop.f32.mrb[65].mxu1  ;;  %v2549_v60 = vshrl.u32 %v12815_v25, 16  ;;  %v2552_v51 = vshll.u32 %v12815_v25, 16  ;;  %v8710_v26 = vadd.f32 %v8709_v37, %v8708_v43  ;;  %v8711_v10 = vpop.f32.mrb[66].mxu0 }
 0x186   : > { %15036 = vst [vmem:[#allocation118_spill] sm:$0xff] %v12844_v44  ;;  %v8822_v22 = vadd.f32 %v8821_v56, %v8820_v1  ;;  %v8823_v40 = vpop.f32.mrb[66].mxu1  ;;  %v15037_v36 = vrot.slane %v12697_v54, 5  ;;  %v15038_v41 = vrot.slane %v12685_v58, 9  ;;  %v15039_v39 = vrot.slane %v12718_v62, 5  ;;  %v8712_v1 = vpop.f32.mrb[67].mxu0 }
 0x187   : > { %v8824_v48 = vpop.f32.mrb[67].mxu1  ;;  %v15040_v13 = vrot.slane %v12721_v16, 9  ;;  %v15041_v18 = vrot.slane %v12622_v52, 5  ;;  %v15042_v21 = vrot.slane %v12724_v57, 9  ;;  %v8104_v58 = vld [vmem:[%s10645_s13 + $0x118] sm:$0xe]  ;;  %v5276_v16 = vadd.f32 %v8710_v26, %v12090_v63 }
 0x188   : > { %v2625_v6 = vsel %vm10670_vm4, %v15038_v41, %v15037_v36  ;;  %v8825_v43 = vadd.f32 %v8824_v48, %v8823_v40  ;;  %v12880_v56 = vrot.slane %v2516_v3, 5  ;;  %v12882_v37 = vrot.slane %v2527_v61, 4  ;;  %v15043_v41 = vld [vmem:[#allocation69_spill] sm:$0xff]  ;;  %v8147_v4 = vld [vmem:[%s10645_s13 + $0x100] sm:$0xf] }
 0x189   : > { %v2629_v7 = vsel %vm10670_vm4, %v15040_v13, %v15039_v39  ;;  %v12877_v54 = vsel %vm10670_vm4, %v15042_v21, %v15041_v18  ;;  %v12884_v62 = vrot.slane %v2530_v19, 5  ;;  %v8713_v36 = vadd.f32 %v8712_v1, %v8711_v10  ;;  %v12889_v39 = vld [vmem:[%s10645_s13 + $0xd0] sm:$0xe]  ;;  %v12892_v13 = vld [vmem:[%s10645_s13 + $0xd8] sm:$0xe] }
 0x18a   : > { %5845 = vmatmul.mubr.bf16.gmra.mrb[172].mxu1 %v15043_v41  ;;  %v2537_v52 = vrot.slane %v2535_v11, 4  ;;  %v2540_v57 = vrot.slane %v2538_v17, 5  ;;  %5684 = vmatmul.mubr.bf16.gmra.mrb[172].mxu0 %v12819_v45  ;;  %v2551_v3 = vrot.slane %v2549_v60, 4  ;;  %v2554_v61 = vrot.slane %v2552_v51, 5  ;;  %v12922_v18 = vld [vmem:[%s10645_s13 + $0xd4] sm:$0x1] }
 0x18b   : > { %5852 = vmatprep.mubr.bf16.mxu1 %v12831_v28  ;;  %v8111_v40 = vrot.slane %v8103_v29, 9  ;;  %v2632_v19 = vrot.slane %v12849_v2, 5  ;;  %v5279_v63 = vadd.f32 %v8713_v36, %v12098_v34  ;;  %v12898_v26 = vadd.f32 %v8822_v22, %v5276_v16  ;;  %5691 = vmatprep.mubr.bf16.mxu0 %v12829_v49  ;;  %v12926_v1 = vld [vmem:[%s10645_s13 + $0x120] sm:$0xf]  ;;  %v12933_v36 = vld [vmem:[%s10645_s13 + $0x128] sm:$0xf] }
 0x18c   : > { %v8112_v11 = vrot.slane %v8104_v58, 9  ;;  %v2636_v17 = vrot.slane %v12857_v46, 5  ;;  %v8826_v10 = vpop.f32.mrb[68].mxu1  ;;  %v12902_v48 = vcombine.low %v2625_v6, %v2629_v7  ;;  %v15045_v60 = vrot.slane %v12759_v12, 5  ;;  %v8714_v7 = vpop.f32.mrb[68].mxu0 }
 0x18d   : > { %v15046_v29 = vrot.slane %v12727_v31, 9  ;;  %v2519_v34 = vsel %vm10679_vm5, %v12852_v59, %v12880_v56  ;;  %v2533_v22 = vsel %vm10679_vm5, %v12882_v37, %v12884_v62  ;;  %v12918_v6 = vadd.f32 %v8825_v43, %v5279_v63  ;;  %v8827_v12 = vpop.f32.mrb[69].mxu1  ;;  %v8715_v59 = vpop.f32.mrb[69].mxu0 }
 0x18e   : > { %15044 = vst [vmem:[#allocation119_spill] sm:$0xff] %v12902_v48  ;;  %v2541_v58 = vor.u32 %v2540_v57, %v2537_v52  ;;  %v8828_v56 = vadd.f32 %v8827_v12, %v8826_v10  ;;  %v8829_v16 = vpop.f32.mrb[70].mxu1  ;;  %v2633_v37 = vsel %vm10670_vm4, %v8111_v40, %v2632_v19  ;;  %v8044_v43 = vrot.slane %v12892_v13, 9  ;;  %v10440_v57 = vld [vmem:[%s10645_s13 + $0xdc] sm:$0x1] }
 0x18f   : > { %v2276_v51 = vsel %vm10670_vm4, %v15046_v29, %v15045_v60  ;;  %v2544_v62 = vshll.u32 %v12849_v2, 16  ;;  %v8716_v63 = vadd.f32 %v8715_v59, %v8714_v7  ;;  %v8717_v60 = vpop.f32.mrb[70].mxu0  ;;  %v8830_v29 = vpop.f32.mrb[71].mxu1  ;;  %v2637_v52 = vsel %vm10670_vm4, %v8112_v11, %v2636_v17  ;;  %v8105_v59 = vld [vmem:[%s10645_s13 + $0x120] sm:$0xe] }
 0x190   : > { %v2283_v31 = vrot.slane %v10440_v57, 5  ;;  %v2555_v10 = vor.u32 %v2554_v61, %v2551_v3  ;;  %v8718_v12 = vpop.f32.mrb[71].mxu0  ;;  %v8831_v21 = vadd.f32 %v8830_v29, %v8829_v16  ;;  %v2558_v40 = vshll.u32 %v12857_v46, 16  ;;  %v12945_v3 = vld [vmem:[%s10645_s13 + $0x124] sm:$0x1] }
 0x191   : > { %v2563_v13 = vshrl.u32 %v12926_v1, 16  ;;  %v2566_v2 = vshll.u32 %v12926_v1, 16  ;;  %v5284_v19 = vadd.f32 %v8716_v63, %v12143_v53  ;;  %v8719_v7 = vadd.f32 %v8718_v12, %v8717_v60  ;;  %v8098_v29 = vld [vmem:[%s10645_s13 + $0x12c] sm:$0x1]  ;;  %v8106_v57 = vld [vmem:[%s10645_s13 + $0x128] sm:$0xe] }
 0x192   : > { %5853 = vmatmul.mubr.bf16.gmra.mrb[176].mxu1 %v12835_v14  ;;  %v2542_v11 = vrot.slane %v2541_v58, 4  ;;  %v2577_v17 = vshrl.u32 %v12933_v36, 16  ;;  %5692 = vmatmul.mubr.bf16.gmra.mrb[176].mxu0 %v12833_v38  ;;  %v12950_v46 = vcombine.low %v12877_v54, %v2276_v51  ;;  %v2546_v61 = vrot.slane %v2544_v62, 5 }
 0x193   : > { %5860 = vmatprep.mubr.bf16.mxu1 %v12902_v48  ;;  %v2580_v53 = vshll.u32 %v12933_v36, 16  ;;  %v5287_v16 = vadd.f32 %v8719_v7, %v12161_v23  ;;  %v12955_v63 = vadd.f32 %v8828_v56, %v5284_v19  ;;  %5699 = vmatprep.mubr.bf16.mxu0 %v12844_v44  ;;  %v12958_v58 = vcombine.low %v2519_v34, %v2533_v22  ;;  %v8720_v32 = vpop.f32.mrb[72].mxu0 }
 0x194   : > { %15047 = vst [vmem:[#allocation120_spill] sm:$0xff] %v12950_v46  ;;  %v12960_v60 = vcombine.low %v2633_v37, %v2637_v52  ;;  %v8832_v12 = vpop.f32.mrb[72].mxu1  ;;  %v2556_v48 = vrot.slane %v2555_v10, 4  ;;  %v2560_v54 = vrot.slane %v2558_v40, 5  ;;  %v2565_v51 = vrot.slane %v2563_v13, 4  ;;  %v8721_v7 = vpop.f32.mrb[73].mxu0 }
 0x195   : > { %15048 = vst [vmem:[#allocation121_spill] sm:$0xff] %v12958_v58  ;;  %v2568_v62 = vrot.slane %v2566_v2, 5  ;;  %v12964_v28 = vadd.f32 %v8831_v21, %v5287_v16  ;;  %v8833_v49 = vpop.f32.mrb[73].mxu1  ;;  %v2579_v23 = vrot.slane %v2577_v17, 4  ;;  %v8113_v56 = vrot.slane %v8105_v59, 9  ;;  %v8723_v14 = vpop.f32.mrb[74].mxu0 }
 0x196   : > { %15049 = vst [vmem:[#allocation122_spill] sm:$0xff] %v12960_v60  ;;  %v2640_v19 = vrot.slane %v12945_v3, 5  ;;  %v8834_v34 = vadd.f32 %v8833_v49, %v8832_v12  ;;  %v8835_v22 = vpop.f32.mrb[74].mxu1  ;;  %v2582_v37 = vrot.slane %v2580_v53, 5  ;;  %v8114_v52 = vrot.slane %v8106_v57, 9  ;;  %v8724_v49 = vpop.f32.mrb[75].mxu0 }
 0x197   : > { %v2644_v44 = vrot.slane %v8098_v29, 5  ;;  %v8722_v38 = vadd.f32 %v8721_v7, %v8720_v32  ;;  %v8836_v10 = vpop.f32.mrb[75].mxu1  ;;  %v12969_v21 = vcombine.low %v12802_v35, %v12815_v25  ;;  %v15051_v40 = vrot.slane %v12922_v18, 5 }
 0x198   : > { %v15052_v13 = vrot.slane %v12889_v39, 9  ;;  %v8837_v17 = vadd.f32 %v8836_v10, %v8835_v22  ;;  %v2284_v53 = vsel %vm10670_vm4, %v8044_v43, %v2283_v31  ;;  %v2547_v32 = vsel %vm10679_vm5, %v2542_v11, %v2546_v61  ;;  %v8037_v43 = vld [vmem:[%s10645_s13 + $0xe0] sm:$0xe] }
 0x199   : > { %15050 = vst [vmem:[#allocation123_spill] sm:$0xff] %v12969_v21  ;;  %v2561_v59 = vsel %vm10679_vm5, %v2556_v48, %v2560_v54  ;;  %v5292_v35 = vadd.f32 %v8722_v38, %v12183_v27  ;;  %v8725_v25 = vadd.f32 %v8724_v49, %v8723_v14  ;;  %v2641_v39 = vsel %vm10670_vm4, %v8113_v56, %v2640_v19 }
 0x19a   : > { %v2280_v2 = vsel %vm10670_vm4, %v15052_v13, %v15051_v40  ;;  %5861 = vmatmul.mubr.bf16.gmra.mrb[180].mxu1 %v12958_v58  ;;  %v2569_v18 = vor.u32 %v2568_v62, %v2565_v51  ;;  %5700 = vmatmul.mubr.bf16.gmra.mrb[180].mxu0 %v12950_v46  ;;  %v2645_v31 = vsel %vm10670_vm4, %v8114_v52, %v2644_v44  ;;  %v2572_v48 = vshll.u32 %v12945_v3, 16  ;;  %v8038_v44 = vld [vmem:[%s10645_s13 + $0xe8] sm:$0xe]  ;;  %v10441_v52 = vld [vmem:[%s10645_s13 + $0xe4] sm:$0x1] }
 0x19b   : > { %5868 = vmatprep.mubr.bf16.mxu1 %v12960_v60  ;;  %v2583_v11 = vor.u32 %v2582_v37, %v2579_v23  ;;  %v2586_v27 = vshll.u32 %v8098_v29, 16  ;;  %v5295_v38 = vadd.f32 %v8725_v25, %v12191_v50  ;;  %v12994_v14 = vadd.f32 %v8834_v34, %v5292_v35  ;;  %5707 = vmatprep.mubr.bf16.mxu0 %v12969_v21  ;;  %v8726_v29 = vpop.f32.mrb[76].mxu0  ;;  %v10442_v13 = vld [vmem:[%s10645_s13 + $0xec] sm:$0x1]  ;;  %v15096_v60 = vld [vmem:[#allocation86_spill] sm:$0xff] }
 0x19c   : > { %v8838_v61 = vpop.f32.mrb[76].mxu1  ;;  %v12997_v16 = vcombine.low %v2280_v2, %v2284_v53  ;;  %v12999_v57 = vcombine.low %v2547_v32, %v2561_v59  ;;  %v13003_v12 = vcombine.low %v12926_v1, %v12933_v36  ;;  %v13008_v50 = vcombine.low %v2641_v39, %v2645_v31  ;;  %v8727_v23 = vpop.f32.mrb[77].mxu0  ;;  %v15057_v53 = vld [vmem:[#allocation97_spill] sm:$0xff]  ;;  %v15058_v39 = vld [vmem:[#allocation98_spill] sm:$0xff]  ;;  %v15113_v58 = vld [vmem:[#allocation27_spill] sm:$0xff] }
 0x19d   : > { %v13006_v3 = vadd.f32 %v8837_v17, %v5295_v38  ;;  %v8839_v54 = vpop.f32.mrb[77].mxu1  ;;  %v8045_v51 = vrot.slane %v8037_v43, 9  ;;  %v2570_v62 = vrot.slane %v2569_v18, 4  ;;  %v2574_v7 = vrot.slane %v2572_v48, 5  ;;  %v8729_v1 = vpop.f32.mrb[78].mxu0  ;;  %v15112_v21 = vld [vmem:[#allocation94_spill] sm:$0xff] }
 0x19e   : > { %15053 = vst [vmem:[#allocation124_spill] sm:$0xff] %v12997_v16  ;;  %15054 = vst [vmem:[#allocation125_spill] sm:$0xff] %v12999_v57  ;;  %v8840_v56 = vadd.f32 %v8839_v54, %v8838_v61  ;;  %v8841_v19 = vpop.f32.mrb[78].mxu1  ;;  %v2584_v34 = vrot.slane %v2583_v11, 4  ;;  %v2588_v22 = vrot.slane %v2586_v27, 5  ;;  %v8728_v37 = vadd.f32 %v8727_v23, %v8726_v29  ;;  %v8730_v49 = vpop.f32.mrb[79].mxu0 }
 0x19f   : > { %15055 = vst [vmem:[#allocation126_spill] sm:$0xff] %v13003_v12  ;;  %15056 = vst [vmem:[#allocation127_spill] sm:$0xff] %v13008_v50  ;;  %v8842_v36 = vpop.f32.mrb[79].mxu1  ;;  %v2287_v10 = vrot.slane %v10441_v52, 5  ;;  %v8046_v40 = vrot.slane %v8038_v44, 9  ;;  %v2291_v2 = vrot.slane %v10442_v13, 5  ;;  %v8731_v59 = vadd.f32 %v8730_v49, %v8729_v1 }
 0x1a0   : > { %v8843_v17 = vadd.f32 %v8842_v36, %v8841_v19  ;;  %v5300_v32 = vadd.f32 %v8728_v37, %v15057_v53  ;;  %v2575_v35 = vsel %vm10679_vm5, %v2570_v62, %v2574_v7  ;;  %v2589_v25 = vsel %vm10679_vm5, %v2584_v34, %v2588_v22  ;;  %v15061_v22 = vld [vmem:[#allocation100_spill] sm:$0xff]  ;;  %v15062_v36 = vld [vmem:[#allocation46_spill] sm:$0xff]  ;;  %v15063_v52 = vld [vmem:[#allocation101_spill] sm:$0xff] }
 0x1a1   : > { %v5303_v18 = vadd.f32 %v8731_v59, %v15058_v39  ;;  %v2288_v43 = vsel %vm10670_vm4, %v8045_v51, %v2287_v10  ;;  %v2292_v48 = vsel %vm10670_vm4, %v8046_v40, %v2291_v2  ;;  %v13030_v44 = vcombine.low %v2575_v35, %v2589_v25  ;;  %v15064_v13 = vld [vmem:[#allocation73_spill] sm:$0xff]  ;;  %v10307_v25 = vld [vmem:[%s14513_s1 + $0x400] sm:$0xff]  }
 0x1a2   : > { %5869 = vmatmul.mubr.bf16.gmra.mrb[184].mxu1 %v12999_v57  ;;  %5708 = vmatmul.mubr.bf16.gmra.mrb[184].mxu0 %v12997_v16  ;;  %v13021_v31 = vadd.f32 %v8840_v56, %v5300_v32  ;;  %v13032_v23 = vcombine.low %v2288_v43, %v2292_v48  ;;  %v10309_v39 = vld [vmem:[%s14513_s1 + $0x480] sm:$0xff]   ;;  %v13213_v16 = vld [vmem:[%s10645_s13 + $0xfc] sm:$0x1] }
 0x1a3   : > { %5876 = vmatprep.mubr.bf16.mxu1 %v13008_v50  ;;  %5715 = vmatprep.mubr.bf16.mxu0 %v13003_v12  ;;  %v13028_v27 = vadd.f32 %v8843_v17, %v5303_v18  ;;  %v8732_v38 = vpop.f32.mrb[80].mxu0  ;;  %15059 = vst [vmem:[#allocation97_spill] sm:$0xff] %v13030_v44 }
 0x1a4   : > { %v8844_v11 = vpop.f32.mrb[80].mxu1  ;;  %v8733_v29 = vpop.f32.mrb[81].mxu0  ;;  %15060 = vst [vmem:[#allocation98_spill] sm:$0xff] %v13032_v23 }
 0x1a5   : > { %v8845_v61 = vpop.f32.mrb[81].mxu1  ;;  %v8734_v56 = vadd.f32 %v8733_v29, %v8732_v38  ;;  %v8735_v19 = vpop.f32.mrb[82].mxu0  ;;  %v15065_v29 = vld [vmem:[#allocation5_spill] sm:$0xff] }
 0x1a6   : > { %v8846_v54 = vadd.f32 %v8845_v61, %v8844_v11  ;;  %v8847_v62 = vpop.f32.mrb[82].mxu1  ;;  %v8736_v34 = vpop.f32.mrb[83].mxu0  ;;  %v10310_v61 = vld [vmem:[%s14513_s1 + $0x448] sm:$0xff]  }
 0x1a7   : > { %v8848_v7 = vpop.f32.mrb[83].mxu1  ;;  %v5308_v37 = vadd.f32 %v8734_v56, %v15061_v22  ;;  %v8737_v1 = vadd.f32 %v8736_v34, %v8735_v19  ;;  %v15066_v56 = vld [vmem:[#allocation72_spill] sm:$0xff]  ;;  %v10312_v19 = vld [vmem:[%s14513_s1 + $0x4c8] sm:$0xff]  }
 0x1a8   : > { %v8849_v51 = vadd.f32 %v8848_v7, %v8847_v62  ;;  %v15067_v7 = vld [vmem:[#allocation3_spill] sm:$0xff] }
 0x1a9   : > { %v5311_v10 = vadd.f32 %v8737_v1, %v15063_v52  ;;  %v13039_v40 = vadd.f32 %v8846_v54, %v5308_v37  ;;  %v10313_v34 = vld [vmem:[%s14513_s1 + $0x488] sm:$0xff]   ;;  %v10316_v52 = vld [vmem:[%s14513_s1 + $0x4d0] sm:$0xff]  }
 0x1aa   : > { %5877 = vmatmul.mubr.bf16.gmra.mrb[188].mxu1 %v13030_v44  ;;  %5716 = vmatmul.mubr.bf16.gmra.mrb[188].mxu0 %v13032_v23  ;;  %v15069_v1 = vld [vmem:[#allocation75_spill] sm:$0xff] }
 0x1ab   : > { %6078 = vmatprep.mubr.bf16.mxu1 %v15062_v36  ;;  %5917 = vmatprep.mubr.bf16.mxu0 %v15064_v13  ;;  %v13042_v49 = vadd.f32 %v8849_v51, %v5311_v10  ;;  %v8738_v17 = vpop.f32.mrb[84].mxu0  ;;  %v15068_v51 = vld [vmem:[#allocation2_spill] sm:$0xff]  ;;  %v10311_v36 = vld [vmem:[%s14513_s1 + $0x408] sm:$0xff]   ;;  %v15070_v13 = vld [vmem:[#allocation77_spill] sm:$0xff] }
 0x1ac   : > { %v8850_v2 = vpop.f32.mrb[84].mxu1  ;;  %v8739_v32 = vpop.f32.mrb[85].mxu0 }
 0x1ad   : > { %v8851_v53 = vpop.f32.mrb[85].mxu1  ;;  %v8740_v18 = vadd.f32 %v8739_v32, %v8738_v17  ;;  %v8741_v43 = vpop.f32.mrb[86].mxu0 }
 0x1ae   : > { %v8852_v59 = vadd.f32 %v8851_v53, %v8850_v2  ;;  %v8853_v35 = vpop.f32.mrb[86].mxu1  ;;  %v8742_v11 = vpop.f32.mrb[87].mxu0  ;;  %v10314_v2 = vld [vmem:[%s14513_s1 + $0x450] sm:$0xff]  }
 0x1af   : > { %v8854_v48 = vpop.f32.mrb[87].mxu1  ;;  %v5316_v54 = vadd.f32 %v8740_v18, %v15065_v29  ;;  %v8743_v62 = vadd.f32 %v8742_v11, %v8741_v43  ;;  %v10317_v11 = vld [vmem:[%s14513_s1 + $0x490] sm:$0xff]   ;;  %v10318_v29 = vld [vmem:[%s14513_s1 + $0x458] sm:$0xff]  }
 0x1b0   : > { %v8855_v38 = vadd.f32 %v8854_v48, %v8853_v35  ;;  %v10315_v48 = vld [vmem:[%s14513_s1 + $0x410] sm:$0xff]  }
 0x1b1   : > { %v5319_v22 = vadd.f32 %v8743_v62, %v15068_v51  ;;  %v13063_v37 = vadd.f32 %v8852_v59, %v5316_v54  ;;  %v15071_v54 = vld [vmem:[#allocation4_spill] sm:$0xff] }
 0x1b2   : > { %6079 = vmatmul.mubr.bf16.vlgmr.msra.gmra.mrb[192].mxu1 %v15066_v56  ;;  %5918 = vmatmul.mubr.bf16.vlgmr.msra.gmra.mrb[192].mxu0 %v15067_v7  ;;  %v10320_v7 = vld [vmem:[%s14513_s1 + $0x4d8] sm:$0xff]   ;;  %v15074_v51 = vld [vmem:[#allocation80_spill] sm:$0xff] }
 0x1b3   : > { %9477 = vmatpush3.bf16.msra.mxu1 %v10309_v39  ;;  %9365 = vmatpush3.bf16.msra.mxu0 %v10307_v25  ;;  %v13076_v17 = vadd.f32 %v8855_v38, %v5319_v22  ;;  %v8744_v53 = vpop.f32.mrb[88].mxu0  ;;  %v10319_v22 = vld [vmem:[%s14513_s1 + $0x418] sm:$0xff]  }
 0x1b4   : > { %5925 = vmatprep.mubr.bf16.mxu0 %v15069_v1  ;;  %v8856_v10 = vpop.f32.mrb[88].mxu1  ;;  %6086 = vmatprep.mubr.bf16.mxu1 %v15070_v13  ;;  %v8745_v59 = vpop.f32.mrb[89].mxu0  ;;  %v15075_v1 = vld [vmem:[#allocation8_spill] sm:$0xff]  ;;  %v10321_v13 = vld [vmem:[%s14513_s1 + $0x498] sm:$0xff]  }
 0x1b5   : > { %9366 = vmatprep.subr.bf16.mxu0 %v10310_v61  ;;  %v8857_v32 = vpop.f32.mrb[89].mxu1  ;;  %9478 = vmatprep.subr.bf16.mxu1 %v10312_v19  ;;  %v8746_v39 = vadd.f32 %v8745_v59, %v8744_v53  ;;  %v8747_v18 = vpop.f32.mrb[90].mxu0  ;;  %v15072_v19 = vld [vmem:[#allocation76_spill] sm:$0xff]  ;;  %v10322_v53 = vld [vmem:[%s14513_s1 + $0x460] sm:$0xff]  }
 0x1b6   : > { %v8858_v35 = vadd.f32 %v8857_v32, %v8856_v10  ;;  %v8859_v25 = vpop.f32.mrb[90].mxu1  ;;  %v8748_v38 = vpop.f32.mrb[91].mxu0  ;;  %v15077_v10 = vld [vmem:[#allocation81_spill] sm:$0xff]  ;;  %v10324_v32 = vld [vmem:[%s14513_s1 + $0x4e0] sm:$0xff]  }
 0x1b7   : > { %9479 = vmatpush3.bf16.msra.mxu1 %v10313_v34  ;;  %v8860_v43 = vpop.f32.mrb[91].mxu1  ;;  %9367 = vmatpush3.bf16.msra.mxu0 %v10311_v36  ;;  %v5324_v62 = vadd.f32 %v8746_v39, %v15071_v54  ;;  %v8749_v56 = vadd.f32 %v8748_v38, %v8747_v18  ;;  %v15073_v34 = vld [vmem:[#allocation6_spill] sm:$0xff]  ;;  %v10326_v38 = vld [vmem:[%s14513_s1 + $0x468] sm:$0xff]  }
 0x1b8   : > { %9480 = vmatprep.subr.bf16.mxu1 %v10316_v52  ;;  %v8861_v61 = vadd.f32 %v8860_v43, %v8859_v25  ;;  %9368 = vmatprep.subr.bf16.mxu0 %v10314_v2  ;;  %v10323_v39 = vld [vmem:[%s14513_s1 + $0x420] sm:$0xff]  }
 0x1b9   : > { %v5327_v36 = vadd.f32 %v8749_v56, %v15075_v1  ;;  %v13098_v52 = vadd.f32 %v8858_v35, %v5324_v62  ;;  %v15080_v1 = vld [vmem:[#allocation78_spill] sm:$0xff] }
 0x1ba   : > { %6087 = vmatmul.mubr.bf16.gmra.mrb[196].mxu1 %v15072_v19  ;;  %5926 = vmatmul.mubr.bf16.gmra.mrb[196].mxu0 %v15073_v34  ;;  %v10328_v19 = vld [vmem:[%s14513_s1 + $0x4e8] sm:$0xff]  }
 0x1bb   : > { %6094 = vmatprep.mubr.bf16.mxu1 %v15074_v51  ;;  %15076 = vst [vmem:[#allocation100_spill] sm:$0xff] %v13098_v52  ;;  %5933 = vmatprep.mubr.bf16.mxu0 %v15077_v10  ;;  %v13110_v59 = vadd.f32 %v8861_v61, %v5327_v36  ;;  %v8750_v35 = vpop.f32.mrb[92].mxu0  ;;  %v10327_v36 = vld [vmem:[%s14513_s1 + $0x428] sm:$0xff]   ;;  %v15081_v10 = vld [vmem:[#allocation10_spill] sm:$0xff] }
 0x1bc   : > { %9369 = vmatpush3.bf16.msra.mxu0 %v10315_v48  ;;  %v8862_v2 = vpop.f32.mrb[92].mxu1  ;;  %9481 = vmatpush3.bf16.msra.mxu1 %v10317_v11  ;;  %v8751_v18 = vpop.f32.mrb[93].mxu0  ;;  %v10325_v11 = vld [vmem:[%s14513_s1 + $0x4a0] sm:$0xff]   ;;  %v15141_v52 = vld [vmem:[#allocation63_spill] sm:$0xff] }
 0x1bd   : > { %9370 = vmatprep.subr.bf16.mxu0 %v10318_v29  ;;  %15078 = vst [vmem:[#allocation46_spill] sm:$0xff] %v13110_v59  ;;  %v8863_v25 = vpop.f32.mrb[93].mxu1  ;;  %9482 = vmatprep.subr.bf16.mxu1 %v10320_v7  ;;  %v8752_v61 = vadd.f32 %v8751_v18, %v8750_v35  ;;  %v8753_v29 = vpop.f32.mrb[94].mxu0  ;;  %v15079_v7 = vld [vmem:[#allocation9_spill] sm:$0xff]  ;;  %v15085_v35 = vld [vmem:[#allocation84_spill] sm:$0xff] }
 0x1be   : > { %v8864_v43 = vadd.f32 %v8863_v25, %v8862_v2  ;;  %v8865_v48 = vpop.f32.mrb[94].mxu1  ;;  %v8754_v62 = vpop.f32.mrb[95].mxu0  ;;  %v10329_v25 = vld [vmem:[%s14513_s1 + $0x4a8] sm:$0xff]  }
 0x1bf   : > { %v8866_v54 = vpop.f32.mrb[95].mxu1  ;;  %v5332_v34 = vadd.f32 %v8752_v61, %v15079_v7  ;;  %v8755_v51 = vadd.f32 %v8754_v62, %v8753_v29 }
 0x1c0   : > { %9371 = vmatpush3.bf16.msra.mxu0 %v10319_v22  ;;  %v8867_v56 = vadd.f32 %v8866_v54, %v8865_v48  ;;  %9483 = vmatpush3.bf16.msra.mxu1 %v10321_v13  ;;  %v15082_v22 = vld [vmem:[#allocation85_spill] sm:$0xff]  ;;  %v15083_v13 = vld [vmem:[#allocation7_spill] sm:$0xff]  ;;  %v10334_v48 = vld [vmem:[%s14513_s1 + $0x4f0] sm:$0xff]  }
 0x1c1   : > { %9372 = vmatprep.subr.bf16.mxu0 %v10322_v53  ;;  %9484 = vmatprep.subr.bf16.mxu1 %v10324_v32  ;;  %v5335_v2 = vadd.f32 %v8755_v51, %v15083_v13  ;;  %v13132_v53 = vadd.f32 %v8864_v43, %v5332_v34  ;;  %v10332_v32 = vld [vmem:[%s14513_s1 + $0x470] sm:$0xff]  }
 0x1c2   : > { %6095 = vmatmul.mubr.bf16.gmra.mrb[200].mxu1 %v15080_v1  ;;  %5934 = vmatmul.mubr.bf16.gmra.mrb[200].mxu0 %v15081_v10  ;;  %v10342_v10 = vld [vmem:[%s14513_s1 + $0x4f8] sm:$0xff]  }
 0x1c3   : > { %6102 = vmatprep.mubr.bf16.mxu1 %v15082_v22  ;;  %15084 = vst [vmem:[#allocation101_spill] sm:$0xff] %v13132_v53  ;;  %5941 = vmatprep.mubr.bf16.mxu0 %v15085_v35  ;;  %v13144_v43 = vadd.f32 %v8867_v56, %v5335_v2  ;;  %v8756_v61 = vpop.f32.mrb[96].mxu0  ;;  %v10340_v56 = vld [vmem:[%s14513_s1 + $0x478] sm:$0xff]  }
 0x1c4   : > { %9373 = vmatpush3.bf16.msra.mxu0 %v10323_v39  ;;  %v8868_v18 = vpop.f32.mrb[96].mxu1  ;;  %9485 = vmatpush3.bf16.msra.mxu1 %v10325_v11  ;;  %v10333_v39 = vld [vmem:[%s14513_s1 + $0x430] sm:$0xff]   ;;  %v8757_v54 = vpop.f32.mrb[97].mxu0  ;;  %v15087_v22 = vld [vmem:[#allocation13_spill] sm:$0xff] }
 0x1c5   : > { %9374 = vmatprep.subr.bf16.mxu0 %v10326_v38  ;;  %15086 = vst [vmem:[#allocation73_spill] sm:$0xff] %v13144_v43  ;;  %v8869_v29 = vpop.f32.mrb[97].mxu1  ;;  %9486 = vmatprep.subr.bf16.mxu1 %v10328_v19  ;;  %v8758_v34 = vadd.f32 %v8757_v54, %v8756_v61  ;;  %v8759_v51 = vpop.f32.mrb[98].mxu0  ;;  %v10335_v38 = vld [vmem:[%s14513_s1 + $0x4b0] sm:$0xff]   ;;  %v10341_v35 = vld [vmem:[%s14513_s1 + $0x438] sm:$0xff]  }
 0x1c6   : > { %v8870_v62 = vadd.f32 %v8869_v29, %v8868_v18  ;;  %v8871_v7 = vpop.f32.mrb[98].mxu1  ;;  %v8760_v19 = vpop.f32.mrb[99].mxu0  ;;  %v15089_v18 = vld [vmem:[#allocation15_spill] sm:$0xff]  ;;  %v15090_v61 = vld [vmem:[#allocation88_spill] sm:$0xff] }
 0x1c7   : > { %v8872_v11 = vpop.f32.mrb[99].mxu1  ;;  %v5340_v13 = vadd.f32 %v8758_v34, %v15087_v22  ;;  %v8761_v2 = vadd.f32 %v8760_v19, %v8759_v51  ;;  %v15091_v29 = vld [vmem:[#allocation12_spill] sm:$0xff]  ;;  %v10348_v51 = vld [vmem:[%s14513_s1 + $0x5c0] sm:$0xff]  }
 0x1c8   : > { %9375 = vmatpush3.bf16.msra.mxu0 %v10327_v36  ;;  %v8873_v1 = vadd.f32 %v8872_v11, %v8871_v7  ;;  %9487 = vmatpush3.bf16.msra.mxu1 %v10329_v25  ;;  %v15088_v36 = vld [vmem:[#allocation82_spill] sm:$0xff]  ;;  %v10343_v25 = vld [vmem:[%s14513_s1 + $0x4b8] sm:$0xff]  }
 0x1c9   : > { %9376 = vmatprep.subr.bf16.mxu0 %v10332_v32  ;;  %9488 = vmatprep.subr.bf16.mxu1 %v10334_v48  ;;  %v10346_v32 = vld [vmem:[%s14513_s1 + $0x540] sm:$0xff]   ;;  %v5343_v54 = vadd.f32 %v8761_v2, %v15091_v29  ;;  %v13172_v7 = vadd.f32 %v8870_v62, %v5340_v13  ;;  %v15093_v48 = vld [vmem:[#allocation89_spill] sm:$0xff] }
 0x1ca   : > { %6103 = vmatmul.mubr.bf16.gmra.mrb[204].mxu1 %v15088_v36  ;;  %5942 = vmatmul.mubr.bf16.gmra.mrb[204].mxu0 %v15089_v18 }
 0x1cb   : > { %6110 = vmatprep.mubr.bf16.mxu1 %v15090_v61  ;;  %15092 = vst [vmem:[#allocation5_spill] sm:$0xff] %v13172_v7  ;;  %5949 = vmatprep.mubr.bf16.mxu0 %v15093_v48  ;;  %v13178_v11 = vadd.f32 %v8873_v1, %v5343_v54  ;;  %v8762_v19 = vpop.f32.mrb[100].mxu0  ;;  %v15097_v1 = vld [vmem:[#allocation18_spill] sm:$0xff]  ;;  %v15099_v54 = vld [vmem:[#allocation16_spill] sm:$0xff] }
 0x1cc   : > { %9377 = vmatpush3.bf16.msra.mxu0 %v10333_v39  ;;  %v8874_v34 = vpop.f32.mrb[100].mxu1  ;;  %9489 = vmatpush3.bf16.msra.mxu1 %v10335_v38  ;;  %v8763_v36 = vpop.f32.mrb[101].mxu0  ;;  %v15095_v38 = vld [vmem:[#allocation17_spill] sm:$0xff]  ;;  %v13198_v48 = vld [vmem:[%s10645_s13 + $0x100] sm:$0xf] }
 0x1cd   : > { %9378 = vmatprep.subr.bf16.mxu0 %v10340_v56  ;;  %15094 = vst [vmem:[#allocation72_spill] sm:$0xff] %v13178_v11  ;;  %v8875_v22 = vpop.f32.mrb[101].mxu1  ;;  %9490 = vmatprep.subr.bf16.mxu1 %v10342_v10  ;;  %v8764_v62 = vadd.f32 %v8763_v36, %v8762_v19  ;;  %v8765_v13 = vpop.f32.mrb[102].mxu0  ;;  %v15098_v10 = vld [vmem:[#allocation93_spill] sm:$0xff]  ;;  %v15132_v11 = vld [vmem:[#allocation54_spill] sm:$0xff] }
 0x1ce   : > { %v8876_v18 = vadd.f32 %v8875_v22, %v8874_v34  ;;  %v8877_v2 = vpop.f32.mrb[102].mxu1  ;;  %v8766_v39 = vpop.f32.mrb[103].mxu0  ;;  %v15101_v22 = vld [vmem:[#allocation91_spill] sm:$0xff] }
 0x1cf   : > { %v8878_v29 = vpop.f32.mrb[103].mxu1  ;;  %v5348_v56 = vadd.f32 %v8764_v62, %v15095_v38  ;;  %v8767_v50 = vadd.f32 %v8766_v39, %v8765_v13 }
 0x1d0   : > { %9379 = vmatpush3.bf16.msra.mxu0 %v10341_v35  ;;  %v8879_v61 = vadd.f32 %v8878_v29, %v8877_v2  ;;  %9491 = vmatpush3.bf16.msra.mxu1 %v10343_v25 }
 0x1d1   : > { %9588 = vmatprep.subr.bf16.mxu0 %v10346_v32  ;;  %9700 = vmatprep.subr.bf16.mxu1 %v10348_v51  ;;  %v5351_v34 = vadd.f32 %v8767_v50, %v15099_v54  ;;  %v13185_v19 = vadd.f32 %v8876_v18, %v5348_v56  ;;  %v15103_v50 = vld [vmem:[#allocation102_spill] sm:$0xff] }
 0x1d2   : > { %6111 = vmatmul.mubr.bf16.gmra.mrb[208].mxu1 %v15096_v60  ;;  %5950 = vmatmul.mubr.bf16.gmra.mrb[208].mxu0 %v15097_v1  ;;  %v15104_v54 = vld [vmem:[#allocation90_spill] sm:$0xff] }
 0x1d3   : > { %6118 = vmatprep.mubr.bf16.mxu1 %v15098_v10  ;;  %15100 = vst [vmem:[#allocation3_spill] sm:$0xff] %v13185_v19  ;;  %5957 = vmatprep.mubr.bf16.mxu0 %v15101_v22  ;;  %v13188_v25 = vadd.f32 %v8879_v61, %v5351_v34  ;;  %v8768_v32 = vpop.f32.mrb[104].mxu0  ;;  %v13193_v22 = vld [vmem:[%s10645_s13 + $0xf8] sm:$0xf]  ;;  %v15105_v61 = vld [vmem:[#allocation22_spill] sm:$0xff]  ;;  %v15106_v34 = vld [vmem:[#allocation95_spill] sm:$0xff] }
 0x1d4   : > { %v8880_v35 = vpop.f32.mrb[104].mxu1  ;;  %v8769_v2 = vpop.f32.mrb[105].mxu0 }
 0x1d5   : > { %15102 = vst [vmem:[#allocation2_spill] sm:$0xff] %v13188_v25  ;;  %v8881_v36 = vpop.f32.mrb[105].mxu1  ;;  %v8770_v13 = vadd.f32 %v8769_v2, %v8768_v32  ;;  %v8771_v29 = vpop.f32.mrb[106].mxu0  ;;  %v15109_v2 = vld [vmem:[#allocation96_spill] sm:$0xff] }
 0x1d6   : > { %v8882_v62 = vadd.f32 %v8881_v36, %v8880_v35  ;;  %v8883_v51 = vpop.f32.mrb[106].mxu1  ;;  %v8772_v38 = vpop.f32.mrb[107].mxu0  ;;  %v15107_v35 = vld [vmem:[#allocation103_spill] sm:$0xff] }
 0x1d7   : > { %v8884_v39 = vpop.f32.mrb[107].mxu1  ;;  %v5356_v18 = vadd.f32 %v8770_v13, %v15103_v50  ;;  %v8773_v56 = vadd.f32 %v8772_v38, %v8771_v29  ;;  %v2664_v13 = vshrl.u32 %v13193_v22, 16  ;;  %v2667_v29 = vshll.u32 %v13193_v22, 16 }
 0x1d8   : > { %v8885_v10 = vadd.f32 %v8884_v39, %v8883_v51 }
 0x1d9   : > { %v5359_v36 = vadd.f32 %v8773_v56, %v15107_v35  ;;  %v13201_v32 = vadd.f32 %v8882_v62, %v5356_v18  ;;  %v2666_v12 = vrot.slane %v2664_v13, 4  ;;  %v2669_v23 = vrot.slane %v2667_v29, 5  ;;  %v15117_v13 = vld [vmem:[#allocation35_spill] sm:$0xff] }
 0x1da   : > { %6119 = vmatmul.mubr.bf16.gmra.mrb[212].mxu1 %v15104_v54  ;;  %5958 = vmatmul.mubr.bf16.gmra.mrb[212].mxu0 %v15105_v61  ;;  %v2681_v54 = vshll.u32 %v13198_v48, 16 }
 0x1db   : > { %6126 = vmatprep.mubr.bf16.mxu1 %v15106_v34  ;;  %15108 = vst [vmem:[#allocation75_spill] sm:$0xff] %v13201_v32  ;;  %5965 = vmatprep.mubr.bf16.mxu0 %v15109_v2  ;;  %v13206_v39 = vadd.f32 %v8885_v10, %v5359_v36  ;;  %v8774_v38 = vpop.f32.mrb[108].mxu0  ;;  %v2678_v34 = vshrl.u32 %v13198_v48, 16  ;;  %v15111_v10 = vld [vmem:[#allocation105_spill] sm:$0xff] }
 0x1dc   : > { %v8886_v51 = vpop.f32.mrb[108].mxu1  ;;  %v8775_v61 = vpop.f32.mrb[109].mxu0  ;;  %v2683_v46 = vrot.slane %v2681_v54, 5 }
 0x1dd   : > { %15110 = vst [vmem:[#allocation77_spill] sm:$0xff] %v13206_v39  ;;  %v8887_v50 = vpop.f32.mrb[109].mxu1  ;;  %v8776_v18 = vadd.f32 %v8775_v61, %v8774_v38  ;;  %v8777_v35 = vpop.f32.mrb[110].mxu0  ;;  %v2680_v57 = vrot.slane %v2678_v34, 4  ;;  %v13218_v61 = vld [vmem:[%s10645_s13 + $0x104] sm:$0x1] }
 0x1de   : > { %v8888_v56 = vadd.f32 %v8887_v50, %v8886_v51  ;;  %v8889_v62 = vpop.f32.mrb[110].mxu1  ;;  %v8778_v1 = vpop.f32.mrb[111].mxu0  ;;  %v15114_v51 = vld [vmem:[#allocation34_spill] sm:$0xff] }
 0x1df   : > { %v8890_v2 = vpop.f32.mrb[111].mxu1  ;;  %v5364_v36 = vadd.f32 %v8776_v18, %v15111_v10  ;;  %v8779_v44 = vadd.f32 %v8778_v1, %v8777_v35  ;;  %v15115_v38 = vld [vmem:[#allocation106_spill] sm:$0xff]  ;;  %v2670_v1 = vor.u32 %v2669_v23, %v2666_v12  ;;  %v2684_v35 = vor.u32 %v2683_v46, %v2680_v57 }
 0x1e0   : > { %v8891_v60 = vadd.f32 %v8890_v2, %v8889_v62  ;;  %v2673_v62 = vshll.u32 %v13213_v16, 16  ;;  %v2687_v10 = vshll.u32 %v13218_v61, 16 }
 0x1e1   : > { %v5367_v50 = vadd.f32 %v8779_v44, %v15115_v38  ;;  %v13221_v2 = vadd.f32 %v8888_v56, %v5364_v36  ;;  %v13228_v23 = vrot.slane %v2670_v1, 4  ;;  %v2849_v1 = vshrl.u32 %v8147_v4, 16 }
 0x1e2   : > { %6127 = vmatmul.mubr.bf16.gmra.mrb[216].mxu1 %v15112_v21  ;;  %5966 = vmatmul.mubr.bf16.gmra.mrb[216].mxu0 %v15113_v58  ;;  %v2675_v21 = vrot.slane %v2673_v62, 5  ;;  %v2852_v62 = vshll.u32 %v8147_v4, 16 }
 0x1e3   : > { %6134 = vmatprep.mubr.bf16.mxu1 %v15114_v51  ;;  %15116 = vst [vmem:[#allocation4_spill] sm:$0xff] %v13221_v2  ;;  %5973 = vmatprep.mubr.bf16.mxu0 %v15117_v13  ;;  %v13225_v18 = vadd.f32 %v8891_v60, %v5367_v50  ;;  %v8780_v54 = vpop.f32.mrb[112].mxu0  ;;  %v13231_v60 = vld [vmem:[%s10645_s13 + $0x108] sm:$0xf]  ;;  %v15119_v50 = vld [vmem:[#allocation33_spill] sm:$0xff] }
 0x1e4   : > { %v8892_v29 = vpop.f32.mrb[112].mxu1  ;;  %v8781_v51 = vpop.f32.mrb[113].mxu0  ;;  %v2695_v41 = vshll.u32 %v13231_v60, 16  ;;  %v2854_v24 = vrot.slane %v2852_v62, 5 }
 0x1e5   : > { %15118 = vst [vmem:[#allocation76_spill] sm:$0xff] %v13225_v18  ;;  %v8893_v34 = vpop.f32.mrb[113].mxu1  ;;  %v8782_v56 = vadd.f32 %v8781_v51, %v8780_v54  ;;  %v8783_v36 = vpop.f32.mrb[114].mxu0  ;;  %v8131_v51 = vld [vmem:[%s10645_s13 + $0xf8] sm:$0xe]  ;;  %v15120_v54 = vld [vmem:[#allocation32_spill] sm:$0xff] }
 0x1e6   : > { %v8894_v58 = vadd.f32 %v8893_v34, %v8892_v29  ;;  %v8895_v44 = vpop.f32.mrb[114].mxu1  ;;  %v8784_v13 = vpop.f32.mrb[115].mxu0  ;;  %v2685_v29 = vrot.slane %v2684_v35, 4  ;;  %v2689_v34 = vrot.slane %v2687_v10, 5  ;;  %v15123_v18 = vld [vmem:[#allocation43_spill] sm:$0xff]  ;;  %v2692_v35 = vshrl.u32 %v13231_v60, 16 }
 0x1e7   : > { %v8896_v38 = vpop.f32.mrb[115].mxu1  ;;  %v5372_v46 = vadd.f32 %v8782_v56, %v12658_v0  ;;  %v8785_v57 = vadd.f32 %v8784_v13, %v8783_v36  ;;  %v8148_v0 = vld [vmem:[%s10645_s13 + $0x108] sm:$0xf]  ;;  %v8132_v13 = vld [vmem:[%s10645_s13 + $0x100] sm:$0xe]  ;;  %v2676_v56 = vsel %vm10679_vm5, %v13228_v23, %v2675_v21 }
 0x1e8   : > { %v8897_v12 = vadd.f32 %v8896_v38, %v8895_v44  ;;  %v15121_v44 = vld [vmem:[#allocation42_spill] sm:$0xff]  ;;  %v2863_v36 = vshrl.u32 %v8148_v0, 16 }
 0x1e9   : > { %v5375_v38 = vadd.f32 %v8785_v57, %v12661_v33  ;;  %v13240_v45 = vadd.f32 %v8894_v58, %v5372_v46  ;;  %v2690_v57 = vsel %vm10679_vm5, %v2685_v29, %v2689_v34 }
 0x1ea   : > { %6135 = vmatmul.mubr.bf16.gmra.mrb[220].mxu1 %v15119_v50  ;;  %5974 = vmatmul.mubr.bf16.gmra.mrb[220].mxu0 %v15120_v54  ;;  %v2801_v54 = vrot.slane %v13213_v16, 5  ;;  %v13251_v50 = vld [vmem:[%s10645_s13 + $0x10c] sm:$0x1]  ;;  %v8140_v16 = vrot.slane %v8132_v13, 9  ;;  %v2865_v47 = vrot.slane %v2863_v36, 4  ;;  %v15126_v13 = vld [vmem:[#allocation41_spill] sm:$0xff] }
 0x1eb   : > { %6142 = vmatprep.mubr.bf16.mxu1 %v15121_v44  ;;  %15122 = vst [vmem:[#allocation6_spill] sm:$0xff] %v13240_v45  ;;  %5981 = vmatprep.mubr.bf16.mxu0 %v15123_v18  ;;  %v8139_v44 = vrot.slane %v8131_v51, 9  ;;  %v13253_v33 = vadd.f32 %v8897_v12, %v5375_v38  ;;  %v8786_v58 = vpop.f32.mrb[116].mxu0  ;;  %v2866_v18 = vshll.u32 %v8148_v0, 16  ;;  %v13258_v45 = vld [vmem:[%s10645_s13 + $0x110] sm:$0xf] }
 0x1ec   : > { %v8898_v10 = vpop.f32.mrb[116].mxu1  ;;  %v8787_v2 = vpop.f32.mrb[117].mxu0  ;;  %v2851_v51 = vrot.slane %v2849_v1, 4  ;;  %v2805_v38 = vrot.slane %v13218_v61, 5  ;;  %v2701_v32 = vshll.u32 %v13251_v50, 16  ;;  %v2706_v25 = vshrl.u32 %v13258_v45, 16 }
 0x1ed   : > { %15124 = vst [vmem:[#allocation80_spill] sm:$0xff] %v13253_v33  ;;  %v8899_v46 = vpop.f32.mrb[117].mxu1  ;;  %v8788_v39 = vadd.f32 %v8787_v2, %v8786_v58  ;;  %v8789_v42 = vpop.f32.mrb[118].mxu0  ;;  %v2694_v33 = vrot.slane %v2692_v35, 4  ;;  %v2868_v2 = vrot.slane %v2866_v18, 5  ;;  %v2697_v58 = vrot.slane %v2695_v41, 5 }
 0x1ee   : > { %v8900_v21 = vadd.f32 %v8899_v46, %v8898_v10  ;;  %v8901_v23 = vpop.f32.mrb[118].mxu1  ;;  %v8790_v29 = vpop.f32.mrb[119].mxu0  ;;  %v2709_v10 = vshll.u32 %v13258_v45, 16  ;;  %v15125_v46 = vld [vmem:[#allocation109_spill] sm:$0xff]  ;;  %v15128_v61 = vld [vmem:[#allocation56_spill] sm:$0xff]  ;;  %v2855_v35 = vor.u32 %v2854_v24, %v2851_v51  ;;  %v15130_v36 = vld [vmem:[#allocation110_spill] sm:$0xff]  ;;  %v2802_v41 = vsel %vm10670_vm4, %v8139_v44, %v2801_v54 }
 0x1ef   : > { %v8902_v12 = vpop.f32.mrb[119].mxu1  ;;  %v5380_v1 = vadd.f32 %v8788_v39, %v15125_v46  ;;  %v8791_v62 = vadd.f32 %v8790_v29, %v8789_v42  ;;  %v13275_v42 = vcombine.low %v2676_v56, %v2690_v57  ;;  %v13280_v39 = vld [vmem:[%s10645_s13 + $0x114] sm:$0x1]  ;;  %v2806_v24 = vsel %vm10670_vm4, %v8140_v16, %v2805_v38  ;;  %v13287_v51 = vld [vmem:[%s10645_s13 + $0x118] sm:$0xf] }
 0x1f0   : > { %v8903_v34 = vadd.f32 %v8902_v12, %v8901_v23  ;;  %v13269_v23 = vcombine.low %v8147_v4, %v8148_v0  ;;  %v13284_v4 = vrot.slane %v2701_v32, 5  ;;  %v2708_v0 = vrot.slane %v2706_v25, 4  ;;  %v13299_v16 = vld [vmem:[%s10645_s13 + $0x118] sm:$0xf] }
 0x1f1   : > { %v5383_v12 = vadd.f32 %v8791_v62, %v15130_v36  ;;  %v13272_v19 = vadd.f32 %v8900_v21, %v5380_v1  ;;  %15133 = vst [vmem:[#allocation9_spill] sm:$0xff] %v13275_v42  ;;  %v2711_v21 = vrot.slane %v2709_v10, 5  ;;  %v2869_v46 = vor.u32 %v2868_v2, %v2865_v47  ;;  %v13296_v1 = vld [vmem:[%s10645_s13 + $0x110] sm:$0xf] }
 0x1f2   : > { %6143 = vmatmul.mubr.bf16.gmra.mrb[224].mxu1 %v15126_v13  ;;  %5982 = vmatmul.mubr.bf16.gmra.mrb[224].mxu0 %v15127_v55  ;;  %15129 = vst [vmem:[#allocation8_spill] sm:$0xff] %v13269_v23  ;;  %v13293_v54 = vcombine.low %v13193_v22, %v13198_v48  ;;  %v2698_v44 = vor.u32 %v2697_v58, %v2694_v33  ;;  %v13301_v10 = vrot.slane %v2855_v35, 4  ;;  %v2877_v62 = vshrl.u32 %v13296_v1, 16  ;;  %v13308_v48 = vld [vmem:[%s10645_s13 + $0x120] sm:$0xf]  ;;  %v15136_v55 = vld [vmem:[#allocation48_spill] sm:$0xff] }
 0x1f3   : > { %6150 = vmatprep.mubr.bf16.mxu1 %v15128_v61  ;;  %15131 = vst [vmem:[#allocation81_spill] sm:$0xff] %v13272_v19  ;;  %5989 = vmatprep.mubr.bf16.mxu0 %v15132_v11  ;;  %v13289_v29 = vadd.f32 %v8903_v34, %v5383_v12  ;;  %v8792_v56 = vpop.f32.mrb[120].mxu0  ;;  %v2715_v34 = vshll.u32 %v13280_v39, 16  ;;  %v13305_v12 = vcombine.low %v2802_v41, %v2806_v24  ;;  %v2720_v22 = vshrl.u32 %v13287_v51, 16  ;;  %v15135_v24 = vld [vmem:[#allocation50_spill] sm:$0xff]  ;;  %v15137_v13 = vld [vmem:[#allocation65_spill] sm:$0xff] }
 0x1f4   : > { %v8904_v18 = vpop.f32.mrb[120].mxu1  ;;  %v8793_v32 = vpop.f32.mrb[121].mxu0  ;;  %v2723_v33 = vshll.u32 %v13287_v51, 16  ;;  %v2712_v35 = vor.u32 %v2711_v21, %v2708_v0  ;;  %v2891_v61 = vshrl.u32 %v13299_v16, 16  ;;  %v2894_v11 = vshll.u32 %v13299_v16, 16 }
 0x1f5   : > { %15134 = vst [vmem:[#allocation78_spill] sm:$0xff] %v13289_v29  ;;  %v8905_v57 = vpop.f32.mrb[121].mxu1  ;;  %v8794_v36 = vadd.f32 %v8793_v32, %v8792_v56  ;;  %v8795_v47 = vpop.f32.mrb[122].mxu0  ;;  %v13316_v32 = vrot.slane %v2869_v46, 4  ;;  %v13321_v0 = vrot.slane %v2698_v44, 4  ;;  %v13323_v21 = vrot.slane %v2715_v34, 5 }
 0x1f6   : > { %v8906_v25 = vadd.f32 %v8905_v57, %v8904_v18  ;;  %v8907_v38 = vpop.f32.mrb[122].mxu1  ;;  %v8796_v58 = vpop.f32.mrb[123].mxu0  ;;  %v2880_v57 = vshll.u32 %v13296_v1, 16  ;;  %v15139_v46 = vld [vmem:[#allocation57_spill] sm:$0xff]  ;;  %v2713_v29 = vrot.slane %v2712_v35, 4  ;;  %v2893_v19 = vrot.slane %v2891_v61, 4 }
 0x1f7   : > { %v8908_v2 = vpop.f32.mrb[123].mxu1  ;;  %v5388_v56 = vadd.f32 %v8794_v36, %v12734_v30  ;;  %v8797_v41 = vadd.f32 %v8796_v58, %v8795_v47  ;;  %v2734_v30 = vshrl.u32 %v13308_v48, 16  ;;  %v8134_v58 = vld [vmem:[%s10645_s13 + $0x110] sm:$0xe]  ;;  %v2813_v35 = vrot.slane %v13280_v39, 5 }
 0x1f8   : > { %v8909_v18 = vadd.f32 %v8908_v2, %v8907_v38  ;;  %v13325_v38 = vrot.slane %v2877_v62, 4  ;;  %v8133_v2 = vld [vmem:[%s10645_s13 + $0x108] sm:$0xe]  ;;  %v2882_v34 = vrot.slane %v2880_v57, 5  ;;  %v2737_v62 = vshll.u32 %v13308_v48, 16 }
 0x1f9   : > { %v5391_v36 = vadd.f32 %v8797_v41, %v12741_v8  ;;  %v13330_v47 = vadd.f32 %v8906_v25, %v5388_v56  ;;  %v2896_v8 = vrot.slane %v2894_v11, 5  ;;  %v8141_v25 = vrot.slane %v8133_v2, 9 }
 0x1fa   : > { %6151 = vmatmul.mubr.bf16.gmra.mrb[228].mxu1 %v15135_v24  ;;  %5990 = vmatmul.mubr.bf16.gmra.mrb[228].mxu0 %v15136_v55  ;;  %v13335_v24 = vld [vmem:[%s10645_s13 + $0x11c] sm:$0x1]  ;;  %v2722_v55 = vrot.slane %v2720_v22, 4  ;;  %v2809_v56 = vrot.slane %v13251_v50, 5  ;;  %v2704_v11 = vsel %vm10679_vm5, %v13321_v0, %v13284_v4  ;;  %v13348_v50 = vld [vmem:[%s10645_s13 + $0x120] sm:$0xf] }
 0x1fb   : > { %6158 = vmatprep.mubr.bf16.mxu1 %v15137_v13  ;;  %15138 = vst [vmem:[#allocation10_spill] sm:$0xff] %v13330_v47  ;;  %5997 = vmatprep.mubr.bf16.mxu0 %v15139_v46  ;;  %v2725_v13 = vrot.slane %v2723_v33, 5  ;;  %v13338_v7 = vadd.f32 %v8909_v18, %v5391_v36  ;;  %v8798_v43 = vpop.f32.mrb[124].mxu0  ;;  %v8142_v33 = vrot.slane %v8134_v58, 9  ;;  %v2729_v61 = vshll.u32 %v13335_v24, 16  ;;  %v15142_v4 = vld [vmem:[#allocation55_spill] sm:$0xff] }
 0x1fc   : > { %v8910_v44 = vpop.f32.mrb[124].mxu1  ;;  %v8799_v41 = vpop.f32.mrb[125].mxu0  ;;  %v2736_v36 = vrot.slane %v2734_v30, 4  ;;  %v13351_v58 = vld [vmem:[%s10645_s13 + $0x124] sm:$0x1]  ;;  %v2739_v39 = vrot.slane %v2737_v62, 5  ;;  %v2897_v30 = vor.u32 %v2896_v8, %v2893_v19  ;;  %v2810_v62 = vsel %vm10670_vm4, %v8141_v25, %v2809_v56 }
 0x1fd   : > { %15140 = vst [vmem:[#allocation85_spill] sm:$0xff] %v13338_v7  ;;  %v8911_v53 = vpop.f32.mrb[125].mxu1  ;;  %v8800_v57 = vadd.f32 %v8799_v41, %v8798_v43  ;;  %v8801_v47 = vpop.f32.mrb[126].mxu0  ;;  %v2726_v2 = vor.u32 %v2725_v13, %v2722_v55  ;;  %v2908_v43 = vshll.u32 %v13348_v50, 16  ;;  %v2718_v55 = vsel %vm10679_vm5, %v2713_v29, %v13323_v21  ;;  %v15143_v0 = vld [vmem:[#allocation99_spill] sm:$0xff] }
 0x1fe   : > { %v8912_v46 = vadd.f32 %v8911_v53, %v8910_v44  ;;  %v8913_v22 = vpop.f32.mrb[126].mxu1  ;;  %v8802_v7 = vpop.f32.mrb[127].mxu0  ;;  %v2905_v44 = vshrl.u32 %v13348_v50, 16  ;;  %v2883_v13 = vor.u32 %v2882_v34, %v13325_v38  ;;  %v15145_v29 = vld [vmem:[#allocation71_spill] sm:$0xff]  ;;  %v2743_v21 = vshll.u32 %v13351_v58, 16 }
 0x1ff   : > { %v8914_v18 = vpop.f32.mrb[127].mxu1  ;;  %v5396_v41 = vadd.f32 %v8800_v57, %v12824_v15  ;;  %v8803_v59 = vadd.f32 %v8802_v7, %v8801_v47  ;;  %v2814_v15 = vsel %vm10670_vm4, %v8142_v33, %v2813_v35  ;;  %v13367_v7 = vrot.slane %v2729_v61, 5  ;;  %v8152_v47 = vld [vmem:[%s10645_s13 + $0x128] sm:$0xf] }
 0x200   : > { %v8915_v53 = vadd.f32 %v8914_v18, %v8913_v22  ;;  %v2919_v38 = vshrl.u32 %v8152_v47, 16  ;;  %v13375_v19 = vrot.slane %v2726_v2, 4  ;;  %v2740_v8 = vor.u32 %v2739_v39, %v2736_v36 }
 0x201   : > { %v5399_v22 = vadd.f32 %v8803_v59, %v12840_v20  ;;  %v13371_v57 = vadd.f32 %v8912_v46, %v5396_v41  ;;  %v13377_v25 = vrot.slane %v2905_v44, 4  ;;  %v13379_v56 = vrot.slane %v2908_v43, 5  ;;  %v13398_v43 = vld [vmem:[%s10645_s13 + $0x118] sm:$0xe] }
 0x202   : > { %6159 = vmatmul.mubr.bf16.gmra.mrb[232].mxu1 %v15141_v52  ;;  %5998 = vmatmul.mubr.bf16.gmra.mrb[232].mxu0 %v15142_v4  ;;  %v13385_v59 = vcombine.low %v13296_v1, %v13299_v16  ;;  %v13389_v46 = vcombine.low %v13231_v60, %v13258_v45  ;;  %v2922_v61 = vshll.u32 %v8152_v47, 16  ;;  %v13391_v39 = vcombine.low %v2704_v11, %v2718_v55 }
 0x203   : > { %6166 = vmatprep.mubr.bf16.mxu1 %v15143_v0  ;;  %15144 = vst [vmem:[#allocation7_spill] sm:$0xff] %v13371_v57  ;;  %6005 = vmatprep.mubr.bf16.mxu0 %v15145_v29  ;;  %v13381_v33 = vadd.f32 %v8915_v53, %v5399_v22  ;;  %v8932_v35 = vpop.f32.mrb[128].mxu0  ;;  %v13393_v44 = vrot.slane %v2883_v13, 4  ;;  %v13395_v53 = vrot.slane %v2897_v30, 4  ;;  %v13400_v22 = vcombine.low %v2810_v62, %v2814_v15  ;;  %v13460_v57 = vld [vmem:[%s10645_s13 + $0x134] sm:$0x1] }
 0x204   : > { %v9044_v34 = vpop.f32.mrb[128].mxu1  ;;  %15147 = vst [vmem:[#allocation13_spill] sm:$0xff] %v13385_v59  ;;  %15148 = vst [vmem:[#allocation82_spill] sm:$0xff] %v13389_v46  ;;  %v8933_v18 = vpop.f32.mrb[129].mxu0  ;;  %v2745_v45 = vrot.slane %v2743_v21, 5  ;;  %v13402_v60 = vrot.slane %v2919_v38, 4  ;;  %v2732_v13 = vsel %vm10679_vm5, %v13375_v19, %v13367_v7  ;;  %v13427_v19 = vcombine.low %v13348_v50, %v8152_v47 }
 0x205   : > { %15146 = vst [vmem:[#allocation84_spill] sm:$0xff] %v13381_v33  ;;  %v9045_v20 = vpop.f32.mrb[129].mxu1  ;;  %15149 = vst [vmem:[#allocation15_spill] sm:$0xff] %v13391_v39  ;;  %v8934_v41 = vadd.f32 %v8933_v18, %v8932_v35  ;;  %v8935_v1 = vpop.f32.mrb[130].mxu0  ;;  %v2741_v30 = vrot.slane %v2740_v8, 4  ;;  %v15150_v21 = vld [vmem:[#allocation67_spill] sm:$0xff] }
 0x206   : > { %v9046_v2 = vadd.f32 %v9045_v20, %v9044_v34  ;;  %v9047_v36 = vpop.f32.mrb[130].mxu1  ;;  %v13405_v34 = vld [vmem:[%s10645_s13 + $0x128] sm:$0xf]  ;;  %v8936_v11 = vpop.f32.mrb[131].mxu0  ;;  %v13415_v38 = vrot.slane %v2922_v61, 5  ;;  %v8143_v18 = vrot.slane %v13398_v43, 9 }
 0x207   : > { %v9048_v16 = vpop.f32.mrb[131].mxu1  ;;  %v5598_v62 = vadd.f32 %v8934_v41, %v12898_v26  ;;  %v8937_v15 = vadd.f32 %v8936_v11, %v8935_v1  ;;  %v13418_v20 = vld [vmem:[%s10645_s13 + $0x120] sm:$0xe]  ;;  %15152 = vst [vmem:[#allocation12_spill] sm:$0xff] %v13427_v19  ;;  %v13431_v26 = vcombine.low %v13287_v51, %v13308_v48  ;;  %v2748_v8 = vshrl.u32 %v13405_v34, 16 }
 0x208   : > { %v9049_v55 = vadd.f32 %v9048_v16, %v9047_v36  ;;  %v13422_v36 = vld [vmem:[%s10645_s13 + $0x130] sm:$0xf]  ;;  %v15151_v7 = vld [vmem:[#allocation66_spill] sm:$0xff]  ;;  %v2751_v61 = vshll.u32 %v13405_v34, 16  ;;  %v13439_v43 = vld [vmem:[%s10645_s13 + $0x10c] sm:$0x1]  ;;  %v2746_v48 = vsel %vm10679_vm5, %v2741_v30, %v2745_v45 }
 0x209   : > { %15153 = vst [vmem:[#allocation17_spill] sm:$0xff] %v13431_v26  ;;  %v13436_v41 = vld [vmem:[%s10645_s13 + $0x104] sm:$0x1]  ;;  %15154 = vst [vmem:[#allocation16_spill] sm:$0xff] %v13439_v43  ;;  %v5601_v1 = vadd.f32 %v8937_v15, %v12918_v6  ;;  %v13443_v16 = vadd.f32 %v9046_v2, %v5598_v62  ;;  %v2872_v47 = vshll.u32 %v13439_v43, 16  ;;  %v2817_v11 = vrot.slane %v13335_v24, 5 }
 0x20a   : > { %6167 = vmatmul.mubr.bf16.gmra.mrb[236].mxu1 %v15150_v21  ;;  %6006 = vmatmul.mubr.bf16.gmra.mrb[236].mxu0 %v15151_v7  ;;  %v2858_v50 = vshll.u32 %v13436_v41, 16  ;;  %v13451_v35 = vld [vmem:[%s10645_s13 + $0x12c] sm:$0x1]  ;;  %v2765_v6 = vshll.u32 %v13422_v36, 16  ;;  %v8144_v62 = vrot.slane %v13418_v20, 9  ;;  %v2821_v24 = vrot.slane %v13351_v58, 5 }
 0x20b   : > { %6174 = vmatprep.mubr.bf16.mxu1 %v13269_v23  ;;  %6013 = vmatprep.mubr.bf16.mxu0 %v13275_v42  ;;  %15155 = vst [vmem:[#allocation102_spill] sm:$0xff] %v13443_v16  ;;  %v2762_v23 = vshrl.u32 %v13422_v36, 16  ;;  %v8938_v15 = vpop.f32.mrb[132].mxu0  ;;  %v13456_v0 = vadd.f32 %v9049_v55, %v5601_v1  ;;  %v2874_v29 = vrot.slane %v2872_v47, 5  ;;  %v2750_v30 = vrot.slane %v2748_v8, 4 }
 0x20c   : > { %v9050_v51 = vpop.f32.mrb[132].mxu1  ;;  %v2860_v42 = vrot.slane %v2858_v50, 5  ;;  %v8939_v7 = vpop.f32.mrb[133].mxu0  ;;  %v2753_v4 = vrot.slane %v2751_v61, 5  ;;  %v2757_v43 = vshll.u32 %v13451_v35, 16 }
 0x20d   : > { %v9051_v2 = vpop.f32.mrb[133].mxu1  ;;  %v8940_v52 = vadd.f32 %v8939_v7, %v8938_v15  ;;  %v8941_v16 = vpop.f32.mrb[134].mxu0  ;;  %v2875_v20 = vsel %vm10679_vm5, %v13316_v32, %v2874_v29  ;;  %v2764_v8 = vrot.slane %v2762_v23, 4  ;;  %v2767_v7 = vrot.slane %v2765_v6, 5  ;;  %v13487_v29 = vld [vmem:[%s10645_s13 + $0x114] sm:$0x1] }
 0x20e   : > { %v9052_v21 = vadd.f32 %v9051_v2, %v9050_v51  ;;  %v9053_v45 = vpop.f32.mrb[134].mxu1  ;;  %v2861_v55 = vsel %vm10679_vm5, %v13301_v10, %v2860_v42  ;;  %v8942_v1 = vpop.f32.mrb[135].mxu0  ;;  %v13473_v51 = vcombine.low %v2732_v13, %v2746_v48  ;;  %v2925_v42 = vor.u32 %v13415_v38, %v13402_v60  ;;  %v13478_v10 = vld [vmem:[%s10645_s13 + $0x130] sm:$0xf]  ;;  %v8154_v6 = vld [vmem:[%s10645_s13 + $0x138] sm:$0xf] }
 0x20f   : > { %v9054_v33 = vpop.f32.mrb[135].mxu1  ;;  %v13469_v61 = vcombine.low %v2861_v55, %v2875_v20  ;;  %v5606_v50 = vadd.f32 %v8940_v52, %v12955_v63  ;;  %v8943_v47 = vadd.f32 %v8942_v1, %v8941_v16  ;;  %v2818_v23 = vsel %vm10670_vm4, %v8143_v18, %v2817_v11 }
 0x210   : > { %v9055_v58 = vadd.f32 %v9054_v33, %v9053_v45  ;;  %15156 = vst [vmem:[#allocation103_spill] sm:$0xff] %v13473_v51  ;;  %v2754_v32 = vor.u32 %v2753_v4, %v2750_v30  ;;  %v2771_v63 = vshll.u32 %v13460_v57, 16  ;;  %v2933_v52 = vshrl.u32 %v13478_v10, 16  ;;  %v13490_v33 = vld [vmem:[%s10645_s13 + $0x11c] sm:$0x1] }
 0x211   : > { %v5609_v60 = vadd.f32 %v8943_v47, %v12964_v28  ;;  %v13494_v13 = vadd.f32 %v9052_v21, %v5606_v50  ;;  %v2886_v38 = vshll.u32 %v13487_v29, 16  ;;  %v2900_v16 = vshll.u32 %v13490_v33, 16 }
 0x212   : > { %6175 = vmatmul.mubr.bf16.gmra.mrb[240].mxu1 %v13305_v12  ;;  %6014 = vmatmul.mubr.bf16.gmra.mrb[240].mxu0 %v13293_v54  ;;  %v2822_v4 = vsel %vm10670_vm4, %v8144_v62, %v2821_v24  ;;  %v13500_v48 = vrot.slane %v2757_v43, 5  ;;  %v2768_v11 = vor.u32 %v2767_v7, %v2764_v8  ;;  %v2936_v15 = vshll.u32 %v13478_v10, 16 }
 0x213   : > { %6182 = vmatprep.mubr.bf16.mxu1 %v13385_v59  ;;  %6021 = vmatprep.mubr.bf16.mxu0 %v13391_v39  ;;  %v8944_v2 = vpop.f32.mrb[136].mxu0  ;;  %v2947_v45 = vshrl.u32 %v8154_v6, 16  ;;  %v13504_v30 = vadd.f32 %v9055_v58, %v5609_v60  ;;  %v2888_v21 = vrot.slane %v2886_v38, 5  ;;  %v2902_v55 = vrot.slane %v2900_v16, 5 }
 0x214   : > { %v9056_v18 = vpop.f32.mrb[136].mxu1  ;;  %v8945_v20 = vpop.f32.mrb[137].mxu0  ;;  %v2755_v47 = vrot.slane %v2754_v32, 4  ;;  %v2773_v59 = vrot.slane %v2771_v63, 5  ;;  %v2950_v39 = vshll.u32 %v8154_v6, 16  ;;  %v2935_v8 = vrot.slane %v2933_v52, 4 }
 0x215   : > { %v9057_v28 = vpop.f32.mrb[137].mxu1  ;;  %v8946_v62 = vadd.f32 %v8945_v20, %v8944_v2  ;;  %v8947_v43 = vpop.f32.mrb[138].mxu0  ;;  %v2889_v7 = vsel %vm10679_vm5, %v13393_v44, %v2888_v21  ;;  %v2903_v58 = vsel %vm10679_vm5, %v13395_v53, %v2902_v55  ;;  %v2769_v16 = vrot.slane %v2768_v11, 4  ;;  %v8137_v53 = vld [vmem:[%s10645_s13 + $0x128] sm:$0xe] }
 0x216   : > { %v9058_v1 = vadd.f32 %v9057_v28, %v9056_v18  ;;  %v9059_v50 = vpop.f32.mrb[138].mxu1  ;;  %v8948_v60 = vpop.f32.mrb[139].mxu0  ;;  %v2938_v32 = vrot.slane %v2936_v15, 5  ;;  %v13512_v63 = vcombine.low %v2889_v7, %v2903_v58  ;;  %v15157_v44 = vor.u32 %v13379_v56, %v13377_v25  ;;  %v13528_v55 = vld [vmem:[%s10645_s13 + $0x124] sm:$0x1] }
 0x217   : > { %v9060_v24 = vpop.f32.mrb[139].mxu1  ;;  %v5614_v18 = vadd.f32 %v8946_v62, %v12994_v14  ;;  %v8949_v52 = vadd.f32 %v8948_v60, %v8947_v43  ;;  %v2926_v28 = vrot.slane %v2925_v42, 4  ;;  %v13522_v11 = vcombine.low %v2818_v23, %v2822_v4  ;;  %v13531_v20 = vld [vmem:[%s10645_s13 + $0x12c] sm:$0x1]  ;;  %v8138_v56 = vld [vmem:[%s10645_s13 + $0x130] sm:$0xe] }
 0x218   : > { %v9061_v38 = vadd.f32 %v9060_v24, %v9059_v50  ;;  %v2912_v2 = vrot.slane %v15157_v44, 4  ;;  %v2760_v14 = vsel %vm10679_vm5, %v2755_v47, %v13500_v48  ;;  %v2949_v15 = vrot.slane %v2947_v45, 4 }
 0x219   : > { %15158 = vst [vmem:[#allocation105_spill] sm:$0xff] %v13522_v11  ;;  %v2952_v21 = vrot.slane %v2950_v39, 5  ;;  %v5617_v25 = vadd.f32 %v8949_v52, %v13006_v3  ;;  %v13536_v42 = vadd.f32 %v9058_v1, %v5614_v18  ;;  %v2914_v23 = vshll.u32 %v13528_v55, 16 }
 0x21a   : > { %6183 = vmatmul.mubr.bf16.gmra.mrb[244].mxu1 %v13400_v22  ;;  %6022 = vmatmul.mubr.bf16.gmra.mrb[244].mxu0 %v13389_v46  ;;  %v2928_v4 = vshll.u32 %v13531_v20, 16  ;;  %v2774_v48 = vsel %vm10679_vm5, %v2769_v16, %v2773_v59  ;;  %v2939_v39 = vor.u32 %v2938_v32, %v2935_v8  ;;  %v13543_v45 = vcombine.low %v13478_v10, %v8154_v6 }
 0x21b   : > { %6190 = vmatprep.mubr.bf16.mxu1 %v13427_v19  ;;  %6029 = vmatprep.mubr.bf16.mxu0 %v13473_v51  ;;  %v8145_v47 = vrot.slane %v8137_v53, 9  ;;  %v8950_v62 = vpop.f32.mrb[140].mxu0  ;;  %v2825_v43 = vrot.slane %v13451_v35, 5  ;;  %v13546_v24 = vadd.f32 %v9061_v38, %v5617_v25  ;;  %v2916_v1 = vrot.slane %v2914_v23, 5  ;;  %v13569_v23 = vld [vmem:[%s10645_s13 + $0x13c] sm:$0x1] }
 0x21c   : > { %15159 = vst [vmem:[#allocation106_spill] sm:$0xff] %v13543_v45  ;;  %v2930_v7 = vrot.slane %v2928_v4, 5  ;;  %v8951_v58 = vpop.f32.mrb[141].mxu0  ;;  %v2953_v52 = vor.u32 %v2952_v21, %v2949_v15  ;;  %v8146_v44 = vrot.slane %v8138_v56, 9  ;;  %v2829_v59 = vrot.slane %v13460_v57, 5  ;;  %v15194_v19 = vld [vmem:[#allocation51_spill] sm:$0xff] }
 0x21d   : > { %v9062_v50 = vpop.f32.mrb[140].mxu1  ;;  %v8952_v8 = vadd.f32 %v8951_v58, %v8950_v62  ;;  %v8953_v16 = vpop.f32.mrb[142].mxu0  ;;  %v13549_v6 = vcombine.low %v2760_v14, %v2774_v48  ;;  %v2917_v35 = vsel %vm10679_vm5, %v2912_v2, %v2916_v1  ;;  %v2940_v14 = vrot.slane %v2939_v39, 4  ;;  %v13566_v56 = vld [vmem:[%s10645_s13 + $0x134] sm:$0x1]  ;;  %v15212_v51 = vld [vmem:[#allocation114_spill] sm:$0xff] }
 0x21e   : > { %v9063_v3 = vpop.f32.mrb[141].mxu1  ;;  %v2931_v38 = vsel %vm10679_vm5, %v2926_v28, %v2930_v7  ;;  %v8954_v32 = vpop.f32.mrb[143].mxu0  ;;  %v2954_v21 = vrot.slane %v2953_v52, 4  ;;  %v2826_v2 = vsel %vm10670_vm4, %v8145_v47, %v2825_v43  ;;  %v2830_v28 = vsel %vm10670_vm4, %v8146_v44, %v2829_v59 }
 0x21f   : > { %v9064_v60 = vadd.f32 %v9063_v3, %v9062_v50  ;;  %v9065_v18 = vpop.f32.mrb[142].mxu1  ;;  %15160 = vst [vmem:[#allocation109_spill] sm:$0xff] %v13549_v6  ;;  %v13555_v25 = vcombine.low %v2917_v35, %v2931_v38  ;;  %v5622_v15 = vadd.f32 %v8952_v8, %v13021_v31  ;;  %v8955_v57 = vadd.f32 %v8954_v32, %v8953_v16 }
 0x220   : > { %v9066_v10 = vpop.f32.mrb[143].mxu1  ;;  %v2942_v50 = vshll.u32 %v13566_v56, 16  ;;  %v2956_v48 = vshll.u32 %v13569_v23, 16  ;;  %v13577_v3 = vcombine.low %v2826_v2, %v2830_v28 }
 0x221   : > { %v9067_v53 = vadd.f32 %v9066_v10, %v9065_v18  ;;  %v5625_v31 = vadd.f32 %v8955_v57, %v13028_v27  ;;  %v13573_v4 = vadd.f32 %v9064_v60, %v5622_v15  ;;  %v13583_v60 = vcombine.low %v13405_v34, %v13422_v36  ;;  %v15163_v34 = vld [vmem:[#allocation20_spill] sm:$0xff]  ;;  %v15164_v15 = vld [vmem:[#allocation11_spill] sm:$0xff] }
 0x222   : > { %6191 = vmatmul.mubr.bf16.gmra.mrb[248].mxu1 %v13522_v11  ;;  %6030 = vmatmul.mubr.bf16.gmra.mrb[248].mxu0 %v13431_v26  ;;  %15161 = vst [vmem:[#allocation110_spill] sm:$0xff] %v13577_v3  ;;  %v2944_v1 = vrot.slane %v2942_v50, 5  ;;  %v2958_v7 = vrot.slane %v2956_v48, 5  ;;  %v10349_v50 = vld [vmem:[%s14513_s1 + $0x580] sm:$0xff]   ;;  %v15224_v26 = vld [vmem:[#allocation124_spill] sm:$0xff] }
 0x223   : > { %6198 = vmatprep.mubr.bf16.mxu1 %v13543_v45  ;;  %6037 = vmatprep.mubr.bf16.mxu0 %v13549_v6  ;;  %v13579_v43 = vadd.f32 %v9067_v53, %v5625_v31  ;;  %15162 = vst [vmem:[#allocation128_spill] sm:$0xff] %v13583_v60 }
 0x224   : > { %v2945_v8 = vsel %vm10679_vm5, %v2940_v14, %v2944_v1  ;;  %v2959_v16 = vsel %vm10679_vm5, %v2954_v21, %v2958_v7  ;;  %v10350_v7 = vld [vmem:[%s14513_s1 + $0x548] sm:$0xff]  }
 0x225   : > { %v9068_v39 = vpop.f32.mrb[144].mxu1  ;;  %v8956_v62 = vpop.f32.mrb[144].mxu0  ;;  %v13589_v38 = vcombine.low %v2945_v8, %v2959_v16  ;;  %v15167_v16 = vld [vmem:[#allocation14_spill] sm:$0xff] }
 0x226   : > { %v9069_v47 = vpop.f32.mrb[145].mxu1  ;;  %v8957_v58 = vpop.f32.mrb[145].mxu0 }
 0x227   : > { %v9070_v18 = vadd.f32 %v9069_v47, %v9068_v39  ;;  %v9071_v27 = vpop.f32.mrb[146].mxu1  ;;  %v8958_v52 = vadd.f32 %v8957_v58, %v8956_v62  ;;  %v8959_v44 = vpop.f32.mrb[146].mxu0 }
 0x228   : > { %v9072_v59 = vpop.f32.mrb[147].mxu1  ;;  %v8960_v10 = vpop.f32.mrb[147].mxu0 }
 0x229   : > { %v9073_v35 = vadd.f32 %v9072_v59, %v9071_v27  ;;  %v5630_v32 = vadd.f32 %v8958_v52, %v13039_v40  ;;  %v8961_v53 = vadd.f32 %v8960_v10, %v8959_v44  ;;  %v15165_v27 = vld [vmem:[#allocation19_spill] sm:$0xff]  ;;  %v15166_v44 = vld [vmem:[#allocation74_spill] sm:$0xff]  ;;  %v10356_v10 = vld [vmem:[%s14513_s1 + $0x5d0] sm:$0xff]  }
 0x22a   : > { %6199 = vmatmul.mubr.bf16.gmra.mrb[252].mxu1 %v13577_v3  ;;  %6038 = vmatmul.mubr.bf16.gmra.mrb[252].mxu0 %v13583_v60  ;;  %v10352_v52 = vld [vmem:[%s14513_s1 + $0x5c8] sm:$0xff]   ;;  %v15206_v60 = vld [vmem:[#allocation68_spill] sm:$0xff] }
 0x22b   : > { %6400 = vmatprep.mubr.bf16.mxu1 %v15163_v34  ;;  %v5633_v36 = vadd.f32 %v8961_v53, %v13042_v49  ;;  %6239 = vmatprep.mubr.bf16.mxu0 %v15164_v15  ;;  %v13597_v57 = vadd.f32 %v9070_v18, %v5630_v32  ;;  %v10347_v49 = vld [vmem:[%s14513_s1 + $0x500] sm:$0xff]   ;;  %v10353_v59 = vld [vmem:[%s14513_s1 + $0x588] sm:$0xff]  }
 0x22c   : > { %v15168_v53 = vld [vmem:[#allocation23_spill] sm:$0xff] }
 0x22d   : > { %v9074_v9 = vpop.f32.mrb[148].mxu1  ;;  %v8962_v14 = vpop.f32.mrb[148].mxu0  ;;  %v13599_v2 = vadd.f32 %v9073_v35, %v5633_v36 }
 0x22e   : > { %v9075_v21 = vpop.f32.mrb[149].mxu1  ;;  %v8963_v28 = vpop.f32.mrb[149].mxu0 }
 0x22f   : > { %v9076_v40 = vadd.f32 %v9075_v21, %v9074_v9  ;;  %v9077_v31 = vpop.f32.mrb[150].mxu1  ;;  %v8964_v48 = vadd.f32 %v8963_v28, %v8962_v14  ;;  %v8965_v39 = vpop.f32.mrb[150].mxu0 }
 0x230   : > { %v9078_v62 = vpop.f32.mrb[151].mxu1  ;;  %v8966_v47 = vpop.f32.mrb[151].mxu0 }
 0x231   : > { %v9079_v1 = vadd.f32 %v9078_v62, %v9077_v31  ;;  %v5638_v58 = vadd.f32 %v8964_v48, %v13063_v37  ;;  %v8967_v18 = vadd.f32 %v8966_v47, %v8965_v39  ;;  %v10351_v37 = vld [vmem:[%s14513_s1 + $0x508] sm:$0xff]   ;;  %v10357_v62 = vld [vmem:[%s14513_s1 + $0x590] sm:$0xff]  }
 0x232   : > { %6401 = vmatmul.mubr.bf16.vlgmr.msra.gmra.mrb[0].mxu1 %v15165_v27  ;;  %6240 = vmatmul.mubr.bf16.vlgmr.msra.gmra.mrb[0].mxu0 %v15166_v44  ;;  %v15169_v47 = vld [vmem:[#allocation100_spill] sm:$0xff]  ;;  %v15171_v27 = vld [vmem:[#allocation79_spill] sm:$0xff]  ;;  %v15173_v44 = vld [vmem:[#allocation46_spill] sm:$0xff] }
 0x233   : > { %9701 = vmatpush3.bf16.msra.mxu1 %v10349_v50  ;;  %v5641_v8 = vadd.f32 %v8967_v18, %v13076_v17  ;;  %9589 = vmatpush3.bf16.msra.mxu0 %v10347_v49  ;;  %v13627_v35 = vadd.f32 %v9076_v40, %v5638_v58  ;;  %v10354_v17 = vld [vmem:[%s14513_s1 + $0x550] sm:$0xff]   ;;  %v10358_v49 = vld [vmem:[%s14513_s1 + $0x558] sm:$0xff]  }
 0x234   : > { %6247 = vmatprep.mubr.bf16.mxu0 %v15167_v16  ;;  %6408 = vmatprep.mubr.bf16.mxu1 %v15168_v53  ;;  %v10355_v50 = vld [vmem:[%s14513_s1 + $0x510] sm:$0xff]   ;;  %v10360_v18 = vld [vmem:[%s14513_s1 + $0x5d8] sm:$0xff]   ;;  %v10362_v53 = vld [vmem:[%s14513_s1 + $0x560] sm:$0xff]  }
 0x235   : > { %v9080_v32 = vpop.f32.mrb[152].mxu1  ;;  %9590 = vmatprep.subr.bf16.mxu0 %v10350_v7  ;;  %v8968_v34 = vpop.f32.mrb[152].mxu0  ;;  %9702 = vmatprep.subr.bf16.mxu1 %v10352_v52  ;;  %v13633_v15 = vadd.f32 %v9079_v1, %v5641_v8  ;;  %v15170_v58 = vld [vmem:[#allocation24_spill] sm:$0xff]  ;;  %v15172_v52 = vld [vmem:[#allocation29_spill] sm:$0xff] }
 0x236   : > { %v9081_v36 = vpop.f32.mrb[153].mxu1  ;;  %v8969_v9 = vpop.f32.mrb[153].mxu0  ;;  %v15174_v8 = vld [vmem:[#allocation104_spill] sm:$0xff]  ;;  %v10359_v16 = vld [vmem:[%s14513_s1 + $0x518] sm:$0xff]  }
 0x237   : > { %v9082_v14 = vadd.f32 %v9081_v36, %v9080_v32  ;;  %v9083_v21 = vpop.f32.mrb[154].mxu1  ;;  %9703 = vmatpush3.bf16.msra.mxu1 %v10353_v59  ;;  %v8970_v28 = vadd.f32 %v8969_v9, %v8968_v34  ;;  %v8971_v40 = vpop.f32.mrb[154].mxu0  ;;  %9591 = vmatpush3.bf16.msra.mxu0 %v10351_v37  ;;  %v10361_v32 = vld [vmem:[%s14513_s1 + $0x598] sm:$0xff]   ;;  %v10364_v36 = vld [vmem:[%s14513_s1 + $0x5e0] sm:$0xff]  }
 0x238   : > { %v9084_v31 = vpop.f32.mrb[155].mxu1  ;;  %9704 = vmatprep.subr.bf16.mxu1 %v10356_v10  ;;  %v8972_v48 = vpop.f32.mrb[155].mxu0  ;;  %9592 = vmatprep.subr.bf16.mxu0 %v10354_v17 }
 0x239   : > { %v9085_v39 = vadd.f32 %v9084_v31, %v9083_v21  ;;  %v5646_v1 = vadd.f32 %v8970_v28, %v15169_v47  ;;  %v8973_v7 = vadd.f32 %v8972_v48, %v8971_v40  ;;  %v10363_v48 = vld [vmem:[%s14513_s1 + $0x520] sm:$0xff]   ;;  %v10366_v47 = vld [vmem:[%s14513_s1 + $0x568] sm:$0xff]  }
 0x23a   : > { %6409 = vmatmul.mubr.bf16.gmra.mrb[4].mxu1 %v15170_v58  ;;  %6248 = vmatmul.mubr.bf16.gmra.mrb[4].mxu0 %v15171_v27  ;;  %v10368_v27 = vld [vmem:[%s14513_s1 + $0x5e8] sm:$0xff]  }
 0x23b   : > { %6416 = vmatprep.mubr.bf16.mxu1 %v15172_v52  ;;  %v5649_v59 = vadd.f32 %v8973_v7, %v15173_v44  ;;  %6255 = vmatprep.mubr.bf16.mxu0 %v15174_v8  ;;  %v13656_v37 = vadd.f32 %v9082_v14, %v5646_v1  ;;  %v15175_v1 = vld [vmem:[#allocation101_spill] sm:$0xff]  ;;  %v15177_v52 = vld [vmem:[#allocation83_spill] sm:$0xff]  ;;  %v15178_v44 = vld [vmem:[#allocation36_spill] sm:$0xff] }
 0x23c   : > { %9593 = vmatpush3.bf16.msra.mxu0 %v10355_v50  ;;  %9705 = vmatpush3.bf16.msra.mxu1 %v10357_v62 }
 0x23d   : > { %v9086_v10 = vpop.f32.mrb[156].mxu1  ;;  %9594 = vmatprep.subr.bf16.mxu0 %v10358_v49  ;;  %v8974_v17 = vpop.f32.mrb[156].mxu0  ;;  %9706 = vmatprep.subr.bf16.mxu1 %v10360_v18  ;;  %v13667_v9 = vadd.f32 %v9085_v39, %v5649_v59  ;;  %v10365_v39 = vld [vmem:[%s14513_s1 + $0x5a0] sm:$0xff]   ;;  %v15176_v18 = vld [vmem:[#allocation28_spill] sm:$0xff]  ;;  %v15179_v59 = vld [vmem:[#allocation73_spill] sm:$0xff] }
 0x23e   : > { %v9087_v34 = vpop.f32.mrb[157].mxu1  ;;  %v8975_v14 = vpop.f32.mrb[157].mxu0 }
 0x23f   : > { %v9088_v21 = vadd.f32 %v9087_v34, %v9086_v10  ;;  %v9089_v28 = vpop.f32.mrb[158].mxu1  ;;  %v8976_v40 = vadd.f32 %v8975_v14, %v8974_v17  ;;  %v8977_v31 = vpop.f32.mrb[158].mxu0  ;;  %v10367_v10 = vld [vmem:[%s14513_s1 + $0x528] sm:$0xff]   ;;  %v10370_v34 = vld [vmem:[%s14513_s1 + $0x570] sm:$0xff]  }
 0x240   : > { %v9090_v50 = vpop.f32.mrb[159].mxu1  ;;  %9595 = vmatpush3.bf16.msra.mxu0 %v10359_v16  ;;  %v8978_v62 = vpop.f32.mrb[159].mxu0  ;;  %9707 = vmatpush3.bf16.msra.mxu1 %v10361_v32  ;;  %v15180_v16 = vld [vmem:[#allocation107_spill] sm:$0xff] }
 0x241   : > { %v9091_v49 = vadd.f32 %v9090_v50, %v9089_v28  ;;  %9596 = vmatprep.subr.bf16.mxu0 %v10362_v53  ;;  %v5654_v7 = vadd.f32 %v8976_v40, %v15175_v1  ;;  %v8979_v58 = vadd.f32 %v8978_v62, %v8977_v31  ;;  %9708 = vmatprep.subr.bf16.mxu1 %v10364_v36  ;;  %v10369_v17 = vld [vmem:[%s14513_s1 + $0x5a8] sm:$0xff]   ;;  %v10372_v28 = vld [vmem:[%s14513_s1 + $0x5f0] sm:$0xff]  }
 0x242   : > { %6417 = vmatmul.mubr.bf16.gmra.mrb[8].mxu1 %v15176_v18  ;;  %6256 = vmatmul.mubr.bf16.gmra.mrb[8].mxu0 %v15177_v52 }
 0x243   : > { %6424 = vmatprep.mubr.bf16.mxu1 %v15178_v44  ;;  %v5657_v8 = vadd.f32 %v8979_v58, %v15179_v59  ;;  %6263 = vmatprep.mubr.bf16.mxu0 %v15180_v16  ;;  %v13690_v32 = vadd.f32 %v9088_v21, %v5654_v7  ;;  %v10374_v58 = vld [vmem:[%s14513_s1 + $0x578] sm:$0xff]  }
 0x244   : > { %9597 = vmatpush3.bf16.msra.mxu0 %v10363_v48  ;;  %9709 = vmatpush3.bf16.msra.mxu1 %v10365_v39  ;;  %v15182_v44 = vld [vmem:[#allocation37_spill] sm:$0xff] }
 0x245   : > { %v9092_v53 = vpop.f32.mrb[160].mxu1  ;;  %9598 = vmatprep.subr.bf16.mxu0 %v10366_v47  ;;  %v8980_v36 = vpop.f32.mrb[160].mxu0  ;;  %9710 = vmatprep.subr.bf16.mxu1 %v10368_v27  ;;  %v13701_v21 = vadd.f32 %v9091_v49, %v5657_v8  ;;  %v10371_v47 = vld [vmem:[%s14513_s1 + $0x530] sm:$0xff]   ;;  %v15181_v27 = vld [vmem:[#allocation5_spill] sm:$0xff]  ;;  %v15183_v8 = vld [vmem:[#allocation87_spill] sm:$0xff] }
 0x246   : > { %v9093_v14 = vpop.f32.mrb[161].mxu1  ;;  %v8981_v40 = vpop.f32.mrb[161].mxu0  ;;  %v10373_v49 = vld [vmem:[%s14513_s1 + $0x5b0] sm:$0xff]   ;;  %v10376_v59 = vld [vmem:[%s14513_s1 + $0x5f8] sm:$0xff]  }
 0x247   : > { %v9094_v31 = vadd.f32 %v9093_v14, %v9092_v53  ;;  %v9095_v50 = vpop.f32.mrb[162].mxu1  ;;  %v8982_v48 = vadd.f32 %v8981_v40, %v8980_v36  ;;  %v8983_v62 = vpop.f32.mrb[162].mxu0  ;;  %v15184_v16 = vld [vmem:[#allocation45_spill] sm:$0xff]  ;;  %v15185_v53 = vld [vmem:[#allocation72_spill] sm:$0xff]  ;;  %v10378_v40 = vld [vmem:[%s14513_s1 + $0x640] sm:$0xff]  }
 0x248   : > { %v9096_v39 = vpop.f32.mrb[163].mxu1  ;;  %9599 = vmatpush3.bf16.msra.mxu0 %v10367_v10  ;;  %v8984_v1 = vpop.f32.mrb[163].mxu0  ;;  %9711 = vmatpush3.bf16.msra.mxu1 %v10369_v17  ;;  %v10375_v36 = vld [vmem:[%s14513_s1 + $0x538] sm:$0xff]  }
 0x249   : > { %v9097_v7 = vadd.f32 %v9096_v39, %v9095_v50  ;;  %9600 = vmatprep.subr.bf16.mxu0 %v10370_v34  ;;  %v8985_v18 = vadd.f32 %v8984_v1, %v8983_v62  ;;  %v5662_v52 = vadd.f32 %v8982_v48, %v15181_v27  ;;  %9712 = vmatprep.subr.bf16.mxu1 %v10372_v28  ;;  %v15186_v34 = vld [vmem:[#allocation108_spill] sm:$0xff]  ;;  %v10377_v28 = vld [vmem:[%s14513_s1 + $0x5b8] sm:$0xff]   ;;  %v13737_v62 = vld [vmem:[%s14513_s1 + $0x680] sm:$0xff]  }
 0x24a   : > { %6425 = vmatmul.mubr.bf16.gmra.mrb[12].mxu1 %v15182_v44  ;;  %6264 = vmatmul.mubr.bf16.gmra.mrb[12].mxu0 %v15183_v8  ;;  %v15187_v44 = vld [vmem:[#allocation3_spill] sm:$0xff] }
 0x24b   : > { %6432 = vmatprep.mubr.bf16.mxu1 %v15184_v16  ;;  %v13719_v10 = vadd.f32 %v9094_v31, %v5662_v52  ;;  %v5665_v17 = vadd.f32 %v8985_v18, %v15185_v53  ;;  %6271 = vmatprep.mubr.bf16.mxu0 %v15186_v34  ;;  %v15189_v16 = vld [vmem:[#allocation92_spill] sm:$0xff] }
 0x24c   : > { %9601 = vmatpush3.bf16.msra.mxu0 %v10371_v47  ;;  %9713 = vmatpush3.bf16.msra.mxu1 %v10373_v49  ;;  %v15190_v53 = vld [vmem:[#allocation52_spill] sm:$0xff] }
 0x24d   : > { %v9098_v14 = vpop.f32.mrb[164].mxu1  ;;  %9602 = vmatprep.subr.bf16.mxu0 %v10374_v58  ;;  %v13732_v31 = vadd.f32 %v9097_v7, %v5665_v17  ;;  %v8986_v50 = vpop.f32.mrb[164].mxu0  ;;  %9714 = vmatprep.subr.bf16.mxu1 %v10376_v59  ;;  %v15188_v59 = vld [vmem:[#allocation44_spill] sm:$0xff] }
 0x24e   : > { %v9099_v48 = vpop.f32.mrb[165].mxu1  ;;  %v8987_v39 = vpop.f32.mrb[165].mxu0  ;;  %v15200_v34 = vld [vmem:[#allocation60_spill] sm:$0xff] }
 0x24f   : > { %v9100_v47 = vadd.f32 %v9099_v48, %v9098_v14  ;;  %v9101_v1 = vpop.f32.mrb[166].mxu1  ;;  %v8988_v49 = vadd.f32 %v8987_v39, %v8986_v50  ;;  %v8989_v58 = vpop.f32.mrb[166].mxu0  ;;  %v15191_v14 = vld [vmem:[#allocation2_spill] sm:$0xff] }
 0x250   : > { %v9102_v18 = vpop.f32.mrb[167].mxu1  ;;  %9603 = vmatpush3.bf16.msra.mxu0 %v10375_v36  ;;  %v8990_v27 = vpop.f32.mrb[167].mxu0  ;;  %9715 = vmatpush3.bf16.msra.mxu1 %v10377_v28  ;;  %v15192_v36 = vld [vmem:[#allocation111_spill] sm:$0xff] }
 0x251   : > { %v9103_v52 = vadd.f32 %v9102_v18, %v9101_v1  ;;  %9812 = vmatprep.subr.bf16.mxu0 %v10378_v40  ;;  %v8991_v7 = vadd.f32 %v8990_v27, %v8989_v58  ;;  %v5670_v8 = vadd.f32 %v8988_v49, %v15187_v44  ;;  %9965 = vmatprep.subr.bf16.mxu1 %v13737_v62 }
 0x252   : > { %6433 = vmatmul.mubr.bf16.gmra.mrb[16].mxu1 %v15188_v59  ;;  %6272 = vmatmul.mubr.bf16.gmra.mrb[16].mxu0 %v15189_v16 }
 0x253   : > { %6440 = vmatprep.mubr.bf16.mxu1 %v15190_v53  ;;  %v13744_v17 = vadd.f32 %v9100_v47, %v5670_v8  ;;  %v5673_v50 = vadd.f32 %v8991_v7, %v15191_v14  ;;  %6279 = vmatprep.mubr.bf16.mxu0 %v15192_v36  ;;  %v15193_v47 = vld [vmem:[#allocation75_spill] sm:$0xff]  ;;  %v15195_v7 = vld [vmem:[#allocation25_spill] sm:$0xff] }
 0x254   : > { %v15196_v14 = vld [vmem:[#allocation61_spill] sm:$0xff] }
 0x255   : > { %v9104_v48 = vpop.f32.mrb[168].mxu1  ;;  %v13748_v28 = vadd.f32 %v9103_v52, %v5673_v50  ;;  %v8992_v40 = vpop.f32.mrb[168].mxu0  ;;  %v15197_v50 = vld [vmem:[#allocation77_spill] sm:$0xff] }
 0x256   : > { %v9105_v39 = vpop.f32.mrb[169].mxu1  ;;  %v8993_v1 = vpop.f32.mrb[169].mxu0 }
 0x257   : > { %v9106_v49 = vadd.f32 %v9105_v39, %v9104_v48  ;;  %v9107_v58 = vpop.f32.mrb[170].mxu1  ;;  %v8994_v18 = vadd.f32 %v8993_v1, %v8992_v40  ;;  %v8995_v27 = vpop.f32.mrb[170].mxu0  ;;  %v15198_v48 = vld [vmem:[#allocation112_spill] sm:$0xff] }
 0x258   : > { %v9108_v44 = vpop.f32.mrb[171].mxu1  ;;  %v8996_v59 = vpop.f32.mrb[171].mxu0 }
 0x259   : > { %v9109_v45 = vadd.f32 %v9108_v44, %v9107_v58  ;;  %v8997_v53 = vadd.f32 %v8996_v59, %v8995_v27  ;;  %v5678_v8 = vadd.f32 %v8994_v18, %v15193_v47 }
 0x25a   : > { %6441 = vmatmul.mubr.bf16.gmra.mrb[20].mxu1 %v15194_v19  ;;  %6280 = vmatmul.mubr.bf16.gmra.mrb[20].mxu0 %v15195_v7 }
 0x25b   : > { %6448 = vmatprep.mubr.bf16.mxu1 %v15196_v14  ;;  %v13754_v52 = vadd.f32 %v9106_v49, %v5678_v8  ;;  %v5681_v36 = vadd.f32 %v8997_v53, %v15197_v50  ;;  %6287 = vmatprep.mubr.bf16.mxu0 %v15198_v48  ;;  %v15199_v49 = vld [vmem:[#allocation4_spill] sm:$0xff]  ;;  %v15201_v53 = vld [vmem:[#allocation31_spill] sm:$0xff]  ;;  %v15202_v50 = vld [vmem:[#allocation69_spill] sm:$0xff] }
 0x25d   : > { %v9110_v40 = vpop.f32.mrb[172].mxu1  ;;  %v13758_v39 = vadd.f32 %v9109_v45, %v5681_v36  ;;  %v8998_v1 = vpop.f32.mrb[172].mxu0  ;;  %v15203_v36 = vld [vmem:[#allocation76_spill] sm:$0xff] }
 0x25e   : > { %v9111_v58 = vpop.f32.mrb[173].mxu1  ;;  %v8999_v27 = vpop.f32.mrb[173].mxu0 }
 0x25f   : > { %v9112_v44 = vadd.f32 %v9111_v58, %v9110_v40  ;;  %v9113_v18 = vpop.f32.mrb[174].mxu1  ;;  %v9000_v59 = vadd.f32 %v8999_v27, %v8998_v1  ;;  %v9001_v19 = vpop.f32.mrb[174].mxu0  ;;  %v15204_v40 = vld [vmem:[#allocation113_spill] sm:$0xff] }
 0x260   : > { %v9114_v47 = vpop.f32.mrb[175].mxu1  ;;  %v9002_v7 = vpop.f32.mrb[175].mxu0 }
 0x261   : > { %v9115_v16 = vadd.f32 %v9114_v47, %v9113_v18  ;;  %v9003_v14 = vadd.f32 %v9002_v7, %v9001_v19  ;;  %v5686_v8 = vadd.f32 %v9000_v59, %v15199_v49 }
 0x262   : > { %6449 = vmatmul.mubr.bf16.gmra.mrb[24].mxu1 %v15200_v34  ;;  %6288 = vmatmul.mubr.bf16.gmra.mrb[24].mxu0 %v15201_v53 }
 0x263   : > { %6456 = vmatprep.mubr.bf16.mxu1 %v15202_v50  ;;  %v13764_v45 = vadd.f32 %v9112_v44, %v5686_v8  ;;  %v5689_v48 = vadd.f32 %v9003_v14, %v15203_v36  ;;  %6295 = vmatprep.mubr.bf16.mxu0 %v15204_v40  ;;  %v15205_v44 = vld [vmem:[#allocation6_spill] sm:$0xff]  ;;  %v15207_v14 = vld [vmem:[#allocation40_spill] sm:$0xff]  ;;  %v15208_v36 = vld [vmem:[#allocation117_spill] sm:$0xff] }
 0x265   : > { %v9116_v1 = vpop.f32.mrb[176].mxu1  ;;  %v13768_v58 = vadd.f32 %v9115_v16, %v5689_v48  ;;  %v9004_v27 = vpop.f32.mrb[176].mxu0  ;;  %v15209_v48 = vld [vmem:[#allocation80_spill] sm:$0xff] }
 0x266   : > { %v9117_v18 = vpop.f32.mrb[177].mxu1  ;;  %v9005_v7 = vpop.f32.mrb[177].mxu0 }
 0x267   : > { %v9118_v19 = vadd.f32 %v9117_v18, %v9116_v1  ;;  %v9119_v59 = vpop.f32.mrb[178].mxu1  ;;  %v9006_v47 = vadd.f32 %v9005_v7, %v9004_v27  ;;  %v9007_v34 = vpop.f32.mrb[178].mxu0  ;;  %v15210_v1 = vld [vmem:[#allocation116_spill] sm:$0xff] }
 0x268   : > { %v9120_v49 = vpop.f32.mrb[179].mxu1  ;;  %v9008_v53 = vpop.f32.mrb[179].mxu0 }
 0x269   : > { %v9121_v6 = vadd.f32 %v9120_v49, %v9119_v59  ;;  %v9009_v50 = vadd.f32 %v9008_v53, %v9007_v34  ;;  %v5694_v8 = vadd.f32 %v9006_v47, %v15205_v44 }
 0x26a   : > { %6457 = vmatmul.mubr.bf16.gmra.mrb[28].mxu1 %v15206_v60  ;;  %6296 = vmatmul.mubr.bf16.gmra.mrb[28].mxu0 %v15207_v14 }
 0x26b   : > { %6464 = vmatprep.mubr.bf16.mxu1 %v15208_v36  ;;  %v13774_v16 = vadd.f32 %v9118_v19, %v5694_v8  ;;  %v5697_v40 = vadd.f32 %v9009_v50, %v15209_v48  ;;  %6303 = vmatprep.mubr.bf16.mxu0 %v15210_v1  ;;  %v15211_v19 = vld [vmem:[#allocation81_spill] sm:$0xff] }
 0x26c   : > { %v15213_v50 = vld [vmem:[#allocation49_spill] sm:$0xff] }
 0x26d   : > { %v9122_v27 = vpop.f32.mrb[180].mxu1  ;;  %v13778_v18 = vadd.f32 %v9121_v6, %v5697_v40  ;;  %v9010_v7 = vpop.f32.mrb[180].mxu0  ;;  %v15214_v48 = vld [vmem:[#allocation121_spill] sm:$0xff]  ;;  %v15215_v40 = vld [vmem:[#allocation78_spill] sm:$0xff] }
 0x26e   : > { %v9123_v59 = vpop.f32.mrb[181].mxu1  ;;  %v9011_v53 = vpop.f32.mrb[181].mxu0 }
 0x26f   : > { %v9124_v34 = vadd.f32 %v9123_v59, %v9122_v27  ;;  %v9125_v47 = vpop.f32.mrb[182].mxu1  ;;  %v9012_v49 = vadd.f32 %v9011_v53, %v9010_v7  ;;  %v9013_v60 = vpop.f32.mrb[182].mxu0  ;;  %v15216_v27 = vld [vmem:[#allocation120_spill] sm:$0xff] }
 0x270   : > { %v9126_v44 = vpop.f32.mrb[183].mxu1  ;;  %v9014_v14 = vpop.f32.mrb[183].mxu0 }
 0x271   : > { %v9127_v3 = vadd.f32 %v9126_v44, %v9125_v47  ;;  %v9015_v36 = vadd.f32 %v9014_v14, %v9013_v60  ;;  %v5702_v8 = vadd.f32 %v9012_v49, %v15211_v19 }
 0x272   : > { %6465 = vmatmul.mubr.bf16.gmra.mrb[32].mxu1 %v15212_v51  ;;  %6304 = vmatmul.mubr.bf16.gmra.mrb[32].mxu0 %v15213_v50  ;;  %v15218_v50 = vld [vmem:[#allocation10_spill] sm:$0xff] }
 0x273   : > { %6472 = vmatprep.mubr.bf16.mxu1 %v15214_v48  ;;  %v13784_v6 = vadd.f32 %v9124_v34, %v5702_v8  ;;  %v5705_v1 = vadd.f32 %v9015_v36, %v15215_v40  ;;  %6311 = vmatprep.mubr.bf16.mxu0 %v15216_v27  ;;  %v15219_v40 = vld [vmem:[#allocation118_spill] sm:$0xff] }
 0x274   : > { %v15220_v27 = vld [vmem:[#allocation58_spill] sm:$0xff] }
 0x275   : > { %v9128_v7 = vpop.f32.mrb[184].mxu1  ;;  %v13788_v59 = vadd.f32 %v9127_v3, %v5705_v1  ;;  %v9016_v53 = vpop.f32.mrb[184].mxu0  ;;  %v15221_v3 = vld [vmem:[#allocation125_spill] sm:$0xff] }
 0x276   : > { %v9129_v47 = vpop.f32.mrb[185].mxu1  ;;  %v9017_v14 = vpop.f32.mrb[185].mxu0 }
 0x277   : > { %15217 = vst [vmem:[#allocation20_spill] sm:$0xff] %v13788_v59  ;;  %v9130_v60 = vadd.f32 %v9129_v47, %v9128_v7  ;;  %v9131_v49 = vpop.f32.mrb[186].mxu1  ;;  %v9018_v51 = vadd.f32 %v9017_v14, %v9016_v53  ;;  %v9019_v44 = vpop.f32.mrb[186].mxu0  ;;  %v15223_v7 = vld [vmem:[#allocation85_spill] sm:$0xff]  ;;  %v8163_v14 = vld [vmem:[%s10645_s13 + $0x100] sm:$0xe] }
 0x278   : > { %v9132_v19 = vpop.f32.mrb[187].mxu1  ;;  %v9020_v48 = vpop.f32.mrb[187].mxu0  ;;  %v15228_v59 = vld [vmem:[#allocation123_spill] sm:$0xff] }
 0x279   : > { %v9133_v34 = vadd.f32 %v9132_v19, %v9131_v49  ;;  %v9021_v8 = vadd.f32 %v9020_v48, %v9019_v44  ;;  %v5710_v36 = vadd.f32 %v9018_v51, %v15218_v50  ;;  %v8164_v19 = vld [vmem:[%s10645_s13 + $0x108] sm:$0xe] }
 0x27a   : > { %6473 = vmatmul.mubr.bf16.gmra.mrb[36].mxu1 %v15219_v40  ;;  %6312 = vmatmul.mubr.bf16.gmra.mrb[36].mxu0 %v15220_v27 }
 0x27b   : > { %6480 = vmatprep.mubr.bf16.mxu1 %v15221_v3  ;;  %v13794_v1 = vadd.f32 %v9130_v60, %v5710_v36  ;;  %v5713_v47 = vadd.f32 %v9021_v8, %v15223_v7  ;;  %6319 = vmatprep.mubr.bf16.mxu0 %v15224_v26  ;;  %v8171_v3 = vrot.slane %v8163_v14, 9  ;;  %v2986_v8 = vrot.slane %v13436_v41, 5  ;;  %v15226_v26 = vld [vmem:[#allocation16_spill] sm:$0xff] }
 0x27c   : > { %v8172_v7 = vrot.slane %v8164_v19, 9  ;;  %v15232_v14 = vld [vmem:[#allocation84_spill] sm:$0xff] }
 0x27d   : > { %15222 = vst [vmem:[#allocation11_spill] sm:$0xff] %v13794_v1  ;;  %v9134_v53 = vpop.f32.mrb[188].mxu1  ;;  %v13799_v11 = vadd.f32 %v9133_v34, %v5713_v47  ;;  %v9022_v49 = vpop.f32.mrb[188].mxu0  ;;  %v2990_v1 = vrot.slane %v15226_v26, 5  ;;  %v15227_v47 = vld [vmem:[#allocation7_spill] sm:$0xff]  ;;  %v2987_v26 = vsel %vm10670_vm4, %v8171_v3, %v2986_v8 }
 0x27e   : > { %v9135_v44 = vpop.f32.mrb[189].mxu1  ;;  %v9023_v50 = vpop.f32.mrb[189].mxu0  ;;  %v8165_v19 = vld [vmem:[%s10645_s13 + $0x110] sm:$0xe] }
 0x27f   : > { %15225 = vst [vmem:[#allocation19_spill] sm:$0xff] %v13799_v11  ;;  %v9136_v51 = vadd.f32 %v9135_v44, %v9134_v53  ;;  %v9137_v48 = vpop.f32.mrb[190].mxu1  ;;  %v9024_v40 = vadd.f32 %v9023_v50, %v9022_v49  ;;  %v9025_v27 = vpop.f32.mrb[190].mxu0  ;;  %v15229_v53 = vld [vmem:[#allocation59_spill] sm:$0xff]  ;;  %v15230_v49 = vld [vmem:[#allocation97_spill] sm:$0xff] }
 0x280   : > { %v9138_v46 = vpop.f32.mrb[191].mxu1  ;;  %v9026_v60 = vpop.f32.mrb[191].mxu0 }
 0x281   : > { %v9139_v36 = vadd.f32 %v9138_v46, %v9137_v48  ;;  %v9027_v34 = vadd.f32 %v9026_v60, %v9025_v27  ;;  %v5718_v11 = vadd.f32 %v9024_v40, %v15227_v47  ;;  %v15233_v46 = vld [vmem:[#allocation98_spill] sm:$0xff]  ;;  %v2991_v27 = vsel %vm10670_vm4, %v8172_v7, %v2990_v1  ;;  %v8166_v60 = vld [vmem:[%s10645_s13 + $0x118] sm:$0xe] }
 0x282   : > { %6481 = vmatmul.mubr.bf16.gmra.mrb[40].mxu1 %v15228_v59  ;;  %6320 = vmatmul.mubr.bf16.gmra.mrb[40].mxu0 %v15229_v53  ;;  %v13820_v53 = vcombine.low %v2987_v26, %v2991_v27  ;;  %v2994_v1 = vrot.slane %v13487_v29, 5  ;;  %v8174_v8 = vrot.slane %v8166_v60, 9  ;;  %v15235_v7 = vld [vmem:[#allocation102_spill] sm:$0xff] }
 0x283   : > { %6488 = vmatprep.mubr.bf16.mxu1 %v15230_v49  ;;  %v13808_v44 = vadd.f32 %v9136_v51, %v5718_v11  ;;  %v5721_v50 = vadd.f32 %v9027_v34, %v15232_v14  ;;  %6327 = vmatprep.mubr.bf16.mxu0 %v15233_v46  ;;  %v8173_v46 = vrot.slane %v8165_v19, 9 }
 0x285   : > { %15231 = vst [vmem:[#allocation74_spill] sm:$0xff] %v13808_v44  ;;  %v9268_v41 = vpop.f32.mrb[192].mxu1  ;;  %v13817_v48 = vadd.f32 %v9139_v36, %v5721_v50  ;;  %v9156_v59 = vpop.f32.mrb[192].mxu0  ;;  %v2998_v36 = vrot.slane %v13490_v33, 5  ;;  %v2995_v33 = vsel %vm10670_vm4, %v8173_v46, %v2994_v1  ;;  %v3002_v1 = vrot.slane %v13528_v55, 5 }
 0x286   : > { %v9269_v40 = vpop.f32.mrb[193].mxu1  ;;  %v9157_v47 = vpop.f32.mrb[193].mxu0 }
 0x287   : > { %15234 = vst [vmem:[#allocation14_spill] sm:$0xff] %v13817_v48  ;;  %v9270_v11 = vadd.f32 %v9269_v40, %v9268_v41  ;;  %v9271_v51 = vpop.f32.mrb[194].mxu1  ;;  %v9158_v49 = vadd.f32 %v9157_v47, %v9156_v59  ;;  %v9159_v34 = vpop.f32.mrb[194].mxu0  ;;  %v15236_v41 = vld [vmem:[#allocation126_spill] sm:$0xff]  ;;  %v15237_v59 = vld [vmem:[#allocation64_spill] sm:$0xff]  ;;  %v15238_v40 = vmov 0   ;;  %v2999_v19 = vsel %vm10670_vm4, %v8174_v8, %v2998_v36 }
 0x288   : > { %v9272_v14 = vpop.f32.mrb[195].mxu1  ;;  %v9160_v44 = vpop.f32.mrb[195].mxu0 }
 0x289   : > { %v9273_v3 = vadd.f32 %v9272_v14, %v9271_v51  ;;  %v5920_v50 = vadd.f32 %v9158_v49, %v15235_v7  ;;  %v9161_v48 = vadd.f32 %v9160_v44, %v9159_v34  ;;  %v8167_v44 = vld [vmem:[%s10645_s13 + $0x120] sm:$0xe]  ;;  %v8168_v49 = vld [vmem:[%s10645_s13 + $0x128] sm:$0xe] }
 0x28a   : > { %6489 = vmatmul.mubr.bf16.gmra.mrb[44].mxu1 %v15236_v41  ;;  %6328 = vmatmul.mubr.bf16.gmra.mrb[44].mxu0 %v15237_v59  ;;  %v8175_v41 = vrot.slane %v8167_v44, 9  ;;  %v8176_v8 = vrot.slane %v8168_v49, 9 }
 0x28b   : > { %6496 = vmatprep.mubr.bf16.mxu1 %v15238_v40  ;;  %v5923_v26 = vadd.f32 %v9161_v48, %v13456_v0  ;;  %v13829_v27 = vadd.f32 %v9270_v11, %v5920_v50  ;;  %6335 = vmatprep.mubr.bf16.mxu0 %v13820_v53  ;;  %v13840_v50 = vcombine.low %v2995_v33, %v2999_v19 }
 0x28d   : > { %v9274_v29 = vpop.f32.mrb[196].mxu1  ;;  %v13837_v60 = vadd.f32 %v9273_v3, %v5923_v26  ;;  %v9162_v47 = vpop.f32.mrb[196].mxu0  ;;  %v3006_v3 = vrot.slane %v13531_v20, 5  ;;  %v3003_v20 = vsel %vm10670_vm4, %v8175_v41, %v3002_v1  ;;  %v3010_v1 = vrot.slane %v13566_v56, 5 }
 0x28e   : > { %v9275_v51 = vpop.f32.mrb[197].mxu1  ;;  %v9163_v34 = vpop.f32.mrb[197].mxu0 }
 0x28f   : > { %v9276_v14 = vadd.f32 %v9275_v51, %v9274_v29  ;;  %v9277_v0 = vpop.f32.mrb[198].mxu1  ;;  %v9164_v48 = vadd.f32 %v9163_v34, %v9162_v47  ;;  %v9165_v11 = vpop.f32.mrb[198].mxu0  ;;  %v8170_v51 = vld [vmem:[%s10645_s13 + $0x138] sm:$0xe] }
 0x290   : > { %v9278_v7 = vpop.f32.mrb[199].mxu1  ;;  %v9166_v59 = vpop.f32.mrb[199].mxu0 }
 0x291   : > { %v9279_v46 = vadd.f32 %v9278_v7, %v9277_v0  ;;  %v5928_v36 = vadd.f32 %v9164_v48, %v13494_v13  ;;  %v9167_v26 = vadd.f32 %v9166_v59, %v9165_v11  ;;  %v3007_v13 = vsel %vm10670_vm4, %v8176_v8, %v3006_v3  ;;  %v8169_v59 = vld [vmem:[%s10645_s13 + $0x130] sm:$0xe] }
 0x292   : > { %6497 = vmatmul.mubr.bf16.gmra.mrb[48].mxu1 %v15238_v40  ;;  %6336 = vmatmul.mubr.bf16.gmra.mrb[48].mxu0 %v13469_v61  ;;  %v13860_v11 = vcombine.low %v3003_v20, %v3007_v13  ;;  %v8177_v7 = vrot.slane %v8169_v59, 9  ;;  %v8178_v8 = vrot.slane %v8170_v51, 9 }
 0x293   : > { %6504 = vmatprep.mubr.bf16.mxu1 %v15238_v40  ;;  %v5931_v29 = vadd.f32 %v9167_v26, %v13504_v30  ;;  %v13849_v33 = vadd.f32 %v9276_v14, %v5928_v36  ;;  %6343 = vmatprep.mubr.bf16.mxu0 %v13840_v50 }
 0x294   : > { %v3011_v56 = vsel %vm10670_vm4, %v8177_v7, %v3010_v1 }
 0x295   : > { %v9280_v55 = vpop.f32.mrb[200].mxu1  ;;  %v13857_v19 = vadd.f32 %v9279_v46, %v5931_v29  ;;  %v9168_v44 = vpop.f32.mrb[200].mxu0  ;;  %v3014_v46 = vrot.slane %v13569_v23, 5 }
 0x296   : > { %v9281_v47 = vpop.f32.mrb[201].mxu1  ;;  %v9169_v49 = vpop.f32.mrb[201].mxu0 }
 0x297   : > { %v9282_v34 = vadd.f32 %v9281_v47, %v9280_v55  ;;  %v9283_v30 = vpop.f32.mrb[202].mxu1  ;;  %v9170_v14 = vadd.f32 %v9169_v49, %v9168_v44  ;;  %v9171_v0 = vpop.f32.mrb[202].mxu0 }
 0x298   : > { %v9284_v48 = vpop.f32.mrb[203].mxu1  ;;  %v9172_v36 = vpop.f32.mrb[203].mxu0 }
 0x299   : > { %v9285_v41 = vadd.f32 %v9284_v48, %v9283_v30  ;;  %v5936_v3 = vadd.f32 %v9170_v14, %v13536_v42  ;;  %v9173_v26 = vadd.f32 %v9172_v36, %v9171_v0  ;;  %v3015_v42 = vsel %vm10670_vm4, %v8178_v8, %v3014_v46 }
 0x29a   : > { %6505 = vmatmul.mubr.bf16.gmra.mrb[52].mxu1 %v15238_v40  ;;  %6344 = vmatmul.mubr.bf16.gmra.mrb[52].mxu0 %v13512_v63  ;;  %v13878_v30 = vcombine.low %v3011_v56, %v3015_v42 }
 0x29b   : > { %6512 = vmatprep.mubr.bf16.mxu1 %v15238_v40  ;;  %v5939_v29 = vadd.f32 %v9173_v26, %v13546_v24  ;;  %v13869_v55 = vadd.f32 %v9282_v34, %v5936_v3  ;;  %6351 = vmatprep.mubr.bf16.mxu0 %v13860_v11 }
 0x29d   : > { %v9286_v20 = vpop.f32.mrb[204].mxu1  ;;  %v13876_v23 = vadd.f32 %v9285_v41, %v5939_v29  ;;  %v9174_v13 = vpop.f32.mrb[204].mxu0 }
 0x29e   : > { %v9287_v59 = vpop.f32.mrb[205].mxu1  ;;  %v9175_v44 = vpop.f32.mrb[205].mxu0 }
 0x29f   : > { %v9288_v47 = vadd.f32 %v9287_v59, %v9286_v20  ;;  %v9289_v51 = vpop.f32.mrb[206].mxu1  ;;  %v9176_v49 = vadd.f32 %v9175_v44, %v9174_v13  ;;  %v9177_v24 = vpop.f32.mrb[206].mxu0  ;;  %v15239_v44 = vld [vmem:[#allocation86_spill] sm:$0xff] }
 0x2a0   : > { %v9290_v34 = vpop.f32.mrb[207].mxu1  ;;  %v9178_v14 = vpop.f32.mrb[207].mxu0 }
 0x2a1   : > { %v9291_v0 = vadd.f32 %v9290_v34, %v9289_v51  ;;  %v5944_v48 = vadd.f32 %v9176_v49, %v13573_v4  ;;  %v9179_v7 = vadd.f32 %v9178_v14, %v9177_v24  ;;  %v15240_v49 = vld [vmem:[#allocation18_spill] sm:$0xff] }
 0x2a2   : > { %6513 = vmatmul.mubr.bf16.gmra.mrb[56].mxu1 %v15238_v40  ;;  %6352 = vmatmul.mubr.bf16.gmra.mrb[56].mxu0 %v13555_v25 }
 0x2a3   : > { %6520 = vmatprep.mubr.bf16.mxu1 %v15238_v40  ;;  %v5947_v5 = vadd.f32 %v9179_v7, %v13579_v43  ;;  %v13885_v36 = vadd.f32 %v9288_v47, %v5944_v48  ;;  %6359 = vmatprep.mubr.bf16.mxu0 %v13878_v30 }
 0x2a5   : > { %v9292_v41 = vpop.f32.mrb[208].mxu1  ;;  %v13888_v1 = vadd.f32 %v9291_v0, %v5947_v5  ;;  %v9180_v8 = vpop.f32.mrb[208].mxu0 }
 0x2a6   : > { %v9293_v46 = vpop.f32.mrb[209].mxu1  ;;  %v9181_v3 = vpop.f32.mrb[209].mxu0 }
 0x2a7   : > { %v9294_v4 = vadd.f32 %v9293_v46, %v9292_v41  ;;  %v9295_v26 = vpop.f32.mrb[210].mxu1  ;;  %v9182_v29 = vadd.f32 %v9181_v3, %v9180_v8  ;;  %v9183_v20 = vpop.f32.mrb[210].mxu0  ;;  %v10379_v46 = vld [vmem:[%s14513_s1 + $0x600] sm:$0xff]  }
 0x2a8   : > { %v9296_v56 = vpop.f32.mrb[211].mxu1  ;;  %v9184_v42 = vpop.f32.mrb[211].mxu0 }
 0x2a9   : > { %v9297_v13 = vadd.f32 %v9296_v56, %v9295_v26  ;;  %v5952_v59 = vadd.f32 %v9182_v29, %v13597_v57  ;;  %v9185_v43 = vadd.f32 %v9184_v42, %v9183_v20  ;;  %v15241_v20 = vld [vmem:[#allocation89_spill] sm:$0xff]  ;;  %v10383_v56 = vld [vmem:[%s14513_s1 + $0x688] sm:$0xff]  }
 0x2aa   : > { %6521 = vmatmul.mubr.bf16.gmra.mrb[60].mxu1 %v15238_v40  ;;  %6360 = vmatmul.mubr.bf16.gmra.mrb[60].mxu0 %v13589_v38  ;;  %v15242_v42 = vld [vmem:[#allocation21_spill] sm:$0xff] }
 0x2ab   : > { %6722 = vmatprep.mubr.bf16.mxu1 %v15239_v44  ;;  %v5955_v47 = vadd.f32 %v9185_v43, %v13599_v2  ;;  %v13895_v51 = vadd.f32 %v9294_v4, %v5952_v59  ;;  %6561 = vmatprep.mubr.bf16.mxu0 %v15240_v49  ;;  %v10381_v4 = vld [vmem:[%s14513_s1 + $0x648] sm:$0xff]   ;;  %v15243_v43 = vld [vmem:[#allocation22_spill] sm:$0xff]  ;;  %v10386_v44 = vld [vmem:[%s14513_s1 + $0x690] sm:$0xff]  }
 0x2ac   : > { %v15244_v49 = vld [vmem:[#allocation90_spill] sm:$0xff] }
 0x2ad   : > { %v9298_v24 = vpop.f32.mrb[212].mxu1  ;;  %v13898_v34 = vadd.f32 %v9297_v13, %v5955_v47  ;;  %v9186_v14 = vpop.f32.mrb[212].mxu0 }
 0x2ae   : > { %v9299_v0 = vpop.f32.mrb[213].mxu1  ;;  %v9187_v48 = vpop.f32.mrb[213].mxu0 }
 0x2af   : > { %v9300_v57 = vadd.f32 %v9299_v0, %v9298_v24  ;;  %v9301_v7 = vpop.f32.mrb[214].mxu1  ;;  %v9188_v5 = vadd.f32 %v9187_v48, %v9186_v14  ;;  %v9189_v41 = vpop.f32.mrb[214].mxu0 }
 0x2b0   : > { %v9302_v8 = vpop.f32.mrb[215].mxu1  ;;  %v9190_v2 = vpop.f32.mrb[215].mxu0 }
 0x2b1   : > { %v9303_v3 = vadd.f32 %v9302_v8, %v9301_v7  ;;  %v5960_v26 = vadd.f32 %v9188_v5, %v13627_v35  ;;  %v9191_v29 = vadd.f32 %v9190_v2, %v9189_v41  ;;  %v10382_v35 = vld [vmem:[%s14513_s1 + $0x608] sm:$0xff]   ;;  %v10385_v8 = vld [vmem:[%s14513_s1 + $0x610] sm:$0xff]  }
 0x2b2   : > { %6723 = vmatmul.mubr.bf16.vlgmr.msra.gmra.mrb[64].mxu1 %v15241_v20  ;;  %6562 = vmatmul.mubr.bf16.vlgmr.msra.gmra.mrb[64].mxu0 %v15242_v42  ;;  %v10389_v20 = vld [vmem:[%s14513_s1 + $0x698] sm:$0xff]   ;;  %v15246_v42 = vld [vmem:[#allocation26_spill] sm:$0xff] }
 0x2b3   : > { %9966 = vmatpush3.bf16.msra.mxu1 %v13737_v62  ;;  %v5963_v13 = vadd.f32 %v9191_v29, %v13633_v15  ;;  %v13914_v59 = vadd.f32 %v9300_v57, %v5960_v26  ;;  %9813 = vmatpush3.bf16.msra.mxu0 %v10379_v46  ;;  %v10384_v15 = vld [vmem:[%s14513_s1 + $0x650] sm:$0xff]   ;;  %v15245_v29 = vld [vmem:[#allocation91_spill] sm:$0xff] }
 0x2b4   : > { %6569 = vmatprep.mubr.bf16.mxu0 %v15243_v43  ;;  %6730 = vmatprep.mubr.bf16.mxu1 %v15244_v49  ;;  %v10388_v49 = vld [vmem:[%s14513_s1 + $0x618] sm:$0xff]  }
 0x2b5   : > { %v9304_v47 = vpop.f32.mrb[216].mxu1  ;;  %9814 = vmatprep.subr.bf16.mxu0 %v10381_v4  ;;  %v13927_v62 = vadd.f32 %v9303_v3, %v5963_v13  ;;  %v9192_v24 = vpop.f32.mrb[216].mxu0  ;;  %9967 = vmatprep.subr.bf16.mxu1 %v10383_v56  ;;  %v10387_v3 = vld [vmem:[%s14513_s1 + $0x658] sm:$0xff]   ;;  %v15247_v13 = vld [vmem:[#allocation94_spill] sm:$0xff] }
 0x2b6   : > { %v9305_v14 = vpop.f32.mrb[217].mxu1  ;;  %v9193_v0 = vpop.f32.mrb[217].mxu0 }
 0x2b7   : > { %v9306_v48 = vadd.f32 %v9305_v14, %v9304_v47  ;;  %v9307_v57 = vpop.f32.mrb[218].mxu1  ;;  %9968 = vmatpush3.bf16.msra.mxu1 %v10383_v56  ;;  %v9194_v7 = vadd.f32 %v9193_v0, %v9192_v24  ;;  %v9195_v5 = vpop.f32.mrb[218].mxu0  ;;  %9815 = vmatpush3.bf16.msra.mxu0 %v10382_v35  ;;  %v13943_v56 = vld [vmem:[%s14516_s4] sm:$0xf]  ;;  %v15248_v47 = vld [vmem:[#allocation27_spill] sm:$0xff] }
 0x2b8   : > { %v9308_v41 = vpop.f32.mrb[219].mxu1  ;;  %9969 = vmatprep.subr.bf16.mxu1 %v10386_v44  ;;  %v9196_v46 = vpop.f32.mrb[219].mxu0  ;;  %9816 = vmatprep.subr.bf16.mxu0 %v10384_v15  ;;  %v10390_v24 = vld [vmem:[%s14513_s1 + $0x660] sm:$0xff]  }
 0x2b9   : > { %v9309_v2 = vadd.f32 %v9308_v41, %v9307_v57  ;;  %v5968_v4 = vadd.f32 %v9194_v7, %v13656_v37  ;;  %v9197_v26 = vadd.f32 %v9196_v46, %v9195_v5  ;;  %v13949_v37 = vsel %vm7335_vm6, %v13943_v56, 0  ;;  %v10391_v46 = vld [vmem:[%s14513_s1 + $0x620] sm:$0xff]  }
 0x2ba   : > { %6731 = vmatmul.mubr.bf16.gmra.mrb[68].mxu1 %v15245_v29  ;;  %6570 = vmatmul.mubr.bf16.gmra.mrb[68].mxu0 %v15246_v42  ;;  %v15249_v42 = vld [vmem:[#allocation96_spill] sm:$0xff] }
 0x2bb   : > { %6738 = vmatprep.mubr.bf16.mxu1 %v15247_v13  ;;  %v5971_v43 = vadd.f32 %v9197_v26, %v13667_v9  ;;  %v13952_v35 = vadd.f32 %v9306_v48, %v5968_v4  ;;  %6577 = vmatprep.mubr.bf16.mxu0 %v15248_v47  ;;  %v10392_v48 = vld [vmem:[%s14513_s1 + $0x6a0] sm:$0xff]   ;;  %v10393_v4 = vld [vmem:[%s14513_s1 + $0x668] sm:$0xff]   ;;  %v15251_v47 = vld [vmem:[#allocation33_spill] sm:$0xff] }
 0x2bc   : > { %9817 = vmatpush3.bf16.msra.mxu0 %v10385_v8  ;;  %9970 = vmatpush3.bf16.msra.mxu1 %v10386_v44  ;;  %v10395_v13 = vld [vmem:[%s14513_s1 + $0x6a8] sm:$0xff]  }
 0x2bd   : > { %v9310_v15 = vpop.f32.mrb[220].mxu1  ;;  %9818 = vmatprep.subr.bf16.mxu0 %v10387_v3  ;;  %v13961_v14 = vadd.f32 %v9309_v2, %v5971_v43  ;;  %v9198_v0 = vpop.f32.mrb[220].mxu0  ;;  %9971 = vmatprep.subr.bf16.mxu1 %v10389_v20  ;;  %v15250_v43 = vld [vmem:[#allocation30_spill] sm:$0xff] }
 0x2be   : > { %v9311_v9 = vpop.f32.mrb[221].mxu1  ;;  %v9199_v57 = vpop.f32.mrb[221].mxu0 }
 0x2bf   : > { %v9312_v7 = vadd.f32 %v9311_v9, %v9310_v15  ;;  %v9313_v5 = vpop.f32.mrb[222].mxu1  ;;  %v9200_v41 = vadd.f32 %v9199_v57, %v9198_v0  ;;  %v9201_v8 = vpop.f32.mrb[222].mxu0  ;;  %v15252_v15 = vld [vmem:[#allocation32_spill] sm:$0xff] }
 0x2c0   : > { %v9314_v44 = vpop.f32.mrb[223].mxu1  ;;  %9819 = vmatpush3.bf16.msra.mxu0 %v10388_v49  ;;  %v9202_v2 = vpop.f32.mrb[223].mxu0  ;;  %9972 = vmatpush3.bf16.msra.mxu1 %v10389_v20  ;;  %v10396_v0 = vld [vmem:[%s14513_s1 + $0x670] sm:$0xff]  }
 0x2c1   : > { %v9315_v3 = vadd.f32 %v9314_v44, %v9313_v5  ;;  %9820 = vmatprep.subr.bf16.mxu0 %v10390_v24  ;;  %v5976_v26 = vadd.f32 %v9200_v41, %v13690_v32  ;;  %v9203_v29 = vadd.f32 %v9202_v2, %v9201_v8  ;;  %9973 = vmatprep.subr.bf16.mxu1 %v10392_v48  ;;  %v10394_v32 = vld [vmem:[%s14513_s1 + $0x628] sm:$0xff]   ;;  %v10397_v2 = vld [vmem:[%s14513_s1 + $0x630] sm:$0xff]  }
 0x2c2   : > { %6739 = vmatmul.mubr.bf16.gmra.mrb[72].mxu1 %v15249_v42  ;;  %6578 = vmatmul.mubr.bf16.gmra.mrb[72].mxu0 %v15250_v43  ;;  %v15253_v43 = vld [vmem:[#allocation35_spill] sm:$0xff] }
 0x2c3   : > { %6746 = vmatprep.mubr.bf16.mxu1 %v15251_v47  ;;  %v5979_v20 = vadd.f32 %v9203_v29, %v13701_v21  ;;  %v13980_v49 = vadd.f32 %v9312_v7, %v5976_v26  ;;  %6585 = vmatprep.mubr.bf16.mxu0 %v15252_v15  ;;  %v10398_v7 = vld [vmem:[%s14513_s1 + $0x6b0] sm:$0xff]   ;;  %v10399_v26 = vld [vmem:[%s14513_s1 + $0x678] sm:$0xff]  }
 0x2c4   : > { %9821 = vmatpush3.bf16.msra.mxu0 %v10391_v46  ;;  %9974 = vmatpush3.bf16.msra.mxu1 %v10392_v48  ;;  %v10401_v47 = vld [vmem:[%s14513_s1 + $0x6b8] sm:$0xff]  }
 0x2c5   : > { %v9316_v24 = vpop.f32.mrb[224].mxu1  ;;  %9822 = vmatprep.subr.bf16.mxu0 %v10393_v4  ;;  %v13989_v9 = vadd.f32 %v9315_v3, %v5979_v20  ;;  %v9204_v57 = vpop.f32.mrb[224].mxu0  ;;  %9975 = vmatprep.subr.bf16.mxu1 %v10395_v13  ;;  %v15254_v20 = vld [vmem:[#allocation38_spill] sm:$0xff]  ;;  %v15255_v15 = vld [vmem:[#allocation41_spill] sm:$0xff] }
 0x2c6   : > { %v9317_v21 = vpop.f32.mrb[225].mxu1  ;;  %v9205_v5 = vpop.f32.mrb[225].mxu0 }
 0x2c7   : > { %v9318_v41 = vadd.f32 %v9317_v21, %v9316_v24  ;;  %v9319_v8 = vpop.f32.mrb[226].mxu1  ;;  %v9206_v44 = vadd.f32 %v9205_v5, %v9204_v57  ;;  %v9207_v46 = vpop.f32.mrb[226].mxu0  ;;  %v15256_v24 = vld [vmem:[#allocation39_spill] sm:$0xff] }
 0x2c8   : > { %v9320_v48 = vpop.f32.mrb[227].mxu1  ;;  %9823 = vmatpush3.bf16.msra.mxu0 %v10394_v32  ;;  %v9208_v3 = vpop.f32.mrb[227].mxu0  ;;  %9976 = vmatpush3.bf16.msra.mxu1 %v10395_v13 }
 0x2c9   : > { %v9321_v4 = vadd.f32 %v9320_v48, %v9319_v8  ;;  %9824 = vmatprep.subr.bf16.mxu0 %v10396_v0  ;;  %v5984_v29 = vadd.f32 %v9206_v44, %v13719_v10  ;;  %v9209_v42 = vadd.f32 %v9208_v3, %v9207_v46  ;;  %9977 = vmatprep.subr.bf16.mxu1 %v10398_v7  ;;  %v10400_v10 = vld [vmem:[%s14513_s1 + $0x638] sm:$0xff]  }
 0x2ca   : > { %6747 = vmatmul.mubr.bf16.gmra.mrb[76].mxu1 %v15253_v43  ;;  %6586 = vmatmul.mubr.bf16.gmra.mrb[76].mxu0 %v15254_v20 }
 0x2cb   : > { %6754 = vmatprep.mubr.bf16.mxu1 %v15255_v15  ;;  %v5987_v13 = vadd.f32 %v9209_v42, %v13732_v31  ;;  %v14008_v32 = vadd.f32 %v9318_v41, %v5984_v29  ;;  %6593 = vmatprep.mubr.bf16.mxu0 %v15256_v24  ;;  %v15260_v15 = vld [vmem:[#allocation48_spill] sm:$0xff] }
 0x2cc   : > { %9825 = vmatpush3.bf16.msra.mxu0 %v10397_v2  ;;  %9978 = vmatpush3.bf16.msra.mxu1 %v10398_v7  ;;  %v15257_v7 = vld [vmem:[#allocation43_spill] sm:$0xff] }
 0x2cd   : > { %v9322_v0 = vpop.f32.mrb[228].mxu1  ;;  %9826 = vmatprep.subr.bf16.mxu0 %v10399_v26  ;;  %v14014_v57 = vadd.f32 %v9321_v4, %v5987_v13  ;;  %v9210_v21 = vpop.f32.mrb[228].mxu0  ;;  %9979 = vmatprep.subr.bf16.mxu1 %v10401_v47  ;;  %v15258_v4 = vld [vmem:[#allocation47_spill] sm:$0xff]  ;;  %v15259_v26 = vld [vmem:[#allocation50_spill] sm:$0xff] }
 0x2ce   : > { %v9323_v5 = vpop.f32.mrb[229].mxu1  ;;  %v9211_v8 = vpop.f32.mrb[229].mxu0 }
 0x2cf   : > { %v9324_v44 = vadd.f32 %v9323_v5, %v9322_v0  ;;  %v9325_v31 = vpop.f32.mrb[230].mxu1  ;;  %v9212_v41 = vadd.f32 %v9211_v8, %v9210_v21  ;;  %v9213_v46 = vpop.f32.mrb[230].mxu0 }
 0x2d0   : > { %v9326_v48 = vpop.f32.mrb[231].mxu1  ;;  %9827 = vmatpush3.bf16.msra.mxu0 %v10400_v10  ;;  %v9214_v2 = vpop.f32.mrb[231].mxu0  ;;  %9980 = vmatpush3.bf16.msra.mxu1 %v10401_v47 }
 0x2d1   : > { %v9327_v3 = vadd.f32 %v9326_v48, %v9325_v31  ;;  %v5992_v29 = vadd.f32 %v9212_v41, %v13744_v17  ;;  %v9215_v42 = vadd.f32 %v9214_v2, %v9213_v46  ;;  %10111 = vmatprep.subr.msk.bf16.mxu1 %vm7335_vm6, %v13943_v56  ;;  %v15262_v48 = vld [vmem:[#allocation53_spill] sm:$0xff]  ;;  %v15263_v2 = vld [vmem:[#allocation63_spill] sm:$0xff] }
 0x2d2   : > { %6755 = vmatmul.mubr.bf16.gmra.mrb[80].mxu1 %v15257_v7  ;;  %6594 = vmatmul.mubr.bf16.gmra.mrb[80].mxu0 %v15258_v4 }
 0x2d3   : > { %6762 = vmatprep.mubr.bf16.mxu1 %v15259_v26  ;;  %v5995_v43 = vadd.f32 %v9215_v42, %v13748_v28  ;;  %v14023_v20 = vadd.f32 %v9324_v44, %v5992_v29  ;;  %6601 = vmatprep.mubr.bf16.mxu0 %v15260_v15  ;;  %v15261_v44 = vld [vmem:[#allocation54_spill] sm:$0xff]  ;;  %v15264_v42 = vld [vmem:[#allocation55_spill] sm:$0xff] }
 0x2d5   : > { %v9328_v13 = vpop.f32.mrb[232].mxu1  ;;  %v14026_v47 = vadd.f32 %v9327_v3, %v5995_v43  ;;  %v9216_v17 = vpop.f32.mrb[232].mxu0 }
 0x2d6   : > { %v9329_v24 = vpop.f32.mrb[233].mxu1  ;;  %v9217_v10 = vpop.f32.mrb[233].mxu0 }
 0x2d7   : > { %v9330_v0 = vadd.f32 %v9329_v24, %v9328_v13  ;;  %v9331_v21 = vpop.f32.mrb[234].mxu1  ;;  %v9218_v5 = vadd.f32 %v9217_v10, %v9216_v17  ;;  %v9219_v56 = vpop.f32.mrb[234].mxu0 }
 0x2d8   : > { %v9332_v8 = vpop.f32.mrb[235].mxu1  ;;  %v9220_v31 = vpop.f32.mrb[235].mxu0 }
 0x2d9   : > { %v9333_v41 = vadd.f32 %v9332_v8, %v9331_v21  ;;  %v6000_v46 = vadd.f32 %v9218_v5, %v13754_v52  ;;  %v9221_v28 = vadd.f32 %v9220_v31, %v9219_v56  ;;  %v15266_v8 = vld [vmem:[#allocation62_spill] sm:$0xff]  ;;  %v15267_v31 = vld [vmem:[#allocation67_spill] sm:$0xff] }
 0x2da   : > { %6763 = vmatmul.mubr.bf16.gmra.mrb[84].mxu1 %v15261_v44  ;;  %6602 = vmatmul.mubr.bf16.gmra.mrb[84].mxu0 %v15262_v48 }
 0x2db   : > { %6770 = vmatprep.mubr.bf16.mxu1 %v15263_v2  ;;  %v6003_v3 = vadd.f32 %v9221_v28, %v13758_v39  ;;  %v14033_v29 = vadd.f32 %v9330_v0, %v6000_v46  ;;  %6609 = vmatprep.mubr.bf16.mxu0 %v15264_v42  ;;  %v15265_v0 = vld [vmem:[#allocation57_spill] sm:$0xff]  ;;  %v15268_v28 = vld [vmem:[#allocation66_spill] sm:$0xff] }
 0x2dd   : > { %v9334_v7 = vpop.f32.mrb[236].mxu1  ;;  %v14036_v4 = vadd.f32 %v9333_v41, %v6003_v3  ;;  %v9222_v26 = vpop.f32.mrb[236].mxu0 }
 0x2de   : > { %v9335_v43 = vpop.f32.mrb[237].mxu1  ;;  %v9223_v15 = vpop.f32.mrb[237].mxu0 }
 0x2df   : > { %v9336_v52 = vadd.f32 %v9335_v43, %v9334_v7  ;;  %v9337_v13 = vpop.f32.mrb[238].mxu1  ;;  %v9224_v17 = vadd.f32 %v9223_v15, %v9222_v26  ;;  %v9225_v24 = vpop.f32.mrb[238].mxu0 }
 0x2e0   : > { %v9338_v10 = vpop.f32.mrb[239].mxu1  ;;  %v9226_v21 = vpop.f32.mrb[239].mxu0 }
 0x2e1   : > { %v9339_v5 = vadd.f32 %v9338_v10, %v9337_v13  ;;  %v6008_v56 = vadd.f32 %v9224_v17, %v13764_v45  ;;  %v9227_v39 = vadd.f32 %v9226_v21, %v9225_v24  ;;  %v15269_v24 = vld [vmem:[#allocation71_spill] sm:$0xff]  ;;  %v15270_v10 = vld [vmem:[#allocation70_spill] sm:$0xff] }
 0x2e2   : > { %6771 = vmatmul.mubr.bf16.gmra.mrb[88].mxu1 %v15265_v0  ;;  %6610 = vmatmul.mubr.bf16.gmra.mrb[88].mxu0 %v15266_v8 }
 0x2e3   : > { %6778 = vmatprep.mubr.bf16.mxu1 %v15267_v31  ;;  %v6011_v41 = vadd.f32 %v9227_v39, %v13768_v58  ;;  %v14043_v46 = vadd.f32 %v9336_v52, %v6008_v56  ;;  %6617 = vmatprep.mubr.bf16.mxu0 %v15268_v28 }
 0x2e5   : > { %v9340_v44 = vpop.f32.mrb[240].mxu1  ;;  %v14046_v48 = vadd.f32 %v9339_v5, %v6011_v41  ;;  %v9228_v2 = vpop.f32.mrb[240].mxu0 }
 0x2e6   : > { %v9341_v3 = vpop.f32.mrb[241].mxu1  ;;  %v9229_v42 = vpop.f32.mrb[241].mxu0 }
 0x2e7   : > { %v9342_v45 = vadd.f32 %v9341_v3, %v9340_v44  ;;  %v9343_v7 = vpop.f32.mrb[242].mxu1  ;;  %v9230_v26 = vadd.f32 %v9229_v42, %v9228_v2  ;;  %v9231_v43 = vpop.f32.mrb[242].mxu0  ;;  %v15271_v42 = vld [vmem:[#allocation9_spill] sm:$0xff] }
 0x2e8   : > { %v9344_v15 = vpop.f32.mrb[243].mxu1  ;;  %v9232_v13 = vpop.f32.mrb[243].mxu0 }
 0x2e9   : > { %v9345_v17 = vadd.f32 %v9344_v15, %v9343_v7  ;;  %v6016_v58 = vadd.f32 %v9230_v26, %v13774_v16  ;;  %v9233_v52 = vadd.f32 %v9232_v13, %v9231_v43  ;;  %v15273_v7 = vld [vmem:[#allocation20_spill] sm:$0xff]  ;;  %v15274_v15 = vld [vmem:[#allocation82_spill] sm:$0xff] }
 0x2ea   : > { %6779 = vmatmul.mubr.bf16.gmra.mrb[92].mxu1 %v15269_v24  ;;  %6618 = vmatmul.mubr.bf16.gmra.mrb[92].mxu0 %v15270_v10 }
 0x2eb   : > { %6786 = vmatprep.mubr.bf16.mxu1 %v13305_v12  ;;  %v6019_v21 = vadd.f32 %v9233_v52, %v13778_v18  ;;  %v14053_v5 = vadd.f32 %v9342_v45, %v6016_v58  ;;  %6625 = vmatprep.mubr.bf16.mxu0 %v13293_v54  ;;  %v15272_v45 = vld [vmem:[#allocation115_spill] sm:$0xff] }
 0x2ed   : > { %v9346_v56 = vpop.f32.mrb[244].mxu1  ;;  %v14056_v39 = vadd.f32 %v9345_v17, %v6019_v21  ;;  %v9234_v0 = vpop.f32.mrb[244].mxu0 }
 0x2ee   : > { %v9347_v8 = vpop.f32.mrb[245].mxu1  ;;  %v9235_v16 = vpop.f32.mrb[245].mxu0 }
 0x2ef   : > { %v9348_v31 = vadd.f32 %v9347_v8, %v9346_v56  ;;  %v9349_v41 = vpop.f32.mrb[246].mxu1  ;;  %v9236_v12 = vadd.f32 %v9235_v16, %v9234_v0  ;;  %v9237_v18 = vpop.f32.mrb[246].mxu0 }
 0x2f0   : > { %v9350_v28 = vpop.f32.mrb[247].mxu1  ;;  %v9238_v44 = vpop.f32.mrb[247].mxu0 }
 0x2f1   : > { %v9351_v2 = vadd.f32 %v9350_v28, %v9349_v41  ;;  %v6024_v54 = vadd.f32 %v9236_v12, %v13784_v6  ;;  %v9239_v3 = vadd.f32 %v9238_v44, %v9237_v18  ;;  %v15277_v18 = vld [vmem:[#allocation119_spill] sm:$0xff]  ;;  %v15278_v28 = vld [vmem:[#allocation105_spill] sm:$0xff] }
 0x2f2   : > { %6787 = vmatmul.mubr.bf16.gmra.mrb[96].mxu1 %v15271_v42  ;;  %6626 = vmatmul.mubr.bf16.gmra.mrb[96].mxu0 %v15272_v45  ;;  %v15279_v44 = vld [vmem:[#allocation19_spill] sm:$0xff] }
 0x2f3   : > { %6794 = vmatprep.mubr.bf16.mxu1 %v13400_v22  ;;  %v6027_v26 = vadd.f32 %v9239_v3, %v15273_v7  ;;  %v14069_v43 = vadd.f32 %v9348_v31, %v6024_v54  ;;  %6633 = vmatprep.mubr.bf16.mxu0 %v15274_v15  ;;  %v15275_v22 = vld [vmem:[#allocation11_spill] sm:$0xff]  ;;  %v15280_v3 = vld [vmem:[#allocation17_spill] sm:$0xff] }
 0x2f4   : > { %v15276_v31 = vld [vmem:[#allocation15_spill] sm:$0xff] }
 0x2f5   : > { %v9352_v13 = vpop.f32.mrb[248].mxu1  ;;  %v14072_v17 = vadd.f32 %v9351_v2, %v6027_v26  ;;  %v9240_v58 = vpop.f32.mrb[248].mxu0 }
 0x2f6   : > { %v9353_v52 = vpop.f32.mrb[249].mxu1  ;;  %v9241_v24 = vpop.f32.mrb[249].mxu0 }
 0x2f7   : > { %v9354_v6 = vadd.f32 %v9353_v52, %v9352_v13  ;;  %v9355_v10 = vpop.f32.mrb[250].mxu1  ;;  %v9242_v21 = vadd.f32 %v9241_v24, %v9240_v58  ;;  %v9243_v56 = vpop.f32.mrb[250].mxu0 }
 0x2f8   : > { %v9356_v0 = vpop.f32.mrb[251].mxu1  ;;  %v9244_v8 = vpop.f32.mrb[251].mxu0 }
 0x2f9   : > { %v9357_v16 = vadd.f32 %v9356_v0, %v9355_v10  ;;  %v6032_v41 = vadd.f32 %v9242_v21, %v15275_v22  ;;  %v9245_v12 = vadd.f32 %v9244_v8, %v9243_v56  ;;  %v15281_v0 = vld [vmem:[#allocation74_spill] sm:$0xff] }
 0x2fa   : > { %6795 = vmatmul.mubr.bf16.gmra.mrb[100].mxu1 %v15276_v31  ;;  %6634 = vmatmul.mubr.bf16.gmra.mrb[100].mxu0 %v15277_v18 }
 0x2fb   : > { %6802 = vmatprep.mubr.bf16.mxu1 %v15278_v28  ;;  %v6035_v2 = vadd.f32 %v9245_v12, %v15279_v44  ;;  %v14079_v54 = vadd.f32 %v9354_v6, %v6032_v41  ;;  %6641 = vmatprep.mubr.bf16.mxu0 %v15280_v3  ;;  %v15282_v6 = vld [vmem:[#allocation103_spill] sm:$0xff]  ;;  %v15283_v41 = vld [vmem:[#allocation122_spill] sm:$0xff]  ;;  %v15286_v28 = vld [vmem:[#allocation128_spill] sm:$0xff] }
 0x2fc   : > { %v15284_v12 = vld [vmem:[#allocation110_spill] sm:$0xff] }
 0x2fd   : > { %v9358_v42 = vpop.f32.mrb[252].mxu1  ;;  %v14082_v45 = vadd.f32 %v9357_v16, %v6035_v2  ;;  %v9246_v7 = vpop.f32.mrb[252].mxu0  ;;  %v15285_v16 = vld [vmem:[#allocation14_spill] sm:$0xff] }
 0x2fe   : > { %v9359_v26 = vpop.f32.mrb[253].mxu1  ;;  %v9247_v15 = vpop.f32.mrb[253].mxu0 }
 0x2ff   : > { %v9360_v13 = vadd.f32 %v9359_v26, %v9358_v42  ;;  %v9361_v58 = vpop.f32.mrb[254].mxu1  ;;  %v9248_v52 = vadd.f32 %v9247_v15, %v9246_v7  ;;  %v9249_v24 = vpop.f32.mrb[254].mxu0 }
 0x300   : > { %v9362_v10 = vpop.f32.mrb[255].mxu1  ;;  %v9250_v21 = vpop.f32.mrb[255].mxu0 }
 0x301   : > { %v9363_v56 = vadd.f32 %v9362_v10, %v9361_v58  ;;  %v6040_v8 = vadd.f32 %v9248_v52, %v15281_v0  ;;  %v9251_v22 = vadd.f32 %v9250_v21, %v9249_v24 }
 0x302   : > { %6803 = vmatmul.mubr.bf16.gmra.mrb[104].mxu1 %v15282_v6  ;;  %6642 = vmatmul.mubr.bf16.gmra.mrb[104].mxu0 %v15283_v41 }
 0x303   : > { %6810 = vmatprep.mubr.bf16.mxu1 %v15284_v12  ;;  %v6043_v31 = vadd.f32 %v9251_v22, %v15285_v16  ;;  %v14089_v18 = vadd.f32 %v9360_v13, %v6040_v8  ;;  %6649 = vmatprep.mubr.bf16.mxu0 %v15286_v28  ;;  %v15287_v13 = vld [vmem:[#allocation109_spill] sm:$0xff]  ;;  %v15288_v8 = vld [vmem:[#allocation127_spill] sm:$0xff] }
 0x305   : > { %v9492_v44 = vpop.f32.mrb[0].mxu1  ;;  %v14092_v2 = vadd.f32 %v9363_v56, %v6043_v31  ;;  %v9380_v3 = vpop.f32.mrb[0].mxu0 }
 0x306   : > { %v9493_v42 = vpop.f32.mrb[1].mxu1  ;;  %v9381_v7 = vpop.f32.mrb[1].mxu0 }
 0x307   : > { %v9494_v26 = vadd.f32 %v9493_v42, %v9492_v44  ;;  %v9495_v15 = vpop.f32.mrb[2].mxu1  ;;  %v9382_v58 = vadd.f32 %v9381_v7, %v9380_v3  ;;  %v9383_v52 = vpop.f32.mrb[2].mxu0 }
 0x308   : > { %v9496_v24 = vpop.f32.mrb[3].mxu1  ;;  %v9384_v10 = vpop.f32.mrb[3].mxu0 }
 0x309   : > { %v9497_v21 = vadd.f32 %v9496_v24, %v9495_v15  ;;  %v6242_v0 = vadd.f32 %v9382_v58, %v13829_v27  ;;  %v9385_v22 = vadd.f32 %v9384_v10, %v9383_v52 }
 0x30a   : > { %6811 = vmatmul.mubr.bf16.gmra.mrb[108].mxu1 %v15287_v13  ;;  %6650 = vmatmul.mubr.bf16.gmra.mrb[108].mxu0 %v15288_v8 }
 0x30b   : > { %6818 = vmatprep.mubr.bf16.mxu1 %v15238_v40  ;;  %v6245_v56 = vadd.f32 %v9385_v22, %v13837_v60  ;;  %v14099_v6 = vadd.f32 %v9494_v26, %v6242_v0  ;;  %6657 = vmatprep.mubr.bf16.mxu0 %v15238_v40 }
 0x30d   : > { %v9498_v41 = vpop.f32.mrb[4].mxu1  ;;  %v14102_v12 = vadd.f32 %v9497_v21, %v6245_v56  ;;  %v9386_v16 = vpop.f32.mrb[4].mxu0 }
 0x30e   : > { %v9499_v31 = vpop.f32.mrb[5].mxu1  ;;  %v9387_v28 = vpop.f32.mrb[5].mxu0 }
 0x30f   : > { %v9500_v27 = vadd.f32 %v9499_v31, %v9498_v41  ;;  %v9501_v44 = vpop.f32.mrb[6].mxu1  ;;  %v9388_v3 = vadd.f32 %v9387_v28, %v9386_v16  ;;  %v9389_v42 = vpop.f32.mrb[6].mxu0 }
 0x310   : > { %v9502_v7 = vpop.f32.mrb[7].mxu1  ;;  %v9390_v15 = vpop.f32.mrb[7].mxu0 }
 0x311   : > { %v9503_v58 = vadd.f32 %v9502_v7, %v9501_v44  ;;  %v6250_v52 = vadd.f32 %v9388_v3, %v13849_v33  ;;  %v9391_v60 = vadd.f32 %v9390_v15, %v9389_v42 }
 0x312   : > { %6819 = vmatmul.mubr.bf16.gmra.mrb[112].mxu1 %v15238_v40  ;;  %6658 = vmatmul.mubr.bf16.gmra.mrb[112].mxu0 %v15238_v40 }
 0x313   : > { %6826 = vmatprep.mubr.bf16.mxu1 %v15238_v40  ;;  %v6253_v26 = vadd.f32 %v9391_v60, %v13857_v19  ;;  %v14109_v24 = vadd.f32 %v9500_v27, %v6250_v52  ;;  %6665 = vmatprep.mubr.bf16.mxu0 %v15238_v40 }
 0x315   : > { %v9504_v10 = vpop.f32.mrb[8].mxu1  ;;  %v14112_v21 = vadd.f32 %v9503_v58, %v6253_v26  ;;  %v9392_v0 = vpop.f32.mrb[8].mxu0 }
 0x316   : > { %v9505_v22 = vpop.f32.mrb[9].mxu1  ;;  %v9393_v13 = vpop.f32.mrb[9].mxu0 }
 0x317   : > { %v9506_v33 = vadd.f32 %v9505_v22, %v9504_v10  ;;  %v9507_v8 = vpop.f32.mrb[10].mxu1  ;;  %v9394_v56 = vadd.f32 %v9393_v13, %v9392_v0  ;;  %v9395_v41 = vpop.f32.mrb[10].mxu0 }
 0x318   : > { %v9508_v16 = vpop.f32.mrb[11].mxu1  ;;  %v9396_v31 = vpop.f32.mrb[11].mxu0 }
 0x319   : > { %v9509_v28 = vadd.f32 %v9508_v16, %v9507_v8  ;;  %v6258_v44 = vadd.f32 %v9394_v56, %v13869_v55  ;;  %v9397_v19 = vadd.f32 %v9396_v31, %v9395_v41 }
 0x31a   : > { %6827 = vmatmul.mubr.bf16.gmra.mrb[116].mxu1 %v15238_v40  ;;  %6666 = vmatmul.mubr.bf16.gmra.mrb[116].mxu0 %v15238_v40 }
 0x31b   : > { %6834 = vmatprep.mubr.bf16.mxu1 %v15238_v40  ;;  %v6261_v27 = vadd.f32 %v9397_v19, %v13876_v23  ;;  %v14119_v3 = vadd.f32 %v9506_v33, %v6258_v44  ;;  %6673 = vmatprep.mubr.bf16.mxu0 %v15238_v40 }
 0x31d   : > { %v9510_v42 = vpop.f32.mrb[12].mxu1  ;;  %v14122_v7 = vadd.f32 %v9509_v28, %v6261_v27  ;;  %v9398_v15 = vpop.f32.mrb[12].mxu0 }
 0x31e   : > { %v9511_v58 = vpop.f32.mrb[13].mxu1  ;;  %v9399_v52 = vpop.f32.mrb[13].mxu0 }
 0x31f   : > { %v9512_v55 = vadd.f32 %v9511_v58, %v9510_v42  ;;  %v9513_v60 = vpop.f32.mrb[14].mxu1  ;;  %v9400_v26 = vadd.f32 %v9399_v52, %v9398_v15  ;;  %v9401_v10 = vpop.f32.mrb[14].mxu0 }
 0x320   : > { %v9514_v0 = vpop.f32.mrb[15].mxu1  ;;  %v9402_v22 = vpop.f32.mrb[15].mxu0 }
 0x321   : > { %v9515_v13 = vadd.f32 %v9514_v0, %v9513_v60  ;;  %v6266_v8 = vadd.f32 %v9400_v26, %v13885_v36  ;;  %v9403_v23 = vadd.f32 %v9402_v22, %v9401_v10  ;;  %v15290_v0 = vld [vmem:[#allocation92_spill] sm:$0xff] }
 0x322   : > { %6835 = vmatmul.mubr.bf16.gmra.mrb[120].mxu1 %v15238_v40  ;;  %6674 = vmatmul.mubr.bf16.gmra.mrb[120].mxu0 %v15238_v40 }
 0x323   : > { %6842 = vmatprep.mubr.bf16.mxu1 %v15238_v40  ;;  %v6269_v33 = vadd.f32 %v9403_v23, %v13888_v1  ;;  %v14129_v56 = vadd.f32 %v9512_v55, %v6266_v8  ;;  %6681 = vmatprep.mubr.bf16.mxu0 %v15238_v40  ;;  %v15289_v55 = vld [vmem:[#allocation108_spill] sm:$0xff] }
 0x325   : > { %v9516_v41 = vpop.f32.mrb[16].mxu1  ;;  %v14132_v16 = vadd.f32 %v9515_v13, %v6269_v33  ;;  %v9404_v31 = vpop.f32.mrb[16].mxu0 }
 0x326   : > { %v9517_v28 = vpop.f32.mrb[17].mxu1  ;;  %v9405_v44 = vpop.f32.mrb[17].mxu0 }
 0x327   : > { %v9518_v36 = vadd.f32 %v9517_v28, %v9516_v41  ;;  %v9519_v19 = vpop.f32.mrb[18].mxu1  ;;  %v9406_v27 = vadd.f32 %v9405_v44, %v9404_v31  ;;  %v9407_v42 = vpop.f32.mrb[18].mxu0 }
 0x328   : > { %v9520_v15 = vpop.f32.mrb[19].mxu1  ;;  %v9408_v58 = vpop.f32.mrb[19].mxu0 }
 0x329   : > { %v9521_v52 = vadd.f32 %v9520_v15, %v9519_v19  ;;  %v6274_v60 = vadd.f32 %v9406_v27, %v13895_v51  ;;  %v9409_v1 = vadd.f32 %v9408_v58, %v9407_v42  ;;  %v15292_v15 = vld [vmem:[#allocation88_spill] sm:$0xff] }
 0x32a   : > { %6843 = vmatmul.mubr.bf16.gmra.mrb[124].mxu1 %v15238_v40  ;;  %6682 = vmatmul.mubr.bf16.gmra.mrb[124].mxu0 %v15238_v40 }
 0x32b   : > { %9981 = vmatprep.mubr.bf16.mxu1 %v15289_v55  ;;  %v6277_v26 = vadd.f32 %v9409_v1, %v13898_v34  ;;  %v14139_v10 = vadd.f32 %v9518_v36, %v6274_v60  ;;  %6883 = vmatprep.mubr.bf16.mxu0 %v15290_v0  ;;  %v15291_v36 = vld [vmem:[#allocation111_spill] sm:$0xff]  ;;  %v15293_v60 = vld [vmem:[#allocation25_spill] sm:$0xff]  ;;  %v15294_v1 = vld [vmem:[#allocation112_spill] sm:$0xff] }
 0x32d   : > { %v9522_v22 = vpop.f32.mrb[20].mxu1  ;;  %v14142_v13 = vadd.f32 %v9521_v52, %v6277_v26  ;;  %v9410_v8 = vpop.f32.mrb[20].mxu0 }
 0x32e   : > { %v9523_v23 = vpop.f32.mrb[21].mxu1  ;;  %v9411_v33 = vpop.f32.mrb[21].mxu0 }
 0x32f   : > { %v9524_v51 = vadd.f32 %v9523_v23, %v9522_v22  ;;  %v9525_v41 = vpop.f32.mrb[22].mxu1  ;;  %v9412_v31 = vadd.f32 %v9411_v33, %v9410_v8  ;;  %v9413_v28 = vpop.f32.mrb[22].mxu0 }
 0x330   : > { %v9526_v44 = vpop.f32.mrb[23].mxu1  ;;  %v9414_v19 = vpop.f32.mrb[23].mxu0 }
 0x331   : > { %v9527_v27 = vadd.f32 %v9526_v44, %v9525_v41  ;;  %v6282_v42 = vadd.f32 %v9412_v31, %v13914_v59  ;;  %v9415_v34 = vadd.f32 %v9414_v19, %v9413_v28  ;;  %v15295_v44 = vld [vmem:[#allocation113_spill] sm:$0xff] }
 0x332   : > { %9982 = vmatmul.mubr.bf16.vlgmr.msra.gmra.mrb[128].mxu1 %v15291_v36  ;;  %6884 = vmatmul.mubr.bf16.vlgmr.msra.gmra.mrb[128].mxu0 %v15292_v15  ;;  %v15296_v19 = vld [vmem:[#allocation93_spill] sm:$0xff]  ;;  %v15298_v36 = vld [vmem:[#allocation31_spill] sm:$0xff] }
 0x333   : > { %10014 = vmatpush3.bf16.msra.mxu1 %v13949_v37  ;;  %v6285_v58 = vadd.f32 %v9415_v34, %v13927_v62  ;;  %v14149_v52 = vadd.f32 %v9524_v51, %v6282_v42  ;;  %6891 = vmatprep.mubr.bf16.mxu0 %v15293_v60  ;;  %v15297_v42 = vld [vmem:[#allocation116_spill] sm:$0xff] }
 0x334   : > { %9985 = vmatprep.mubr.bf16.mxu1 %v15294_v1 }
 0x335   : > { %v9528_v55 = vpop.f32.mrb[24].mxu1  ;;  %v14153_v26 = vadd.f32 %v9527_v27, %v6285_v58  ;;  %v9416_v0 = vpop.f32.mrb[24].mxu0 }
 0x336   : > { %v9529_v59 = vpop.f32.mrb[25].mxu1  ;;  %v9417_v22 = vpop.f32.mrb[25].mxu0 }
 0x337   : > { %v9530_v8 = vadd.f32 %v9529_v59, %v9528_v55  ;;  %v9531_v23 = vpop.f32.mrb[26].mxu1  ;;  %v9418_v33 = vadd.f32 %v9417_v22, %v9416_v0  ;;  %v9419_v41 = vpop.f32.mrb[26].mxu0 }
 0x338   : > { %v9532_v31 = vpop.f32.mrb[27].mxu1  ;;  %v9420_v37 = vpop.f32.mrb[27].mxu0 }
 0x339   : > { %v9533_v28 = vadd.f32 %v9532_v31, %v9531_v23  ;;  %v6290_v62 = vadd.f32 %v9418_v33, %v13952_v35  ;;  %v9421_v51 = vadd.f32 %v9420_v37, %v9419_v41  ;;  %v15300_v37 = vld [vmem:[#allocation95_spill] sm:$0xff] }
 0x33a   : > { %9986 = vmatmul.mubr.bf16.gmra.mrb[132].mxu1 %v15295_v44  ;;  %6892 = vmatmul.mubr.bf16.gmra.mrb[132].mxu0 %v15296_v19  ;;  %v15302_v44 = vld [vmem:[#allocation40_spill] sm:$0xff] }
 0x33b   : > { %9989 = vmatprep.mubr.bf16.mxu1 %v15297_v42  ;;  %v6293_v27 = vadd.f32 %v9421_v51, %v13961_v14  ;;  %v14160_v34 = vadd.f32 %v9530_v8, %v6290_v62  ;;  %6899 = vmatprep.mubr.bf16.mxu0 %v15298_v36  ;;  %v15299_v8 = vld [vmem:[#allocation120_spill] sm:$0xff] }
 0x33c   : > { %v15301_v62 = vld [vmem:[#allocation124_spill] sm:$0xff] }
 0x33d   : > { %v9534_v15 = vpop.f32.mrb[28].mxu1  ;;  %v14163_v58 = vadd.f32 %v9533_v28, %v6293_v27  ;;  %v9422_v60 = vpop.f32.mrb[28].mxu0 }
 0x33e   : > { %v9535_v1 = vpop.f32.mrb[29].mxu1  ;;  %v9423_v55 = vpop.f32.mrb[29].mxu0 }
 0x33f   : > { %v9536_v35 = vadd.f32 %v9535_v1, %v9534_v15  ;;  %v9537_v0 = vpop.f32.mrb[30].mxu1  ;;  %v9424_v59 = vadd.f32 %v9423_v55, %v9422_v60  ;;  %v9425_v22 = vpop.f32.mrb[30].mxu0 }
 0x340   : > { %v9538_v23 = vpop.f32.mrb[31].mxu1  ;;  %v9426_v33 = vpop.f32.mrb[31].mxu0 }
 0x341   : > { %v9539_v41 = vadd.f32 %v9538_v23, %v9537_v0  ;;  %v6298_v31 = vadd.f32 %v9424_v59, %v13980_v49  ;;  %v9427_v14 = vadd.f32 %v9426_v33, %v9425_v22  ;;  %v15304_v33 = vld [vmem:[#allocation34_spill] sm:$0xff] }
 0x342   : > { %9990 = vmatmul.mubr.bf16.gmra.mrb[136].mxu1 %v15299_v8  ;;  %6900 = vmatmul.mubr.bf16.gmra.mrb[136].mxu0 %v15300_v37 }
 0x343   : > { %9993 = vmatprep.mubr.bf16.mxu1 %v15301_v62  ;;  %v6301_v28 = vadd.f32 %v9427_v14, %v13989_v9  ;;  %v14170_v51 = vadd.f32 %v9536_v35, %v6298_v31  ;;  %6907 = vmatprep.mubr.bf16.mxu0 %v15302_v44  ;;  %v15303_v35 = vld [vmem:[#allocation98_spill] sm:$0xff]  ;;  %v15305_v14 = vld [vmem:[#allocation49_spill] sm:$0xff] }
 0x345   : > { %v9540_v19 = vpop.f32.mrb[32].mxu1  ;;  %v14173_v42 = vadd.f32 %v9539_v41, %v6301_v28  ;;  %v9428_v27 = vpop.f32.mrb[32].mxu0 }
 0x346   : > { %v9541_v36 = vpop.f32.mrb[33].mxu1  ;;  %v9429_v15 = vpop.f32.mrb[33].mxu0 }
 0x347   : > { %v9542_v49 = vadd.f32 %v9541_v36, %v9540_v19  ;;  %v9543_v60 = vpop.f32.mrb[34].mxu1  ;;  %v9430_v1 = vadd.f32 %v9429_v15, %v9428_v27  ;;  %v9431_v55 = vpop.f32.mrb[34].mxu0 }
 0x348   : > { %v9544_v0 = vpop.f32.mrb[35].mxu1  ;;  %v9432_v59 = vpop.f32.mrb[35].mxu0 }
 0x349   : > { %v9545_v22 = vadd.f32 %v9544_v0, %v9543_v60  ;;  %v6306_v23 = vadd.f32 %v9430_v1, %v14008_v32  ;;  %v9433_v9 = vadd.f32 %v9432_v59, %v9431_v55  ;;  %v15307_v59 = vld [vmem:[#allocation58_spill] sm:$0xff] }
 0x34a   : > { %9994 = vmatmul.mubr.bf16.gmra.mrb[140].mxu1 %v15303_v35  ;;  %6908 = vmatmul.mubr.bf16.gmra.mrb[140].mxu0 %v15304_v33 }
 0x34b   : > { %9997 = vmatprep.mubr.bf16.mxu1 %v13820_v53  ;;  %v6309_v41 = vadd.f32 %v9433_v9, %v14014_v57  ;;  %v14180_v31 = vadd.f32 %v9542_v49, %v6306_v23  ;;  %6915 = vmatprep.mubr.bf16.mxu0 %v15305_v14  ;;  %v15306_v49 = vld [vmem:[#allocation42_spill] sm:$0xff] }
 0x34d   : > { %v9546_v8 = vpop.f32.mrb[36].mxu1  ;;  %v14183_v37 = vadd.f32 %v9545_v22, %v6309_v41  ;;  %v9434_v62 = vpop.f32.mrb[36].mxu0 }
 0x34e   : > { %v9547_v28 = vpop.f32.mrb[37].mxu1  ;;  %v9435_v44 = vpop.f32.mrb[37].mxu0 }
 0x34f   : > { %v9548_v32 = vadd.f32 %v9547_v28, %v9546_v8  ;;  %v9549_v19 = vpop.f32.mrb[38].mxu1  ;;  %v9436_v27 = vadd.f32 %v9435_v44, %v9434_v62  ;;  %v9437_v36 = vpop.f32.mrb[38].mxu0  ;;  %v15308_v44 = vld [vmem:[#allocation56_spill] sm:$0xff] }
 0x350   : > { %v9550_v15 = vpop.f32.mrb[39].mxu1  ;;  %v9438_v60 = vpop.f32.mrb[39].mxu0 }
 0x351   : > { %v9551_v1 = vadd.f32 %v9550_v15, %v9549_v19  ;;  %v6314_v53 = vadd.f32 %v9436_v27, %v14023_v20  ;;  %v9439_v57 = vadd.f32 %v9438_v60, %v9437_v36  ;;  %v15309_v27 = vld [vmem:[#allocation59_spill] sm:$0xff] }
 0x352   : > { %9998 = vmatmul.mubr.bf16.gmra.mrb[144].mxu1 %v13840_v50  ;;  %6916 = vmatmul.mubr.bf16.gmra.mrb[144].mxu0 %v15306_v49 }
 0x353   : > { %10001 = vmatprep.mubr.bf16.mxu1 %v13860_v11  ;;  %v6317_v55 = vadd.f32 %v9439_v57, %v14026_v47  ;;  %v14190_v0 = vadd.f32 %v9548_v32, %v6314_v53  ;;  %6923 = vmatprep.mubr.bf16.mxu0 %v15307_v59 }
 0x355   : > { %v9552_v22 = vpop.f32.mrb[40].mxu1  ;;  %v14193_v23 = vadd.f32 %v9551_v1, %v6317_v55  ;;  %v9440_v9 = vpop.f32.mrb[40].mxu0 }
 0x356   : > { %v9553_v35 = vpop.f32.mrb[41].mxu1  ;;  %v9441_v33 = vpop.f32.mrb[41].mxu0 }
 0x357   : > { %v9554_v20 = vadd.f32 %v9553_v35, %v9552_v22  ;;  %v9555_v41 = vpop.f32.mrb[42].mxu1  ;;  %v9442_v14 = vadd.f32 %v9441_v33, %v9440_v9  ;;  %v9443_v50 = vpop.f32.mrb[42].mxu0  ;;  %v15310_v35 = vld [vmem:[#allocation65_spill] sm:$0xff] }
 0x358   : > { %v9556_v8 = vpop.f32.mrb[43].mxu1  ;;  %v9444_v62 = vpop.f32.mrb[43].mxu0 }
 0x359   : > { %v9557_v28 = vadd.f32 %v9556_v8, %v9555_v41  ;;  %v6322_v11 = vadd.f32 %v9442_v14, %v14033_v29  ;;  %v9445_v47 = vadd.f32 %v9444_v62, %v9443_v50  ;;  %v15311_v41 = vld [vmem:[#allocation64_spill] sm:$0xff] }
 0x35a   : > { %10002 = vmatmul.mubr.bf16.gmra.mrb[148].mxu1 %v13878_v30  ;;  %6924 = vmatmul.mubr.bf16.gmra.mrb[148].mxu0 %v15308_v44 }
 0x35b   : > { %10005 = vmatprep.mubr.bf16.mxu1 %v15238_v40  ;;  %v6325_v32 = vadd.f32 %v9445_v47, %v14036_v4  ;;  %v14200_v19 = vadd.f32 %v9554_v20, %v6322_v11  ;;  %6931 = vmatprep.mubr.bf16.mxu0 %v15309_v27  ;;  %v10402_v47 = vld [vmem:[%s14062_s16] sm:$0xff]  }
 0x35d   : > { %v9558_v36 = vpop.f32.mrb[44].mxu1  ;;  %v14203_v15 = vadd.f32 %v9557_v28, %v6325_v32  ;;  %v9446_v60 = vpop.f32.mrb[44].mxu0 }
 0x35e   : > { %v9559_v1 = vpop.f32.mrb[45].mxu1  ;;  %v9447_v53 = vpop.f32.mrb[45].mxu0 }
 0x35f   : > { %v9560_v29 = vadd.f32 %v9559_v1, %v9558_v36  ;;  %v9561_v57 = vpop.f32.mrb[46].mxu1  ;;  %v9448_v49 = vadd.f32 %v9447_v53, %v9446_v60  ;;  %v9449_v30 = vpop.f32.mrb[46].mxu0  ;;  %v15312_v53 = vld [vmem:[#allocation99_spill] sm:$0xff] }
 0x360   : > { %v9562_v55 = vpop.f32.mrb[47].mxu1  ;;  %v9450_v59 = vpop.f32.mrb[47].mxu0 }
 0x361   : > { %v9563_v22 = vadd.f32 %v9562_v55, %v9561_v57  ;;  %v6330_v4 = vadd.f32 %v9448_v49, %v14043_v46  ;;  %v9451_v9 = vadd.f32 %v9450_v59, %v9449_v30 }
 0x362   : > { %10006 = vmatmul.mubr.bf16.gmra.mrb[152].mxu1 %v15238_v40  ;;  %6932 = vmatmul.mubr.bf16.gmra.mrb[152].mxu0 %v15310_v35  ;;  %v10404_v35 = vld [vmem:[%s14062_s16 + $0x10] sm:$0xff]  }
 0x363   : > { %10009 = vmatprep.mubr.bf16.mxu1 %v15238_v40  ;;  %v6333_v33 = vadd.f32 %v9451_v9, %v14046_v48  ;;  %v14210_v20 = vadd.f32 %v9560_v29, %v6330_v4  ;;  %6939 = vmatprep.mubr.bf16.mxu0 %v15311_v41 }
 0x365   : > { %v9564_v14 = vpop.f32.mrb[48].mxu1  ;;  %v14213_v50 = vadd.f32 %v9563_v22, %v6333_v33  ;;  %v9452_v8 = vpop.f32.mrb[48].mxu0 }
 0x366   : > { %v9565_v62 = vpop.f32.mrb[49].mxu1  ;;  %v9453_v28 = vpop.f32.mrb[49].mxu0 }
 0x367   : > { %v9566_v46 = vadd.f32 %v9565_v62, %v9564_v14  ;;  %v9567_v11 = vpop.f32.mrb[50].mxu1  ;;  %v9454_v44 = vadd.f32 %v9453_v28, %v9452_v8  ;;  %v9455_v32 = vpop.f32.mrb[50].mxu0  ;;  %v15313_v28 = vld [vmem:[#allocation8_spill] sm:$0xff] }
 0x368   : > { %v9568_v27 = vpop.f32.mrb[51].mxu1  ;;  %v9456_v36 = vpop.f32.mrb[51].mxu0 }
 0x369   : > { %v9569_v48 = vadd.f32 %v9568_v27, %v9567_v11  ;;  %v6338_v60 = vadd.f32 %v9454_v44, %v14053_v5  ;;  %v9457_v1 = vadd.f32 %v9456_v36, %v9455_v32  ;;  %v10403_v5 = vld [vmem:[%s14062_s16 + $0x8] sm:$0xff]  }
 0x36a   : > { %10010 = vmatmul.mubr.bf16.gmra.mrb[156].mxu1 %v15238_v40  ;;  %6940 = vmatmul.mubr.bf16.gmra.mrb[156].mxu0 %v15312_v53 }
 0x36b   : > { %10015 = vmatprep.mubr.msk.bf16.mxu1 %vm7286_vm7, %v10402_v47  ;;  %v6341_v29 = vadd.f32 %v9457_v1, %v14056_v39  ;;  %v14221_v57 = vadd.f32 %v9566_v46, %v6338_v60  ;;  %6947 = vmatprep.mubr.bf16.mxu0 %v13469_v61  ;;  %v10406_v1 = vld [vmem:[%s14062_s16 + $0x20] sm:$0xff]  }
 0x36d   : > { %v9570_v49 = vpop.f32.mrb[52].mxu1  ;;  %v14224_v30 = vadd.f32 %v9569_v48, %v6341_v29  ;;  %v9458_v55 = vpop.f32.mrb[52].mxu0 }
 0x36e   : > { %v9571_v59 = vpop.f32.mrb[53].mxu1  ;;  %v9459_v22 = vpop.f32.mrb[53].mxu0 }
 0x36f   : > { %v9572_v4 = vadd.f32 %v9571_v59, %v9570_v49  ;;  %v9573_v9 = vpop.f32.mrb[54].mxu1  ;;  %v9460_v33 = vadd.f32 %v9459_v22, %v9458_v55  ;;  %v9461_v41 = vpop.f32.mrb[54].mxu0 }
 0x370   : > { %v9574_v14 = vpop.f32.mrb[55].mxu1  ;;  %v9462_v8 = vpop.f32.mrb[55].mxu0 }
 0x371   : > { %v9575_v39 = vadd.f32 %v9574_v14, %v9573_v9  ;;  %v6346_v62 = vadd.f32 %v9460_v33, %v14069_v43  ;;  %v9463_v61 = vadd.f32 %v9462_v8, %v9461_v41  ;;  %v10405_v43 = vld [vmem:[%s14062_s16 + $0x18] sm:$0xff]  }
 0x372   : > { %10016 = vmatmul.mubr.msk.bf16.vlgmr.msra.gmra.mrb[128].mxu1 %vm7286_vm7, %v10403_v5  ;;  %6948 = vmatmul.mubr.bf16.gmra.mrb[160].mxu0 %v15313_v28  ;;  %v15314_v5 = vld [vmem:[#allocation13_spill] sm:$0xff] }
 0x373   : > { %10019 = vmatprep.mubr.msk.bf16.mxu1 %vm7286_vm7, %v10404_v35  ;;  %v6349_v46 = vadd.f32 %v9463_v61, %v14072_v17  ;;  %v14233_v11 = vadd.f32 %v9572_v4, %v6346_v62  ;;  %6955 = vmatprep.mubr.bf16.mxu0 %v13512_v63  ;;  %v10408_v62 = vld [vmem:[%s14062_s16 + $0x30] sm:$0xff]  }
 0x375   : > { %v9576_v47 = vpop.f32.mrb[56].mxu1  ;;  %v14236_v44 = vadd.f32 %v9575_v39, %v6349_v46  ;;  %v9464_v32 = vpop.f32.mrb[56].mxu0 }
 0x376   : > { %v9577_v27 = vpop.f32.mrb[57].mxu1  ;;  %v9465_v36 = vpop.f32.mrb[57].mxu0 }
 0x377   : > { %v9578_v48 = vadd.f32 %v9577_v27, %v9576_v47  ;;  %v9579_v60 = vpop.f32.mrb[58].mxu1  ;;  %v9466_v53 = vadd.f32 %v9465_v36, %v9464_v32  ;;  %v9467_v29 = vpop.f32.mrb[58].mxu0  ;;  %v15315_v27 = vld [vmem:[#allocation12_spill] sm:$0xff] }
 0x378   : > { %v9580_v49 = vpop.f32.mrb[59].mxu1  ;;  %v9468_v55 = vpop.f32.mrb[59].mxu0 }
 0x379   : > { %v9581_v17 = vadd.f32 %v9580_v49, %v9579_v60  ;;  %v6354_v59 = vadd.f32 %v9466_v53, %v14079_v54  ;;  %v9469_v63 = vadd.f32 %v9468_v55, %v9467_v29  ;;  %v10407_v54 = vld [vmem:[%s14062_s16 + $0x28] sm:$0xff]  }
 0x37a   : > { %10020 = vmatmul.mubr.msk.bf16.gmra.mrb[132].mxu1 %vm7286_vm7, %v10405_v43  ;;  %6956 = vmatmul.mubr.bf16.gmra.mrb[164].mxu0 %v15314_v5 }
 0x37b   : > { %10023 = vmatprep.mubr.msk.bf16.mxu1 %vm7286_vm7, %v10406_v1  ;;  %v6357_v22 = vadd.f32 %v9469_v63, %v14082_v45  ;;  %v14245_v4 = vadd.f32 %v9578_v48, %v6354_v59  ;;  %6963 = vmatprep.mubr.bf16.mxu0 %v13555_v25 }
 0x37d   : > { %v9582_v9 = vpop.f32.mrb[60].mxu1  ;;  %v14248_v35 = vadd.f32 %v9581_v17, %v6357_v22  ;;  %v9470_v33 = vpop.f32.mrb[60].mxu0  ;;  %v10410_v17 = vld [vmem:[%s14062_s16 + $0x40] sm:$0xff]  }
 0x37e   : > { %v9583_v41 = vpop.f32.mrb[61].mxu1  ;;  %v9471_v14 = vpop.f32.mrb[61].mxu0 }
 0x37f   : > { %v9584_v8 = vadd.f32 %v9583_v41, %v9582_v9  ;;  %v9585_v39 = vpop.f32.mrb[62].mxu1  ;;  %v9472_v61 = vadd.f32 %v9471_v14, %v9470_v33  ;;  %v9473_v28 = vpop.f32.mrb[62].mxu0  ;;  %v15316_v33 = vld [vmem:[#allocation106_spill] sm:$0xff] }
 0x380   : > { %v9586_v46 = vpop.f32.mrb[63].mxu1  ;;  %v9474_v47 = vpop.f32.mrb[63].mxu0 }
 0x381   : > { %v9587_v45 = vadd.f32 %v9586_v46, %v9585_v39  ;;  %v6362_v32 = vadd.f32 %v9472_v61, %v14089_v18  ;;  %v9475_v25 = vadd.f32 %v9474_v47, %v9473_v28  ;;  %v10409_v18 = vld [vmem:[%s14062_s16 + $0x38] sm:$0xff]   ;;  %v10412_v47 = vld [vmem:[%s14062_s16 + $0x50] sm:$0xff]  }
 0x382   : > { %10024 = vmatmul.mubr.msk.bf16.gmra.mrb[136].mxu1 %vm7286_vm7, %v10407_v54  ;;  %6964 = vmatmul.mubr.bf16.gmra.mrb[168].mxu0 %v15315_v27 }
 0x383   : > { %10027 = vmatprep.mubr.msk.bf16.mxu1 %vm7286_vm7, %v10408_v62  ;;  %v6365_v43 = vadd.f32 %v9475_v25, %v14092_v2  ;;  %v14257_v36 = vadd.f32 %v9584_v8, %v6362_v32  ;;  %6971 = vmatprep.mubr.bf16.mxu0 %v13589_v38 }
 0x385   : > { %v9716_v48 = vpop.f32.mrb[64].mxu1  ;;  %v14260_v60 = vadd.f32 %v9587_v45, %v6365_v43  ;;  %v9604_v1 = vpop.f32.mrb[64].mxu0 }
 0x386   : > { %v9717_v53 = vpop.f32.mrb[65].mxu1  ;;  %v9605_v29 = vpop.f32.mrb[65].mxu0 }
 0x387   : > { %v9718_v49 = vadd.f32 %v9717_v53, %v9716_v48  ;;  %v9719_v55 = vpop.f32.mrb[66].mxu1  ;;  %v9606_v59 = vadd.f32 %v9605_v29, %v9604_v1  ;;  %v9607_v63 = vpop.f32.mrb[66].mxu0 }
 0x388   : > { %v9720_v5 = vpop.f32.mrb[67].mxu1  ;;  %v9608_v22 = vpop.f32.mrb[67].mxu0 }
 0x389   : > { %v9721_v2 = vadd.f32 %v9720_v5, %v9719_v55  ;;  %v6564_v9 = vadd.f32 %v9606_v59, %v14099_v6  ;;  %v9609_v38 = vadd.f32 %v9608_v22, %v9607_v63  ;;  %v10411_v6 = vld [vmem:[%s14062_s16 + $0x48] sm:$0xff]   ;;  %v10414_v5 = vld [vmem:[%s14062_s16 + $0x60] sm:$0xff]  }
 0x38a   : > { %10028 = vmatmul.mubr.msk.bf16.gmra.mrb[140].mxu1 %vm7286_vm7, %v10409_v18  ;;  %6972 = vmatmul.mubr.bf16.gmra.mrb[172].mxu0 %v15316_v33 }
 0x38b   : > { %10031 = vmatprep.mubr.msk.bf16.mxu1 %vm7286_vm7, %v10410_v17  ;;  %v6567_v41 = vadd.f32 %v9609_v38, %v14102_v12  ;;  %v14269_v54 = vadd.f32 %v9718_v49, %v6564_v9  ;;  %6979 = vmatprep.mubr.bf16.mxu0 %v15238_v40 }
 0x38d   : > { %v9722_v14 = vpop.f32.mrb[68].mxu1  ;;  %v14272_v8 = vadd.f32 %v9721_v2, %v6567_v41  ;;  %v9610_v39 = vpop.f32.mrb[68].mxu0 }
 0x38e   : > { %v9723_v62 = vpop.f32.mrb[69].mxu1  ;;  %v9611_v61 = vpop.f32.mrb[69].mxu0 }
 0x38f   : > { %v9724_v28 = vadd.f32 %v9723_v62, %v9722_v14  ;;  %v9725_v46 = vpop.f32.mrb[70].mxu1  ;;  %v9612_v45 = vadd.f32 %v9611_v61, %v9610_v39  ;;  %v9613_v32 = vpop.f32.mrb[70].mxu0 }
 0x390   : > { %v9726_v25 = vpop.f32.mrb[71].mxu1  ;;  %v9614_v27 = vpop.f32.mrb[71].mxu0 }
 0x391   : > { %v9727_v12 = vadd.f32 %v9726_v25, %v9725_v46  ;;  %v6572_v43 = vadd.f32 %v9612_v45, %v14109_v24  ;;  %v9615_v48 = vadd.f32 %v9614_v27, %v9613_v32  ;;  %v10413_v24 = vld [vmem:[%s14062_s16 + $0x58] sm:$0xff]   ;;  %v10416_v32 = vld [vmem:[%s14062_s16 + $0x70] sm:$0xff]  }
 0x392   : > { %10032 = vmatmul.mubr.msk.bf16.gmra.mrb[144].mxu1 %vm7286_vm7, %v10411_v6  ;;  %6980 = vmatmul.mubr.bf16.gmra.mrb[176].mxu0 %v15238_v40 }
 0x393   : > { %10035 = vmatprep.mubr.msk.bf16.mxu1 %vm7286_vm7, %v10412_v47  ;;  %v6575_v1 = vadd.f32 %v9615_v48, %v14112_v21  ;;  %v14281_v53 = vadd.f32 %v9724_v28, %v6572_v43  ;;  %6987 = vmatprep.mubr.bf16.mxu0 %v15238_v40 }
 0x395   : > { %v9728_v18 = vpop.f32.mrb[72].mxu1  ;;  %v14284_v29 = vadd.f32 %v9727_v12, %v6575_v1  ;;  %v9616_v49 = vpop.f32.mrb[72].mxu0 }
 0x396   : > { %v9729_v55 = vpop.f32.mrb[73].mxu1  ;;  %v9617_v17 = vpop.f32.mrb[73].mxu0 }
 0x397   : > { %v9730_v59 = vadd.f32 %v9729_v55, %v9728_v18  ;;  %v9731_v63 = vpop.f32.mrb[74].mxu1  ;;  %v9618_v22 = vadd.f32 %v9617_v17, %v9616_v49  ;;  %v9619_v2 = vpop.f32.mrb[74].mxu0 }
 0x398   : > { %v9732_v9 = vpop.f32.mrb[75].mxu1  ;;  %v9620_v38 = vpop.f32.mrb[75].mxu0 }
 0x399   : > { %v9733_v21 = vadd.f32 %v9732_v9, %v9731_v63  ;;  %v6580_v33 = vadd.f32 %v9618_v22, %v14119_v3  ;;  %v9621_v41 = vadd.f32 %v9620_v38, %v9619_v2  ;;  %v10415_v3 = vld [vmem:[%s14062_s16 + $0x68] sm:$0xff]   ;;  %v10417_v63 = vld [vmem:[%s14062_s16 + $0x78] sm:$0xff]  }
 0x39a   : > { %10036 = vmatmul.mubr.msk.bf16.gmra.mrb[148].mxu1 %vm7286_vm7, %v10413_v24  ;;  %6988 = vmatmul.mubr.bf16.gmra.mrb[180].mxu0 %v15238_v40 }
 0x39b   : > { %10039 = vmatprep.mubr.msk.bf16.mxu1 %vm7286_vm7, %v10414_v5  ;;  %v6583_v14 = vadd.f32 %v9621_v41, %v14122_v7  ;;  %v14293_v39 = vadd.f32 %v9730_v59, %v6580_v33  ;;  %6995 = vmatprep.mubr.bf16.mxu0 %v15238_v40 }
 0x39d   : > { %v9734_v62 = vpop.f32.mrb[76].mxu1  ;;  %v14296_v6 = vadd.f32 %v9733_v21, %v6583_v14  ;;  %v9622_v61 = vpop.f32.mrb[76].mxu0 }
 0x39e   : > { %v9735_v28 = vpop.f32.mrb[77].mxu1  ;;  %v9623_v46 = vpop.f32.mrb[77].mxu0 }
 0x39f   : > { %v9736_v47 = vadd.f32 %v9735_v28, %v9734_v62  ;;  %v9737_v45 = vpop.f32.mrb[78].mxu1  ;;  %v9624_v25 = vadd.f32 %v9623_v46, %v9622_v61  ;;  %v9625_v27 = vpop.f32.mrb[78].mxu0 }
 0x3a0   : > { %v9738_v12 = vpop.f32.mrb[79].mxu1  ;;  %v9626_v43 = vpop.f32.mrb[79].mxu0 }
 0x3a1   : > { %v9739_v7 = vadd.f32 %v9738_v12, %v9737_v45  ;;  %v6588_v48 = vadd.f32 %v9624_v25, %v14129_v56  ;;  %v9627_v1 = vadd.f32 %v9626_v43, %v9625_v27 }
 0x3a2   : > { %10040 = vmatmul.mubr.msk.bf16.gmra.mrb[152].mxu1 %vm7286_vm7, %v10415_v3  ;;  %6996 = vmatmul.mubr.bf16.gmra.mrb[184].mxu0 %v15238_v40 }
 0x3a3   : > { %10043 = vmatprep.mubr.msk.bf16.mxu1 %vm7286_vm7, %v10416_v32  ;;  %v6591_v18 = vadd.f32 %v9627_v1, %v14132_v16  ;;  %v14305_v49 = vadd.f32 %v9736_v47, %v6588_v48  ;;  %7003 = vmatprep.mubr.bf16.mxu0 %v15238_v40 }
 0x3a5   : > { %v9740_v55 = vpop.f32.mrb[80].mxu1  ;;  %v14308_v24 = vadd.f32 %v9739_v7, %v6591_v18  ;;  %v9628_v17 = vpop.f32.mrb[80].mxu0 }
 0x3a6   : > { %v9741_v59 = vpop.f32.mrb[81].mxu1  ;;  %v9629_v56 = vpop.f32.mrb[81].mxu0 }
 0x3a7   : > { %v9742_v5 = vadd.f32 %v9741_v59, %v9740_v55  ;;  %v9743_v22 = vpop.f32.mrb[82].mxu1  ;;  %v9630_v2 = vadd.f32 %v9629_v56, %v9628_v17  ;;  %v9631_v9 = vpop.f32.mrb[82].mxu0 }
 0x3a8   : > { %v9744_v38 = vpop.f32.mrb[83].mxu1  ;;  %v9632_v21 = vpop.f32.mrb[83].mxu0 }
 0x3a9   : > { %v9745_v33 = vadd.f32 %v9744_v38, %v9743_v22  ;;  %v6596_v16 = vadd.f32 %v9630_v2, %v14139_v10  ;;  %v9633_v41 = vadd.f32 %v9632_v21, %v9631_v9 }
 0x3aa   : > { %10044 = vmatmul.mubr.msk.bf16.gmra.mrb[156].mxu1 %vm7286_vm7, %v10417_v63  ;;  %7004 = vmatmul.mubr.bf16.gmra.mrb[188].mxu0 %v15238_v40 }
 0x3ab   : > { %v6599_v14 = vadd.f32 %v9633_v41, %v14142_v13  ;;  %v14315_v62 = vadd.f32 %v9742_v5, %v6596_v16 }
 0x3ad   : > { %v9746_v61 = vpop.f32.mrb[84].mxu1  ;;  %v14317_v28 = vadd.f32 %v9745_v33, %v6599_v14  ;;  %v9634_v3 = vpop.f32.mrb[84].mxu0 }
 0x3ae   : > { %v9747_v46 = vpop.f32.mrb[85].mxu1  ;;  %v9635_v47 = vpop.f32.mrb[85].mxu0 }
 0x3af   : > { %v9748_v45 = vadd.f32 %v9747_v46, %v9746_v61  ;;  %v9749_v32 = vpop.f32.mrb[86].mxu1  ;;  %v9636_v25 = vadd.f32 %v9635_v47, %v9634_v3  ;;  %v9637_v27 = vpop.f32.mrb[86].mxu0 }
 0x3b0   : > { %v9750_v10 = vpop.f32.mrb[87].mxu1  ;;  %v9638_v12 = vpop.f32.mrb[87].mxu0 }
 0x3b1   : > { %v9751_v43 = vadd.f32 %v9750_v10, %v9749_v32  ;;  %v6604_v7 = vadd.f32 %v9636_v25, %v14149_v52  ;;  %v9639_v40 = vadd.f32 %v9638_v12, %v9637_v27 }
 0x3b3   : > { %v6607_v13 = vadd.f32 %v9639_v40, %v14153_v26  ;;  %v14321_v48 = vadd.f32 %v9748_v45, %v6604_v7 }
 0x3b5   : > { %v9752_v1 = vpop.f32.mrb[88].mxu1  ;;  %v14323_v18 = vadd.f32 %v9751_v43, %v6607_v13  ;;  %v9640_v55 = vpop.f32.mrb[88].mxu0 }
 0x3b6   : > { %v9753_v17 = vpop.f32.mrb[89].mxu1  ;;  %v9641_v59 = vpop.f32.mrb[89].mxu0 }
 0x3b7   : > { %v9754_v63 = vadd.f32 %v9753_v17, %v9752_v1  ;;  %v9755_v56 = vpop.f32.mrb[90].mxu1  ;;  %v9642_v5 = vadd.f32 %v9641_v59, %v9640_v55  ;;  %v9643_v22 = vpop.f32.mrb[90].mxu0 }
 0x3b8   : > { %v9756_v2 = vpop.f32.mrb[91].mxu1  ;;  %v9644_v9 = vpop.f32.mrb[91].mxu0 }
 0x3b9   : > { %v9757_v38 = vadd.f32 %v9756_v2, %v9755_v56  ;;  %v6612_v52 = vadd.f32 %v9642_v5, %v14160_v34  ;;  %v9645_v21 = vadd.f32 %v9644_v9, %v9643_v22 }
 0x3bb   : > { %v6615_v26 = vadd.f32 %v9645_v21, %v14163_v58  ;;  %v14327_v33 = vadd.f32 %v9754_v63, %v6612_v52 }
 0x3bd   : > { %v9758_v16 = vpop.f32.mrb[92].mxu1  ;;  %v14329_v41 = vadd.f32 %v9757_v38, %v6615_v26  ;;  %v9646_v14 = vpop.f32.mrb[92].mxu0 }
 0x3be   : > { %v9759_v61 = vpop.f32.mrb[93].mxu1  ;;  %v9647_v3 = vpop.f32.mrb[93].mxu0 }
 0x3bf   : > { %v9760_v46 = vadd.f32 %v9759_v61, %v9758_v16  ;;  %v9761_v47 = vpop.f32.mrb[94].mxu1  ;;  %v9648_v45 = vadd.f32 %v9647_v3, %v9646_v14  ;;  %v9649_v32 = vpop.f32.mrb[94].mxu0 }
 0x3c0   : > { %v9762_v25 = vpop.f32.mrb[95].mxu1  ;;  %v9650_v27 = vpop.f32.mrb[95].mxu0 }
 0x3c1   : > { %v9763_v10 = vadd.f32 %v9762_v25, %v9761_v47  ;;  %v6620_v34 = vadd.f32 %v9648_v45, %v14170_v51  ;;  %v9651_v12 = vadd.f32 %v9650_v27, %v9649_v32 }
 0x3c3   : > { %v6623_v58 = vadd.f32 %v9651_v12, %v14173_v42  ;;  %v14333_v43 = vadd.f32 %v9760_v46, %v6620_v34 }
 0x3c5   : > { %v9764_v7 = vpop.f32.mrb[96].mxu1  ;;  %v14335_v40 = vadd.f32 %v9763_v10, %v6623_v58  ;;  %v9652_v13 = vpop.f32.mrb[96].mxu0 }
 0x3c6   : > { %v9765_v1 = vpop.f32.mrb[97].mxu1  ;;  %v9653_v55 = vpop.f32.mrb[97].mxu0 }
 0x3c7   : > { %v9766_v17 = vadd.f32 %v9765_v1, %v9764_v7  ;;  %v9767_v59 = vpop.f32.mrb[98].mxu1  ;;  %v9654_v63 = vadd.f32 %v9653_v55, %v9652_v13  ;;  %v9655_v56 = vpop.f32.mrb[98].mxu0 }
 0x3c8   : > { %v9768_v5 = vpop.f32.mrb[99].mxu1  ;;  %v9656_v22 = vpop.f32.mrb[99].mxu0 }
 0x3c9   : > { %v9769_v2 = vadd.f32 %v9768_v5, %v9767_v59  ;;  %v6628_v51 = vadd.f32 %v9654_v63, %v14180_v31  ;;  %v9657_v9 = vadd.f32 %v9656_v22, %v9655_v56 }
 0x3cb   : > { %v6631_v42 = vadd.f32 %v9657_v9, %v14183_v37  ;;  %v14339_v38 = vadd.f32 %v9766_v17, %v6628_v51 }
 0x3cd   : > { %v9770_v52 = vpop.f32.mrb[100].mxu1  ;;  %v14341_v21 = vadd.f32 %v9769_v2, %v6631_v42  ;;  %v9658_v26 = vpop.f32.mrb[100].mxu0 }
 0x3ce   : > { %v9771_v16 = vpop.f32.mrb[101].mxu1  ;;  %v9659_v14 = vpop.f32.mrb[101].mxu0 }
 0x3cf   : > { %v9772_v61 = vadd.f32 %v9771_v16, %v9770_v52  ;;  %v9773_v3 = vpop.f32.mrb[102].mxu1  ;;  %v9660_v46 = vadd.f32 %v9659_v14, %v9658_v26  ;;  %v9661_v47 = vpop.f32.mrb[102].mxu0 }
 0x3d0   : > { %v9774_v45 = vpop.f32.mrb[103].mxu1  ;;  %v9662_v32 = vpop.f32.mrb[103].mxu0 }
 0x3d1   : > { %v9775_v25 = vadd.f32 %v9774_v45, %v9773_v3  ;;  %v6636_v31 = vadd.f32 %v9660_v46, %v14190_v0  ;;  %v9663_v27 = vadd.f32 %v9662_v32, %v9661_v47 }
 0x3d3   : > { %v6639_v37 = vadd.f32 %v9663_v27, %v14193_v23  ;;  %v14345_v10 = vadd.f32 %v9772_v61, %v6636_v31 }
 0x3d5   : > { %v9776_v34 = vpop.f32.mrb[104].mxu1  ;;  %v14347_v12 = vadd.f32 %v9775_v25, %v6639_v37  ;;  %v9664_v58 = vpop.f32.mrb[104].mxu0 }
 0x3d6   : > { %v9777_v7 = vpop.f32.mrb[105].mxu1  ;;  %v9665_v13 = vpop.f32.mrb[105].mxu0 }
 0x3d7   : > { %v9778_v1 = vadd.f32 %v9777_v7, %v9776_v34  ;;  %v9779_v55 = vpop.f32.mrb[106].mxu1  ;;  %v9666_v17 = vadd.f32 %v9665_v13, %v9664_v58  ;;  %v9667_v59 = vpop.f32.mrb[106].mxu0 }
 0x3d8   : > { %v9780_v63 = vpop.f32.mrb[107].mxu1  ;;  %v9668_v56 = vpop.f32.mrb[107].mxu0 }
 0x3d9   : > { %v9781_v5 = vadd.f32 %v9780_v63, %v9779_v55  ;;  %v6644_v0 = vadd.f32 %v9666_v17, %v14200_v19  ;;  %v9669_v22 = vadd.f32 %v9668_v56, %v9667_v59 }
 0x3db   : > { %v6647_v23 = vadd.f32 %v9669_v22, %v14203_v15  ;;  %v14351_v2 = vadd.f32 %v9778_v1, %v6644_v0 }
 0x3dd   : > { %v9782_v51 = vpop.f32.mrb[108].mxu1  ;;  %v14353_v9 = vadd.f32 %v9781_v5, %v6647_v23  ;;  %v9670_v42 = vpop.f32.mrb[108].mxu0 }
 0x3de   : > { %v9783_v52 = vpop.f32.mrb[109].mxu1  ;;  %v9671_v26 = vpop.f32.mrb[109].mxu0 }
 0x3df   : > { %v9784_v16 = vadd.f32 %v9783_v52, %v9782_v51  ;;  %v9785_v14 = vpop.f32.mrb[110].mxu1  ;;  %v9672_v61 = vadd.f32 %v9671_v26, %v9670_v42  ;;  %v9673_v3 = vpop.f32.mrb[110].mxu0 }
 0x3e0   : > { %v9786_v46 = vpop.f32.mrb[111].mxu1  ;;  %v9674_v47 = vpop.f32.mrb[111].mxu0 }
 0x3e1   : > { %v9787_v45 = vadd.f32 %v9786_v46, %v9785_v14  ;;  %v6652_v19 = vadd.f32 %v9672_v61, %v14210_v20  ;;  %v9675_v32 = vadd.f32 %v9674_v47, %v9673_v3 }
 0x3e3   : > { %v6655_v15 = vadd.f32 %v9675_v32, %v14213_v50  ;;  %v14357_v25 = vadd.f32 %v9784_v16, %v6652_v19 }
 0x3e5   : > { %v9788_v31 = vpop.f32.mrb[112].mxu1  ;;  %v14359_v27 = vadd.f32 %v9787_v45, %v6655_v15  ;;  %v9676_v37 = vpop.f32.mrb[112].mxu0 }
 0x3e6   : > { %v9789_v34 = vpop.f32.mrb[113].mxu1  ;;  %v9677_v58 = vpop.f32.mrb[113].mxu0 }
 0x3e7   : > { %v9790_v7 = vadd.f32 %v9789_v34, %v9788_v31  ;;  %v9791_v13 = vpop.f32.mrb[114].mxu1  ;;  %v9678_v1 = vadd.f32 %v9677_v58, %v9676_v37  ;;  %v9679_v55 = vpop.f32.mrb[114].mxu0 }
 0x3e8   : > { %v9792_v17 = vpop.f32.mrb[115].mxu1  ;;  %v9680_v59 = vpop.f32.mrb[115].mxu0 }
 0x3e9   : > { %v9793_v63 = vadd.f32 %v9792_v17, %v9791_v13  ;;  %v6660_v20 = vadd.f32 %v9678_v1, %v14221_v57  ;;  %v9681_v56 = vadd.f32 %v9680_v59, %v9679_v55 }
 0x3eb   : > { %v6663_v50 = vadd.f32 %v9681_v56, %v14224_v30  ;;  %v14363_v5 = vadd.f32 %v9790_v7, %v6660_v20 }
 0x3ed   : > { %v9794_v0 = vpop.f32.mrb[116].mxu1  ;;  %v14365_v22 = vadd.f32 %v9793_v63, %v6663_v50  ;;  %v9682_v23 = vpop.f32.mrb[116].mxu0 }
 0x3ee   : > { %v9795_v51 = vpop.f32.mrb[117].mxu1  ;;  %v9683_v42 = vpop.f32.mrb[117].mxu0 }
 0x3ef   : > { %v9796_v52 = vadd.f32 %v9795_v51, %v9794_v0  ;;  %v9797_v26 = vpop.f32.mrb[118].mxu1  ;;  %v9684_v16 = vadd.f32 %v9683_v42, %v9682_v23  ;;  %v9685_v14 = vpop.f32.mrb[118].mxu0 }
 0x3f0   : > { %v9798_v61 = vpop.f32.mrb[119].mxu1  ;;  %v9686_v3 = vpop.f32.mrb[119].mxu0 }
 0x3f1   : > { %v9799_v46 = vadd.f32 %v9798_v61, %v9797_v26  ;;  %v6668_v57 = vadd.f32 %v9684_v16, %v14233_v11  ;;  %v9687_v47 = vadd.f32 %v9686_v3, %v9685_v14 }
 0x3f3   : > { %v6671_v30 = vadd.f32 %v9687_v47, %v14236_v44  ;;  %v14369_v45 = vadd.f32 %v9796_v52, %v6668_v57 }
 0x3f5   : > { %v9800_v19 = vpop.f32.mrb[120].mxu1  ;;  %v14371_v32 = vadd.f32 %v9799_v46, %v6671_v30  ;;  %v9688_v15 = vpop.f32.mrb[120].mxu0 }
 0x3f6   : > { %v9801_v31 = vpop.f32.mrb[121].mxu1  ;;  %v9689_v37 = vpop.f32.mrb[121].mxu0 }
 0x3f7   : > { %v9802_v34 = vadd.f32 %v9801_v31, %v9800_v19  ;;  %v9803_v58 = vpop.f32.mrb[122].mxu1  ;;  %v9690_v7 = vadd.f32 %v9689_v37, %v9688_v15  ;;  %v9691_v13 = vpop.f32.mrb[122].mxu0 }
 0x3f8   : > { %v9804_v1 = vpop.f32.mrb[123].mxu1  ;;  %v9692_v55 = vpop.f32.mrb[123].mxu0 }
 0x3f9   : > { %v9805_v17 = vadd.f32 %v9804_v1, %v9803_v58  ;;  %v6676_v11 = vadd.f32 %v9690_v7, %v14245_v4  ;;  %v9693_v59 = vadd.f32 %v9692_v55, %v9691_v13 }
 0x3fb   : > { %v6679_v44 = vadd.f32 %v9693_v59, %v14248_v35  ;;  %v14375_v63 = vadd.f32 %v9802_v34, %v6676_v11 }
 0x3fd   : > { %v9806_v20 = vpop.f32.mrb[124].mxu1  ;;  %v14377_v56 = vadd.f32 %v9805_v17, %v6679_v44  ;;  %v9694_v50 = vpop.f32.mrb[124].mxu0 }
 0x3fe   : > { %v9807_v0 = vpop.f32.mrb[125].mxu1  ;;  %v9695_v23 = vpop.f32.mrb[125].mxu0 }
 0x3ff   : > { %v9808_v51 = vadd.f32 %v9807_v0, %v9806_v20  ;;  %v9809_v42 = vpop.f32.mrb[126].mxu1  ;;  %v9696_v52 = vadd.f32 %v9695_v23, %v9694_v50  ;;  %v9697_v26 = vpop.f32.mrb[126].mxu0 }
 0x400   : > { %v9810_v16 = vpop.f32.mrb[127].mxu1  ;;  %v9698_v14 = vpop.f32.mrb[127].mxu0 }
 0x401   : > { %v9811_v61 = vadd.f32 %v9810_v16, %v9809_v42  ;;  %v6684_v4 = vadd.f32 %v9696_v52, %v14257_v36  ;;  %v9699_v3 = vadd.f32 %v9698_v14, %v9697_v26 }
 0x403   : > { %v6687_v35 = vadd.f32 %v9699_v3, %v14260_v60  ;;  %v14381_v46 = vadd.f32 %v9808_v51, %v6684_v4 }
 0x405   : > { %v14383_v57 = vadd.f32 %v9811_v61, %v6687_v35  ;;  %v9828_v47 = vpop.f32.mrb[128].mxu0 }
 0x406   : > { %v9829_v30 = vpop.f32.mrb[129].mxu0 }
 0x407   : > { %v9830_v19 = vadd.f32 %v9829_v30, %v9828_v47  ;;  %v9831_v15 = vpop.f32.mrb[130].mxu0 }
 0x408   : > { %v9832_v31 = vpop.f32.mrb[131].mxu0 }
 0x409   : > { %v9833_v37 = vadd.f32 %v9832_v31, %v9831_v15  ;;  %v14386_v34 = vadd.f32 %v9830_v19, %v14269_v54 }
 0x40b   : > { %v14389_v58 = vadd.f32 %v9833_v37, %v14272_v8 }
 0x40d   : > { %v9834_v36 = vpop.f32.mrb[132].mxu0 }
 0x40e   : > { %v9835_v7 = vpop.f32.mrb[133].mxu0 }
 0x40f   : > { %v9836_v13 = vadd.f32 %v9835_v7, %v9834_v36  ;;  %v9837_v60 = vpop.f32.mrb[134].mxu0 }
 0x410   : > { %v9838_v1 = vpop.f32.mrb[135].mxu0 }
 0x411   : > { %v9839_v55 = vadd.f32 %v9838_v1, %v9837_v60  ;;  %v6894_v17 = vadd.f32 %v9836_v13, %v14281_v53 }
 0x413   : > { %v6897_v11 = vadd.f32 %v9839_v55, %v14284_v29 }
 0x415   : > { %v9840_v59 = vpop.f32.mrb[136].mxu0 }
 0x416   : > { %v9841_v44 = vpop.f32.mrb[137].mxu0 }
 0x417   : > { %v9842_v20 = vadd.f32 %v9841_v44, %v9840_v59  ;;  %v9843_v50 = vpop.f32.mrb[138].mxu0 }
 0x418   : > { %v9844_v0 = vpop.f32.mrb[139].mxu0 }
 0x419   : > { %v9845_v54 = vadd.f32 %v9844_v0, %v9843_v50  ;;  %v14394_v23 = vadd.f32 %v9842_v20, %v14293_v39 }
 0x41b   : > { %v14397_v8 = vadd.f32 %v9845_v54, %v14296_v6 }
 0x41d   : > { %v9846_v51 = vpop.f32.mrb[140].mxu0 }
 0x41e   : > { %v9847_v42 = vpop.f32.mrb[141].mxu0 }
 0x41f   : > { %v9848_v52 = vadd.f32 %v9847_v42, %v9846_v51  ;;  %v9849_v26 = vpop.f32.mrb[142].mxu0 }
 0x420   : > { %v9850_v16 = vpop.f32.mrb[143].mxu0 }
 0x421   : > { %v9851_v53 = vadd.f32 %v9850_v16, %v9849_v26  ;;  %v6910_v29 = vadd.f32 %v9848_v52, %v14305_v49 }
 0x423   : > { %v14401_v14 = vadd.f32 %v9851_v53, %v14308_v24 }
 0x425   : > { %v9852_v61 = vpop.f32.mrb[144].mxu0 }
 0x426   : > { %v9853_v4 = vpop.f32.mrb[145].mxu0 }
 0x427   : > { %v9854_v3 = vadd.f32 %v9853_v4, %v9852_v61  ;;  %v9855_v35 = vpop.f32.mrb[146].mxu0 }
 0x428   : > { %v9856_v39 = vpop.f32.mrb[147].mxu0 }
 0x429   : > { %v9857_v47 = vadd.f32 %v9856_v39, %v9855_v35  ;;  %v14404_v6 = vadd.f32 %v9854_v3, %v14315_v62 }
 0x42b   : > { %v14407_v30 = vadd.f32 %v9857_v47, %v14317_v28 }
 0x42d   : > { %v9858_v19 = vpop.f32.mrb[148].mxu0 }
 0x42e   : > { %v9859_v15 = vpop.f32.mrb[149].mxu0 }
 0x42f   : > { %v9860_v31 = vadd.f32 %v9859_v15, %v9858_v19  ;;  %v9861_v37 = vpop.f32.mrb[150].mxu0 }
 0x430   : > { %v9862_v49 = vpop.f32.mrb[151].mxu0 }
 0x431   : > { %v9863_v36 = vadd.f32 %v9862_v49, %v9861_v37  ;;  %v14410_v24 = vadd.f32 %v9860_v31, %v14321_v48 }
 0x433   : > { %v14413_v7 = vadd.f32 %v9863_v36, %v14323_v18 }
 0x435   : > { %v9864_v13 = vpop.f32.mrb[152].mxu0 }
 0x436   : > { %v9865_v60 = vpop.f32.mrb[153].mxu0 }
 0x437   : > { %v9866_v62 = vadd.f32 %v9865_v60, %v9864_v13  ;;  %v9867_v1 = vpop.f32.mrb[154].mxu0 }
 0x438   : > { %v9868_v55 = vpop.f32.mrb[155].mxu0 }
 0x439   : > { %v9869_v28 = vadd.f32 %v9868_v55, %v9867_v1  ;;  %v14416_v59 = vadd.f32 %v9866_v62, %v14327_v33 }
 0x43b   : > { %v14419_v44 = vadd.f32 %v9869_v28, %v14329_v41 }
 0x43d   : > { %v9870_v20 = vpop.f32.mrb[156].mxu0 }
 0x43e   : > { %v9871_v50 = vpop.f32.mrb[157].mxu0 }
 0x43f   : > { %v9872_v48 = vadd.f32 %v9871_v50, %v9870_v20  ;;  %v9873_v0 = vpop.f32.mrb[158].mxu0 }
 0x440   : > { %v9874_v54 = vpop.f32.mrb[159].mxu0 }
 0x441   : > { %v9875_v18 = vadd.f32 %v9874_v54, %v9873_v0  ;;  %v14422_v51 = vadd.f32 %v9872_v48, %v14333_v43 }
 0x443   : > { %v14426_v42 = vadd.f32 %v9875_v18, %v14335_v40 }
 0x445   : > { %v10017_v52 = vpop.f32.mrb[128].mxu1  ;;  %v9876_v26 = vpop.f32.mrb[160].mxu0 }
 0x446   : > { %v10047_v33 = vadd.f32 %v10017_v52, %v6894_v17  ;;  %v7373_v16 = vpop.f32.mrb[129].mxu1  ;;  %v9877_v41 = vpop.f32.mrb[161].mxu0 }
 0x447   : > { %v10048_v53 = vadd.f32 %v7373_v16, %v14386_v34  ;;  %v10018_v43 = vpop.f32.mrb[130].mxu1  ;;  %v9878_v40 = vadd.f32 %v9877_v41, %v9876_v26  ;;  %v9879_v4 = vpop.f32.mrb[162].mxu0 }
 0x448   : > { %v7534_v61 = vmax.f32 %v10047_v33, 0.0  ;;  %v10049_v3 = vadd.f32 %v10018_v43, %v6897_v11  ;;  %v7376_v35 = vpop.f32.mrb[131].mxu1  ;;  %v9880_v39 = vpop.f32.mrb[163].mxu0 }
 0x449   : > { %v7532_v17 = vmax.f32 %v10048_v53, 0.0  ;;  %v10050_v47 = vadd.f32 %v7376_v35, %v14389_v58  ;;  %v9881_v15 = vadd.f32 %v9880_v39, %v9879_v4  ;;  %v14437_v31 = vadd.f32 %v9878_v40, %v14339_v38 }
 0x44a   : > { %7566 = vst [vmem:[%s14431_s24 + $0x10] sm:$0xff] %v7534_v61  ;;  %v7535_v19 = vmax.f32 %v10049_v3, 0.0 }
 0x44b   : > { %7564 = vst [vmem:[%s14431_s24] sm:$0xff] %v7532_v17  ;;  %v7533_v34 = vmax.f32 %v10050_v47, 0.0  ;;  %v14442_v37 = vadd.f32 %v9881_v15, %v14341_v21 }
 0x44c   : > { %7567 = vst [vmem:[%s14431_s24 + $0x18] sm:$0xff] %v7535_v19 }
 0x44d   : > { %7565 = vst [vmem:[%s14431_s24 + $0x8] sm:$0xff] %v7533_v34  ;;  %v10021_v11 = vpop.f32.mrb[132].mxu1  ;;  %v9882_v49 = vpop.f32.mrb[164].mxu0 }
 0x44e   : > { %v10051_v36 = vadd.f32 %v10021_v11, %v6910_v29  ;;  %v7389_v13 = vpop.f32.mrb[133].mxu1  ;;  %v9883_v58 = vpop.f32.mrb[165].mxu0 }
 0x44f   : > { %v10052_v60 = vadd.f32 %v7389_v13, %v14394_v23  ;;  %v10022_v62 = vpop.f32.mrb[134].mxu1  ;;  %v9884_v1 = vadd.f32 %v9883_v58, %v9882_v49  ;;  %v9885_v55 = vpop.f32.mrb[166].mxu0 }
 0x450   : > { %v7538_v38 = vmax.f32 %v10051_v36, 0.0  ;;  %v10053_v28 = vadd.f32 %v10022_v62, %v14401_v14  ;;  %v7392_v21 = vpop.f32.mrb[135].mxu1  ;;  %v9886_v50 = vpop.f32.mrb[167].mxu0 }
 0x451   : > { %v7536_v20 = vmax.f32 %v10052_v60, 0.0  ;;  %v10054_v48 = vadd.f32 %v7392_v21, %v14397_v8  ;;  %v9887_v0 = vadd.f32 %v9886_v50, %v9885_v55  ;;  %v6958_v54 = vadd.f32 %v9884_v1, %v14345_v10 }
 0x452   : > { %7570 = vst [vmem:[%s14431_s24 + $0x30] sm:$0xff] %v7538_v38  ;;  %v7539_v29 = vmax.f32 %v10053_v28, 0.0 }
 0x453   : > { %7568 = vst [vmem:[%s14431_s24 + $0x20] sm:$0xff] %v7536_v20  ;;  %v7537_v23 = vmax.f32 %v10054_v48, 0.0  ;;  %v6961_v18 = vadd.f32 %v9887_v0, %v14347_v12 }
 0x454   : > { %7571 = vst [vmem:[%s14431_s24 + $0x38] sm:$0xff] %v7539_v29 }
 0x455   : > { %7569 = vst [vmem:[%s14431_s24 + $0x28] sm:$0xff] %v7537_v23  ;;  %v10025_v52 = vpop.f32.mrb[136].mxu1  ;;  %v9888_v26 = vpop.f32.mrb[168].mxu0 }
 0x456   : > { %v10055_v14 = vadd.f32 %v10025_v52, %v14410_v24  ;;  %v7405_v33 = vpop.f32.mrb[137].mxu1  ;;  %v9889_v16 = vpop.f32.mrb[169].mxu0 }
 0x457   : > { %v10056_v8 = vadd.f32 %v7405_v33, %v14404_v6  ;;  %v10026_v41 = vpop.f32.mrb[138].mxu1  ;;  %v9890_v10 = vadd.f32 %v9889_v16, %v9888_v26  ;;  %v9891_v43 = vpop.f32.mrb[170].mxu0 }
 0x458   : > { %v7542_v53 = vmax.f32 %v10055_v14, 0.0  ;;  %v10057_v61 = vadd.f32 %v10026_v41, %v14413_v7  ;;  %v7408_v12 = vpop.f32.mrb[139].mxu1  ;;  %v9892_v4 = vpop.f32.mrb[171].mxu0 }
 0x459   : > { %v7540_v40 = vmax.f32 %v10056_v8, 0.0  ;;  %v10058_v3 = vadd.f32 %v7408_v12, %v14407_v30  ;;  %v9893_v35 = vadd.f32 %v9892_v4, %v9891_v43  ;;  %v6966_v17 = vadd.f32 %v9890_v10, %v14351_v2 }
 0x45a   : > { %7574 = vst [vmem:[%s14431_s24 + $0x50] sm:$0xff] %v7542_v53  ;;  %v7543_v24 = vmax.f32 %v10057_v61, 0.0 }
 0x45b   : > { %7572 = vst [vmem:[%s14431_s24 + $0x40] sm:$0xff] %v7540_v40  ;;  %v7541_v6 = vmax.f32 %v10058_v3, 0.0  ;;  %v14463_v39 = vadd.f32 %v9893_v35, %v14353_v9 }
 0x45c   : > { %7575 = vst [vmem:[%s14431_s24 + $0x58] sm:$0xff] %v7543_v24 }
 0x45d   : > { %7573 = vst [vmem:[%s14431_s24 + $0x48] sm:$0xff] %v7541_v6  ;;  %v10029_v47 = vpop.f32.mrb[140].mxu1  ;;  %v9894_v7 = vpop.f32.mrb[172].mxu0 }
 0x45e   : > { %v10059_v19 = vadd.f32 %v10029_v47, %v14422_v51  ;;  %v7421_v15 = vpop.f32.mrb[141].mxu1  ;;  %v9895_v30 = vpop.f32.mrb[173].mxu0 }
 0x45f   : > { %v10060_v34 = vadd.f32 %v7421_v15, %v14416_v59  ;;  %v10030_v11 = vpop.f32.mrb[142].mxu1  ;;  %v9896_v49 = vadd.f32 %v9895_v30, %v9894_v7  ;;  %v9897_v36 = vpop.f32.mrb[174].mxu0 }
 0x460   : > { %v7546_v2 = vmax.f32 %v10059_v19, 0.0  ;;  %v10061_v9 = vadd.f32 %v10030_v11, %v14426_v42  ;;  %v7424_v13 = vpop.f32.mrb[143].mxu1  ;;  %v9898_v60 = vpop.f32.mrb[175].mxu0 }
 0x461   : > { %v7544_v58 = vmax.f32 %v10060_v34, 0.0  ;;  %v10062_v62 = vadd.f32 %v7424_v13, %v14419_v44  ;;  %v9899_v38 = vadd.f32 %v9898_v60, %v9897_v36  ;;  %v6974_v1 = vadd.f32 %v9896_v49, %v14357_v25 }
 0x462   : > { %7578 = vst [vmem:[%s14431_s24 + $0x70] sm:$0xff] %v7546_v2  ;;  %v7547_v51 = vmax.f32 %v10061_v9, 0.0 }
 0x463   : > { %7576 = vst [vmem:[%s14431_s24 + $0x60] sm:$0xff] %v7544_v58  ;;  %v7545_v59 = vmax.f32 %v10062_v62, 0.0  ;;  %v6977_v55 = vadd.f32 %v9899_v38, %v14359_v27 }
 0x464   : > { %7579 = vst [vmem:[%s14431_s24 + $0x78] sm:$0xff] %v7547_v51 }
 0x465   : > { %7577 = vst [vmem:[%s14431_s24 + $0x68] sm:$0xff] %v7545_v59  ;;  %v10033_v28 = vpop.f32.mrb[144].mxu1  ;;  %v9900_v21 = vpop.f32.mrb[176].mxu0 }
 0x466   : > { %v10063_v42 = vadd.f32 %v10033_v28, %v6958_v54  ;;  %v7437_v20 = vpop.f32.mrb[145].mxu1  ;;  %v9901_v50 = vpop.f32.mrb[177].mxu0 }
 0x467   : > { %v10064_v44 = vadd.f32 %v7437_v20, %v14437_v31  ;;  %v10034_v48 = vpop.f32.mrb[146].mxu1  ;;  %v9902_v25 = vadd.f32 %v9901_v50, %v9900_v21  ;;  %v9903_v0 = vpop.f32.mrb[178].mxu0 }
 0x468   : > { %v7550_v29 = vmax.f32 %v10063_v42, 0.0  ;;  %v10065_v23 = vadd.f32 %v10034_v48, %v6961_v18  ;;  %v7440_v52 = vpop.f32.mrb[147].mxu1  ;;  %v9904_v27 = vpop.f32.mrb[179].mxu0 }
 0x469   : > { %v7548_v26 = vmax.f32 %v10064_v44, 0.0  ;;  %v10066_v14 = vadd.f32 %v7440_v52, %v14442_v37  ;;  %v9905_v54 = vadd.f32 %v9904_v27, %v9903_v0  ;;  %v6982_v16 = vadd.f32 %v9902_v25, %v14363_v5 }
 0x46a   : > { %7582 = vst [vmem:[%s14431_s24 + $0x90] sm:$0xff] %v7550_v29  ;;  %v7551_v33 = vmax.f32 %v10065_v23, 0.0 }
 0x46b   : > { %7580 = vst [vmem:[%s14431_s24 + $0x80] sm:$0xff] %v7548_v26  ;;  %v7549_v8 = vmax.f32 %v10066_v14, 0.0  ;;  %v6985_v31 = vadd.f32 %v9905_v54, %v14365_v22 }
 0x46c   : > { %7583 = vst [vmem:[%s14431_s24 + $0x98] sm:$0xff] %v7551_v33 }
 0x46d   : > { %7581 = vst [vmem:[%s14431_s24 + $0x88] sm:$0xff] %v7549_v8  ;;  %v10037_v41 = vpop.f32.mrb[148].mxu1  ;;  %v9906_v53 = vpop.f32.mrb[180].mxu0 }
 0x46e   : > { %v10067_v18 = vadd.f32 %v10037_v41, %v6974_v1  ;;  %v7453_v10 = vpop.f32.mrb[149].mxu1  ;;  %v9907_v43 = vpop.f32.mrb[181].mxu0 }
 0x46f   : > { %v10068_v61 = vadd.f32 %v7453_v10, %v6966_v17  ;;  %v10038_v37 = vpop.f32.mrb[150].mxu1  ;;  %v9908_v40 = vadd.f32 %v9907_v43, %v9906_v53  ;;  %v9909_v5 = vpop.f32.mrb[182].mxu0 }
 0x470   : > { %v7554_v12 = vmax.f32 %v10067_v18, 0.0  ;;  %v10069_v4 = vadd.f32 %v10038_v37, %v6977_v55  ;;  %v7456_v3 = vpop.f32.mrb[151].mxu1  ;;  %v9910_v35 = vpop.f32.mrb[183].mxu0 }
 0x471   : > { %v7552_v24 = vmax.f32 %v10068_v61, 0.0  ;;  %v10070_v22 = vadd.f32 %v7456_v3, %v14463_v39  ;;  %v9911_v47 = vadd.f32 %v9910_v35, %v9909_v5  ;;  %v6990_v7 = vadd.f32 %v9908_v40, %v14369_v45 }
 0x472   : > { %7586 = vst [vmem:[%s14431_s24 + $0xb0] sm:$0xff] %v7554_v12  ;;  %v7555_v6 = vmax.f32 %v10069_v4, 0.0 }
 0x473   : > { %7584 = vst [vmem:[%s14431_s24 + $0xa0] sm:$0xff] %v7552_v24  ;;  %v7553_v19 = vmax.f32 %v10070_v22, 0.0  ;;  %v6993_v17 = vadd.f32 %v9911_v47, %v14371_v32 }
 0x474   : > { %7587 = vst [vmem:[%s14431_s24 + $0xb8] sm:$0xff] %v7555_v6 }
 0x475   : > { %7585 = vst [vmem:[%s14431_s24 + $0xa8] sm:$0xff] %v7553_v19  ;;  %v10041_v15 = vpop.f32.mrb[152].mxu1  ;;  %v9912_v30 = vpop.f32.mrb[184].mxu0 }
 0x476   : > { %v10071_v34 = vadd.f32 %v10041_v15, %v6990_v7  ;;  %v7469_v11 = vpop.f32.mrb[153].mxu1  ;;  %v9913_v2 = vpop.f32.mrb[185].mxu0 }
 0x477   : > { %v10072_v49 = vadd.f32 %v7469_v11, %v6982_v16  ;;  %v10042_v39 = vpop.f32.mrb[154].mxu1  ;;  %v9914_v9 = vadd.f32 %v9913_v2, %v9912_v30  ;;  %v9915_v45 = vpop.f32.mrb[186].mxu0 }
 0x478   : > { %v7558_v36 = vmax.f32 %v10071_v34, 0.0  ;;  %v10073_v13 = vadd.f32 %v10042_v39, %v6993_v17  ;;  %v7472_v58 = vpop.f32.mrb[155].mxu1  ;;  %v9916_v62 = vpop.f32.mrb[187].mxu0 }
 0x479   : > { %v7556_v60 = vmax.f32 %v10072_v49, 0.0  ;;  %v10074_v32 = vadd.f32 %v7472_v58, %v6985_v31  ;;  %v9917_v38 = vadd.f32 %v9916_v62, %v9915_v45  ;;  %v6998_v1 = vadd.f32 %v9914_v9, %v14375_v63 }
 0x47a   : > { %7590 = vst [vmem:[%s14431_s24 + $0xd0] sm:$0xff] %v7558_v36  ;;  %v7559_v51 = vmax.f32 %v10073_v13, 0.0 }
 0x47b   : > { %7588 = vst [vmem:[%s14431_s24 + $0xc0] sm:$0xff] %v7556_v60  ;;  %v7557_v59 = vmax.f32 %v10074_v32, 0.0  ;;  %v7001_v55 = vadd.f32 %v9917_v38, %v14377_v56 }
 0x47c   : > { %7591 = vst [vmem:[%s14431_s24 + $0xd8] sm:$0xff] %v7559_v51 }
 0x47d   : > { %7589 = vst [vmem:[%s14431_s24 + $0xc8] sm:$0xff] %v7557_v59  ;;  %v10045_v28 = vpop.f32.mrb[156].mxu1  ;;  %v9918_v21 = vpop.f32.mrb[188].mxu0 }
 0x47e   : > { %v7485_v42 = vpop.f32.mrb[157].mxu1  ;;  %v9919_v20 = vpop.f32.mrb[189].mxu0 }
 0x47f   : > { %v10076_v50 = vadd.f32 %v7485_v42, %v6998_v1  ;;  %v10046_v44 = vpop.f32.mrb[158].mxu1  ;;  %v9920_v48 = vadd.f32 %v9919_v20, %v9918_v21  ;;  %v9921_v29 = vpop.f32.mrb[190].mxu0 }
 0x480   : > { %v7488_v25 = vpop.f32.mrb[159].mxu1  ;;  %v9922_v0 = vpop.f32.mrb[191].mxu0 }
 0x481   : > { %v7560_v63 = vmax.f32 %v10076_v50, 0.0  ;;  %v10078_v23 = vadd.f32 %v7488_v25, %v7001_v55  ;;  %v7006_v52 = vadd.f32 %v9920_v48, %v14381_v46  ;;  %v9923_v56 = vadd.f32 %v9922_v0, %v9921_v29 }
 0x483   : > { %7592 = vst [vmem:[%s14431_s24 + $0xe0] sm:$0xff] %v7560_v63  ;;  %v7561_v26 = vmax.f32 %v10078_v23, 0.0  ;;  %v10075_v27 = vadd.f32 %v10045_v28, %v7006_v52  ;;  %v7009_v14 = vadd.f32 %v9923_v56, %v14383_v57 }
 0x485   : > { %7593 = vst [vmem:[%s14431_s24 + $0xe8] sm:$0xff] %v7561_v26  ;;  %v7562_v33 = vmax.f32 %v10075_v27, 0.0  ;;  %v10077_v54 = vadd.f32 %v10046_v44, %v7009_v14 }
 0x487   : > { %7594 = vst [vmem:[%s14431_s24 + $0xf0] sm:$0xff] %v7562_v33  ;;  %v7563_v16 = vmax.f32 %v10077_v54, 0.0 }
 0x489   : > { %7595 = vst [vmem:[%s14431_s24 + $0xf8] sm:$0xff] %v7563_v16 }
 0x48a PF: > { %s15_s20 = sadd.s32 1, %s10465_s20   ;;  %s15317_s18 = smov %s10461_s19 }
 0x48b   : > { %p12_p5 = scmp.ge.s32.totalorder %s15_s20, 4   ;;  %s15318_s19 = smov %s15320_s21 }
 0x48d   :  { %14 = sbr.rel (!%p12_p5) target bundleno = 2 (0x2), region = 84 }

</bundles_post_ra>
